<compile_context>
chip_gen: v5e
topology: v5e:2x2
jax: 0.10.0
libtpu: 0.0.40
codegen_flags: <defaults>
</compile_context>

<pallas_src>
import functools
import numpy as np
import jax
import jax.numpy as jnp
from jax import lax
from jax.experimental import pallas as pl
from jax.experimental.pallas import tpu as pltpu

N_QUBITS = 7          # "size" of the Ansatz  -> D = 128 (lane aligned)
LAYERS = 1
DIM = 2 ** N_QUBITS

I2 = np.eye(2, dtype=np.complex64)
PAULI = {
    "X": np.array([[0, 1], [1, 0]], dtype=np.complex64),
    "Y": np.array([[0, -1j], [1j, 0]], dtype=np.complex64),
    "Z": np.array([[1, 0], [0, -1]], dtype=np.complex64),
}


# ----------------------------------------------------------------------------
# Circuit construction (glue; mirrors Ansatz.construct_qcircuit_ZZ_X_Z with
# CFG.extra_ancilla = False) and gate -> full-unitary expansion (numpy).
# ----------------------------------------------------------------------------
def build_gate_list_zz_x_z(size: int, layers: int):
    gates = []
    for _ in range(layers):
        for i in range(size):
            gates.append(("X", i, None))
            gates.append(("Z", i, None))
        for i in range(size - 1):
            gates.append(("ZZ", i, i + 1))
    return gates


def _embed(op: np.ndarray, q0: int, n: int) -> np.ndarray:
    """kron(I_{2^q0}, op, I_rest); qubit 0 is the most-significant factor."""
    k = int(round(np.log2(op.shape[0])))
    left = np.eye(2 ** q0, dtype=np.complex64)
    right = np.eye(2 ** (n - q0 - k), dtype=np.complex64)
    return np.kron(np.kron(left, op), right).astype(np.complex64)


def gate_unitary(name: str, q1: int, angle: float, n: int) -> np.ndarray:
    c = np.complex64(np.cos(angle / 2.0))
    s = np.complex64(np.sin(angle / 2.0))
    if name in ("X", "Y", "Z"):
        u = c * I2 - 1j * s * PAULI[name]
        return _embed(u, q1, n)
    # two-qubit Pauli-product rotation on adjacent qubits (q1, q1+1)
    p = np.kron(PAULI[name[0]], PAULI[name[1]])
    u = c * np.eye(4, dtype=np.complex64) - 1j * s * p
    return _embed(u, q1, n)


def gates_to_block_form(full_gates: np.ndarray) -> np.ndarray:
    """(G, D, D) complex -> (G, 2D, 2D) real block form [[re, -im], [im, re]]."""
    re = full_gates.real.astype(np.float32)
    im = full_gates.imag.astype(np.float32)
    top = np.concatenate([re, -im], axis=2)
    bot = np.concatenate([im, re], axis=2)
    return np.concatenate([top, bot], axis=1)          # (G, 2D, 2D) float32


# ----------------------------------------------------------------------------
# Pallas kernel: whole chain in one invocation, one MXU matmul per gate.
# ----------------------------------------------------------------------------
def chain_kernel(gates_ref, out_ref):
    # gates_ref: (G, 2D, 2D) f32 block-form gates, fully resident in VMEM.
    # out_ref:   (2D, D)     f32 = [U_re ; U_im].
    num_gates = gates_ref.shape[0]
    d = out_ref.shape[1]

    # acc0 = identity applied to gate 0  ->  [g0_re ; g0_im]  (left half columns)
    acc0 = gates_ref[0][:, :d]

    def body(g, acc):
        # [[gr, -gi],[gi, gr]] @ [ar; ai] = [gr@ar - gi@ai ; gi@ar + gr@ai]
        return jnp.dot(gates_ref[g], acc, preferred_element_type=jnp.float32)

    acc = lax.fori_loop(1, num_gates, body, acc0, unroll=True)
    out_ref[...] = acc


def ansatz_forward(gates_blk: jnp.ndarray) -> jnp.ndarray:
    """gates_blk: (G, 2D, 2D) float32 -> (D, D) complex64 circuit unitary."""
    G, D2, _ = gates_blk.shape
    D = D2 // 2

    out = pl.pallas_call(
        chain_kernel,
        out_shape=jax.ShapeDtypeStruct((D2, D), jnp.float32),
        grid_spec=pltpu.PrefetchScalarGridSpec(
            num_scalar_prefetch=0,
            grid=(1,),
            in_specs=[pl.BlockSpec((G, D2, D2), lambda i: (0, 0, 0))],
            out_specs=pl.BlockSpec((D2, D), lambda i: (0, 0)),
        ),
        compiler_params=pltpu.CompilerParams(
            dimension_semantics=("arbitrary",),
            vmem_limit_bytes=32 << 20,
        ),
        cost_estimate=pl.CostEstimate(
            flops=2 * (G - 1) * D2 * D2 * D,
            transcendentals=0,
            bytes_accessed=G * D2 * D2 * 4 + D2 * D * 4,
        ),
    )(gates_blk)

    out_re = out[:D]
    out_im = out[D:]
    return out_re.astype(jnp.complex64) + 1j * out_im.astype(jnp.complex64)


if __name__ == "__main__":
    # ---- deterministic "parameter init" (randomize_gates_in_qc equivalent) ----
    gate_list = build_gate_list_zz_x_z(N_QUBITS, LAYERS)
    num_gates = len(gate_list)                       # 7*2 + 6 = 20 for n=7, L=1
    key = jax.random.PRNGKey(0)
    angles = np.asarray(
        jax.random.uniform(key, (num_gates,), minval=0.0, maxval=2.0 * np.pi),
        dtype=np.float64,
    )

    # Expand each parametrized gate to its full (D, D) unitary (glue).
    full_gates = np.stack(
        [gate_unitary(name, q1, angles[k], N_QUBITS)
         for k, (name, q1, _q2) in enumerate(gate_list)],
        axis=0,
    )  # (G, D, D) complex64

    gates_blk = jnp.asarray(gates_to_block_form(full_gates))   # (G, 2D, 2D) f32

    # ---- run the Pallas kernel (the forward pass) ----
    unitary = ansatz_forward(gates_blk)
    unitary = jax.block_until_ready(unitary)

    # ---- reference check (pure numpy complex chain product) ----
    ref = functools.reduce(lambda acc, g: g @ acc, full_gates[1:], full_gates[0])
    np.testing.assert_allclose(np.asarray(unitary), ref, atol=1e-4, rtol=1e-4)

    # sanity: result should be (approximately) unitary
    eye = np.asarray(unitary) @ np.asarray(unitary).conj().T
    np.testing.assert_allclose(eye, np.eye(DIM, dtype=np.complex64), atol=1e-3)

    print("KERNEL_OK")
</pallas_src>

<mosaic_0001>
module attributes {stable_mosaic.version = 11 : i64} {
  func.func @chain_kernel(%arg0: i32, %arg1: memref<20x256x256xf32, #tpu.memory_space<vmem>>, %arg2: memref<256x128xf32, #tpu.memory_space<vmem>>) attributes {dimension_semantics = [#tpu.dimension_semantics<arbitrary>], iteration_bounds = array<i64: 1>, scalar_prefetch = 0 : i64, scratch_operands = 0 : i64, tpu.core_type = #tpu.core_type<tc>, window_params = [{pipeline_mode = #tpu.pipeline_mode<synchronous>, transform_indices = @transform_0, window_bounds = array<i64: 20, 256, 256>}, {pipeline_mode = #tpu.pipeline_mode<synchronous>, transform_indices = @transform_1, window_bounds = array<i64: 256, 128>}]} {
    %c0 = arith.constant 0 : index
    %c0_0 = arith.constant 0 : index
    %c0_1 = arith.constant 0 : index
    %0 = vector.load %arg1[%c0, %c0_0, %c0_1] : memref<20x256x256xf32, #tpu.memory_space<vmem>>, vector<1x256x256xf32>
    %1 = vector.shape_cast %0 : vector<1x256x256xf32> to vector<256x256xf32>
    %2 = vector.extract_strided_slice %1 {offsets = [0, 0], sizes = [256, 128], strides = [1, 1]} : vector<256x256xf32> to vector<256x128xf32>
    %c1_i32 = arith.constant 1 : i32
    %3 = arith.index_cast %c1_i32 : i32 to index
    %c0_2 = arith.constant 0 : index
    %c0_3 = arith.constant 0 : index
    %4 = vector.load %arg1[%3, %c0_2, %c0_3] : memref<20x256x256xf32, #tpu.memory_space<vmem>>, vector<1x256x256xf32>
    %5 = vector.shape_cast %4 : vector<1x256x256xf32> to vector<256x256xf32>
    %cst = arith.constant dense<0.000000e+00> : vector<256x128xf32>
    %6 = tpu.matmul %5, %2, %cst {dimension_numbers = #tpu.dot_dimension_numbers<[1], [0], [0], [1], [0, 0, 1, 1], [], []>} : vector<256x256xf32>, vector<256x128xf32>, vector<256x128xf32> -> vector<256x128xf32>
    %c2_i32 = arith.constant 2 : i32
    %7 = arith.index_cast %c2_i32 : i32 to index
    %c0_4 = arith.constant 0 : index
    %c0_5 = arith.constant 0 : index
    %8 = vector.load %arg1[%7, %c0_4, %c0_5] : memref<20x256x256xf32, #tpu.memory_space<vmem>>, vector<1x256x256xf32>
    %9 = vector.shape_cast %8 : vector<1x256x256xf32> to vector<256x256xf32>
    %cst_6 = arith.constant dense<0.000000e+00> : vector<256x128xf32>
    %10 = tpu.matmul %9, %6, %cst_6 {dimension_numbers = #tpu.dot_dimension_numbers<[1], [0], [0], [1], [0, 0, 1, 1], [], []>} : vector<256x256xf32>, vector<256x128xf32>, vector<256x128xf32> -> vector<256x128xf32>
    %c3_i32 = arith.constant 3 : i32
    %11 = arith.index_cast %c3_i32 : i32 to index
    %c0_7 = arith.constant 0 : index
    %c0_8 = arith.constant 0 : index
    %12 = vector.load %arg1[%11, %c0_7, %c0_8] : memref<20x256x256xf32, #tpu.memory_space<vmem>>, vector<1x256x256xf32>
    %13 = vector.shape_cast %12 : vector<1x256x256xf32> to vector<256x256xf32>
    %cst_9 = arith.constant dense<0.000000e+00> : vector<256x128xf32>
    %14 = tpu.matmul %13, %10, %cst_9 {dimension_numbers = #tpu.dot_dimension_numbers<[1], [0], [0], [1], [0, 0, 1, 1], [], []>} : vector<256x256xf32>, vector<256x128xf32>, vector<256x128xf32> -> vector<256x128xf32>
    %c4_i32 = arith.constant 4 : i32
    %15 = arith.index_cast %c4_i32 : i32 to index
    %c0_10 = arith.constant 0 : index
    %c0_11 = arith.constant 0 : index
    %16 = vector.load %arg1[%15, %c0_10, %c0_11] : memref<20x256x256xf32, #tpu.memory_space<vmem>>, vector<1x256x256xf32>
    %17 = vector.shape_cast %16 : vector<1x256x256xf32> to vector<256x256xf32>
    %cst_12 = arith.constant dense<0.000000e+00> : vector<256x128xf32>
    %18 = tpu.matmul %17, %14, %cst_12 {dimension_numbers = #tpu.dot_dimension_numbers<[1], [0], [0], [1], [0, 0, 1, 1], [], []>} : vector<256x256xf32>, vector<256x128xf32>, vector<256x128xf32> -> vector<256x128xf32>
    %c5_i32 = arith.constant 5 : i32
    %19 = arith.index_cast %c5_i32 : i32 to index
    %c0_13 = arith.constant 0 : index
    %c0_14 = arith.constant 0 : index
    %20 = vector.load %arg1[%19, %c0_13, %c0_14] : memref<20x256x256xf32, #tpu.memory_space<vmem>>, vector<1x256x256xf32>
    %21 = vector.shape_cast %20 : vector<1x256x256xf32> to vector<256x256xf32>
    %cst_15 = arith.constant dense<0.000000e+00> : vector<256x128xf32>
    %22 = tpu.matmul %21, %18, %cst_15 {dimension_numbers = #tpu.dot_dimension_numbers<[1], [0], [0], [1], [0, 0, 1, 1], [], []>} : vector<256x256xf32>, vector<256x128xf32>, vector<256x128xf32> -> vector<256x128xf32>
    %c6_i32 = arith.constant 6 : i32
    %23 = arith.index_cast %c6_i32 : i32 to index
    %c0_16 = arith.constant 0 : index
    %c0_17 = arith.constant 0 : index
    %24 = vector.load %arg1[%23, %c0_16, %c0_17] : memref<20x256x256xf32, #tpu.memory_space<vmem>>, vector<1x256x256xf32>
    %25 = vector.shape_cast %24 : vector<1x256x256xf32> to vector<256x256xf32>
    %cst_18 = arith.constant dense<0.000000e+00> : vector<256x128xf32>
    %26 = tpu.matmul %25, %22, %cst_18 {dimension_numbers = #tpu.dot_dimension_numbers<[1], [0], [0], [1], [0, 0, 1, 1], [], []>} : vector<256x256xf32>, vector<256x128xf32>, vector<256x128xf32> -> vector<256x128xf32>
    %c7_i32 = arith.constant 7 : i32
    %27 = arith.index_cast %c7_i32 : i32 to index
    %c0_19 = arith.constant 0 : index
    %c0_20 = arith.constant 0 : index
    %28 = vector.load %arg1[%27, %c0_19, %c0_20] : memref<20x256x256xf32, #tpu.memory_space<vmem>>, vector<1x256x256xf32>
    %29 = vector.shape_cast %28 : vector<1x256x256xf32> to vector<256x256xf32>
    %cst_21 = arith.constant dense<0.000000e+00> : vector<256x128xf32>
    %30 = tpu.matmul %29, %26, %cst_21 {dimension_numbers = #tpu.dot_dimension_numbers<[1], [0], [0], [1], [0, 0, 1, 1], [], []>} : vector<256x256xf32>, vector<256x128xf32>, vector<256x128xf32> -> vector<256x128xf32>
    %c8_i32 = arith.constant 8 : i32
    %31 = arith.index_cast %c8_i32 : i32 to index
    %c0_22 = arith.constant 0 : index
    %c0_23 = arith.constant 0 : index
    %32 = vector.load %arg1[%31, %c0_22, %c0_23] : memref<20x256x256xf32, #tpu.memory_space<vmem>>, vector<1x256x256xf32>
    %33 = vector.shape_cast %32 : vector<1x256x256xf32> to vector<256x256xf32>
    %cst_24 = arith.constant dense<0.000000e+00> : vector<256x128xf32>
    %34 = tpu.matmul %33, %30, %cst_24 {dimension_numbers = #tpu.dot_dimension_numbers<[1], [0], [0], [1], [0, 0, 1, 1], [], []>} : vector<256x256xf32>, vector<256x128xf32>, vector<256x128xf32> -> vector<256x128xf32>
    %c9_i32 = arith.constant 9 : i32
    %35 = arith.index_cast %c9_i32 : i32 to index
    %c0_25 = arith.constant 0 : index
    %c0_26 = arith.constant 0 : index
    %36 = vector.load %arg1[%35, %c0_25, %c0_26] : memref<20x256x256xf32, #tpu.memory_space<vmem>>, vector<1x256x256xf32>
    %37 = vector.shape_cast %36 : vector<1x256x256xf32> to vector<256x256xf32>
    %cst_27 = arith.constant dense<0.000000e+00> : vector<256x128xf32>
    %38 = tpu.matmul %37, %34, %cst_27 {dimension_numbers = #tpu.dot_dimension_numbers<[1], [0], [0], [1], [0, 0, 1, 1], [], []>} : vector<256x256xf32>, vector<256x128xf32>, vector<256x128xf32> -> vector<256x128xf32>
    %c10_i32 = arith.constant 10 : i32
    %39 = arith.index_cast %c10_i32 : i32 to index
    %c0_28 = arith.constant 0 : index
    %c0_29 = arith.constant 0 : index
    %40 = vector.load %arg1[%39, %c0_28, %c0_29] : memref<20x256x256xf32, #tpu.memory_space<vmem>>, vector<1x256x256xf32>
    %41 = vector.shape_cast %40 : vector<1x256x256xf32> to vector<256x256xf32>
    %cst_30 = arith.constant dense<0.000000e+00> : vector<256x128xf32>
    %42 = tpu.matmul %41, %38, %cst_30 {dimension_numbers = #tpu.dot_dimension_numbers<[1], [0], [0], [1], [0, 0, 1, 1], [], []>} : vector<256x256xf32>, vector<256x128xf32>, vector<256x128xf32> -> vector<256x128xf32>
    %c11_i32 = arith.constant 11 : i32
    %43 = arith.index_cast %c11_i32 : i32 to index
    %c0_31 = arith.constant 0 : index
    %c0_32 = arith.constant 0 : index
    %44 = vector.load %arg1[%43, %c0_31, %c0_32] : memref<20x256x256xf32, #tpu.memory_space<vmem>>, vector<1x256x256xf32>
    %45 = vector.shape_cast %44 : vector<1x256x256xf32> to vector<256x256xf32>
    %cst_33 = arith.constant dense<0.000000e+00> : vector<256x128xf32>
    %46 = tpu.matmul %45, %42, %cst_33 {dimension_numbers = #tpu.dot_dimension_numbers<[1], [0], [0], [1], [0, 0, 1, 1], [], []>} : vector<256x256xf32>, vector<256x128xf32>, vector<256x128xf32> -> vector<256x128xf32>
    %c12_i32 = arith.constant 12 : i32
    %47 = arith.index_cast %c12_i32 : i32 to index
    %c0_34 = arith.constant 0 : index
    %c0_35 = arith.constant 0 : index
    %48 = vector.load %arg1[%47, %c0_34, %c0_35] : memref<20x256x256xf32, #tpu.memory_space<vmem>>, vector<1x256x256xf32>
    %49 = vector.shape_cast %48 : vector<1x256x256xf32> to vector<256x256xf32>
    %cst_36 = arith.constant dense<0.000000e+00> : vector<256x128xf32>
    %50 = tpu.matmul %49, %46, %cst_36 {dimension_numbers = #tpu.dot_dimension_numbers<[1], [0], [0], [1], [0, 0, 1, 1], [], []>} : vector<256x256xf32>, vector<256x128xf32>, vector<256x128xf32> -> vector<256x128xf32>
    %c13_i32 = arith.constant 13 : i32
    %51 = arith.index_cast %c13_i32 : i32 to index
    %c0_37 = arith.constant 0 : index
    %c0_38 = arith.constant 0 : index
    %52 = vector.load %arg1[%51, %c0_37, %c0_38] : memref<20x256x256xf32, #tpu.memory_space<vmem>>, vector<1x256x256xf32>
    %53 = vector.shape_cast %52 : vector<1x256x256xf32> to vector<256x256xf32>
    %cst_39 = arith.constant dense<0.000000e+00> : vector<256x128xf32>
    %54 = tpu.matmul %53, %50, %cst_39 {dimension_numbers = #tpu.dot_dimension_numbers<[1], [0], [0], [1], [0, 0, 1, 1], [], []>} : vector<256x256xf32>, vector<256x128xf32>, vector<256x128xf32> -> vector<256x128xf32>
    %c14_i32 = arith.constant 14 : i32
    %55 = arith.index_cast %c14_i32 : i32 to index
    %c0_40 = arith.constant 0 : index
    %c0_41 = arith.constant 0 : index
    %56 = vector.load %arg1[%55, %c0_40, %c0_41] : memref<20x256x256xf32, #tpu.memory_space<vmem>>, vector<1x256x256xf32>
    %57 = vector.shape_cast %56 : vector<1x256x256xf32> to vector<256x256xf32>
    %cst_42 = arith.constant dense<0.000000e+00> : vector<256x128xf32>
    %58 = tpu.matmul %57, %54, %cst_42 {dimension_numbers = #tpu.dot_dimension_numbers<[1], [0], [0], [1], [0, 0, 1, 1], [], []>} : vector<256x256xf32>, vector<256x128xf32>, vector<256x128xf32> -> vector<256x128xf32>
    %c15_i32 = arith.constant 15 : i32
    %59 = arith.index_cast %c15_i32 : i32 to index
    %c0_43 = arith.constant 0 : index
    %c0_44 = arith.constant 0 : index
    %60 = vector.load %arg1[%59, %c0_43, %c0_44] : memref<20x256x256xf32, #tpu.memory_space<vmem>>, vector<1x256x256xf32>
    %61 = vector.shape_cast %60 : vector<1x256x256xf32> to vector<256x256xf32>
    %cst_45 = arith.constant dense<0.000000e+00> : vector<256x128xf32>
    %62 = tpu.matmul %61, %58, %cst_45 {dimension_numbers = #tpu.dot_dimension_numbers<[1], [0], [0], [1], [0, 0, 1, 1], [], []>} : vector<256x256xf32>, vector<256x128xf32>, vector<256x128xf32> -> vector<256x128xf32>
    %c16_i32 = arith.constant 16 : i32
    %63 = arith.index_cast %c16_i32 : i32 to index
    %c0_46 = arith.constant 0 : index
    %c0_47 = arith.constant 0 : index
    %64 = vector.load %arg1[%63, %c0_46, %c0_47] : memref<20x256x256xf32, #tpu.memory_space<vmem>>, vector<1x256x256xf32>
    %65 = vector.shape_cast %64 : vector<1x256x256xf32> to vector<256x256xf32>
    %cst_48 = arith.constant dense<0.000000e+00> : vector<256x128xf32>
    %66 = tpu.matmul %65, %62, %cst_48 {dimension_numbers = #tpu.dot_dimension_numbers<[1], [0], [0], [1], [0, 0, 1, 1], [], []>} : vector<256x256xf32>, vector<256x128xf32>, vector<256x128xf32> -> vector<256x128xf32>
    %c17_i32 = arith.constant 17 : i32
    %67 = arith.index_cast %c17_i32 : i32 to index
    %c0_49 = arith.constant 0 : index
    %c0_50 = arith.constant 0 : index
    %68 = vector.load %arg1[%67, %c0_49, %c0_50] : memref<20x256x256xf32, #tpu.memory_space<vmem>>, vector<1x256x256xf32>
    %69 = vector.shape_cast %68 : vector<1x256x256xf32> to vector<256x256xf32>
    %cst_51 = arith.constant dense<0.000000e+00> : vector<256x128xf32>
    %70 = tpu.matmul %69, %66, %cst_51 {dimension_numbers = #tpu.dot_dimension_numbers<[1], [0], [0], [1], [0, 0, 1, 1], [], []>} : vector<256x256xf32>, vector<256x128xf32>, vector<256x128xf32> -> vector<256x128xf32>
    %c18_i32 = arith.constant 18 : i32
    %71 = arith.index_cast %c18_i32 : i32 to index
    %c0_52 = arith.constant 0 : index
    %c0_53 = arith.constant 0 : index
    %72 = vector.load %arg1[%71, %c0_52, %c0_53] : memref<20x256x256xf32, #tpu.memory_space<vmem>>, vector<1x256x256xf32>
    %73 = vector.shape_cast %72 : vector<1x256x256xf32> to vector<256x256xf32>
    %cst_54 = arith.constant dense<0.000000e+00> : vector<256x128xf32>
    %74 = tpu.matmul %73, %70, %cst_54 {dimension_numbers = #tpu.dot_dimension_numbers<[1], [0], [0], [1], [0, 0, 1, 1], [], []>} : vector<256x256xf32>, vector<256x128xf32>, vector<256x128xf32> -> vector<256x128xf32>
    %c19_i32 = arith.constant 19 : i32
    %75 = arith.index_cast %c19_i32 : i32 to index
    %c0_55 = arith.constant 0 : index
    %c0_56 = arith.constant 0 : index
    %76 = vector.load %arg1[%75, %c0_55, %c0_56] : memref<20x256x256xf32, #tpu.memory_space<vmem>>, vector<1x256x256xf32>
    %77 = vector.shape_cast %76 : vector<1x256x256xf32> to vector<256x256xf32>
    %cst_57 = arith.constant dense<0.000000e+00> : vector<256x128xf32>
    %78 = tpu.matmul %77, %74, %cst_57 {dimension_numbers = #tpu.dot_dimension_numbers<[1], [0], [0], [1], [0, 0, 1, 1], [], []>} : vector<256x256xf32>, vector<256x128xf32>, vector<256x128xf32> -> vector<256x128xf32>
    %c19_i32_58 = arith.constant 19 : i32
    %c0_59 = arith.constant 0 : index
    %c0_60 = arith.constant 0 : index
    %79 = vector.load %arg2[%c0_59, %c0_60] : memref<256x128xf32, #tpu.memory_space<vmem>>, vector<256x128xf32>
    tpu.vector_store %arg2[%c0_59, %c0_60], %78 {strides = array<i32>} : memref<256x128xf32, #tpu.memory_space<vmem>>, vector<256x128xf32>,
    return
  }
  func.func @transform_0(%arg0: i32) -> (i32, i32, i32) {
    %c0_i32 = arith.constant 0 : i32
    %c0_i32_0 = arith.constant 0 : i32
    %c0_i32_1 = arith.constant 0 : i32
    %c0_i32_2 = arith.constant 0 : i32
    return %c0_i32, %c0_i32_0, %c0_i32_1 : i32, i32, i32
  }
  func.func @transform_1(%arg0: i32) -> (i32, i32) {
    %c0_i32 = arith.constant 0 : i32
    %c0_i32_0 = arith.constant 0 : i32
    %c0_i32_1 = arith.constant 0 : i32
    return %c0_i32, %c0_i32_0 : i32, i32
  }
}

</mosaic_0001>

<bundles_post_ra>
// kernel: tpu_custom_call.1
= control target key start
LH: loop header
LB: loop body
LE: loop exit
PB: predicated region body
PF: predicated region fallthrough
CT: control target
= control target key end

     0   :  { %6 = vsyncpa [#allocation3], 0  ;;  %s6880_s0 = inlined_call_operand.hbm [shape: f32[20,256,256], index: 0, kind: input, shape index: {}]   ;;  %s6881_s1 = inlined_call_operand.hbm [shape: f32[256,128], index: 1, kind: output, shape index: {}]  }
   0x1   :  { %7 = vsyncpa [#allocation4], 0  ;;  %s12_s8 = sshll.u32 %s6880_s0, 4  ;;  %s5727_s9 = smov [#allocation2]   ;;  %s13_s8 = int_to_ptr.hbm [resolvable:$true] %s12_s8 }
   0x2   :  { %s14_s10 = sshll.u32 %s5727_s9, 4  ;;  %s5728_s11 = smov 256   ;;  %s15_s10 = int_to_ptr.vmem [resolvable:$true] %s14_s10 }
   0x3   :  { %s5729_s12 = smov 16  }
   0x4   :  { %20 = dma.hbm_to_vmem [thread:$0]  %s13_s8, 163840, %s15_s10, [#allocation3], %s5728_s11, %s5728_s11, %s5729_s12  }
   0x5   :  { %5723 = dma.done.wait [#allocation3], 163840  }
   0x6   :  { %5724 = vsyncadd [#allocation3], 4294803456  ;;  %v40_v0 = vld [vmem:[#allocation2 + $0xf0] sm:$0xff]  ;;  %v39_v2 = vld [vmem:[#allocation2 + $0xe0] sm:$0xff]  ;;  %s5730_s0 = smov [#allocation5]   ;;  %s5624_s16 = sshll.u32 %s6881_s1, 4  ;;  %s5625_s16 = int_to_ptr.hbm [resolvable:$true] %s5624_s16 }
   0x7   :  { %v56_v1 = vld [vmem:[#allocation2 + $0x1f0] sm:$0xff]  ;;  %122 = vmatpush.msra.mxu0 %v40_v0  ;;  %5637 = vmatpush.msra.mxu2 %v40_v0  ;;  %v55_v3 = vld [vmem:[#allocation2 + $0x1e0] sm:$0xff]  ;;  %v59_v34 = vld [vmem:[#allocation2 + $0x208] sm:$0xff]  ;;  %s5622_s13 = sshll.u32 %s5730_s0, 4  ;;  %s5731_s17 = smov 128   ;;  %s5623_s13 = int_to_ptr.vmem [resolvable:$true] %s5622_s13 }
   0x8   :  { %235 = vmatpush.msra.mxu1 %v56_v1  ;;  %5653 = vmatpush.msra.mxu3 %v56_v1  ;;  %v38_v4 = vld [vmem:[#allocation2 + $0xd0] sm:$0xff]  ;;  %v37_v6 = vld [vmem:[#allocation2 + $0xc0] sm:$0xff]  ;;  %v91_v35 = vld [vmem:[#allocation2 + $0x308] sm:$0xff]  ;;  %s5732_s18 = smov 8  }
   0x9   :  { %123 = vmatpush.msra.mxu0 %v39_v2  ;;  %5638 = vmatpush.msra.mxu2 %v39_v2  ;;  %v54_v5 = vld [vmem:[#allocation2 + $0x1d0] sm:$0xff]  ;;  %v53_v7 = vld [vmem:[#allocation2 + $0x1c0] sm:$0xff]  ;;  %v61_v38 = vld [vmem:[#allocation2 + $0x218] sm:$0xff] }
   0xa   :  { %236 = vmatpush.msra.mxu1 %v55_v3  ;;  %5654 = vmatpush.msra.mxu3 %v55_v3  ;;  %v36_v8 = vld [vmem:[#allocation2 + $0xb0] sm:$0xff]  ;;  %v35_v10 = vld [vmem:[#allocation2 + $0xa0] sm:$0xff]  ;;  %v93_v39 = vld [vmem:[#allocation2 + $0x318] sm:$0xff] }
   0xb   :  { %124 = vmatpush.msra.mxu0 %v38_v4  ;;  %5639 = vmatpush.msra.mxu2 %v38_v4  ;;  %v52_v9 = vld [vmem:[#allocation2 + $0x1b0] sm:$0xff]  ;;  %v51_v11 = vld [vmem:[#allocation2 + $0x1a0] sm:$0xff]  ;;  %v63_v42 = vld [vmem:[#allocation2 + $0x228] sm:$0xff] }
   0xc   :  { %237 = vmatpush.msra.mxu1 %v54_v5  ;;  %5655 = vmatpush.msra.mxu3 %v54_v5  ;;  %v34_v12 = vld [vmem:[#allocation2 + $0x90] sm:$0xff]  ;;  %v33_v14 = vld [vmem:[#allocation2 + $0x80] sm:$0xff]  ;;  %v95_v43 = vld [vmem:[#allocation2 + $0x328] sm:$0xff] }
   0xd   :  { %125 = vmatpush.msra.mxu0 %v37_v6  ;;  %5640 = vmatpush.msra.mxu2 %v37_v6  ;;  %v50_v13 = vld [vmem:[#allocation2 + $0x190] sm:$0xff]  ;;  %v49_v15 = vld [vmem:[#allocation2 + $0x180] sm:$0xff]  ;;  %v65_v46 = vld [vmem:[#allocation2 + $0x238] sm:$0xff] }
   0xe   :  { %238 = vmatpush.msra.mxu1 %v53_v7  ;;  %5656 = vmatpush.msra.mxu3 %v53_v7  ;;  %v32_v16 = vld [vmem:[#allocation2 + $0x70] sm:$0xff]  ;;  %v31_v18 = vld [vmem:[#allocation2 + $0x60] sm:$0xff]  ;;  %v97_v47 = vld [vmem:[#allocation2 + $0x338] sm:$0xff] }
   0xf   :  { %126 = vmatpush.msra.mxu0 %v36_v8  ;;  %5641 = vmatpush.msra.mxu2 %v36_v8  ;;  %v48_v17 = vld [vmem:[#allocation2 + $0x170] sm:$0xff]  ;;  %v47_v19 = vld [vmem:[#allocation2 + $0x160] sm:$0xff]  ;;  %v67_v50 = vld [vmem:[#allocation2 + $0x248] sm:$0xff] }
  0x10   :  { %239 = vmatpush.msra.mxu1 %v52_v9  ;;  %5657 = vmatpush.msra.mxu3 %v52_v9  ;;  %v30_v20 = vld [vmem:[#allocation2 + $0x50] sm:$0xff]  ;;  %v29_v22 = vld [vmem:[#allocation2 + $0x40] sm:$0xff]  ;;  %v99_v51 = vld [vmem:[#allocation2 + $0x348] sm:$0xff] }
  0x11   :  { %127 = vmatpush.msra.mxu0 %v35_v10  ;;  %5642 = vmatpush.msra.mxu2 %v35_v10  ;;  %v46_v21 = vld [vmem:[#allocation2 + $0x150] sm:$0xff]  ;;  %v45_v23 = vld [vmem:[#allocation2 + $0x140] sm:$0xff]  ;;  %v69_v54 = vld [vmem:[#allocation2 + $0x258] sm:$0xff] }
  0x12   :  { %240 = vmatpush.msra.mxu1 %v51_v11  ;;  %5658 = vmatpush.msra.mxu3 %v51_v11  ;;  %v28_v24 = vld [vmem:[#allocation2 + $0x30] sm:$0xff]  ;;  %v27_v26 = vld [vmem:[#allocation2 + $0x20] sm:$0xff]  ;;  %v101_v55 = vld [vmem:[#allocation2 + $0x358] sm:$0xff] }
  0x13   :  { %128 = vmatpush.msra.mxu0 %v34_v12  ;;  %5643 = vmatpush.msra.mxu2 %v34_v12  ;;  %v44_v25 = vld [vmem:[#allocation2 + $0x130] sm:$0xff]  ;;  %v43_v27 = vld [vmem:[#allocation2 + $0x120] sm:$0xff]  ;;  %v71_v58 = vld [vmem:[#allocation2 + $0x268] sm:$0xff] }
  0x14   :  { %241 = vmatpush.msra.mxu1 %v50_v13  ;;  %5659 = vmatpush.msra.mxu3 %v50_v13  ;;  %v26_v28 = vld [vmem:[#allocation2 + $0x10] sm:$0xff]  ;;  %v25_v30 = vld [vmem:[#allocation2] sm:$0xff]  ;;  %v103_v59 = vld [vmem:[#allocation2 + $0x368] sm:$0xff] }
  0x15   :  { %129 = vmatpush.msra.mxu0 %v33_v14  ;;  %5644 = vmatpush.msra.mxu2 %v33_v14  ;;  %v42_v29 = vld [vmem:[#allocation2 + $0x110] sm:$0xff]  ;;  %v41_v31 = vld [vmem:[#allocation2 + $0x100] sm:$0xff]  ;;  %v73_v62 = vld [vmem:[#allocation2 + $0x278] sm:$0xff] }
  0x16   :  { %242 = vmatpush.msra.mxu1 %v49_v15  ;;  %5660 = vmatpush.msra.mxu3 %v49_v15  ;;  %v58_v32 = vld [vmem:[#allocation2 + $0x200] sm:$0xff]  ;;  %v60_v36 = vld [vmem:[#allocation2 + $0x210] sm:$0xff]  ;;  %v105_v63 = vld [vmem:[#allocation2 + $0x378] sm:$0xff] }
  0x17   :  { %130 = vmatpush.msra.mxu0 %v32_v16  ;;  %5645 = vmatpush.msra.mxu2 %v32_v16  ;;  %v90_v33 = vld [vmem:[#allocation2 + $0x300] sm:$0xff]  ;;  %v92_v37 = vld [vmem:[#allocation2 + $0x310] sm:$0xff]  ;;  %v75_v2 = vld [vmem:[#allocation2 + $0x288] sm:$0xff] }
  0x18   :  { %243 = vmatpush.msra.mxu1 %v48_v17  ;;  %5661 = vmatpush.msra.mxu3 %v48_v17  ;;  %v62_v40 = vld [vmem:[#allocation2 + $0x220] sm:$0xff]  ;;  %v64_v44 = vld [vmem:[#allocation2 + $0x230] sm:$0xff]  ;;  %v107_v3 = vld [vmem:[#allocation2 + $0x388] sm:$0xff] }
  0x19   :  { %131 = vmatpush.msra.mxu0 %v31_v18  ;;  %5646 = vmatpush.msra.mxu2 %v31_v18  ;;  %v94_v41 = vld [vmem:[#allocation2 + $0x320] sm:$0xff]  ;;  %v96_v45 = vld [vmem:[#allocation2 + $0x330] sm:$0xff]  ;;  %v77_v6 = vld [vmem:[#allocation2 + $0x298] sm:$0xff] }
  0x1a   :  { %244 = vmatpush.msra.mxu1 %v47_v19  ;;  %5662 = vmatpush.msra.mxu3 %v47_v19  ;;  %v66_v48 = vld [vmem:[#allocation2 + $0x240] sm:$0xff]  ;;  %v68_v52 = vld [vmem:[#allocation2 + $0x250] sm:$0xff]  ;;  %v109_v7 = vld [vmem:[#allocation2 + $0x398] sm:$0xff] }
  0x1b   :  { %132 = vmatpush.msra.mxu0 %v30_v20  ;;  %5647 = vmatpush.msra.mxu2 %v30_v20  ;;  %v98_v49 = vld [vmem:[#allocation2 + $0x340] sm:$0xff]  ;;  %v100_v53 = vld [vmem:[#allocation2 + $0x350] sm:$0xff]  ;;  %v79_v10 = vld [vmem:[#allocation2 + $0x2a8] sm:$0xff] }
  0x1c   :  { %245 = vmatpush.msra.mxu1 %v46_v21  ;;  %5663 = vmatpush.msra.mxu3 %v46_v21  ;;  %v70_v56 = vld [vmem:[#allocation2 + $0x260] sm:$0xff]  ;;  %v72_v60 = vld [vmem:[#allocation2 + $0x270] sm:$0xff]  ;;  %v111_v11 = vld [vmem:[#allocation2 + $0x3a8] sm:$0xff] }
  0x1d   :  { %133 = vmatpush.msra.mxu0 %v29_v22  ;;  %5648 = vmatpush.msra.mxu2 %v29_v22  ;;  %v102_v57 = vld [vmem:[#allocation2 + $0x360] sm:$0xff]  ;;  %v104_v61 = vld [vmem:[#allocation2 + $0x370] sm:$0xff]  ;;  %v81_v14 = vld [vmem:[#allocation2 + $0x2b8] sm:$0xff] }
  0x1e   :  { %246 = vmatpush.msra.mxu1 %v45_v23  ;;  %5664 = vmatpush.msra.mxu3 %v45_v23  ;;  %v74_v0 = vld [vmem:[#allocation2 + $0x280] sm:$0xff]  ;;  %v76_v4 = vld [vmem:[#allocation2 + $0x290] sm:$0xff]  ;;  %v113_v15 = vld [vmem:[#allocation2 + $0x3b8] sm:$0xff] }
  0x1f   :  { %134 = vmatpush.msra.mxu0 %v28_v24  ;;  %5649 = vmatpush.msra.mxu2 %v28_v24  ;;  %v106_v1 = vld [vmem:[#allocation2 + $0x380] sm:$0xff]  ;;  %v108_v5 = vld [vmem:[#allocation2 + $0x390] sm:$0xff]  ;;  %v83_v18 = vld [vmem:[#allocation2 + $0x2c8] sm:$0xff] }
  0x20   :  { %247 = vmatpush.msra.mxu1 %v44_v25  ;;  %5665 = vmatpush.msra.mxu3 %v44_v25  ;;  %v78_v8 = vld [vmem:[#allocation2 + $0x2a0] sm:$0xff]  ;;  %v80_v12 = vld [vmem:[#allocation2 + $0x2b0] sm:$0xff]  ;;  %v115_v19 = vld [vmem:[#allocation2 + $0x3c8] sm:$0xff] }
  0x21   :  { %135 = vmatpush.msra.mxu0 %v27_v26  ;;  %5650 = vmatpush.msra.mxu2 %v27_v26  ;;  %v110_v9 = vld [vmem:[#allocation2 + $0x3a0] sm:$0xff]  ;;  %v112_v13 = vld [vmem:[#allocation2 + $0x3b0] sm:$0xff]  ;;  %v85_v22 = vld [vmem:[#allocation2 + $0x2d8] sm:$0xff] }
  0x22   :  { %248 = vmatpush.msra.mxu1 %v43_v27  ;;  %5666 = vmatpush.msra.mxu3 %v43_v27  ;;  %v82_v16 = vld [vmem:[#allocation2 + $0x2c0] sm:$0xff]  ;;  %v84_v20 = vld [vmem:[#allocation2 + $0x2d0] sm:$0xff]  ;;  %v117_v23 = vld [vmem:[#allocation2 + $0x3d8] sm:$0xff] }
  0x23   :  { %136 = vmatpush.msra.mxu0 %v26_v28  ;;  %5651 = vmatpush.msra.mxu2 %v26_v28  ;;  %v114_v17 = vld [vmem:[#allocation2 + $0x3c0] sm:$0xff]  ;;  %v116_v21 = vld [vmem:[#allocation2 + $0x3d0] sm:$0xff]  ;;  %v87_v26 = vld [vmem:[#allocation2 + $0x2e8] sm:$0xff] }
  0x24   :  { %249 = vmatpush.msra.mxu1 %v42_v29  ;;  %5667 = vmatpush.msra.mxu3 %v42_v29  ;;  %v86_v24 = vld [vmem:[#allocation2 + $0x2e0] sm:$0xff]  ;;  %v119_v27 = vld [vmem:[#allocation2 + $0x3e8] sm:$0xff]  ;;  %v88_v28 = vld [vmem:[#allocation2 + $0x2f0] sm:$0xff] }
  0x25   :  { %137 = vmatpush.msra.mxu0 %v25_v30  ;;  %5652 = vmatpush.msra.mxu2 %v25_v30  ;;  %v118_v25 = vld [vmem:[#allocation2 + $0x3e0] sm:$0xff]  ;;  %v120_v29 = vld [vmem:[#allocation2 + $0x3f0] sm:$0xff]  ;;  %v89_v30 = vld [vmem:[#allocation2 + $0x2f8] sm:$0xff] }
  0x26   :  { %250 = vmatpush.msra.mxu1 %v41_v31  ;;  %5668 = vmatpush.msra.mxu3 %v41_v31  ;;  %v121_v31 = vld [vmem:[#allocation2 + $0x3f8] sm:$0xff] }
  0x27   :  { %138 = vmatmul.f32.vlgmr.msra.gmra.mxu0 %v58_v32  ;;  %186 = vmatmul.f32.vlgmr.msra.gmra.mxu2 %v90_v33 }
  0x28   :  { %251 = vmatmul.f32.vlgmr.msra.gmra.mxu1 %v59_v34  ;;  %299 = vmatmul.f32.vlgmr.msra.gmra.mxu3 %v91_v35 }
  0x2f   :  { %141 = vmatmul.f32.gmra.mxu0 %v60_v36  ;;  %189 = vmatmul.f32.gmra.mxu2 %v92_v37 }
  0x30   :  { %254 = vmatmul.f32.gmra.mxu1 %v61_v38  ;;  %302 = vmatmul.f32.gmra.mxu3 %v93_v39 }
  0x37   :  { %144 = vmatmul.f32.gmra.mxu0 %v62_v40  ;;  %192 = vmatmul.f32.gmra.mxu2 %v94_v41 }
  0x38   :  { %257 = vmatmul.f32.gmra.mxu1 %v63_v42  ;;  %305 = vmatmul.f32.gmra.mxu3 %v95_v43 }
  0x3f   :  { %147 = vmatmul.f32.gmra.mxu0 %v64_v44  ;;  %195 = vmatmul.f32.gmra.mxu2 %v96_v45 }
  0x40   :  { %260 = vmatmul.f32.gmra.mxu1 %v65_v46  ;;  %308 = vmatmul.f32.gmra.mxu3 %v97_v47 }
  0x47   :  { %150 = vmatmul.f32.gmra.mxu0 %v66_v48  ;;  %198 = vmatmul.f32.gmra.mxu2 %v98_v49 }
  0x48   :  { %263 = vmatmul.f32.gmra.mxu1 %v67_v50  ;;  %311 = vmatmul.f32.gmra.mxu3 %v99_v51 }
  0x4f   :  { %153 = vmatmul.f32.gmra.mxu0 %v68_v52  ;;  %201 = vmatmul.f32.gmra.mxu2 %v100_v53 }
  0x50   :  { %266 = vmatmul.f32.gmra.mxu1 %v69_v54  ;;  %314 = vmatmul.f32.gmra.mxu3 %v101_v55 }
  0x57   :  { %156 = vmatmul.f32.gmra.mxu0 %v70_v56  ;;  %204 = vmatmul.f32.gmra.mxu2 %v102_v57 }
  0x58   :  { %269 = vmatmul.f32.gmra.mxu1 %v71_v58  ;;  %317 = vmatmul.f32.gmra.mxu3 %v103_v59 }
  0x5f   :  { %159 = vmatmul.f32.gmra.mxu0 %v72_v60  ;;  %207 = vmatmul.f32.gmra.mxu2 %v104_v61 }
  0x60   :  { %272 = vmatmul.f32.gmra.mxu1 %v73_v62  ;;  %320 = vmatmul.f32.gmra.mxu3 %v105_v63 }
  0x67   :  { %162 = vmatmul.f32.gmra.mxu0 %v74_v0  ;;  %210 = vmatmul.f32.gmra.mxu2 %v106_v1 }
  0x68   :  { %275 = vmatmul.f32.gmra.mxu1 %v75_v2  ;;  %323 = vmatmul.f32.gmra.mxu3 %v107_v3 }
  0x6f   :  { %165 = vmatmul.f32.gmra.mxu0 %v76_v4  ;;  %213 = vmatmul.f32.gmra.mxu2 %v108_v5 }
  0x70   :  { %278 = vmatmul.f32.gmra.mxu1 %v77_v6  ;;  %326 = vmatmul.f32.gmra.mxu3 %v109_v7 }
  0x77   :  { %168 = vmatmul.f32.gmra.mxu0 %v78_v8  ;;  %216 = vmatmul.f32.gmra.mxu2 %v110_v9 }
  0x78   :  { %281 = vmatmul.f32.gmra.mxu1 %v79_v10  ;;  %329 = vmatmul.f32.gmra.mxu3 %v111_v11 }
  0x7f   :  { %171 = vmatmul.f32.gmra.mxu0 %v80_v12  ;;  %219 = vmatmul.f32.gmra.mxu2 %v112_v13 }
  0x80   :  { %284 = vmatmul.f32.gmra.mxu1 %v81_v14  ;;  %332 = vmatmul.f32.gmra.mxu3 %v113_v15 }
  0x87   :  { %174 = vmatmul.f32.gmra.mxu0 %v82_v16  ;;  %222 = vmatmul.f32.gmra.mxu2 %v114_v17 }
  0x88   :  { %287 = vmatmul.f32.gmra.mxu1 %v83_v18  ;;  %335 = vmatmul.f32.gmra.mxu3 %v115_v19 }
  0x8f   :  { %177 = vmatmul.f32.gmra.mxu0 %v84_v20  ;;  %225 = vmatmul.f32.gmra.mxu2 %v116_v21 }
  0x90   :  { %290 = vmatmul.f32.gmra.mxu1 %v85_v22  ;;  %338 = vmatmul.f32.gmra.mxu3 %v117_v23 }
  0x97   :  { %180 = vmatmul.f32.gmra.mxu0 %v86_v24  ;;  %228 = vmatmul.f32.gmra.mxu2 %v118_v25 }
  0x98   :  { %293 = vmatmul.f32.gmra.mxu1 %v87_v26  ;;  %341 = vmatmul.f32.gmra.mxu3 %v119_v27 }
  0x9f   :  { %183 = vmatmul.f32.gmra.mxu0 %v88_v28  ;;  %231 = vmatmul.f32.gmra.mxu2 %v120_v29 }
  0xa0   :  { %296 = vmatmul.f32.gmra.mxu1 %v89_v30  ;;  %344 = vmatmul.f32.gmra.mxu3 %v121_v31 }
  0xa4   :  { %v5746_v32 = vpop.f32.mrf.mxu0 }
  0xa5   :  { %v5748_v33 = vpop.f32.mrf.mxu1 }
  0xa6   :  { %6882 = vst [vmem:[#allocation8_spill] sm:$0xff] %v5748_v33 }
  0xaa   :  { %v5750_v34 = vpop.f32.mrf.mxu2 }
  0xab   :  { %6883 = vst [vmem:[#allocation9_spill] sm:$0xff] %v5750_v34  ;;  %v5752_v35 = vpop.f32.mrf.mxu3 }
  0xac   :  { %6884 = vst [vmem:[#allocation10_spill] sm:$0xff] %v5752_v35  ;;  %v5754_v36 = vpop.f32.mrf.mxu0 }
  0xad   :  { %v5756_v37 = vpop.f32.mrf.mxu1 }
  0xb2   :  { %v5758_v38 = vpop.f32.mrf.mxu2 }
  0xb3   :  { %6885 = vst [vmem:[#allocation11_spill] sm:$0xff] %v5758_v38  ;;  %v5760_v39 = vpop.f32.mrf.mxu3 }
  0xb4   :  { %6886 = vst [vmem:[#allocation12_spill] sm:$0xff] %v5760_v39  ;;  %v5762_v40 = vpop.f32.mrf.mxu0 }
  0xb5   :  { %v5764_v41 = vpop.f32.mrf.mxu1 }
  0xba   :  { %v5766_v42 = vpop.f32.mrf.mxu2 }
  0xbb   :  { %6887 = vst [vmem:[#allocation13_spill] sm:$0xff] %v5766_v42  ;;  %v5768_v43 = vpop.f32.mrf.mxu3 }
  0xbc   :  { %6888 = vst [vmem:[#allocation14_spill] sm:$0xff] %v5768_v43  ;;  %v5770_v44 = vpop.f32.mrf.mxu0 }
  0xbd   :  { %v5772_v45 = vpop.f32.mrf.mxu1 }
  0xc2   :  { %v5774_v46 = vpop.f32.mrf.mxu2 }
  0xc3   :  { %6889 = vst [vmem:[#allocation15_spill] sm:$0xff] %v5774_v46  ;;  %v5776_v47 = vpop.f32.mrf.mxu3 }
  0xc4   :  { %6890 = vst [vmem:[#allocation16_spill] sm:$0xff] %v5776_v47  ;;  %v5778_v48 = vpop.f32.mrf.mxu0 }
  0xc5   :  { %v5780_v49 = vpop.f32.mrf.mxu1 }
  0xca   :  { %v5782_v50 = vpop.f32.mrf.mxu2 }
  0xcb   :  { %v5784_v51 = vpop.f32.mrf.mxu3 }
  0xcc   :  { %v5786_v52 = vpop.f32.mrf.mxu0 }
  0xcd   :  { %v5788_v53 = vpop.f32.mrf.mxu1 }
  0xd2   :  { %v5790_v54 = vpop.f32.mrf.mxu2 }
  0xd3   :  { %v5792_v55 = vpop.f32.mrf.mxu3 }
  0xd4   :  { %v5794_v56 = vpop.f32.mrf.mxu0 }
  0xd5   :  { %v5796_v57 = vpop.f32.mrf.mxu1 }
  0xda   :  { %v5798_v58 = vpop.f32.mrf.mxu2 }
  0xdb   :  { %v5800_v59 = vpop.f32.mrf.mxu3 }
  0xdc   :  { %v160_v60 = vpop.f32.mrf.mxu0 }
  0xdd   :  { %v273_v61 = vpop.f32.mrf.mxu1 }
  0xe2   :  { %v5802_v62 = vpop.f32.mrf.mxu2 }
  0xe3   :  { %v5804_v63 = vpop.f32.mrf.mxu3 }
  0xe4   :  { %v163_v0 = vpop.f32.mrf.mxu0 }
  0xe5   :  { %v276_v1 = vpop.f32.mrf.mxu1 }
  0xea   :  { %v5806_v2 = vpop.f32.mrf.mxu2 }
  0xeb   :  { %v5808_v3 = vpop.f32.mrf.mxu3 }
  0xec   :  { %v166_v4 = vpop.f32.mrf.mxu0 }
  0xed   :  { %v279_v5 = vpop.f32.mrf.mxu1 }
  0xf2   :  { %v214_v6 = vpop.f32.mrf.mxu2 }
  0xf3   :  { %v327_v7 = vpop.f32.mrf.mxu3 }
  0xf4   :  { %v169_v8 = vpop.f32.mrf.mxu0 }
  0xf5   :  { %v282_v9 = vpop.f32.mrf.mxu1 }
  0xf6   :  { %v283_v46 = vadd.f32 %v282_v9, %v169_v8  ;;  %v361_v8 = vld [vmem:[#allocation2 + $0x460] sm:$0xff]  ;;  %v362_v9 = vld [vmem:[#allocation2 + $0x468] sm:$0xff] }
  0xfa   :  { %v217_v10 = vpop.f32.mrf.mxu2 }
  0xfb   :  { %v330_v11 = vpop.f32.mrf.mxu3 }
  0xfc   :  { %v172_v12 = vpop.f32.mrf.mxu0 }
  0xfd   :  { %v285_v13 = vpop.f32.mrf.mxu1 }
  0xfe   :  { %v286_v42 = vadd.f32 %v285_v13, %v172_v12  ;;  %v365_v12 = vld [vmem:[#allocation2 + $0x480] sm:$0xff]  ;;  %v366_v13 = vld [vmem:[#allocation2 + $0x488] sm:$0xff] }
 0x102   :  { %v220_v14 = vpop.f32.mrf.mxu2 }
 0x103   :  { %v333_v15 = vpop.f32.mrf.mxu3 }
 0x104   :  { %v175_v16 = vpop.f32.mrf.mxu0 }
 0x105   :  { %v288_v17 = vpop.f32.mrf.mxu1 }
 0x106   :  { %v289_v38 = vadd.f32 %v288_v17, %v175_v16  ;;  %v369_v16 = vld [vmem:[#allocation2 + $0x4a0] sm:$0xff]  ;;  %v370_v17 = vld [vmem:[#allocation2 + $0x4a8] sm:$0xff] }
 0x10a   :  { %v223_v18 = vpop.f32.mrf.mxu2 }
 0x10b   :  { %v336_v19 = vpop.f32.mrf.mxu3 }
 0x10c   :  { %v178_v20 = vpop.f32.mrf.mxu0 }
 0x10d   :  { %v291_v21 = vpop.f32.mrf.mxu1 }
 0x10e   :  { %v292_v34 = vadd.f32 %v291_v21, %v178_v20  ;;  %v334_v20 = vadd.f32 %v333_v15, %v220_v14  ;;  %v367_v14 = vld [vmem:[#allocation2 + $0x490] sm:$0xff]  ;;  %v368_v15 = vld [vmem:[#allocation2 + $0x498] sm:$0xff]  ;;  %v373_v21 = vld [vmem:[#allocation2 + $0x4c0] sm:$0xff] }
 0x112   :  { %v226_v22 = vpop.f32.mrf.mxu2 }
 0x113   :  { %v339_v23 = vpop.f32.mrf.mxu3 }
 0x114   :  { %v181_v24 = vpop.f32.mrf.mxu0  ;;  %v340_v33 = vadd.f32 %v339_v23, %v226_v22  ;;  %v374_v22 = vld [vmem:[#allocation2 + $0x4c8] sm:$0xff]  ;;  %v375_v23 = vld [vmem:[#allocation2 + $0x4d0] sm:$0xff] }
 0x115   :  { %v294_v25 = vpop.f32.mrf.mxu1 }
 0x116   :  { %v295_v31 = vadd.f32 %v294_v25, %v181_v24  ;;  %v277_v24 = vadd.f32 %v276_v1, %v163_v0  ;;  %v353_v0 = vld [vmem:[#allocation2 + $0x420] sm:$0xff]  ;;  %v354_v1 = vld [vmem:[#allocation2 + $0x428] sm:$0xff]  ;;  %v376_v25 = vld [vmem:[#allocation2 + $0x4d8] sm:$0xff] }
 0x11a   :  { %v229_v26 = vpop.f32.mrf.mxu2 }
 0x11b   :  { %v342_v27 = vpop.f32.mrf.mxu3 }
 0x11c   :  { %v184_v28 = vpop.f32.mrf.mxu0  ;;  %v343_v47 = vadd.f32 %v342_v27, %v229_v26  ;;  %v377_v26 = vld [vmem:[#allocation2 + $0x4e0] sm:$0xff]  ;;  %v378_v27 = vld [vmem:[#allocation2 + $0x4e8] sm:$0xff] }
 0x11d   :  { %v297_v29 = vpop.f32.mrf.mxu1 }
 0x11e   :  { %v298_v30 = vadd.f32 %v297_v29, %v184_v28  ;;  %v280_v28 = vadd.f32 %v279_v5, %v166_v4  ;;  %v337_v29 = vadd.f32 %v336_v19, %v223_v18  ;;  %v357_v4 = vld [vmem:[#allocation2 + $0x440] sm:$0xff]  ;;  %v358_v5 = vld [vmem:[#allocation2 + $0x448] sm:$0xff]  ;;  %v371_v18 = vld [vmem:[#allocation2 + $0x4b0] sm:$0xff] }
 0x11f   :  { %v372_v19 = vld [vmem:[#allocation2 + $0x4b8] sm:$0xff] }
 0x120   :  { %413 = vmatpush.msrb.mxu2 %v298_v30  ;;  %v379_v30 = vld [vmem:[#allocation2 + $0x4f0] sm:$0xff] }
 0x122   :  { %414 = vmatpush.msrb.mxu2 %v295_v31  ;;  %v232_v35 = vpop.f32.mrf.mxu2  ;;  %v380_v31 = vld [vmem:[#allocation2 + $0x4f8] sm:$0xff] }
 0x123   :  { %v345_v39 = vpop.f32.mrf.mxu3 }
 0x124   :  { %415 = vmatpush.msrb.mxu2 %v292_v34  ;;  %v346_v43 = vadd.f32 %v345_v39, %v232_v35  ;;  %v274_v34 = vadd.f32 %v273_v61, %v160_v60  ;;  %v331_v35 = vadd.f32 %v330_v11, %v217_v10  ;;  %v328_v39 = vadd.f32 %v327_v7, %v214_v6  ;;  %v359_v6 = vld [vmem:[#allocation2 + $0x450] sm:$0xff]  ;;  %v360_v7 = vld [vmem:[#allocation2 + $0x458] sm:$0xff] }
 0x125   :  { %v363_v10 = vld [vmem:[#allocation2 + $0x470] sm:$0xff]  ;;  %v364_v11 = vld [vmem:[#allocation2 + $0x478] sm:$0xff] }
 0x126   :  { %416 = vmatpush.msrb.mxu2 %v289_v38  ;;  %526 = vmatpush.msrb.mxu3 %v346_v43  ;;  %v271_v38 = vadd.f32 %v5796_v57, %v5794_v56  ;;  %v265_v43 = vadd.f32 %v5780_v49, %v5778_v48  ;;  %v319_v56 = vadd.f32 %v5800_v59, %v5798_v58  ;;  %v6892_v57 = vld [vmem:[#allocation15_spill] sm:$0xff]  ;;  %v6893_v58 = vld [vmem:[#allocation16_spill] sm:$0xff] }
 0x127   :  { %v256_v48 = vadd.f32 %v5756_v37, %v5754_v36  ;;  %v313_v49 = vadd.f32 %v5784_v51, %v5782_v50  ;;  %v310_v59 = vadd.f32 %v6893_v58, %v6892_v57  ;;  %v6896_v36 = vld [vmem:[#allocation11_spill] sm:$0xff]  ;;  %v6897_v37 = vld [vmem:[#allocation12_spill] sm:$0xff]  ;;  %v6898_v50 = vld [vmem:[#allocation9_spill] sm:$0xff] }
 0x128   :  { %417 = vmatpush.msrb.mxu2 %v286_v42  ;;  %527 = vmatpush.msrb.mxu3 %v343_v47  ;;  %v325_v42 = vadd.f32 %v5808_v3, %v5806_v2  ;;  %v262_v47 = vadd.f32 %v5772_v45, %v5770_v44  ;;  %v6891_v44 = vld [vmem:[#allocation8_spill] sm:$0xff]  ;;  %v304_v60 = vadd.f32 %v6897_v37, %v6896_v36  ;;  %v6899_v51 = vld [vmem:[#allocation10_spill] sm:$0xff]  ;;  %v356_v3 = vld [vmem:[#allocation2 + $0x438] sm:$0xff] }
 0x129   :  { %v253_v45 = vadd.f32 %v6891_v44, %v5746_v32  ;;  %v301_v61 = vadd.f32 %v6899_v51, %v6898_v50  ;;  %v351_v32 = vld [vmem:[#allocation2 + $0x410] sm:$0xff]  ;;  %v389_v44 = vld [vmem:[#allocation2 + $0x540] sm:$0xff]  ;;  %v390_v58 = vld [vmem:[#allocation2 + $0x548] sm:$0xff] }
 0x12a   :  { %418 = vmatpush.msrb.mxu2 %v283_v46  ;;  %528 = vmatpush.msrb.mxu3 %v340_v33  ;;  %v268_v33 = vadd.f32 %v5788_v53, %v5786_v52  ;;  %v322_v46 = vadd.f32 %v5804_v63, %v5802_v62  ;;  %v259_v52 = vadd.f32 %v5764_v41, %v5762_v40  ;;  %v349_v40 = vld [vmem:[#allocation2 + $0x400] sm:$0xff]  ;;  %v6894_v41 = vld [vmem:[#allocation13_spill] sm:$0xff]  ;;  %v352_v63 = vld [vmem:[#allocation2 + $0x418] sm:$0xff] }
 0x12b   :  { %v316_v53 = vadd.f32 %v5792_v55, %v5790_v54  ;;  %v6895_v54 = vld [vmem:[#allocation14_spill] sm:$0xff]  ;;  %v350_v62 = vld [vmem:[#allocation2 + $0x408] sm:$0xff]  ;;  %v393_v37 = vld [vmem:[#allocation2 + $0x560] sm:$0xff] }
 0x12c   :  { %419 = vmatpush.msrb.mxu2 %v280_v28  ;;  %529 = vmatpush.msrb.mxu3 %v337_v29  ;;  %v307_v55 = vadd.f32 %v6895_v54, %v6894_v41  ;;  %v355_v2 = vld [vmem:[#allocation2 + $0x430] sm:$0xff]  ;;  %v381_v28 = vld [vmem:[#allocation2 + $0x500] sm:$0xff]  ;;  %v382_v29 = vld [vmem:[#allocation2 + $0x508] sm:$0xff] }
 0x12d   :  { %v394_v51 = vld [vmem:[#allocation2 + $0x568] sm:$0xff] }
 0x12e   :  { %420 = vmatpush.msrb.mxu2 %v277_v24  ;;  %530 = vmatpush.msrb.mxu3 %v334_v20  ;;  %v383_v20 = vld [vmem:[#allocation2 + $0x510] sm:$0xff] }
 0x130   :  { %421 = vmatpush.msrb.mxu2 %v274_v34  ;;  %531 = vmatpush.msrb.mxu3 %v331_v35 }
 0x132   :  { %422 = vmatpush.msrb.mxu2 %v271_v38  ;;  %532 = vmatpush.msrb.mxu3 %v328_v39  ;;  %v384_v38 = vld [vmem:[#allocation2 + $0x518] sm:$0xff] }
 0x134   :  { %423 = vmatpush.msrb.mxu2 %v268_v33  ;;  %533 = vmatpush.msrb.mxu3 %v325_v42  ;;  %v385_v33 = vld [vmem:[#allocation2 + $0x520] sm:$0xff] }
 0x136   :  { %424 = vmatpush.msrb.mxu2 %v265_v43  ;;  %534 = vmatpush.msrb.mxu3 %v322_v46  ;;  %v386_v46 = vld [vmem:[#allocation2 + $0x528] sm:$0xff] }
 0x138   :  { %425 = vmatpush.msrb.mxu2 %v262_v47  ;;  %535 = vmatpush.msrb.mxu3 %v319_v56  ;;  %v387_v56 = vld [vmem:[#allocation2 + $0x530] sm:$0xff] }
 0x13a   :  { %426 = vmatpush.msrb.mxu2 %v259_v52  ;;  %536 = vmatpush.msrb.mxu3 %v316_v53 }
 0x13c   :  { %427 = vmatpush.msrb.mxu2 %v256_v48  ;;  %537 = vmatpush.msrb.mxu3 %v313_v49  ;;  %v388_v48 = vld [vmem:[#allocation2 + $0x538] sm:$0xff] }
 0x13e   :  { %428 = vmatpush.msrb.mxu2 %v253_v45  ;;  %538 = vmatpush.msrb.mxu3 %v310_v59 }
 0x13f   :  { %429 = vmatmul.f32.vlgmr.msrb.gmra.mxu2 %v349_v40  ;;  %v391_v40 = vld [vmem:[#allocation2 + $0x550] sm:$0xff] }
 0x140   :  { %539 = vmatpush.msrb.mxu3 %v307_v55  ;;  %v392_v55 = vld [vmem:[#allocation2 + $0x558] sm:$0xff] }
 0x142   :  { %540 = vmatpush.msrb.mxu3 %v304_v60 }
 0x144   :  { %541 = vmatpush.msrb.mxu3 %v301_v61 }
 0x145   :  { %542 = vmatmul.f32.vlgmr.msrb.gmra.mxu3 %v350_v62  ;;  %v395_v62 = vld [vmem:[#allocation2 + $0x570] sm:$0xff] }
 0x147   :  { %432 = vmatmul.f32.gmra.mxu2 %v351_v32 }
 0x14d   :  { %545 = vmatmul.f32.gmra.mxu3 %v352_v63 }
 0x14f   :  { %435 = vmatmul.f32.gmra.mxu2 %v353_v0  ;;  %v396_v0 = vld [vmem:[#allocation2 + $0x578] sm:$0xff] }
 0x155   :  { %548 = vmatmul.f32.gmra.mxu3 %v354_v1 }
 0x157   :  { %438 = vmatmul.f32.gmra.mxu2 %v355_v2  ;;  %v397_v2 = vld [vmem:[#allocation2 + $0x580] sm:$0xff] }
 0x15d   :  { %551 = vmatmul.f32.gmra.mxu3 %v356_v3 }
 0x15f   :  { %441 = vmatmul.f32.gmra.mxu2 %v357_v4 }
 0x165   :  { %554 = vmatmul.f32.gmra.mxu3 %v358_v5  ;;  %v398_v5 = vld [vmem:[#allocation2 + $0x588] sm:$0xff] }
 0x167   :  { %444 = vmatmul.f32.gmra.mxu2 %v359_v6 }
 0x16d   :  { %557 = vmatmul.f32.gmra.mxu3 %v360_v7  ;;  %v399_v7 = vld [vmem:[#allocation2 + $0x590] sm:$0xff] }
 0x16f   :  { %447 = vmatmul.f32.gmra.mxu2 %v361_v8 }
 0x175   :  { %560 = vmatmul.f32.gmra.mxu3 %v362_v9  ;;  %v400_v9 = vld [vmem:[#allocation2 + $0x598] sm:$0xff] }
 0x177   :  { %450 = vmatmul.f32.gmra.mxu2 %v363_v10 }
 0x17d   :  { %563 = vmatmul.f32.gmra.mxu3 %v364_v11  ;;  %v401_v11 = vld [vmem:[#allocation2 + $0x5a0] sm:$0xff] }
 0x17f   :  { %453 = vmatmul.f32.gmra.mxu2 %v365_v12 }
 0x185   :  { %566 = vmatmul.f32.gmra.mxu3 %v366_v13  ;;  %v402_v13 = vld [vmem:[#allocation2 + $0x5a8] sm:$0xff] }
 0x187   :  { %456 = vmatmul.f32.gmra.mxu2 %v367_v14 }
 0x18d   :  { %569 = vmatmul.f32.gmra.mxu3 %v368_v15  ;;  %v403_v15 = vld [vmem:[#allocation2 + $0x5b0] sm:$0xff] }
 0x18f   :  { %459 = vmatmul.f32.gmra.mxu2 %v369_v16 }
 0x195   :  { %572 = vmatmul.f32.gmra.mxu3 %v370_v17  ;;  %v404_v17 = vld [vmem:[#allocation2 + $0x5b8] sm:$0xff] }
 0x197   :  { %462 = vmatmul.f32.gmra.mxu2 %v371_v18 }
 0x19d   :  { %575 = vmatmul.f32.gmra.mxu3 %v372_v19  ;;  %v405_v19 = vld [vmem:[#allocation2 + $0x5c0] sm:$0xff] }
 0x19f   :  { %465 = vmatmul.f32.gmra.mxu2 %v373_v21 }
 0x1a5   :  { %578 = vmatmul.f32.gmra.mxu3 %v374_v22  ;;  %v406_v22 = vld [vmem:[#allocation2 + $0x5c8] sm:$0xff] }
 0x1a7   :  { %468 = vmatmul.f32.gmra.mxu2 %v375_v23 }
 0x1ad   :  { %581 = vmatmul.f32.gmra.mxu3 %v376_v25  ;;  %v407_v25 = vld [vmem:[#allocation2 + $0x5d0] sm:$0xff] }
 0x1af   :  { %471 = vmatmul.f32.gmra.mxu2 %v377_v26 }
 0x1b5   :  { %584 = vmatmul.f32.gmra.mxu3 %v378_v27  ;;  %v408_v27 = vld [vmem:[#allocation2 + $0x5d8] sm:$0xff] }
 0x1b7   :  { %474 = vmatmul.f32.gmra.mxu2 %v379_v30 }
 0x1bd   :  { %587 = vmatmul.f32.gmra.mxu3 %v380_v31  ;;  %v409_v31 = vld [vmem:[#allocation2 + $0x5e0] sm:$0xff] }
 0x1bf   :  { %477 = vmatmul.f32.gmra.mxu2 %v381_v28 }
 0x1c2   :  { %v430_v24 = vpop.f32.mrf.mxu2 }
 0x1c5   :  { %590 = vmatmul.f32.gmra.mxu3 %v382_v29  ;;  %v410_v29 = vld [vmem:[#allocation2 + $0x5e8] sm:$0xff] }
 0x1c7   :  { %480 = vmatmul.f32.gmra.mxu2 %v383_v20  ;;  %v411_v20 = vld [vmem:[#allocation2 + $0x5f0] sm:$0xff] }
 0x1c8   :  { %v543_v34 = vpop.f32.mrf.mxu3 }
 0x1c9   :  { %v5842_v35 = vadd.f32 %v543_v34, %v430_v24 }
 0x1ca   :  { %v433_v39 = vpop.f32.mrf.mxu2 }
 0x1cd   :  { %593 = vmatmul.f32.gmra.mxu3 %v384_v38  ;;  %v412_v38 = vld [vmem:[#allocation2 + $0x5f8] sm:$0xff] }
 0x1cf   :  { %483 = vmatmul.f32.gmra.mxu2 %v385_v33 }
 0x1d0   :  { %v546_v42 = vpop.f32.mrf.mxu3 }
 0x1d1   :  { %v5844_v43 = vadd.f32 %v546_v42, %v433_v39 }
 0x1d2   :  { %v436_v47 = vpop.f32.mrf.mxu2 }
 0x1d5   :  { %596 = vmatmul.f32.gmra.mxu3 %v386_v46 }
 0x1d7   :  { %486 = vmatmul.f32.gmra.mxu2 %v387_v56 }
 0x1d8   :  { %v549_v52 = vpop.f32.mrf.mxu3 }
 0x1d9   :  { %v5846_v53 = vadd.f32 %v549_v52, %v436_v47 }
 0x1da   :  { %v439_v49 = vpop.f32.mrf.mxu2 }
 0x1dd   :  { %599 = vmatmul.f32.gmra.mxu3 %v388_v48 }
 0x1df   :  { %489 = vmatmul.f32.gmra.mxu2 %v389_v44 }
 0x1e0   :  { %v552_v45 = vpop.f32.mrf.mxu3 }
 0x1e1   :  { %v5848_v57 = vadd.f32 %v552_v45, %v439_v49 }
 0x1e2   :  { %v442_v59 = vpop.f32.mrf.mxu2 }
 0x1e5   :  { %602 = vmatmul.f32.gmra.mxu3 %v390_v58 }
 0x1e7   :  { %492 = vmatmul.f32.gmra.mxu2 %v391_v40 }
 0x1e8   :  { %v555_v41 = vpop.f32.mrf.mxu3 }
 0x1e9   :  { %v5850_v54 = vadd.f32 %v555_v41, %v442_v59 }
 0x1ea   :  { %v445_v36 = vpop.f32.mrf.mxu2 }
 0x1ed   :  { %605 = vmatmul.f32.gmra.mxu3 %v392_v55 }
 0x1ef   :  { %495 = vmatmul.f32.gmra.mxu2 %v393_v37 }
 0x1f0   :  { %v558_v60 = vpop.f32.mrf.mxu3 }
 0x1f1   :  { %v5852_v50 = vadd.f32 %v558_v60, %v445_v36 }
 0x1f2   :  { %v448_v61 = vpop.f32.mrf.mxu2 }
 0x1f5   :  { %608 = vmatmul.f32.gmra.mxu3 %v394_v51 }
 0x1f7   :  { %498 = vmatmul.f32.gmra.mxu2 %v395_v62 }
 0x1f8   :  { %v561_v32 = vpop.f32.mrf.mxu3 }
 0x1f9   :  { %v5854_v63 = vadd.f32 %v561_v32, %v448_v61 }
 0x1fa   :  { %v451_v1 = vpop.f32.mrf.mxu2 }
 0x1fd   :  { %611 = vmatmul.f32.gmra.mxu3 %v396_v0 }
 0x1ff   :  { %501 = vmatmul.f32.gmra.mxu2 %v397_v2 }
 0x200   :  { %v564_v3 = vpop.f32.mrf.mxu3 }
 0x201   :  { %v5856_v4 = vadd.f32 %v564_v3, %v451_v1 }
 0x202   :  { %v454_v6 = vpop.f32.mrf.mxu2 }
 0x205   :  { %614 = vmatmul.f32.gmra.mxu3 %v398_v5 }
 0x207   :  { %504 = vmatmul.f32.gmra.mxu2 %v399_v7 }
 0x208   :  { %v567_v8 = vpop.f32.mrf.mxu3 }
 0x209   :  { %v568_v59 = vadd.f32 %v567_v8, %v454_v6 }
 0x20a   :  { %v457_v10 = vpop.f32.mrf.mxu2 }
 0x20d   :  { %617 = vmatmul.f32.gmra.mxu3 %v400_v9 }
 0x20f   :  { %507 = vmatmul.f32.gmra.mxu2 %v401_v11 }
 0x210   :  { %v570_v12 = vpop.f32.mrf.mxu3 }
 0x211   :  { %v571_v58 = vadd.f32 %v570_v12, %v457_v10 }
 0x212   :  { %v460_v14 = vpop.f32.mrf.mxu2 }
 0x215   :  { %620 = vmatmul.f32.gmra.mxu3 %v402_v13  ;;  %v640_v13 = vld [vmem:[#allocation2 + $0x600] sm:$0xff] }
 0x217   :  { %510 = vmatmul.f32.gmra.mxu2 %v403_v15 }
 0x218   :  { %v573_v16 = vpop.f32.mrf.mxu3 }
 0x219   :  { %v574_v45 = vadd.f32 %v573_v16, %v460_v14 }
 0x21a   :  { %v463_v18 = vpop.f32.mrf.mxu2 }
 0x21d   :  { %623 = vmatmul.f32.gmra.mxu3 %v404_v17  ;;  %v642_v17 = vld [vmem:[#allocation2 + $0x610] sm:$0xff] }
 0x21f   :  { %513 = vmatmul.f32.gmra.mxu2 %v405_v19 }
 0x220   :  { %v576_v21 = vpop.f32.mrf.mxu3 }
 0x221   :  { %v577_v49 = vadd.f32 %v576_v21, %v463_v18 }
 0x222   :  { %v466_v23 = vpop.f32.mrf.mxu2 }
 0x225   :  { %626 = vmatmul.f32.gmra.mxu3 %v406_v22 }
 0x227   :  { %516 = vmatmul.f32.gmra.mxu2 %v407_v25 }
 0x228   :  { %v579_v26 = vpop.f32.mrf.mxu3 }
 0x229   :  { %v580_v52 = vadd.f32 %v579_v26, %v466_v23  ;;  %v644_v23 = vld [vmem:[#allocation2 + $0x620] sm:$0xff] }
 0x22a   :  { %v469_v30 = vpop.f32.mrf.mxu2 }
 0x22d   :  { %629 = vmatmul.f32.gmra.mxu3 %v408_v27 }
 0x22f   :  { %519 = vmatmul.f32.gmra.mxu2 %v409_v31  ;;  %v646_v31 = vld [vmem:[#allocation2 + $0x630] sm:$0xff] }
 0x230   :  { %v582_v28 = vpop.f32.mrf.mxu3 }
 0x231   :  { %v583_v56 = vadd.f32 %v582_v28, %v469_v30 }
 0x232   :  { %v472_v24 = vpop.f32.mrf.mxu2 }
 0x235   :  { %632 = vmatmul.f32.gmra.mxu3 %v410_v29 }
 0x237   :  { %522 = vmatmul.f32.gmra.mxu2 %v411_v20 }
 0x238   :  { %v585_v34 = vpop.f32.mrf.mxu3 }
 0x239   :  { %v586_v47 = vadd.f32 %v585_v34, %v472_v24  ;;  %v641_v34 = vld [vmem:[#allocation2 + $0x608] sm:$0xff] }
 0x23a   :  { %v475_v39 = vpop.f32.mrf.mxu2 }
 0x23d   :  { %635 = vmatmul.f32.gmra.mxu3 %v412_v38  ;;  %v648_v38 = vld [vmem:[#allocation2 + $0x640] sm:$0xff] }
 0x240   :  { %v588_v33 = vpop.f32.mrf.mxu3 }
 0x241   :  { %v589_v42 = vadd.f32 %v588_v33, %v475_v39  ;;  %v643_v39 = vld [vmem:[#allocation2 + $0x618] sm:$0xff]  ;;  %v650_v33 = vld [vmem:[#allocation2 + $0x650] sm:$0xff] }
 0x242   :  { %v5858_v46 = vpop.f32.mrf.mxu2 }
 0x243   :  { %704 = vmatpush.msrb.mxu0 %v589_v42  ;;  %v645_v42 = vld [vmem:[#allocation2 + $0x628] sm:$0xff] }
 0x245   :  { %705 = vmatpush.msrb.mxu0 %v586_v47  ;;  %v652_v47 = vld [vmem:[#allocation2 + $0x660] sm:$0xff] }
 0x247   :  { %706 = vmatpush.msrb.mxu0 %v583_v56  ;;  %v647_v56 = vld [vmem:[#allocation2 + $0x638] sm:$0xff] }
 0x248   :  { %v5860_v48 = vpop.f32.mrf.mxu3 }
 0x249   :  { %707 = vmatpush.msrb.mxu0 %v580_v52  ;;  %v592_v20 = vadd.f32 %v5860_v48, %v5858_v46  ;;  %v654_v52 = vld [vmem:[#allocation2 + $0x670] sm:$0xff]  ;;  %v651_v46 = vld [vmem:[#allocation2 + $0x658] sm:$0xff] }
 0x24a   :  { %v5862_v44 = vpop.f32.mrf.mxu2  ;;  %v658_v48 = vld [vmem:[#allocation2 + $0x690] sm:$0xff] }
 0x24b   :  { %708 = vmatpush.msrb.mxu0 %v577_v49  ;;  %v649_v49 = vld [vmem:[#allocation2 + $0x648] sm:$0xff] }
 0x24d   :  { %709 = vmatpush.msrb.mxu0 %v574_v45  ;;  %v653_v45 = vld [vmem:[#allocation2 + $0x668] sm:$0xff] }
 0x24f   :  { %710 = vmatpush.msrb.mxu0 %v571_v58  ;;  %v660_v58 = vld [vmem:[#allocation2 + $0x6a0] sm:$0xff] }
 0x250   :  { %v5864_v40 = vpop.f32.mrf.mxu3 }
 0x251   :  { %711 = vmatpush.msrb.mxu0 %v568_v59  ;;  %v595_v24 = vadd.f32 %v5864_v40, %v5862_v44  ;;  %v656_v44 = vld [vmem:[#allocation2 + $0x680] sm:$0xff]  ;;  %v655_v59 = vld [vmem:[#allocation2 + $0x678] sm:$0xff]  ;;  %v662_v40 = vld [vmem:[#allocation2 + $0x6b0] sm:$0xff] }
 0x252   :  { %v5866_v41 = vpop.f32.mrf.mxu2 }
 0x253   :  { %712 = vmatpush.msrb.mxu0 %v5856_v4 }
 0x255   :  { %713 = vmatpush.msrb.mxu0 %v5854_v63 }
 0x257   :  { %714 = vmatpush.msrb.mxu0 %v5852_v50 }
 0x258   :  { %v5871_v55 = vpop.f32.mrf.mxu3 }
 0x259   :  { %715 = vmatpush.msrb.mxu0 %v5850_v54  ;;  %v598_v29 = vadd.f32 %v5871_v55, %v5866_v41  ;;  %v657_v41 = vld [vmem:[#allocation2 + $0x688] sm:$0xff]  ;;  %v664_v55 = vld [vmem:[#allocation2 + $0x6c0] sm:$0xff] }
 0x25a   :  { %v487_v36 = vpop.f32.mrf.mxu2 }
 0x25b   :  { %716 = vmatpush.msrb.mxu0 %v5848_v57 }
 0x25d   :  { %717 = vmatpush.msrb.mxu0 %v5846_v53 }
 0x25f   :  { %718 = vmatpush.msrb.mxu0 %v5844_v43 }
 0x260   :  { %v600_v37 = vpop.f32.mrf.mxu3 }
 0x261   :  { %719 = vmatpush.msrb.mxu0 %v5842_v35  ;;  %v601_v28 = vadd.f32 %v600_v37, %v487_v36  ;;  %v659_v36 = vld [vmem:[#allocation2 + $0x698] sm:$0xff]  ;;  %v666_v37 = vld [vmem:[#allocation2 + $0x6d0] sm:$0xff] }
 0x262   :  { %v490_v60 = vpop.f32.mrf.mxu2  ;;  %720 = vmatmul.f32.vlgmr.msrb.gmra.mxu0 %v640_v13  ;;  %v677_v13 = vld [vmem:[#allocation2 + $0x728] sm:$0xff] }
 0x268   :  { %v603_v51 = vpop.f32.mrf.mxu3 }
 0x269   :  { %v604_v30 = vadd.f32 %v603_v51, %v490_v60  ;;  %v661_v60 = vld [vmem:[#allocation2 + $0x6a8] sm:$0xff]  ;;  %v668_v51 = vld [vmem:[#allocation2 + $0x6e0] sm:$0xff] }
 0x26a   :  { %v493_v61 = vpop.f32.mrf.mxu2  ;;  %723 = vmatmul.f32.gmra.mxu0 %v642_v17  ;;  %v679_v17 = vld [vmem:[#allocation2 + $0x738] sm:$0xff] }
 0x270   :  { %v606_v62 = vpop.f32.mrf.mxu3 }
 0x271   :  { %v607_v27 = vadd.f32 %v606_v62, %v493_v61  ;;  %v663_v61 = vld [vmem:[#allocation2 + $0x6b8] sm:$0xff]  ;;  %v670_v62 = vld [vmem:[#allocation2 + $0x6f0] sm:$0xff] }
 0x272   :  { %v496_v32 = vpop.f32.mrf.mxu2  ;;  %726 = vmatmul.f32.gmra.mxu0 %v644_v23 }
 0x278   :  { %v609_v50 = vpop.f32.mrf.mxu3 }
 0x279   :  { %v610_v26 = vadd.f32 %v609_v50, %v496_v32  ;;  %v665_v32 = vld [vmem:[#allocation2 + $0x6c8] sm:$0xff] }
 0x27a   :  { %v499_v63 = vpop.f32.mrf.mxu2  ;;  %729 = vmatmul.f32.gmra.mxu0 %v646_v31  ;;  %v690_v31 = vld [vmem:[#allocation2 + $0x790] sm:$0xff] }
 0x280   :  { %v612_v0 = vpop.f32.mrf.mxu3 }
 0x281   :  { %v613_v25 = vadd.f32 %v612_v0, %v499_v63  ;;  %v672_v63 = vld [vmem:[#allocation2 + $0x700] sm:$0xff]  ;;  %v667_v0 = vld [vmem:[#allocation2 + $0x6d8] sm:$0xff] }
 0x282   :  { %v502_v1 = vpop.f32.mrf.mxu2  ;;  %732 = vmatmul.f32.gmra.mxu0 %v648_v38  ;;  %v687_v38 = vld [vmem:[#allocation2 + $0x778] sm:$0xff] }
 0x288   :  { %v615_v54 = vpop.f32.mrf.mxu3 }
 0x289   :  { %v616_v22 = vadd.f32 %v615_v54, %v502_v1  ;;  %v674_v54 = vld [vmem:[#allocation2 + $0x710] sm:$0xff] }
 0x28a   :  { %v505_v2 = vpop.f32.mrf.mxu2  ;;  %735 = vmatmul.f32.gmra.mxu0 %v650_v33  ;;  %v694_v33 = vld [vmem:[#allocation2 + $0x7b0] sm:$0xff] }
 0x290   :  { %v618_v3 = vpop.f32.mrf.mxu3 }
 0x291   :  { %v619_v21 = vadd.f32 %v618_v3, %v505_v2  ;;  %v669_v2 = vld [vmem:[#allocation2 + $0x6e8] sm:$0xff] }
 0x292   :  { %v508_v57 = vpop.f32.mrf.mxu2  ;;  %738 = vmatmul.f32.gmra.mxu0 %v652_v47  ;;  %v689_v47 = vld [vmem:[#allocation2 + $0x788] sm:$0xff] }
 0x298   :  { %v621_v4 = vpop.f32.mrf.mxu3 }
 0x299   :  { %v622_v19 = vadd.f32 %v621_v4, %v508_v57  ;;  %v676_v57 = vld [vmem:[#allocation2 + $0x720] sm:$0xff]  ;;  %v671_v4 = vld [vmem:[#allocation2 + $0x6f8] sm:$0xff] }
 0x29a   :  { %v511_v53 = vpop.f32.mrf.mxu2  ;;  %741 = vmatmul.f32.gmra.mxu0 %v654_v52  ;;  %v696_v52 = vld [vmem:[#allocation2 + $0x7c0] sm:$0xff] }
 0x2a0   :  { %v624_v5 = vpop.f32.mrf.mxu3 }
 0x2a1   :  { %v625_v18 = vadd.f32 %v624_v5, %v511_v53  ;;  %v678_v5 = vld [vmem:[#allocation2 + $0x730] sm:$0xff] }
 0x2a2   :  { %v514_v43 = vpop.f32.mrf.mxu2  ;;  %744 = vmatmul.f32.gmra.mxu0 %v656_v44  ;;  %v691_v44 = vld [vmem:[#allocation2 + $0x798] sm:$0xff] }
 0x2a8   :  { %v627_v6 = vpop.f32.mrf.mxu3 }
 0x2a9   :  { %v628_v16 = vadd.f32 %v627_v6, %v514_v43  ;;  %v673_v6 = vld [vmem:[#allocation2 + $0x708] sm:$0xff] }
 0x2aa   :  { %v517_v7 = vpop.f32.mrf.mxu2  ;;  %747 = vmatmul.f32.gmra.mxu0 %v658_v48  ;;  %v698_v48 = vld [vmem:[#allocation2 + $0x7d0] sm:$0xff] }
 0x2b0   :  { %v630_v35 = vpop.f32.mrf.mxu3 }
 0x2b1   :  { %v631_v15 = vadd.f32 %v630_v35, %v517_v7  ;;  %v680_v35 = vld [vmem:[#allocation2 + $0x740] sm:$0xff] }
 0x2b2   :  { %v520_v8 = vpop.f32.mrf.mxu2  ;;  %750 = vmatmul.f32.gmra.mxu0 %v660_v58  ;;  %v693_v58 = vld [vmem:[#allocation2 + $0x7a8] sm:$0xff] }
 0x2b8   :  { %v633_v9 = vpop.f32.mrf.mxu3 }
 0x2b9   :  { %v634_v14 = vadd.f32 %v633_v9, %v520_v8  ;;  %v675_v9 = vld [vmem:[#allocation2 + $0x718] sm:$0xff] }
 0x2ba   :  { %v523_v10 = vpop.f32.mrf.mxu2  ;;  %753 = vmatmul.f32.gmra.mxu0 %v662_v40  ;;  %v700_v40 = vld [vmem:[#allocation2 + $0x7e0] sm:$0xff] }
 0x2c0   :  { %v636_v11 = vpop.f32.mrf.mxu3 }
 0x2c1   :  { %v637_v12 = vadd.f32 %v636_v11, %v523_v10  ;;  %v682_v11 = vld [vmem:[#allocation2 + $0x750] sm:$0xff] }
 0x2c2   :  { %756 = vmatmul.f32.gmra.mxu0 %v664_v55  ;;  %v695_v55 = vld [vmem:[#allocation2 + $0x7b8] sm:$0xff] }
 0x2c3   :  { %817 = vmatpush.msrb.mxu1 %v637_v12 }
 0x2c5   :  { %818 = vmatpush.msrb.mxu1 %v634_v14 }
 0x2c7   :  { %819 = vmatpush.msrb.mxu1 %v631_v15  ;;  %v684_v15 = vld [vmem:[#allocation2 + $0x760] sm:$0xff] }
 0x2c9   :  { %820 = vmatpush.msrb.mxu1 %v628_v16 }
 0x2ca   :  { %759 = vmatmul.f32.gmra.mxu0 %v666_v37  ;;  %v702_v37 = vld [vmem:[#allocation2 + $0x7f0] sm:$0xff] }
 0x2cb   :  { %821 = vmatpush.msrb.mxu1 %v625_v18 }
 0x2cd   :  { %822 = vmatpush.msrb.mxu1 %v622_v19  ;;  %v686_v19 = vld [vmem:[#allocation2 + $0x770] sm:$0xff] }
 0x2cf   :  { %823 = vmatpush.msrb.mxu1 %v619_v21 }
 0x2d1   :  { %824 = vmatpush.msrb.mxu1 %v616_v22  ;;  %v681_v22 = vld [vmem:[#allocation2 + $0x748] sm:$0xff] }
 0x2d2   :  { %762 = vmatmul.f32.gmra.mxu0 %v668_v51  ;;  %v697_v51 = vld [vmem:[#allocation2 + $0x7c8] sm:$0xff] }
 0x2d3   :  { %825 = vmatpush.msrb.mxu1 %v613_v25  ;;  %v688_v25 = vld [vmem:[#allocation2 + $0x780] sm:$0xff] }
 0x2d5   :  { %826 = vmatpush.msrb.mxu1 %v610_v26 }
 0x2d7   :  { %827 = vmatpush.msrb.mxu1 %v607_v27  ;;  %v683_v27 = vld [vmem:[#allocation2 + $0x758] sm:$0xff] }
 0x2d9   :  { %828 = vmatpush.msrb.mxu1 %v604_v30 }
 0x2da   :  { %765 = vmatmul.f32.gmra.mxu0 %v670_v62 }
 0x2db   :  { %829 = vmatpush.msrb.mxu1 %v601_v28 }
 0x2dd   :  { %830 = vmatpush.msrb.mxu1 %v598_v29  ;;  %v685_v29 = vld [vmem:[#allocation2 + $0x768] sm:$0xff] }
 0x2df   :  { %831 = vmatpush.msrb.mxu1 %v595_v24  ;;  %v5884_v50 = vpop.f32.mrf.mxu0 }
 0x2e1   :  { %832 = vmatpush.msrb.mxu1 %v592_v20  ;;  %v692_v20 = vld [vmem:[#allocation2 + $0x7a0] sm:$0xff] }
 0x2e2   :  { %833 = vmatmul.f32.vlgmr.msrb.gmra.mxu1 %v641_v34  ;;  %768 = vmatmul.f32.gmra.mxu0 %v672_v63 }
 0x2e7   :  { %v5886_v1 = vpop.f32.mrf.mxu0 }
 0x2ea   :  { %836 = vmatmul.f32.gmra.mxu1 %v643_v39  ;;  %771 = vmatmul.f32.gmra.mxu0 %v674_v54  ;;  %v701_v54 = vld [vmem:[#allocation2 + $0x7e8] sm:$0xff] }
 0x2ef   :  { %v5888_v3 = vpop.f32.mrf.mxu0 }
 0x2f2   :  { %839 = vmatmul.f32.gmra.mxu1 %v645_v42  ;;  %774 = vmatmul.f32.gmra.mxu0 %v676_v57 }
 0x2f7   :  { %v5890_v53 = vpop.f32.mrf.mxu0 }
 0x2fa   :  { %842 = vmatmul.f32.gmra.mxu1 %v647_v56  ;;  %777 = vmatmul.f32.gmra.mxu0 %v678_v5 }
 0x2ff   :  { %v5894_v7 = vpop.f32.mrf.mxu0 }
 0x302   :  { %845 = vmatmul.f32.gmra.mxu1 %v649_v49  ;;  %780 = vmatmul.f32.gmra.mxu0 %v680_v35 }
 0x307   :  { %v5898_v10 = vpop.f32.mrf.mxu0 }
 0x30a   :  { %848 = vmatmul.f32.gmra.mxu1 %v651_v46  ;;  %783 = vmatmul.f32.gmra.mxu0 %v682_v11 }
 0x30f   :  { %v5902_v14 = vpop.f32.mrf.mxu0 }
 0x312   :  { %851 = vmatmul.f32.gmra.mxu1 %v653_v45  ;;  %786 = vmatmul.f32.gmra.mxu0 %v684_v15 }
 0x317   :  { %v5906_v18 = vpop.f32.mrf.mxu0 }
 0x31a   :  { %854 = vmatmul.f32.gmra.mxu1 %v655_v59  ;;  %789 = vmatmul.f32.gmra.mxu0 %v686_v19 }
 0x31f   :  { %v5910_v23 = vpop.f32.mrf.mxu0 }
 0x322   :  { %857 = vmatmul.f32.gmra.mxu1 %v657_v41  ;;  %792 = vmatmul.f32.gmra.mxu0 %v688_v25 }
 0x327   :  { %v5914_v30 = vpop.f32.mrf.mxu0 }
 0x32a   :  { %860 = vmatmul.f32.gmra.mxu1 %v659_v36  ;;  %795 = vmatmul.f32.gmra.mxu0 %v690_v31 }
 0x32f   :  { %v751_v24 = vpop.f32.mrf.mxu0 }
 0x332   :  { %863 = vmatmul.f32.gmra.mxu1 %v661_v60  ;;  %798 = vmatmul.f32.gmra.mxu0 %v692_v20 }
 0x337   :  { %v754_v39 = vpop.f32.mrf.mxu0 }
 0x33a   :  { %866 = vmatmul.f32.gmra.mxu1 %v663_v61  ;;  %801 = vmatmul.f32.gmra.mxu0 %v694_v33 }
 0x33f   :  { %v757_v56 = vpop.f32.mrf.mxu0 }
 0x342   :  { %869 = vmatmul.f32.gmra.mxu1 %v665_v32  ;;  %804 = vmatmul.f32.gmra.mxu0 %v696_v52  ;;  %v699_v32 = vld [vmem:[#allocation2 + $0x7d8] sm:$0xff] }
 0x347   :  { %v760_v46 = vpop.f32.mrf.mxu0 }
 0x34a   :  { %872 = vmatmul.f32.gmra.mxu1 %v667_v0  ;;  %807 = vmatmul.f32.gmra.mxu0 %v698_v48 }
 0x34f   :  { %v763_v59 = vpop.f32.mrf.mxu0 }
 0x352   :  { %875 = vmatmul.f32.gmra.mxu1 %v669_v2  ;;  %810 = vmatmul.f32.gmra.mxu0 %v700_v40 }
 0x357   :  { %v766_v36 = vpop.f32.mrf.mxu0 }
 0x35a   :  { %878 = vmatmul.f32.gmra.mxu1 %v671_v4  ;;  %813 = vmatmul.f32.gmra.mxu0 %v702_v37  ;;  %v703_v4 = vld [vmem:[#allocation2 + $0x7f8] sm:$0xff] }
 0x35f   :  { %v5892_v43 = vpop.f32.mrf.mxu1  ;;  %v5920_v61 = vpop.f32.mrf.mxu0 }
 0x362   :  { %881 = vmatmul.f32.gmra.mxu1 %v673_v6 }
 0x367   :  { %v5896_v8 = vpop.f32.mrf.mxu1  ;;  %v5922_v63 = vpop.f32.mrf.mxu0 }
 0x36a   :  { %884 = vmatmul.f32.gmra.mxu1 %v675_v9 }
 0x36f   :  { %v5900_v12 = vpop.f32.mrf.mxu1  ;;  %v5924_v2 = vpop.f32.mrf.mxu0 }
 0x372   :  { %887 = vmatmul.f32.gmra.mxu1 %v677_v13 }
 0x377   :  { %v5904_v16 = vpop.f32.mrf.mxu1  ;;  %v5926_v9 = vpop.f32.mrf.mxu0 }
 0x378   :  { %v844_v20 = vadd.f32 %v5904_v16, %v5890_v53 }
 0x37a   :  { %890 = vmatmul.f32.gmra.mxu1 %v679_v17 }
 0x37f   :  { %v5908_v21 = vpop.f32.mrf.mxu1 }
 0x382   :  { %893 = vmatmul.f32.gmra.mxu1 %v681_v22 }
 0x387   :  { %v5912_v26 = vpop.f32.mrf.mxu1 }
 0x38a   :  { %896 = vmatmul.f32.gmra.mxu1 %v683_v27  ;;  %v5934_v27 = vpop.f32.mrf.mxu0 }
 0x38f   :  { %v5916_v28 = vpop.f32.mrf.mxu1 }
 0x392   :  { %899 = vmatmul.f32.gmra.mxu1 %v685_v29  ;;  %v853_v29 = vadd.f32 %v5916_v28, %v5902_v14  ;;  %v838_v14 = vadd.f32 %v5896_v8, %v5886_v1 }
 0x397   :  { %v5918_v34 = vpop.f32.mrf.mxu1 }
 0x398   :  { %v856_v31 = vadd.f32 %v5918_v34, %v5906_v18  ;;  %v784_v18 = vpop.f32.mrf.mxu0  ;;  %v841_v34 = vadd.f32 %v5900_v12, %v5888_v3 }
 0x39a   :  { %902 = vmatmul.f32.gmra.mxu1 %v687_v38 }
 0x39f   :  { %v858_v42 = vpop.f32.mrf.mxu1 }
 0x3a0   :  { %v859_v22 = vadd.f32 %v858_v42, %v5910_v23  ;;  %v847_v23 = vadd.f32 %v5908_v21, %v5894_v7  ;;  %v787_v21 = vpop.f32.mrf.mxu0 }
 0x3a2   :  { %905 = vmatmul.f32.gmra.mxu1 %v689_v47 }
 0x3a7   :  { %v861_v49 = vpop.f32.mrf.mxu1 }
 0x3a8   :  { %v862_v19 = vadd.f32 %v861_v49, %v5914_v30  ;;  %v790_v28 = vpop.f32.mrf.mxu0 }
 0x3aa   :  { %908 = vmatmul.f32.gmra.mxu1 %v691_v44 }
 0x3af   :  { %v864_v45 = vpop.f32.mrf.mxu1 }
 0x3b0   :  { %v865_v17 = vadd.f32 %v864_v45, %v751_v24  ;;  %v850_v24 = vadd.f32 %v5912_v26, %v5898_v10  ;;  %v835_v10 = vadd.f32 %v5892_v43, %v5884_v50  ;;  %v793_v38 = vpop.f32.mrf.mxu0 }
 0x3b2   :  { %911 = vmatmul.f32.gmra.mxu1 %v693_v58  ;;  %v931_v58 = vld [vmem:[#allocation2 + $0x800] sm:$0xff] }
 0x3b7   :  { %v867_v41 = vpop.f32.mrf.mxu1 }
 0x3b8   :  { %v868_v15 = vadd.f32 %v867_v41, %v754_v39  ;;  %v796_v33 = vpop.f32.mrf.mxu0 }
 0x3ba   :  { %914 = vmatmul.f32.gmra.mxu1 %v695_v55  ;;  %v933_v55 = vld [vmem:[#allocation2 + $0x810] sm:$0xff] }
 0x3bf   :  { %v870_v60 = vpop.f32.mrf.mxu1 }
 0x3c0   :  { %v871_v11 = vadd.f32 %v870_v60, %v757_v56  ;;  %v799_v12 = vpop.f32.mrf.mxu0 }
 0x3c2   :  { %917 = vmatmul.f32.gmra.mxu1 %v697_v51 }
 0x3c7   :  { %v873_v62 = vpop.f32.mrf.mxu1 }
 0x3c8   :  { %v874_v35 = vadd.f32 %v873_v62, %v760_v46  ;;  %v802_v47 = vpop.f32.mrf.mxu0  ;;  %v935_v62 = vld [vmem:[#allocation2 + $0x820] sm:$0xff] }
 0x3ca   :  { %920 = vmatmul.f32.gmra.mxu1 %v699_v32 }
 0x3cf   :  { %v876_v0 = vpop.f32.mrf.mxu1 }
 0x3d0   :  { %v877_v6 = vadd.f32 %v876_v0, %v763_v59  ;;  %v805_v56 = vpop.f32.mrf.mxu0 }
 0x3d2   :  { %923 = vmatmul.f32.gmra.mxu1 %v701_v54 }
 0x3d7   :  { %v879_v57 = vpop.f32.mrf.mxu1 }
 0x3d8   :  { %v880_v5 = vadd.f32 %v879_v57, %v766_v36  ;;  %v808_v50 = vpop.f32.mrf.mxu0 }
 0x3da   :  { %926 = vmatmul.f32.gmra.mxu1 %v703_v4  ;;  %995 = vmatpush.msra.mxu2 %v880_v5  ;;  %v937_v4 = vld [vmem:[#allocation2 + $0x830] sm:$0xff] }
 0x3dc   :  { %996 = vmatpush.msra.mxu2 %v877_v6 }
 0x3de   :  { %997 = vmatpush.msra.mxu2 %v874_v35 }
 0x3df   :  { %v5928_v13 = vpop.f32.mrf.mxu1 }
 0x3e0   :  { %998 = vmatpush.msra.mxu2 %v871_v11  ;;  %v811_v49 = vpop.f32.mrf.mxu0  ;;  %v883_v11 = vadd.f32 %v5928_v13, %v5920_v61  ;;  %v947_v61 = vld [vmem:[#allocation2 + $0x880] sm:$0xff]  ;;  %v942_v13 = vld [vmem:[#allocation2 + $0x858] sm:$0xff] }
 0x3e2   :  { %999 = vmatpush.msra.mxu2 %v868_v15  ;;  %v932_v15 = vld [vmem:[#allocation2 + $0x808] sm:$0xff] }
 0x3e4   :  { %1000 = vmatpush.msra.mxu2 %v865_v17  ;;  %v939_v17 = vld [vmem:[#allocation2 + $0x840] sm:$0xff] }
 0x3e6   :  { %1001 = vmatpush.msra.mxu2 %v862_v19  ;;  %v941_v19 = vld [vmem:[#allocation2 + $0x850] sm:$0xff] }
 0x3e7   :  { %v5932_v25 = vpop.f32.mrf.mxu1 }
 0x3e8   :  { %1002 = vmatpush.msra.mxu2 %v859_v22  ;;  %v814_v46 = vpop.f32.mrf.mxu0  ;;  %v886_v35 = vadd.f32 %v5932_v25, %v5922_v63  ;;  %v936_v22 = vld [vmem:[#allocation2 + $0x828] sm:$0xff]  ;;  %v945_v63 = vld [vmem:[#allocation2 + $0x870] sm:$0xff] }
 0x3e9   :  { %v940_v25 = vld [vmem:[#allocation2 + $0x848] sm:$0xff] }
 0x3ea   :  { %1003 = vmatpush.msra.mxu2 %v856_v31  ;;  %v949_v31 = vld [vmem:[#allocation2 + $0x890] sm:$0xff] }
 0x3ec   :  { %1004 = vmatpush.msra.mxu2 %v853_v29  ;;  %v944_v29 = vld [vmem:[#allocation2 + $0x868] sm:$0xff] }
 0x3ee   :  { %1005 = vmatpush.msra.mxu2 %v850_v24  ;;  %v951_v24 = vld [vmem:[#allocation2 + $0x8a0] sm:$0xff] }
 0x3ef   :  { %v5944_v30 = vpop.f32.mrf.mxu1 }
 0x3f0   :  { %1006 = vmatpush.msra.mxu2 %v847_v23  ;;  %v889_v6 = vadd.f32 %v5944_v30, %v5924_v2  ;;  %v943_v2 = vld [vmem:[#allocation2 + $0x860] sm:$0xff]  ;;  %v946_v23 = vld [vmem:[#allocation2 + $0x878] sm:$0xff]  ;;  %v953_v30 = vld [vmem:[#allocation2 + $0x8b0] sm:$0xff] }
 0x3f2   :  { %1007 = vmatpush.msra.mxu2 %v844_v20  ;;  %v948_v20 = vld [vmem:[#allocation2 + $0x888] sm:$0xff] }
 0x3f4   :  { %1008 = vmatpush.msra.mxu2 %v841_v34  ;;  %v950_v34 = vld [vmem:[#allocation2 + $0x898] sm:$0xff] }
 0x3f6   :  { %1009 = vmatpush.msra.mxu2 %v838_v14  ;;  %v957_v14 = vld [vmem:[#allocation2 + $0x8d0] sm:$0xff] }
 0x3f7   :  { %v891_v7 = vpop.f32.mrf.mxu1 }
 0x3f8   :  { %1010 = vmatpush.msra.mxu2 %v835_v10  ;;  %v892_v5 = vadd.f32 %v891_v7, %v5926_v9  ;;  %v934_v9 = vld [vmem:[#allocation2 + $0x818] sm:$0xff]  ;;  %v952_v10 = vld [vmem:[#allocation2 + $0x8a8] sm:$0xff]  ;;  %v959_v7 = vld [vmem:[#allocation2 + $0x8e0] sm:$0xff] }
 0x3f9   :  { %1011 = vmatmul.f32.vlgmr.msra.gmra.mxu2 %v931_v58 }
 0x3ff   :  { %v894_v26 = vpop.f32.mrf.mxu1 }
 0x400   :  { %v895_v57 = vadd.f32 %v894_v26, %v5934_v27  ;;  %v938_v27 = vld [vmem:[#allocation2 + $0x838] sm:$0xff]  ;;  %v961_v26 = vld [vmem:[#allocation2 + $0x8f0] sm:$0xff] }
 0x401   :  { %1014 = vmatmul.f32.gmra.mxu2 %v933_v55 }
 0x407   :  { %v897_v53 = vpop.f32.mrf.mxu1 }
 0x408   :  { %v898_v54 = vadd.f32 %v897_v53, %v784_v18  ;;  %v955_v18 = vld [vmem:[#allocation2 + $0x8c0] sm:$0xff] }
 0x409   :  { %1017 = vmatmul.f32.gmra.mxu2 %v935_v62  ;;  %v963_v53 = vld [vmem:[#allocation2 + $0x900] sm:$0xff] }
 0x40f   :  { %v900_v16 = vpop.f32.mrf.mxu1 }
 0x410   :  { %v901_v0 = vadd.f32 %v900_v16, %v787_v21  ;;  %v954_v21 = vld [vmem:[#allocation2 + $0x8b8] sm:$0xff] }
 0x411   :  { %1020 = vmatmul.f32.gmra.mxu2 %v937_v4 }
 0x417   :  { %v903_v39 = vpop.f32.mrf.mxu1 }
 0x418   :  { %v904_v32 = vadd.f32 %v903_v39, %v790_v28  ;;  %v956_v28 = vld [vmem:[#allocation2 + $0x8c8] sm:$0xff]  ;;  %v965_v39 = vld [vmem:[#allocation2 + $0x910] sm:$0xff] }
 0x419   :  { %1023 = vmatmul.f32.gmra.mxu2 %v939_v17 }
 0x41f   :  { %v906_v3 = vpop.f32.mrf.mxu1 }
 0x420   :  { %v907_v51 = vadd.f32 %v906_v3, %v793_v38  ;;  %v958_v38 = vld [vmem:[#allocation2 + $0x8d8] sm:$0xff]  ;;  %v960_v3 = vld [vmem:[#allocation2 + $0x8e8] sm:$0xff] }
 0x421   :  { %1026 = vmatmul.f32.gmra.mxu2 %v941_v19  ;;  %v983_v19 = vld [vmem:[#allocation2 + $0x9a0] sm:$0xff] }
 0x427   :  { %v909_v42 = vpop.f32.mrf.mxu1 }
 0x428   :  { %v910_v60 = vadd.f32 %v909_v42, %v796_v33 }
 0x429   :  { %1029 = vmatmul.f32.gmra.mxu2 %v943_v2 }
 0x42f   :  { %v912_v1 = vpop.f32.mrf.mxu1 }
 0x430   :  { %v913_v37 = vadd.f32 %v912_v1, %v799_v12  ;;  %v967_v12 = vld [vmem:[#allocation2 + $0x920] sm:$0xff]  ;;  %v969_v1 = vld [vmem:[#allocation2 + $0x930] sm:$0xff] }
 0x431   :  { %1032 = vmatmul.f32.gmra.mxu2 %v945_v63  ;;  %v978_v63 = vld [vmem:[#allocation2 + $0x978] sm:$0xff] }
 0x437   :  { %v915_v8 = vpop.f32.mrf.mxu1 }
 0x438   :  { %v916_v36 = vadd.f32 %v915_v8, %v802_v47  ;;  %v962_v47 = vld [vmem:[#allocation2 + $0x8f8] sm:$0xff] }
 0x439   :  { %1035 = vmatmul.f32.gmra.mxu2 %v947_v61 }
 0x43f   :  { %v918_v52 = vpop.f32.mrf.mxu1 }
 0x440   :  { %v919_v41 = vadd.f32 %v918_v52, %v805_v56  ;;  %v964_v56 = vld [vmem:[#allocation2 + $0x908] sm:$0xff]  ;;  %v971_v52 = vld [vmem:[#allocation2 + $0x940] sm:$0xff] }
 0x441   :  { %1038 = vmatmul.f32.gmra.mxu2 %v949_v31 }
 0x447   :  { %v921_v43 = vpop.f32.mrf.mxu1 }
 0x448   :  { %v922_v40 = vadd.f32 %v921_v43, %v808_v50 }
 0x449   :  { %1041 = vmatmul.f32.gmra.mxu2 %v951_v24  ;;  %v987_v24 = vld [vmem:[#allocation2 + $0x9c0] sm:$0xff] }
 0x44f   :  { %v924_v44 = vpop.f32.mrf.mxu1 }
 0x450   :  { %v925_v59 = vadd.f32 %v924_v44, %v811_v49  ;;  %v966_v44 = vld [vmem:[#allocation2 + $0x918] sm:$0xff] }
 0x451   :  { %1044 = vmatmul.f32.gmra.mxu2 %v953_v30 }
 0x457   :  { %v927_v48 = vpop.f32.mrf.mxu1 }
 0x458   :  { %v928_v45 = vadd.f32 %v927_v48, %v814_v46  ;;  %v973_v46 = vld [vmem:[#allocation2 + $0x950] sm:$0xff] }
 0x459   :  { %1047 = vmatmul.f32.gmra.mxu2 %v955_v18  ;;  %v989_v18 = vld [vmem:[#allocation2 + $0x9d0] sm:$0xff] }
 0x45a   :  { %1108 = vmatpush.msra.mxu3 %v928_v45 }
 0x45c   :  { %1109 = vmatpush.msra.mxu3 %v925_v59  ;;  %v968_v59 = vld [vmem:[#allocation2 + $0x928] sm:$0xff] }
 0x45e   :  { %1110 = vmatpush.msra.mxu3 %v922_v40  ;;  %v975_v40 = vld [vmem:[#allocation2 + $0x960] sm:$0xff] }
 0x460   :  { %1111 = vmatpush.msra.mxu3 %v919_v41 }
 0x461   :  { %1050 = vmatmul.f32.gmra.mxu2 %v957_v14 }
 0x462   :  { %1112 = vmatpush.msra.mxu3 %v916_v36 }
 0x464   :  { %1113 = vmatpush.msra.mxu3 %v913_v37  ;;  %v970_v37 = vld [vmem:[#allocation2 + $0x938] sm:$0xff] }
 0x466   :  { %1114 = vmatpush.msra.mxu3 %v910_v60  ;;  %v977_v60 = vld [vmem:[#allocation2 + $0x970] sm:$0xff] }
 0x468   :  { %1115 = vmatpush.msra.mxu3 %v907_v51 }
 0x469   :  { %1053 = vmatmul.f32.gmra.mxu2 %v959_v7  ;;  %v991_v7 = vld [vmem:[#allocation2 + $0x9e0] sm:$0xff] }
 0x46a   :  { %1116 = vmatpush.msra.mxu3 %v904_v32 }
 0x46c   :  { %1117 = vmatpush.msra.mxu3 %v901_v0  ;;  %v972_v0 = vld [vmem:[#allocation2 + $0x948] sm:$0xff] }
 0x46e   :  { %1118 = vmatpush.msra.mxu3 %v898_v54  ;;  %v979_v54 = vld [vmem:[#allocation2 + $0x980] sm:$0xff] }
 0x470   :  { %1119 = vmatpush.msra.mxu3 %v895_v57 }
 0x471   :  { %1056 = vmatmul.f32.gmra.mxu2 %v961_v26 }
 0x472   :  { %1120 = vmatpush.msra.mxu3 %v892_v5 }
 0x474   :  { %1121 = vmatpush.msra.mxu3 %v889_v6  ;;  %v974_v6 = vld [vmem:[#allocation2 + $0x958] sm:$0xff] }
 0x476   :  { %1122 = vmatpush.msra.mxu3 %v886_v35  ;;  %v981_v35 = vld [vmem:[#allocation2 + $0x990] sm:$0xff] }
 0x478   :  { %1123 = vmatpush.msra.mxu3 %v883_v11 }
 0x479   :  { %1124 = vmatmul.f32.vlgmr.msra.gmra.mxu3 %v932_v15  ;;  %1059 = vmatmul.f32.gmra.mxu2 %v963_v53  ;;  %v993_v53 = vld [vmem:[#allocation2 + $0x9f0] sm:$0xff] }
 0x47c   :  { %v1012_v16 = vpop.f32.mrf.mxu2 }
 0x481   :  { %1127 = vmatmul.f32.gmra.mxu3 %v934_v9  ;;  %1062 = vmatmul.f32.gmra.mxu2 %v965_v39  ;;  %v976_v9 = vld [vmem:[#allocation2 + $0x968] sm:$0xff] }
 0x482   :  { %v988_v39 = vld [vmem:[#allocation2 + $0x9c8] sm:$0xff] }
 0x484   :  { %v1015_v33 = vpop.f32.mrf.mxu2 }
 0x489   :  { %1130 = vmatmul.f32.gmra.mxu3 %v936_v22  ;;  %1065 = vmatmul.f32.gmra.mxu2 %v967_v12  ;;  %v990_v12 = vld [vmem:[#allocation2 + $0x9d8] sm:$0xff] }
 0x48c   :  { %v1018_v42 = vpop.f32.mrf.mxu2 }
 0x491   :  { %1133 = vmatmul.f32.gmra.mxu3 %v938_v27  ;;  %1068 = vmatmul.f32.gmra.mxu2 %v969_v1 }
 0x494   :  { %v1021_v8 = vpop.f32.mrf.mxu2 }
 0x499   :  { %1136 = vmatmul.f32.gmra.mxu3 %v940_v25  ;;  %1071 = vmatmul.f32.gmra.mxu2 %v971_v52  ;;  %v985_v25 = vld [vmem:[#allocation2 + $0x9b0] sm:$0xff] }
 0x49c   :  { %v1024_v43 = vpop.f32.mrf.mxu2 }
 0x4a1   :  { %1139 = vmatmul.f32.gmra.mxu3 %v942_v13  ;;  %1074 = vmatmul.f32.gmra.mxu2 %v973_v46 }
 0x4a4   :  { %v1027_v45 = vpop.f32.mrf.mxu2 }
 0x4a9   :  { %1142 = vmatmul.f32.gmra.mxu3 %v944_v29  ;;  %1077 = vmatmul.f32.gmra.mxu2 %v975_v40  ;;  %v980_v29 = vld [vmem:[#allocation2 + $0x988] sm:$0xff] }
 0x4ac   :  { %v1030_v55 = vpop.f32.mrf.mxu2 }
 0x4b1   :  { %1145 = vmatmul.f32.gmra.mxu3 %v946_v23  ;;  %1080 = vmatmul.f32.gmra.mxu2 %v977_v60 }
 0x4b4   :  { %v1033_v62 = vpop.f32.mrf.mxu2 }
 0x4b9   :  { %1148 = vmatmul.f32.gmra.mxu3 %v948_v20  ;;  %1083 = vmatmul.f32.gmra.mxu2 %v979_v54  ;;  %v982_v20 = vld [vmem:[#allocation2 + $0x998] sm:$0xff] }
 0x4bc   :  { %v5970_v4 = vpop.f32.mrf.mxu2 }
 0x4c1   :  { %1151 = vmatmul.f32.gmra.mxu3 %v950_v34  ;;  %1086 = vmatmul.f32.gmra.mxu2 %v981_v35 }
 0x4c4   :  { %v5974_v15 = vpop.f32.mrf.mxu2 }
 0x4c9   :  { %1154 = vmatmul.f32.gmra.mxu3 %v952_v10  ;;  %1089 = vmatmul.f32.gmra.mxu2 %v983_v19  ;;  %v984_v10 = vld [vmem:[#allocation2 + $0x9a8] sm:$0xff] }
 0x4cc   :  { %v1042_v2 = vpop.f32.mrf.mxu2 }
 0x4d1   :  { %1157 = vmatmul.f32.gmra.mxu3 %v954_v21  ;;  %1092 = vmatmul.f32.gmra.mxu2 %v985_v25 }
 0x4d4   :  { %v1045_v13 = vpop.f32.mrf.mxu2 }
 0x4d9   :  { %1160 = vmatmul.f32.gmra.mxu3 %v956_v28  ;;  %1095 = vmatmul.f32.gmra.mxu2 %v987_v24  ;;  %v986_v28 = vld [vmem:[#allocation2 + $0x9b8] sm:$0xff]  ;;  %v1222_v24 = vld [vmem:[#allocation2 + $0xa00] sm:$0xff] }
 0x4dc   :  { %v1048_v30 = vpop.f32.mrf.mxu2 }
 0x4e1   :  { %1163 = vmatmul.f32.gmra.mxu3 %v958_v38  ;;  %1098 = vmatmul.f32.gmra.mxu2 %v989_v18  ;;  %v1224_v18 = vld [vmem:[#allocation2 + $0xa10] sm:$0xff] }
 0x4e4   :  { %v1051_v14 = vpop.f32.mrf.mxu2 }
 0x4e9   :  { %1166 = vmatmul.f32.gmra.mxu3 %v960_v3  ;;  %1101 = vmatmul.f32.gmra.mxu2 %v991_v7 }
 0x4ec   :  { %v1054_v26 = vpop.f32.mrf.mxu2 }
 0x4f1   :  { %1169 = vmatmul.f32.gmra.mxu3 %v962_v47  ;;  %1104 = vmatmul.f32.gmra.mxu2 %v993_v53  ;;  %v992_v47 = vld [vmem:[#allocation2 + $0x9e8] sm:$0xff] }
 0x4f4   :  { %v1057_v38 = vpop.f32.mrf.mxu2 }
 0x4f9   :  { %1172 = vmatmul.f32.gmra.mxu3 %v964_v56  ;;  %v994_v56 = vld [vmem:[#allocation2 + $0x9f8] sm:$0xff] }
 0x4fc   :  { %v1125_v50 = vpop.f32.mrf.mxu3  ;;  %v5980_v3 = vpop.f32.mrf.mxu2 }
 0x4fd   :  { %v5962_v49 = vadd.f32 %v1125_v50, %v1012_v16 }
 0x501   :  { %1175 = vmatmul.f32.gmra.mxu3 %v966_v44 }
 0x504   :  { %v1128_v48 = vpop.f32.mrf.mxu3  ;;  %v5982_v1 = vpop.f32.mrf.mxu2 }
 0x505   :  { %v5964_v58 = vadd.f32 %v1128_v48, %v1015_v33 }
 0x509   :  { %1178 = vmatmul.f32.gmra.mxu3 %v968_v59 }
 0x50c   :  { %v1131_v41 = vpop.f32.mrf.mxu3  ;;  %v5984_v52 = vpop.f32.mrf.mxu2 }
 0x50d   :  { %v5966_v36 = vadd.f32 %v1131_v41, %v1018_v42 }
 0x511   :  { %1181 = vmatmul.f32.gmra.mxu3 %v970_v37 }
 0x514   :  { %v1134_v51 = vpop.f32.mrf.mxu3  ;;  %v5986_v48 = vpop.f32.mrf.mxu2 }
 0x515   :  { %v5968_v32 = vadd.f32 %v1134_v51, %v1021_v8 }
 0x519   :  { %1184 = vmatmul.f32.gmra.mxu3 %v972_v0 }
 0x51c   :  { %v1137_v57 = vpop.f32.mrf.mxu3  ;;  %v1072_v51 = vpop.f32.mrf.mxu2 }
 0x51d   :  { %v5972_v5 = vadd.f32 %v1137_v57, %v1024_v43 }
 0x521   :  { %1187 = vmatmul.f32.gmra.mxu3 %v974_v6 }
 0x524   :  { %v1140_v11 = vpop.f32.mrf.mxu3  ;;  %v1075_v0 = vpop.f32.mrf.mxu2 }
 0x525   :  { %v5976_v17 = vadd.f32 %v1140_v11, %v1027_v45 }
 0x529   :  { %1190 = vmatmul.f32.gmra.mxu3 %v976_v9 }
 0x52c   :  { %v1143_v22 = vpop.f32.mrf.mxu3  ;;  %v1078_v57 = vpop.f32.mrf.mxu2 }
 0x52d   :  { %v5978_v27 = vadd.f32 %v1143_v22, %v1030_v55 }
 0x531   :  { %1193 = vmatmul.f32.gmra.mxu3 %v978_v63 }
 0x534   :  { %v1146_v61 = vpop.f32.mrf.mxu3  ;;  %v1081_v6 = vpop.f32.mrf.mxu2 }
 0x535   :  { %v1147_v31 = vadd.f32 %v1146_v61, %v1033_v62 }
 0x539   :  { %1196 = vmatmul.f32.gmra.mxu3 %v980_v29 }
 0x53c   :  { %v1149_v23 = vpop.f32.mrf.mxu3 }
 0x53d   :  { %v1150_v37 = vadd.f32 %v1149_v23, %v5970_v4 }
 0x541   :  { %1199 = vmatmul.f32.gmra.mxu3 %v982_v20 }
 0x544   :  { %v1152_v34 = vpop.f32.mrf.mxu3 }
 0x545   :  { %v1153_v55 = vadd.f32 %v1152_v34, %v5974_v15  ;;  %v1084_v15 = vpop.f32.mrf.mxu2 }
 0x549   :  { %1202 = vmatmul.f32.gmra.mxu3 %v984_v10 }
 0x54c   :  { %v1155_v21 = vpop.f32.mrf.mxu3 }
 0x54d   :  { %v1156_v41 = vadd.f32 %v1155_v21, %v1042_v2  ;;  %v1087_v9 = vpop.f32.mrf.mxu2  ;;  %v1226_v21 = vld [vmem:[#allocation2 + $0xa20] sm:$0xff] }
 0x551   :  { %1205 = vmatmul.f32.gmra.mxu3 %v986_v28 }
 0x554   :  { %v1158_v16 = vpop.f32.mrf.mxu3 }
 0x555   :  { %v1159_v40 = vadd.f32 %v1158_v16, %v1045_v13 }
 0x559   :  { %1208 = vmatmul.f32.gmra.mxu3 %v988_v39 }
 0x55c   :  { %v1161_v33 = vpop.f32.mrf.mxu3 }
 0x55d   :  { %v1162_v45 = vadd.f32 %v1161_v33, %v1048_v30 }
 0x561   :  { %1211 = vmatmul.f32.gmra.mxu3 %v990_v12 }
 0x564   :  { %v1164_v42 = vpop.f32.mrf.mxu3 }
 0x565   :  { %v1165_v46 = vadd.f32 %v1164_v42, %v1051_v14 }
 0x569   :  { %1214 = vmatmul.f32.gmra.mxu3 %v992_v47  ;;  %v1223_v47 = vld [vmem:[#allocation2 + $0xa08] sm:$0xff] }
 0x56c   :  { %v1167_v8 = vpop.f32.mrf.mxu3 }
 0x56d   :  { %v1168_v44 = vadd.f32 %v1167_v8, %v1054_v26  ;;  %v1230_v8 = vld [vmem:[#allocation2 + $0xa40] sm:$0xff] }
 0x571   :  { %1217 = vmatmul.f32.gmra.mxu3 %v994_v56  ;;  %v1225_v56 = vld [vmem:[#allocation2 + $0xa18] sm:$0xff] }
 0x574   :  { %v1170_v50 = vpop.f32.mrf.mxu3 }
 0x575   :  { %v1171_v43 = vadd.f32 %v1170_v50, %v1057_v38  ;;  %v1228_v38 = vld [vmem:[#allocation2 + $0xa30] sm:$0xff] }
 0x576   :  { %v1232_v50 = vld [vmem:[#allocation2 + $0xa50] sm:$0xff] }
 0x577   :  { %1286 = vmatpush.msra.mxu0 %v1171_v43  ;;  %v1227_v43 = vld [vmem:[#allocation2 + $0xa28] sm:$0xff] }
 0x579   :  { %1287 = vmatpush.msra.mxu0 %v1168_v44  ;;  %v1229_v44 = vld [vmem:[#allocation2 + $0xa38] sm:$0xff] }
 0x57b   :  { %1288 = vmatpush.msra.mxu0 %v1165_v46  ;;  %v1231_v46 = vld [vmem:[#allocation2 + $0xa48] sm:$0xff] }
 0x57c   :  { %v5988_v59 = vpop.f32.mrf.mxu3 }
 0x57d   :  { %1289 = vmatpush.msra.mxu0 %v1162_v45  ;;  %v1174_v42 = vadd.f32 %v5988_v59, %v5980_v3  ;;  %v1238_v3 = vld [vmem:[#allocation2 + $0xa80] sm:$0xff]  ;;  %v1240_v45 = vld [vmem:[#allocation2 + $0xa90] sm:$0xff]  ;;  %v1235_v59 = vld [vmem:[#allocation2 + $0xa68] sm:$0xff] }
 0x57f   :  { %1290 = vmatpush.msra.mxu0 %v1159_v40  ;;  %v1242_v40 = vld [vmem:[#allocation2 + $0xaa0] sm:$0xff] }
 0x581   :  { %1291 = vmatpush.msra.mxu0 %v1156_v41  ;;  %v1237_v41 = vld [vmem:[#allocation2 + $0xa78] sm:$0xff] }
 0x583   :  { %1292 = vmatpush.msra.mxu0 %v1153_v55  ;;  %v1244_v55 = vld [vmem:[#allocation2 + $0xab0] sm:$0xff] }
 0x584   :  { %v5992_v60 = vpop.f32.mrf.mxu3 }
 0x585   :  { %1293 = vmatpush.msra.mxu0 %v1150_v37  ;;  %v1177_v12 = vadd.f32 %v5992_v60, %v5982_v1  ;;  %v1236_v1 = vld [vmem:[#allocation2 + $0xa70] sm:$0xff]  ;;  %v1239_v37 = vld [vmem:[#allocation2 + $0xa88] sm:$0xff]  ;;  %v1246_v60 = vld [vmem:[#allocation2 + $0xac0] sm:$0xff] }
 0x587   :  { %1294 = vmatpush.msra.mxu0 %v1147_v31 }
 0x589   :  { %1295 = vmatpush.msra.mxu0 %v5978_v27 }
 0x58b   :  { %1296 = vmatpush.msra.mxu0 %v5976_v17 }
 0x58c   :  { %v5996_v62 = vpop.f32.mrf.mxu3 }
 0x58d   :  { %1297 = vmatpush.msra.mxu0 %v5972_v5  ;;  %v1090_v5 = vpop.f32.mrf.mxu2  ;;  %v1180_v33 = vadd.f32 %v5996_v62, %v5984_v52  ;;  %v1234_v52 = vld [vmem:[#allocation2 + $0xa60] sm:$0xff]  ;;  %v1248_v62 = vld [vmem:[#allocation2 + $0xad0] sm:$0xff] }
 0x58f   :  { %1298 = vmatpush.msra.mxu0 %v5968_v32 }
 0x591   :  { %1299 = vmatpush.msra.mxu0 %v5966_v36 }
 0x593   :  { %1300 = vmatpush.msra.mxu0 %v5964_v58 }
 0x594   :  { %v1182_v54 = vpop.f32.mrf.mxu3 }
 0x595   :  { %1301 = vmatpush.msra.mxu0 %v5962_v49  ;;  %v1093_v2 = vpop.f32.mrf.mxu2  ;;  %v1183_v39 = vadd.f32 %v1182_v54, %v5986_v48  ;;  %v1233_v48 = vld [vmem:[#allocation2 + $0xa58] sm:$0xff]  ;;  %v1250_v54 = vld [vmem:[#allocation2 + $0xae0] sm:$0xff] }
 0x596   :  { %1302 = vmatmul.f32.vlgmr.msra.gmra.mxu0 %v1222_v24  ;;  %v1259_v24 = vld [vmem:[#allocation2 + $0xb28] sm:$0xff] }
 0x59c   :  { %v1185_v4 = vpop.f32.mrf.mxu3 }
 0x59d   :  { %v1096_v36 = vpop.f32.mrf.mxu2  ;;  %v1186_v16 = vadd.f32 %v1185_v4, %v1072_v51  ;;  %v1241_v51 = vld [vmem:[#allocation2 + $0xa98] sm:$0xff]  ;;  %v1252_v4 = vld [vmem:[#allocation2 + $0xaf0] sm:$0xff] }
 0x59e   :  { %1305 = vmatmul.f32.gmra.mxu0 %v1224_v18  ;;  %v1261_v18 = vld [vmem:[#allocation2 + $0xb38] sm:$0xff] }
 0x5a4   :  { %v1188_v35 = vpop.f32.mrf.mxu3 }
 0x5a5   :  { %v1099_v58 = vpop.f32.mrf.mxu2  ;;  %v1189_v53 = vadd.f32 %v1188_v35, %v1075_v0  ;;  %v1243_v0 = vld [vmem:[#allocation2 + $0xaa8] sm:$0xff] }
 0x5a6   :  { %1308 = vmatmul.f32.gmra.mxu0 %v1226_v21 }
 0x5ac   :  { %v1191_v11 = vpop.f32.mrf.mxu3 }
 0x5ad   :  { %v1102_v61 = vpop.f32.mrf.mxu2  ;;  %v1192_v28 = vadd.f32 %v1191_v11, %v1078_v57  ;;  %v1245_v57 = vld [vmem:[#allocation2 + $0xab8] sm:$0xff]  ;;  %v1254_v11 = vld [vmem:[#allocation2 + $0xb00] sm:$0xff] }
 0x5ae   :  { %1311 = vmatmul.f32.gmra.mxu0 %v1228_v38  ;;  %v1272_v38 = vld [vmem:[#allocation2 + $0xb90] sm:$0xff] }
 0x5b4   :  { %v1194_v17 = vpop.f32.mrf.mxu3 }
 0x5b5   :  { %v1105_v13 = vpop.f32.mrf.mxu2  ;;  %v1195_v26 = vadd.f32 %v1194_v17, %v1081_v6  ;;  %v1247_v6 = vld [vmem:[#allocation2 + $0xac8] sm:$0xff] }
 0x5b6   :  { %1314 = vmatmul.f32.gmra.mxu0 %v1230_v8  ;;  %v1269_v8 = vld [vmem:[#allocation2 + $0xb78] sm:$0xff] }
 0x5bc   :  { %v1197_v19 = vpop.f32.mrf.mxu3 }
 0x5bd   :  { %v1198_v7 = vadd.f32 %v1197_v19, %v1084_v15  ;;  %v1249_v15 = vld [vmem:[#allocation2 + $0xad8] sm:$0xff]  ;;  %v1251_v19 = vld [vmem:[#allocation2 + $0xae8] sm:$0xff] }
 0x5be   :  { %1317 = vmatmul.f32.gmra.mxu0 %v1232_v50  ;;  %v1276_v50 = vld [vmem:[#allocation2 + $0xbb0] sm:$0xff] }
 0x5c4   :  { %v1200_v22 = vpop.f32.mrf.mxu3 }
 0x5c5   :  { %v1201_v10 = vadd.f32 %v1200_v22, %v1087_v9  ;;  %v1256_v9 = vld [vmem:[#allocation2 + $0xb10] sm:$0xff]  ;;  %v1258_v22 = vld [vmem:[#allocation2 + $0xb20] sm:$0xff] }
 0x5c6   :  { %1320 = vmatmul.f32.gmra.mxu0 %v1234_v52  ;;  %v1271_v52 = vld [vmem:[#allocation2 + $0xb88] sm:$0xff] }
 0x5cc   :  { %v1203_v32 = vpop.f32.mrf.mxu3 }
 0x5cd   :  { %v1204_v14 = vadd.f32 %v1203_v32, %v1090_v5 }
 0x5ce   :  { %1323 = vmatmul.f32.gmra.mxu0 %v1236_v1  ;;  %v1278_v1 = vld [vmem:[#allocation2 + $0xbc0] sm:$0xff] }
 0x5d4   :  { %v1206_v27 = vpop.f32.mrf.mxu3 }
 0x5d5   :  { %v1207_v34 = vadd.f32 %v1206_v27, %v1093_v2  ;;  %v1253_v2 = vld [vmem:[#allocation2 + $0xaf8] sm:$0xff]  ;;  %v1260_v27 = vld [vmem:[#allocation2 + $0xb30] sm:$0xff] }
 0x5d6   :  { %1326 = vmatmul.f32.gmra.mxu0 %v1238_v3  ;;  %v1273_v3 = vld [vmem:[#allocation2 + $0xb98] sm:$0xff] }
 0x5dc   :  { %v1209_v63 = vpop.f32.mrf.mxu3 }
 0x5dd   :  { %v1210_v20 = vadd.f32 %v1209_v63, %v1096_v36  ;;  %v1255_v63 = vld [vmem:[#allocation2 + $0xb08] sm:$0xff] }
 0x5de   :  { %1329 = vmatmul.f32.gmra.mxu0 %v1240_v45  ;;  %v1280_v45 = vld [vmem:[#allocation2 + $0xbd0] sm:$0xff] }
 0x5e4   :  { %v1212_v25 = vpop.f32.mrf.mxu3 }
 0x5e5   :  { %v1213_v30 = vadd.f32 %v1212_v25, %v1099_v58  ;;  %v1262_v25 = vld [vmem:[#allocation2 + $0xb40] sm:$0xff] }
 0x5e6   :  { %1332 = vmatmul.f32.gmra.mxu0 %v1242_v40  ;;  %v1275_v40 = vld [vmem:[#allocation2 + $0xba8] sm:$0xff] }
 0x5ec   :  { %v1215_v49 = vpop.f32.mrf.mxu3 }
 0x5ed   :  { %v1216_v23 = vadd.f32 %v1215_v49, %v1102_v61  ;;  %v1257_v49 = vld [vmem:[#allocation2 + $0xb18] sm:$0xff] }
 0x5ee   :  { %1335 = vmatmul.f32.gmra.mxu0 %v1244_v55  ;;  %v1282_v55 = vld [vmem:[#allocation2 + $0xbe0] sm:$0xff] }
 0x5f4   :  { %v1218_v31 = vpop.f32.mrf.mxu3 }
 0x5f5   :  { %v1219_v29 = vadd.f32 %v1218_v31, %v1105_v13  ;;  %v1264_v31 = vld [vmem:[#allocation2 + $0xb50] sm:$0xff] }
 0x5f6   :  { %1338 = vmatmul.f32.gmra.mxu0 %v1246_v60  ;;  %v1277_v60 = vld [vmem:[#allocation2 + $0xbb8] sm:$0xff] }
 0x5f7   :  { %1399 = vmatpush.msra.mxu1 %v1219_v29 }
 0x5f9   :  { %1400 = vmatpush.msra.mxu1 %v1216_v23 }
 0x5fb   :  { %1401 = vmatpush.msra.mxu1 %v1213_v30  ;;  %v1266_v30 = vld [vmem:[#allocation2 + $0xb60] sm:$0xff] }
 0x5fd   :  { %1402 = vmatpush.msra.mxu1 %v1210_v20 }
 0x5fe   :  { %1341 = vmatmul.f32.gmra.mxu0 %v1248_v62  ;;  %v1284_v62 = vld [vmem:[#allocation2 + $0xbf0] sm:$0xff] }
 0x5ff   :  { %1403 = vmatpush.msra.mxu1 %v1207_v34 }
 0x601   :  { %1404 = vmatpush.msra.mxu1 %v1204_v14  ;;  %v1268_v14 = vld [vmem:[#allocation2 + $0xb70] sm:$0xff] }
 0x603   :  { %1405 = vmatpush.msra.mxu1 %v1201_v10 }
 0x605   :  { %1406 = vmatpush.msra.mxu1 %v1198_v7  ;;  %v1263_v7 = vld [vmem:[#allocation2 + $0xb48] sm:$0xff] }
 0x606   :  { %1344 = vmatmul.f32.gmra.mxu0 %v1250_v54  ;;  %v1279_v54 = vld [vmem:[#allocation2 + $0xbc8] sm:$0xff] }
 0x607   :  { %1407 = vmatpush.msra.mxu1 %v1195_v26  ;;  %v1270_v26 = vld [vmem:[#allocation2 + $0xb80] sm:$0xff] }
 0x609   :  { %1408 = vmatpush.msra.mxu1 %v1192_v28 }
 0x60b   :  { %1409 = vmatpush.msra.mxu1 %v1189_v53  ;;  %v1265_v53 = vld [vmem:[#allocation2 + $0xb58] sm:$0xff] }
 0x60d   :  { %1410 = vmatpush.msra.mxu1 %v1186_v16 }
 0x60e   :  { %1347 = vmatmul.f32.gmra.mxu0 %v1252_v4 }
 0x60f   :  { %1411 = vmatpush.msra.mxu1 %v1183_v39 }
 0x611   :  { %1412 = vmatpush.msra.mxu1 %v1180_v33  ;;  %v1267_v33 = vld [vmem:[#allocation2 + $0xb68] sm:$0xff] }
 0x613   :  { %1413 = vmatpush.msra.mxu1 %v1177_v12  ;;  %v6010_v35 = vpop.f32.mrf.mxu0 }
 0x615   :  { %1414 = vmatpush.msra.mxu1 %v1174_v42  ;;  %v1274_v42 = vld [vmem:[#allocation2 + $0xba0] sm:$0xff] }
 0x616   :  { %1415 = vmatmul.f32.vlgmr.msra.gmra.mxu1 %v1223_v47  ;;  %1350 = vmatmul.f32.gmra.mxu0 %v1254_v11 }
 0x61b   :  { %v6012_v17 = vpop.f32.mrf.mxu0 }
 0x61e   :  { %1418 = vmatmul.f32.gmra.mxu1 %v1225_v56  ;;  %1353 = vmatmul.f32.gmra.mxu0 %v1256_v9  ;;  %v1283_v9 = vld [vmem:[#allocation2 + $0xbe8] sm:$0xff] }
 0x623   :  { %v6014_v5 = vpop.f32.mrf.mxu0 }
 0x626   :  { %1421 = vmatmul.f32.gmra.mxu1 %v1227_v43  ;;  %1356 = vmatmul.f32.gmra.mxu0 %v1258_v22 }
 0x62b   :  { %v6016_v32 = vpop.f32.mrf.mxu0 }
 0x62e   :  { %1424 = vmatmul.f32.gmra.mxu1 %v1229_v44  ;;  %1359 = vmatmul.f32.gmra.mxu0 %v1260_v27 }
 0x633   :  { %v6020_v58 = vpop.f32.mrf.mxu0 }
 0x636   :  { %1427 = vmatmul.f32.gmra.mxu1 %v1231_v46  ;;  %1362 = vmatmul.f32.gmra.mxu0 %v1262_v25 }
 0x63b   :  { %v6024_v13 = vpop.f32.mrf.mxu0 }
 0x63e   :  { %1430 = vmatmul.f32.gmra.mxu1 %v1233_v48  ;;  %1365 = vmatmul.f32.gmra.mxu0 %v1264_v31 }
 0x643   :  { %v6028_v23 = vpop.f32.mrf.mxu0 }
 0x646   :  { %1433 = vmatmul.f32.gmra.mxu1 %v1235_v59  ;;  %1368 = vmatmul.f32.gmra.mxu0 %v1266_v30 }
 0x64b   :  { %v6032_v34 = vpop.f32.mrf.mxu0 }
 0x64e   :  { %1436 = vmatmul.f32.gmra.mxu1 %v1237_v41  ;;  %1371 = vmatmul.f32.gmra.mxu0 %v1268_v14 }
 0x653   :  { %v6036_v21 = vpop.f32.mrf.mxu0 }
 0x656   :  { %1439 = vmatmul.f32.gmra.mxu1 %v1239_v37  ;;  %1374 = vmatmul.f32.gmra.mxu0 %v1270_v26 }
 0x65b   :  { %v6040_v16 = vpop.f32.mrf.mxu0 }
 0x65e   :  { %1442 = vmatmul.f32.gmra.mxu1 %v1241_v51  ;;  %1377 = vmatmul.f32.gmra.mxu0 %v1272_v38 }
 0x663   :  { %v1333_v12 = vpop.f32.mrf.mxu0 }
 0x666   :  { %1445 = vmatmul.f32.gmra.mxu1 %v1243_v0  ;;  %1380 = vmatmul.f32.gmra.mxu0 %v1274_v42 }
 0x66b   :  { %v1336_v56 = vpop.f32.mrf.mxu0 }
 0x66e   :  { %1448 = vmatmul.f32.gmra.mxu1 %v1245_v57  ;;  %1383 = vmatmul.f32.gmra.mxu0 %v1276_v50 }
 0x673   :  { %v1339_v44 = vpop.f32.mrf.mxu0 }
 0x676   :  { %1451 = vmatmul.f32.gmra.mxu1 %v1247_v6  ;;  %1386 = vmatmul.f32.gmra.mxu0 %v1278_v1  ;;  %v1281_v6 = vld [vmem:[#allocation2 + $0xbd8] sm:$0xff] }
 0x67b   :  { %v1342_v48 = vpop.f32.mrf.mxu0 }
 0x67e   :  { %1454 = vmatmul.f32.gmra.mxu1 %v1249_v15  ;;  %1389 = vmatmul.f32.gmra.mxu0 %v1280_v45 }
 0x683   :  { %v1345_v41 = vpop.f32.mrf.mxu0 }
 0x686   :  { %1457 = vmatmul.f32.gmra.mxu1 %v1251_v19  ;;  %1392 = vmatmul.f32.gmra.mxu0 %v1282_v55 }
 0x68b   :  { %v1348_v51 = vpop.f32.mrf.mxu0 }
 0x68e   :  { %1460 = vmatmul.f32.gmra.mxu1 %v1253_v2  ;;  %1395 = vmatmul.f32.gmra.mxu0 %v1284_v62  ;;  %v1285_v2 = vld [vmem:[#allocation2 + $0xbf8] sm:$0xff] }
 0x693   :  { %v6018_v36 = vpop.f32.mrf.mxu1  ;;  %v6046_v57 = vpop.f32.mrf.mxu0 }
 0x696   :  { %1463 = vmatmul.f32.gmra.mxu1 %v1255_v63 }
 0x69b   :  { %v6022_v61 = vpop.f32.mrf.mxu1  ;;  %v6048_v11 = vpop.f32.mrf.mxu0 }
 0x69e   :  { %1466 = vmatmul.f32.gmra.mxu1 %v1257_v49 }
 0x6a3   :  { %v6026_v29 = vpop.f32.mrf.mxu1  ;;  %v6050_v19 = vpop.f32.mrf.mxu0 }
 0x6a6   :  { %1469 = vmatmul.f32.gmra.mxu1 %v1259_v24 }
 0x6ab   :  { %v6030_v20 = vpop.f32.mrf.mxu1  ;;  %v6052_v49 = vpop.f32.mrf.mxu0 }
 0x6ac   :  { %v1426_v42 = vadd.f32 %v6030_v20, %v6016_v32 }
 0x6ae   :  { %1472 = vmatmul.f32.gmra.mxu1 %v1261_v18 }
 0x6b3   :  { %v6034_v10 = vpop.f32.mrf.mxu1 }
 0x6b6   :  { %1475 = vmatmul.f32.gmra.mxu1 %v1263_v7 }
 0x6bb   :  { %v6038_v28 = vpop.f32.mrf.mxu1 }
 0x6be   :  { %1478 = vmatmul.f32.gmra.mxu1 %v1265_v53  ;;  %v6060_v53 = vpop.f32.mrf.mxu0 }
 0x6c3   :  { %v6042_v39 = vpop.f32.mrf.mxu1 }
 0x6c6   :  { %1481 = vmatmul.f32.gmra.mxu1 %v1267_v33  ;;  %v1435_v33 = vadd.f32 %v6042_v39, %v6028_v23  ;;  %v1420_v23 = vadd.f32 %v6022_v61, %v6012_v17 }
 0x6cb   :  { %v6044_v47 = vpop.f32.mrf.mxu1 }
 0x6cc   :  { %v1438_v38 = vadd.f32 %v6044_v47, %v6032_v34  ;;  %v1366_v34 = vpop.f32.mrf.mxu0  ;;  %v1423_v47 = vadd.f32 %v6026_v29, %v6014_v5 }
 0x6ce   :  { %1484 = vmatmul.f32.gmra.mxu1 %v1269_v8 }
 0x6d3   :  { %v1440_v43 = vpop.f32.mrf.mxu1 }
 0x6d4   :  { %v1441_v7 = vadd.f32 %v1440_v43, %v6036_v21  ;;  %v1429_v21 = vadd.f32 %v6034_v10, %v6020_v58  ;;  %v1369_v10 = vpop.f32.mrf.mxu0 }
 0x6d6   :  { %1487 = vmatmul.f32.gmra.mxu1 %v1271_v52 }
 0x6db   :  { %v1443_v46 = vpop.f32.mrf.mxu1 }
 0x6dc   :  { %v1444_v14 = vadd.f32 %v1443_v46, %v6040_v16  ;;  %v1372_v39 = vpop.f32.mrf.mxu0 }
 0x6de   :  { %1490 = vmatmul.f32.gmra.mxu1 %v1273_v3 }
 0x6e3   :  { %v1446_v59 = vpop.f32.mrf.mxu1 }
 0x6e4   :  { %v1447_v18 = vadd.f32 %v1446_v59, %v1333_v12  ;;  %v1432_v12 = vadd.f32 %v6038_v28, %v6024_v13  ;;  %v1417_v13 = vadd.f32 %v6018_v36, %v6010_v35  ;;  %v1375_v8 = vpop.f32.mrf.mxu0 }
 0x6e6   :  { %1493 = vmatmul.f32.gmra.mxu1 %v1275_v40  ;;  %v1513_v40 = vld [vmem:[#allocation2 + $0xc00] sm:$0xff] }
 0x6eb   :  { %v1449_v37 = vpop.f32.mrf.mxu1 }
 0x6ec   :  { %v1450_v30 = vadd.f32 %v1449_v37, %v1336_v56  ;;  %v1378_v50 = vpop.f32.mrf.mxu0 }
 0x6ee   :  { %1496 = vmatmul.f32.gmra.mxu1 %v1277_v60  ;;  %v1515_v60 = vld [vmem:[#allocation2 + $0xc10] sm:$0xff] }
 0x6f3   :  { %v1452_v0 = vpop.f32.mrf.mxu1 }
 0x6f4   :  { %v1453_v31 = vadd.f32 %v1452_v0, %v1339_v44  ;;  %v1381_v29 = vpop.f32.mrf.mxu0 }
 0x6f6   :  { %1499 = vmatmul.f32.gmra.mxu1 %v1279_v54 }
 0x6fb   :  { %v1455_v4 = vpop.f32.mrf.mxu1 }
 0x6fc   :  { %v1456_v25 = vadd.f32 %v1455_v4, %v1342_v48  ;;  %v1384_v52 = vpop.f32.mrf.mxu0  ;;  %v1517_v4 = vld [vmem:[#allocation2 + $0xc20] sm:$0xff] }
 0x6fe   :  { %1502 = vmatmul.f32.gmra.mxu1 %v1281_v6 }
 0x703   :  { %v1458_v15 = vpop.f32.mrf.mxu1 }
 0x704   :  { %v1459_v63 = vadd.f32 %v1458_v15, %v1345_v41  ;;  %v1387_v44 = vpop.f32.mrf.mxu0 }
 0x706   :  { %1505 = vmatmul.f32.gmra.mxu1 %v1283_v9 }
 0x70b   :  { %v1461_v22 = vpop.f32.mrf.mxu1 }
 0x70c   :  { %v1462_v27 = vadd.f32 %v1461_v22, %v1348_v51  ;;  %v1390_v35 = vpop.f32.mrf.mxu0 }
 0x70e   :  { %1508 = vmatmul.f32.gmra.mxu1 %v1285_v2  ;;  %1577 = vmatpush.msrb.mxu2 %v1462_v27  ;;  %v1519_v2 = vld [vmem:[#allocation2 + $0xc30] sm:$0xff] }
 0x710   :  { %1578 = vmatpush.msrb.mxu2 %v1459_v63 }
 0x712   :  { %1579 = vmatpush.msrb.mxu2 %v1456_v25 }
 0x713   :  { %v6054_v24 = vpop.f32.mrf.mxu1 }
 0x714   :  { %1580 = vmatpush.msrb.mxu2 %v1453_v31  ;;  %v1393_v46 = vpop.f32.mrf.mxu0  ;;  %v1465_v31 = vadd.f32 %v6054_v24, %v6046_v57  ;;  %v1529_v57 = vld [vmem:[#allocation2 + $0xc80] sm:$0xff]  ;;  %v1524_v24 = vld [vmem:[#allocation2 + $0xc58] sm:$0xff] }
 0x716   :  { %1581 = vmatpush.msrb.mxu2 %v1450_v30  ;;  %v1514_v30 = vld [vmem:[#allocation2 + $0xc08] sm:$0xff] }
 0x718   :  { %1582 = vmatpush.msrb.mxu2 %v1447_v18  ;;  %v1521_v18 = vld [vmem:[#allocation2 + $0xc40] sm:$0xff] }
 0x71a   :  { %1583 = vmatpush.msrb.mxu2 %v1444_v14  ;;  %v1523_v14 = vld [vmem:[#allocation2 + $0xc50] sm:$0xff] }
 0x71b   :  { %v6058_v26 = vpop.f32.mrf.mxu1 }
 0x71c   :  { %1584 = vmatpush.msrb.mxu2 %v1441_v7  ;;  %v1396_v48 = vpop.f32.mrf.mxu0  ;;  %v1468_v25 = vadd.f32 %v6058_v26, %v6048_v11  ;;  %v1518_v7 = vld [vmem:[#allocation2 + $0xc28] sm:$0xff]  ;;  %v1527_v11 = vld [vmem:[#allocation2 + $0xc70] sm:$0xff] }
 0x71d   :  { %v1522_v26 = vld [vmem:[#allocation2 + $0xc48] sm:$0xff] }
 0x71e   :  { %1585 = vmatpush.msrb.mxu2 %v1438_v38  ;;  %v1531_v38 = vld [vmem:[#allocation2 + $0xc90] sm:$0xff] }
 0x720   :  { %1586 = vmatpush.msrb.mxu2 %v1435_v33  ;;  %v1526_v33 = vld [vmem:[#allocation2 + $0xc68] sm:$0xff] }
 0x722   :  { %1587 = vmatpush.msrb.mxu2 %v1432_v12  ;;  %v1533_v12 = vld [vmem:[#allocation2 + $0xca0] sm:$0xff] }
 0x723   :  { %v6070_v16 = vpop.f32.mrf.mxu1 }
 0x724   :  { %1588 = vmatpush.msrb.mxu2 %v1429_v21  ;;  %v1471_v63 = vadd.f32 %v6070_v16, %v6050_v19  ;;  %v1525_v19 = vld [vmem:[#allocation2 + $0xc60] sm:$0xff]  ;;  %v1528_v21 = vld [vmem:[#allocation2 + $0xc78] sm:$0xff]  ;;  %v1535_v16 = vld [vmem:[#allocation2 + $0xcb0] sm:$0xff] }
 0x726   :  { %1589 = vmatpush.msrb.mxu2 %v1426_v42  ;;  %v1530_v42 = vld [vmem:[#allocation2 + $0xc88] sm:$0xff] }
 0x728   :  { %1590 = vmatpush.msrb.mxu2 %v1423_v47  ;;  %v1532_v47 = vld [vmem:[#allocation2 + $0xc98] sm:$0xff] }
 0x72a   :  { %1591 = vmatpush.msrb.mxu2 %v1420_v23  ;;  %v1539_v23 = vld [vmem:[#allocation2 + $0xcd0] sm:$0xff] }
 0x72b   :  { %v1473_v58 = vpop.f32.mrf.mxu1 }
 0x72c   :  { %1592 = vmatpush.msrb.mxu2 %v1417_v13  ;;  %v1474_v27 = vadd.f32 %v1473_v58, %v6052_v49  ;;  %v1516_v49 = vld [vmem:[#allocation2 + $0xc18] sm:$0xff]  ;;  %v1534_v13 = vld [vmem:[#allocation2 + $0xca8] sm:$0xff]  ;;  %v1541_v58 = vld [vmem:[#allocation2 + $0xce0] sm:$0xff] }
 0x72d   :  { %1593 = vmatmul.f32.vlgmr.msrb.gmra.mxu2 %v1513_v40 }
 0x733   :  { %v1476_v28 = vpop.f32.mrf.mxu1 }
 0x734   :  { %v1477_v22 = vadd.f32 %v1476_v28, %v6060_v53  ;;  %v1520_v53 = vld [vmem:[#allocation2 + $0xc38] sm:$0xff]  ;;  %v1543_v28 = vld [vmem:[#allocation2 + $0xcf0] sm:$0xff] }
 0x735   :  { %1596 = vmatmul.f32.gmra.mxu2 %v1515_v60 }
 0x73b   :  { %v1479_v32 = vpop.f32.mrf.mxu1 }
 0x73c   :  { %v1480_v9 = vadd.f32 %v1479_v32, %v1366_v34  ;;  %v1537_v34 = vld [vmem:[#allocation2 + $0xcc0] sm:$0xff] }
 0x73d   :  { %1599 = vmatmul.f32.gmra.mxu2 %v1517_v4  ;;  %v1545_v32 = vld [vmem:[#allocation2 + $0xd00] sm:$0xff] }
 0x743   :  { %v1482_v20 = vpop.f32.mrf.mxu1 }
 0x744   :  { %v1483_v15 = vadd.f32 %v1482_v20, %v1369_v10  ;;  %v1536_v10 = vld [vmem:[#allocation2 + $0xcb8] sm:$0xff] }
 0x745   :  { %1602 = vmatmul.f32.gmra.mxu2 %v1519_v2 }
 0x74b   :  { %v1485_v56 = vpop.f32.mrf.mxu1 }
 0x74c   :  { %v1486_v6 = vadd.f32 %v1485_v56, %v1372_v39  ;;  %v1538_v39 = vld [vmem:[#allocation2 + $0xcc8] sm:$0xff]  ;;  %v1547_v56 = vld [vmem:[#allocation2 + $0xd10] sm:$0xff] }
 0x74d   :  { %1605 = vmatmul.f32.gmra.mxu2 %v1521_v18 }
 0x753   :  { %v1488_v5 = vpop.f32.mrf.mxu1 }
 0x754   :  { %v1489_v54 = vadd.f32 %v1488_v5, %v1375_v8  ;;  %v1540_v8 = vld [vmem:[#allocation2 + $0xcd8] sm:$0xff]  ;;  %v1542_v5 = vld [vmem:[#allocation2 + $0xce8] sm:$0xff] }
 0x755   :  { %1608 = vmatmul.f32.gmra.mxu2 %v1523_v14  ;;  %v1565_v14 = vld [vmem:[#allocation2 + $0xda0] sm:$0xff] }
 0x75b   :  { %v1491_v43 = vpop.f32.mrf.mxu1 }
 0x75c   :  { %v1492_v0 = vadd.f32 %v1491_v43, %v1378_v50 }
 0x75d   :  { %1611 = vmatmul.f32.gmra.mxu2 %v1525_v19 }
 0x763   :  { %v1494_v17 = vpop.f32.mrf.mxu1 }
 0x764   :  { %v1495_v62 = vadd.f32 %v1494_v17, %v1381_v29  ;;  %v1549_v29 = vld [vmem:[#allocation2 + $0xd20] sm:$0xff]  ;;  %v1551_v17 = vld [vmem:[#allocation2 + $0xd30] sm:$0xff] }
 0x765   :  { %1614 = vmatmul.f32.gmra.mxu2 %v1527_v11  ;;  %v1560_v11 = vld [vmem:[#allocation2 + $0xd78] sm:$0xff] }
 0x76b   :  { %v1497_v61 = vpop.f32.mrf.mxu1 }
 0x76c   :  { %v1498_v51 = vadd.f32 %v1497_v61, %v1384_v52  ;;  %v1544_v52 = vld [vmem:[#allocation2 + $0xcf8] sm:$0xff] }
 0x76d   :  { %1617 = vmatmul.f32.gmra.mxu2 %v1529_v57 }
 0x773   :  { %v1500_v1 = vpop.f32.mrf.mxu1 }
 0x774   :  { %v1501_v37 = vadd.f32 %v1500_v1, %v1387_v44  ;;  %v1546_v44 = vld [vmem:[#allocation2 + $0xd08] sm:$0xff]  ;;  %v1553_v1 = vld [vmem:[#allocation2 + $0xd40] sm:$0xff] }
 0x775   :  { %1620 = vmatmul.f32.gmra.mxu2 %v1531_v38 }
 0x77b   :  { %v1503_v36 = vpop.f32.mrf.mxu1 }
 0x77c   :  { %v1504_v55 = vadd.f32 %v1503_v36, %v1390_v35 }
 0x77d   :  { %1623 = vmatmul.f32.gmra.mxu2 %v1533_v12  ;;  %v1569_v12 = vld [vmem:[#allocation2 + $0xdc0] sm:$0xff] }
 0x783   :  { %v1506_v3 = vpop.f32.mrf.mxu1 }
 0x784   :  { %v1507_v41 = vadd.f32 %v1506_v3, %v1393_v46  ;;  %v1548_v3 = vld [vmem:[#allocation2 + $0xd18] sm:$0xff] }
 0x785   :  { %1626 = vmatmul.f32.gmra.mxu2 %v1535_v16 }
 0x78b   :  { %v1509_v45 = vpop.f32.mrf.mxu1 }
 0x78c   :  { %v1510_v59 = vadd.f32 %v1509_v45, %v1396_v48  ;;  %v1555_v48 = vld [vmem:[#allocation2 + $0xd50] sm:$0xff] }
 0x78d   :  { %1629 = vmatmul.f32.gmra.mxu2 %v1537_v34  ;;  %v1571_v34 = vld [vmem:[#allocation2 + $0xdd0] sm:$0xff] }
 0x78e   :  { %1690 = vmatpush.msrb.mxu3 %v1510_v59 }
 0x790   :  { %1691 = vmatpush.msrb.mxu3 %v1507_v41  ;;  %v1550_v41 = vld [vmem:[#allocation2 + $0xd28] sm:$0xff] }
 0x792   :  { %1692 = vmatpush.msrb.mxu3 %v1504_v55  ;;  %v1557_v55 = vld [vmem:[#allocation2 + $0xd60] sm:$0xff] }
 0x794   :  { %1693 = vmatpush.msrb.mxu3 %v1501_v37 }
 0x795   :  { %1632 = vmatmul.f32.gmra.mxu2 %v1539_v23 }
 0x796   :  { %1694 = vmatpush.msrb.mxu3 %v1498_v51 }
 0x798   :  { %1695 = vmatpush.msrb.mxu3 %v1495_v62  ;;  %v1552_v62 = vld [vmem:[#allocation2 + $0xd38] sm:$0xff] }
 0x79a   :  { %1696 = vmatpush.msrb.mxu3 %v1492_v0  ;;  %v1559_v0 = vld [vmem:[#allocation2 + $0xd70] sm:$0xff] }
 0x79c   :  { %1697 = vmatpush.msrb.mxu3 %v1489_v54 }
 0x79d   :  { %1635 = vmatmul.f32.gmra.mxu2 %v1541_v58  ;;  %v1573_v58 = vld [vmem:[#allocation2 + $0xde0] sm:$0xff] }
 0x79e   :  { %1698 = vmatpush.msrb.mxu3 %v1486_v6 }
 0x7a0   :  { %1699 = vmatpush.msrb.mxu3 %v1483_v15  ;;  %v1554_v15 = vld [vmem:[#allocation2 + $0xd48] sm:$0xff] }
 0x7a2   :  { %1700 = vmatpush.msrb.mxu3 %v1480_v9  ;;  %v1561_v9 = vld [vmem:[#allocation2 + $0xd80] sm:$0xff] }
 0x7a4   :  { %1701 = vmatpush.msrb.mxu3 %v1477_v22 }
 0x7a5   :  { %1638 = vmatmul.f32.gmra.mxu2 %v1543_v28 }
 0x7a6   :  { %1702 = vmatpush.msrb.mxu3 %v1474_v27 }
 0x7a8   :  { %1703 = vmatpush.msrb.mxu3 %v1471_v63  ;;  %v1556_v63 = vld [vmem:[#allocation2 + $0xd58] sm:$0xff] }
 0x7aa   :  { %1704 = vmatpush.msrb.mxu3 %v1468_v25  ;;  %v1563_v25 = vld [vmem:[#allocation2 + $0xd90] sm:$0xff] }
 0x7ac   :  { %1705 = vmatpush.msrb.mxu3 %v1465_v31 }
 0x7ad   :  { %1706 = vmatmul.f32.vlgmr.msrb.gmra.mxu3 %v1514_v30  ;;  %1641 = vmatmul.f32.gmra.mxu2 %v1545_v32  ;;  %v1575_v32 = vld [vmem:[#allocation2 + $0xdf0] sm:$0xff] }
 0x7b0   :  { %v1594_v20 = vpop.f32.mrf.mxu2 }
 0x7b5   :  { %1709 = vmatmul.f32.gmra.mxu3 %v1516_v49  ;;  %1644 = vmatmul.f32.gmra.mxu2 %v1547_v56  ;;  %v1558_v49 = vld [vmem:[#allocation2 + $0xd68] sm:$0xff] }
 0x7b6   :  { %v1570_v56 = vld [vmem:[#allocation2 + $0xdc8] sm:$0xff] }
 0x7b8   :  { %v1597_v50 = vpop.f32.mrf.mxu2 }
 0x7bd   :  { %1712 = vmatmul.f32.gmra.mxu3 %v1518_v7  ;;  %1647 = vmatmul.f32.gmra.mxu2 %v1549_v29  ;;  %v1572_v29 = vld [vmem:[#allocation2 + $0xdd8] sm:$0xff] }
 0x7c0   :  { %v1600_v43 = vpop.f32.mrf.mxu2 }
 0x7c5   :  { %1715 = vmatmul.f32.gmra.mxu3 %v1520_v53  ;;  %1650 = vmatmul.f32.gmra.mxu2 %v1551_v17 }
 0x7c8   :  { %v1603_v61 = vpop.f32.mrf.mxu2 }
 0x7cd   :  { %1718 = vmatmul.f32.gmra.mxu3 %v1522_v26  ;;  %1653 = vmatmul.f32.gmra.mxu2 %v1553_v1  ;;  %v1567_v26 = vld [vmem:[#allocation2 + $0xdb0] sm:$0xff] }
 0x7d0   :  { %v1606_v36 = vpop.f32.mrf.mxu2 }
 0x7d5   :  { %1721 = vmatmul.f32.gmra.mxu3 %v1524_v24  ;;  %1656 = vmatmul.f32.gmra.mxu2 %v1555_v48 }
 0x7d8   :  { %v1609_v59 = vpop.f32.mrf.mxu2 }
 0x7dd   :  { %1724 = vmatmul.f32.gmra.mxu3 %v1526_v33  ;;  %1659 = vmatmul.f32.gmra.mxu2 %v1557_v55  ;;  %v1562_v33 = vld [vmem:[#allocation2 + $0xd88] sm:$0xff] }
 0x7e0   :  { %v1612_v60 = vpop.f32.mrf.mxu2 }
 0x7e5   :  { %1727 = vmatmul.f32.gmra.mxu3 %v1528_v21  ;;  %1662 = vmatmul.f32.gmra.mxu2 %v1559_v0 }
 0x7e8   :  { %v1615_v4 = vpop.f32.mrf.mxu2 }
 0x7ed   :  { %1730 = vmatmul.f32.gmra.mxu3 %v1530_v42  ;;  %1665 = vmatmul.f32.gmra.mxu2 %v1561_v9  ;;  %v1564_v42 = vld [vmem:[#allocation2 + $0xd98] sm:$0xff] }
 0x7f0   :  { %v6096_v2 = vpop.f32.mrf.mxu2 }
 0x7f5   :  { %1733 = vmatmul.f32.gmra.mxu3 %v1532_v47  ;;  %1668 = vmatmul.f32.gmra.mxu2 %v1563_v25 }
 0x7f8   :  { %v6100_v30 = vpop.f32.mrf.mxu2 }
 0x7fd   :  { %1736 = vmatmul.f32.gmra.mxu3 %v1534_v13  ;;  %1671 = vmatmul.f32.gmra.mxu2 %v1565_v14  ;;  %v1566_v13 = vld [vmem:[#allocation2 + $0xda8] sm:$0xff] }
 0x800   :  { %v1624_v19 = vpop.f32.mrf.mxu2 }
 0x805   :  { %1739 = vmatmul.f32.gmra.mxu3 %v1536_v10  ;;  %1674 = vmatmul.f32.gmra.mxu2 %v1567_v26 }
 0x808   :  { %v1627_v24 = vpop.f32.mrf.mxu2 }
 0x80d   :  { %1742 = vmatmul.f32.gmra.mxu3 %v1538_v39  ;;  %1677 = vmatmul.f32.gmra.mxu2 %v1569_v12  ;;  %v1568_v39 = vld [vmem:[#allocation2 + $0xdb8] sm:$0xff]  ;;  %v1804_v12 = vld [vmem:[#allocation2 + $0xe00] sm:$0xff] }
 0x810   :  { %v1630_v16 = vpop.f32.mrf.mxu2 }
 0x815   :  { %1745 = vmatmul.f32.gmra.mxu3 %v1540_v8  ;;  %1680 = vmatmul.f32.gmra.mxu2 %v1571_v34  ;;  %v1806_v34 = vld [vmem:[#allocation2 + $0xe10] sm:$0xff] }
 0x818   :  { %v1633_v23 = vpop.f32.mrf.mxu2 }
 0x81d   :  { %1748 = vmatmul.f32.gmra.mxu3 %v1542_v5  ;;  %1683 = vmatmul.f32.gmra.mxu2 %v1573_v58 }
 0x820   :  { %v1636_v28 = vpop.f32.mrf.mxu2 }
 0x825   :  { %1751 = vmatmul.f32.gmra.mxu3 %v1544_v52  ;;  %1686 = vmatmul.f32.gmra.mxu2 %v1575_v32  ;;  %v1574_v52 = vld [vmem:[#allocation2 + $0xde8] sm:$0xff] }
 0x828   :  { %v1639_v8 = vpop.f32.mrf.mxu2 }
 0x82d   :  { %1754 = vmatmul.f32.gmra.mxu3 %v1546_v44  ;;  %v1576_v44 = vld [vmem:[#allocation2 + $0xdf8] sm:$0xff] }
 0x830   :  { %v1707_v35 = vpop.f32.mrf.mxu3  ;;  %v6106_v5 = vpop.f32.mrf.mxu2 }
 0x831   :  { %v6088_v46 = vadd.f32 %v1707_v35, %v1594_v20 }
 0x835   :  { %1757 = vmatmul.f32.gmra.mxu3 %v1548_v3 }
 0x838   :  { %v1710_v45 = vpop.f32.mrf.mxu3  ;;  %v6108_v17 = vpop.f32.mrf.mxu2 }
 0x839   :  { %v6090_v40 = vadd.f32 %v1710_v45, %v1597_v50 }
 0x83d   :  { %1760 = vmatmul.f32.gmra.mxu3 %v1550_v41 }
 0x840   :  { %v1713_v37 = vpop.f32.mrf.mxu3  ;;  %v6110_v1 = vpop.f32.mrf.mxu2 }
 0x841   :  { %v6092_v51 = vadd.f32 %v1713_v37, %v1600_v43 }
 0x845   :  { %1763 = vmatmul.f32.gmra.mxu3 %v1552_v62 }
 0x848   :  { %v1716_v54 = vpop.f32.mrf.mxu3  ;;  %v6112_v45 = vpop.f32.mrf.mxu2 }
 0x849   :  { %v6094_v6 = vadd.f32 %v1716_v54, %v1603_v61 }
 0x84d   :  { %1766 = vmatmul.f32.gmra.mxu3 %v1554_v15 }
 0x850   :  { %v1719_v22 = vpop.f32.mrf.mxu3  ;;  %v1654_v54 = vpop.f32.mrf.mxu2 }
 0x851   :  { %v6098_v27 = vadd.f32 %v1719_v22, %v1606_v36 }
 0x855   :  { %1769 = vmatmul.f32.gmra.mxu3 %v1556_v63 }
 0x858   :  { %v1722_v31 = vpop.f32.mrf.mxu3  ;;  %v1657_v15 = vpop.f32.mrf.mxu2 }
 0x859   :  { %v6102_v18 = vadd.f32 %v1722_v31, %v1609_v59 }
 0x85d   :  { %1772 = vmatmul.f32.gmra.mxu3 %v1558_v49 }
 0x860   :  { %v1725_v7 = vpop.f32.mrf.mxu3  ;;  %v1660_v22 = vpop.f32.mrf.mxu2 }
 0x861   :  { %v6104_v53 = vadd.f32 %v1725_v7, %v1612_v60 }
 0x865   :  { %1775 = vmatmul.f32.gmra.mxu3 %v1560_v11 }
 0x868   :  { %v1728_v57 = vpop.f32.mrf.mxu3  ;;  %v1663_v63 = vpop.f32.mrf.mxu2 }
 0x869   :  { %v1729_v38 = vadd.f32 %v1728_v57, %v1615_v4 }
 0x86d   :  { %1778 = vmatmul.f32.gmra.mxu3 %v1562_v33 }
 0x870   :  { %v1731_v21 = vpop.f32.mrf.mxu3 }
 0x871   :  { %v1732_v62 = vadd.f32 %v1731_v21, %v6096_v2 }
 0x875   :  { %1781 = vmatmul.f32.gmra.mxu3 %v1564_v42 }
 0x878   :  { %v1734_v47 = vpop.f32.mrf.mxu3 }
 0x879   :  { %v1735_v60 = vadd.f32 %v1734_v47, %v6100_v30  ;;  %v1666_v30 = vpop.f32.mrf.mxu2 }
 0x87d   :  { %1784 = vmatmul.f32.gmra.mxu3 %v1566_v13 }
 0x880   :  { %v1737_v10 = vpop.f32.mrf.mxu3 }
 0x881   :  { %v1738_v37 = vadd.f32 %v1737_v10, %v1624_v19  ;;  %v1669_v49 = vpop.f32.mrf.mxu2  ;;  %v1808_v10 = vld [vmem:[#allocation2 + $0xe20] sm:$0xff] }
 0x885   :  { %1787 = vmatmul.f32.gmra.mxu3 %v1568_v39 }
 0x888   :  { %v1740_v20 = vpop.f32.mrf.mxu3 }
 0x889   :  { %v1741_v55 = vadd.f32 %v1740_v20, %v1627_v24 }
 0x88d   :  { %1790 = vmatmul.f32.gmra.mxu3 %v1570_v56 }
 0x890   :  { %v1743_v50 = vpop.f32.mrf.mxu3 }
 0x891   :  { %v1744_v59 = vadd.f32 %v1743_v50, %v1630_v16 }
 0x895   :  { %1793 = vmatmul.f32.gmra.mxu3 %v1572_v29 }
 0x898   :  { %v1746_v43 = vpop.f32.mrf.mxu3 }
 0x899   :  { %v1747_v48 = vadd.f32 %v1746_v43, %v1633_v23 }
 0x89d   :  { %1796 = vmatmul.f32.gmra.mxu3 %v1574_v52  ;;  %v1805_v52 = vld [vmem:[#allocation2 + $0xe08] sm:$0xff] }
 0x8a0   :  { %v1749_v61 = vpop.f32.mrf.mxu3 }
 0x8a1   :  { %v1750_v3 = vadd.f32 %v1749_v61, %v1636_v28  ;;  %v1812_v61 = vld [vmem:[#allocation2 + $0xe40] sm:$0xff] }
 0x8a5   :  { %1799 = vmatmul.f32.gmra.mxu3 %v1576_v44  ;;  %v1807_v44 = vld [vmem:[#allocation2 + $0xe18] sm:$0xff] }
 0x8a8   :  { %v1752_v35 = vpop.f32.mrf.mxu3 }
 0x8a9   :  { %v1753_v36 = vadd.f32 %v1752_v35, %v1639_v8  ;;  %v1810_v8 = vld [vmem:[#allocation2 + $0xe30] sm:$0xff] }
 0x8aa   :  { %v1814_v35 = vld [vmem:[#allocation2 + $0xe50] sm:$0xff] }
 0x8ab   :  { %1868 = vmatpush.msrb.mxu0 %v1753_v36  ;;  %v1809_v36 = vld [vmem:[#allocation2 + $0xe28] sm:$0xff] }
 0x8ad   :  { %1869 = vmatpush.msrb.mxu0 %v1750_v3  ;;  %v1811_v3 = vld [vmem:[#allocation2 + $0xe38] sm:$0xff] }
 0x8af   :  { %1870 = vmatpush.msrb.mxu0 %v1747_v48  ;;  %v1813_v48 = vld [vmem:[#allocation2 + $0xe48] sm:$0xff] }
 0x8b0   :  { %v6114_v41 = vpop.f32.mrf.mxu3 }
 0x8b1   :  { %1871 = vmatpush.msrb.mxu0 %v1744_v59  ;;  %v1756_v43 = vadd.f32 %v6114_v41, %v6106_v5  ;;  %v1820_v5 = vld [vmem:[#allocation2 + $0xe80] sm:$0xff]  ;;  %v1822_v59 = vld [vmem:[#allocation2 + $0xe90] sm:$0xff]  ;;  %v1817_v41 = vld [vmem:[#allocation2 + $0xe68] sm:$0xff] }
 0x8b3   :  { %1872 = vmatpush.msrb.mxu0 %v1741_v55  ;;  %v1824_v55 = vld [vmem:[#allocation2 + $0xea0] sm:$0xff] }
 0x8b5   :  { %1873 = vmatpush.msrb.mxu0 %v1738_v37  ;;  %v1819_v37 = vld [vmem:[#allocation2 + $0xe78] sm:$0xff] }
 0x8b7   :  { %1874 = vmatpush.msrb.mxu0 %v1735_v60  ;;  %v1826_v60 = vld [vmem:[#allocation2 + $0xeb0] sm:$0xff] }
 0x8b8   :  { %v6118_v0 = vpop.f32.mrf.mxu3 }
 0x8b9   :  { %1875 = vmatpush.msrb.mxu0 %v1732_v62  ;;  %v1759_v29 = vadd.f32 %v6118_v0, %v6108_v17  ;;  %v1818_v17 = vld [vmem:[#allocation2 + $0xe70] sm:$0xff]  ;;  %v1821_v62 = vld [vmem:[#allocation2 + $0xe88] sm:$0xff]  ;;  %v1828_v0 = vld [vmem:[#allocation2 + $0xec0] sm:$0xff] }
 0x8bb   :  { %1876 = vmatpush.msrb.mxu0 %v1729_v38 }
 0x8bd   :  { %1877 = vmatpush.msrb.mxu0 %v6104_v53 }
 0x8bf   :  { %1878 = vmatpush.msrb.mxu0 %v6102_v18 }
 0x8c0   :  { %v6122_v4 = vpop.f32.mrf.mxu3 }
 0x8c1   :  { %1879 = vmatpush.msrb.mxu0 %v6098_v27  ;;  %v1672_v27 = vpop.f32.mrf.mxu2  ;;  %v1762_v50 = vadd.f32 %v6122_v4, %v6110_v1  ;;  %v1816_v1 = vld [vmem:[#allocation2 + $0xe60] sm:$0xff]  ;;  %v1830_v4 = vld [vmem:[#allocation2 + $0xed0] sm:$0xff] }
 0x8c3   :  { %1880 = vmatpush.msrb.mxu0 %v6094_v6 }
 0x8c5   :  { %1881 = vmatpush.msrb.mxu0 %v6092_v51 }
 0x8c7   :  { %1882 = vmatpush.msrb.mxu0 %v6090_v40 }
 0x8c8   :  { %v1764_v9 = vpop.f32.mrf.mxu3 }
 0x8c9   :  { %1883 = vmatpush.msrb.mxu0 %v6088_v46  ;;  %v1675_v19 = vpop.f32.mrf.mxu2  ;;  %v1765_v56 = vadd.f32 %v1764_v9, %v6112_v45  ;;  %v1815_v45 = vld [vmem:[#allocation2 + $0xe58] sm:$0xff]  ;;  %v1832_v9 = vld [vmem:[#allocation2 + $0xee0] sm:$0xff] }
 0x8ca   :  { %1884 = vmatmul.f32.vlgmr.msrb.gmra.mxu0 %v1804_v12  ;;  %v1841_v12 = vld [vmem:[#allocation2 + $0xf28] sm:$0xff] }
 0x8d0   :  { %v1767_v2 = vpop.f32.mrf.mxu3 }
 0x8d1   :  { %v1678_v51 = vpop.f32.mrf.mxu2  ;;  %v1768_v20 = vadd.f32 %v1767_v2, %v1654_v54  ;;  %v1823_v54 = vld [vmem:[#allocation2 + $0xe98] sm:$0xff]  ;;  %v1834_v2 = vld [vmem:[#allocation2 + $0xef0] sm:$0xff] }
 0x8d2   :  { %1887 = vmatmul.f32.gmra.mxu0 %v1806_v34  ;;  %v1843_v34 = vld [vmem:[#allocation2 + $0xf38] sm:$0xff] }
 0x8d8   :  { %v1770_v25 = vpop.f32.mrf.mxu3 }
 0x8d9   :  { %v1681_v40 = vpop.f32.mrf.mxu2  ;;  %v1771_v32 = vadd.f32 %v1770_v25, %v1657_v15  ;;  %v1825_v15 = vld [vmem:[#allocation2 + $0xea8] sm:$0xff] }
 0x8da   :  { %1890 = vmatmul.f32.gmra.mxu0 %v1808_v10 }
 0x8e0   :  { %v1773_v31 = vpop.f32.mrf.mxu3 }
 0x8e1   :  { %v1684_v57 = vpop.f32.mrf.mxu2  ;;  %v1774_v39 = vadd.f32 %v1773_v31, %v1660_v22  ;;  %v1827_v22 = vld [vmem:[#allocation2 + $0xeb8] sm:$0xff]  ;;  %v1836_v31 = vld [vmem:[#allocation2 + $0xf00] sm:$0xff] }
 0x8e2   :  { %1893 = vmatmul.f32.gmra.mxu0 %v1810_v8  ;;  %v1854_v8 = vld [vmem:[#allocation2 + $0xf90] sm:$0xff] }
 0x8e8   :  { %v1776_v18 = vpop.f32.mrf.mxu3 }
 0x8e9   :  { %v1687_v24 = vpop.f32.mrf.mxu2  ;;  %v1777_v28 = vadd.f32 %v1776_v18, %v1663_v63  ;;  %v1829_v63 = vld [vmem:[#allocation2 + $0xec8] sm:$0xff] }
 0x8ea   :  { %1896 = vmatmul.f32.gmra.mxu0 %v1812_v61  ;;  %v1851_v61 = vld [vmem:[#allocation2 + $0xf78] sm:$0xff] }
 0x8f0   :  { %v1779_v14 = vpop.f32.mrf.mxu3 }
 0x8f1   :  { %v1780_v58 = vadd.f32 %v1779_v14, %v1666_v30  ;;  %v1831_v30 = vld [vmem:[#allocation2 + $0xed8] sm:$0xff]  ;;  %v1833_v14 = vld [vmem:[#allocation2 + $0xee8] sm:$0xff] }
 0x8f2   :  { %1899 = vmatmul.f32.gmra.mxu0 %v1814_v35  ;;  %v1858_v35 = vld [vmem:[#allocation2 + $0xfb0] sm:$0xff] }
 0x8f8   :  { %v1782_v7 = vpop.f32.mrf.mxu3 }
 0x8f9   :  { %v1783_v13 = vadd.f32 %v1782_v7, %v1669_v49  ;;  %v1838_v49 = vld [vmem:[#allocation2 + $0xf10] sm:$0xff]  ;;  %v1840_v7 = vld [vmem:[#allocation2 + $0xf20] sm:$0xff] }
 0x8fa   :  { %1902 = vmatmul.f32.gmra.mxu0 %v1816_v1  ;;  %v1853_v1 = vld [vmem:[#allocation2 + $0xf88] sm:$0xff] }
 0x900   :  { %v1785_v6 = vpop.f32.mrf.mxu3 }
 0x901   :  { %v1786_v23 = vadd.f32 %v1785_v6, %v1672_v27 }
 0x902   :  { %1905 = vmatmul.f32.gmra.mxu0 %v1818_v17  ;;  %v1860_v17 = vld [vmem:[#allocation2 + $0xfc0] sm:$0xff] }
 0x908   :  { %v1788_v53 = vpop.f32.mrf.mxu3 }
 0x909   :  { %v1789_v47 = vadd.f32 %v1788_v53, %v1675_v19  ;;  %v1835_v19 = vld [vmem:[#allocation2 + $0xef8] sm:$0xff]  ;;  %v1842_v53 = vld [vmem:[#allocation2 + $0xf30] sm:$0xff] }
 0x90a   :  { %1908 = vmatmul.f32.gmra.mxu0 %v1820_v5  ;;  %v1855_v5 = vld [vmem:[#allocation2 + $0xf98] sm:$0xff] }
 0x910   :  { %v1791_v11 = vpop.f32.mrf.mxu3 }
 0x911   :  { %v1792_v42 = vadd.f32 %v1791_v11, %v1678_v51  ;;  %v1837_v11 = vld [vmem:[#allocation2 + $0xf08] sm:$0xff] }
 0x912   :  { %1911 = vmatmul.f32.gmra.mxu0 %v1822_v59  ;;  %v1862_v59 = vld [vmem:[#allocation2 + $0xfd0] sm:$0xff] }
 0x918   :  { %v1794_v26 = vpop.f32.mrf.mxu3 }
 0x919   :  { %v1795_v16 = vadd.f32 %v1794_v26, %v1681_v40  ;;  %v1844_v26 = vld [vmem:[#allocation2 + $0xf40] sm:$0xff] }
 0x91a   :  { %1914 = vmatmul.f32.gmra.mxu0 %v1824_v55  ;;  %v1857_v55 = vld [vmem:[#allocation2 + $0xfa8] sm:$0xff] }
 0x920   :  { %v1797_v46 = vpop.f32.mrf.mxu3 }
 0x921   :  { %v1798_v21 = vadd.f32 %v1797_v46, %v1684_v57  ;;  %v1839_v46 = vld [vmem:[#allocation2 + $0xf18] sm:$0xff] }
 0x922   :  { %1917 = vmatmul.f32.gmra.mxu0 %v1826_v60  ;;  %v1864_v60 = vld [vmem:[#allocation2 + $0xfe0] sm:$0xff] }
 0x928   :  { %v1800_v38 = vpop.f32.mrf.mxu3 }
 0x929   :  { %v1801_v33 = vadd.f32 %v1800_v38, %v1687_v24  ;;  %v1846_v38 = vld [vmem:[#allocation2 + $0xf50] sm:$0xff] }
 0x92a   :  { %1920 = vmatmul.f32.gmra.mxu0 %v1828_v0  ;;  %v1859_v0 = vld [vmem:[#allocation2 + $0xfb8] sm:$0xff] }
 0x92b   :  { %1981 = vmatpush.msrb.mxu1 %v1801_v33 }
 0x92d   :  { %1982 = vmatpush.msrb.mxu1 %v1798_v21 }
 0x92f   :  { %1983 = vmatpush.msrb.mxu1 %v1795_v16  ;;  %v1848_v16 = vld [vmem:[#allocation2 + $0xf60] sm:$0xff] }
 0x931   :  { %1984 = vmatpush.msrb.mxu1 %v1792_v42 }
 0x932   :  { %1923 = vmatmul.f32.gmra.mxu0 %v1830_v4  ;;  %v1866_v4 = vld [vmem:[#allocation2 + $0xff0] sm:$0xff] }
 0x933   :  { %1985 = vmatpush.msrb.mxu1 %v1789_v47 }
 0x935   :  { %1986 = vmatpush.msrb.mxu1 %v1786_v23  ;;  %v1850_v23 = vld [vmem:[#allocation2 + $0xf70] sm:$0xff] }
 0x937   :  { %1987 = vmatpush.msrb.mxu1 %v1783_v13 }
 0x939   :  { %1988 = vmatpush.msrb.mxu1 %v1780_v58  ;;  %v1845_v58 = vld [vmem:[#allocation2 + $0xf48] sm:$0xff] }
 0x93a   :  { %1926 = vmatmul.f32.gmra.mxu0 %v1832_v9  ;;  %v1861_v9 = vld [vmem:[#allocation2 + $0xfc8] sm:$0xff] }
 0x93b   :  { %1989 = vmatpush.msrb.mxu1 %v1777_v28  ;;  %v1852_v28 = vld [vmem:[#allocation2 + $0xf80] sm:$0xff] }
 0x93d   :  { %1990 = vmatpush.msrb.mxu1 %v1774_v39 }
 0x93f   :  { %1991 = vmatpush.msrb.mxu1 %v1771_v32  ;;  %v1847_v32 = vld [vmem:[#allocation2 + $0xf58] sm:$0xff] }
 0x941   :  { %1992 = vmatpush.msrb.mxu1 %v1768_v20 }
 0x942   :  { %1929 = vmatmul.f32.gmra.mxu0 %v1834_v2 }
 0x943   :  { %1993 = vmatpush.msrb.mxu1 %v1765_v56 }
 0x945   :  { %1994 = vmatpush.msrb.mxu1 %v1762_v50  ;;  %v1849_v50 = vld [vmem:[#allocation2 + $0xf68] sm:$0xff] }
 0x947   :  { %1995 = vmatpush.msrb.mxu1 %v1759_v29  ;;  %v6136_v25 = vpop.f32.mrf.mxu0 }
 0x949   :  { %1996 = vmatpush.msrb.mxu1 %v1756_v43  ;;  %v1856_v43 = vld [vmem:[#allocation2 + $0xfa0] sm:$0xff] }
 0x94a   :  { %1997 = vmatmul.f32.vlgmr.msrb.gmra.mxu1 %v1805_v52  ;;  %1932 = vmatmul.f32.gmra.mxu0 %v1836_v31 }
 0x94f   :  { %v6138_v18 = vpop.f32.mrf.mxu0 }
 0x952   :  { %2000 = vmatmul.f32.gmra.mxu1 %v1807_v44  ;;  %1935 = vmatmul.f32.gmra.mxu0 %v1838_v49  ;;  %v1865_v49 = vld [vmem:[#allocation2 + $0xfe8] sm:$0xff] }
 0x957   :  { %v6140_v27 = vpop.f32.mrf.mxu0 }
 0x95a   :  { %2003 = vmatmul.f32.gmra.mxu1 %v1809_v36  ;;  %1938 = vmatmul.f32.gmra.mxu0 %v1840_v7 }
 0x95f   :  { %v6142_v6 = vpop.f32.mrf.mxu0 }
 0x962   :  { %2006 = vmatmul.f32.gmra.mxu1 %v1811_v3  ;;  %1941 = vmatmul.f32.gmra.mxu0 %v1842_v53 }
 0x967   :  { %v6146_v40 = vpop.f32.mrf.mxu0 }
 0x96a   :  { %2009 = vmatmul.f32.gmra.mxu1 %v1813_v48  ;;  %1944 = vmatmul.f32.gmra.mxu0 %v1844_v26 }
 0x96f   :  { %v6150_v24 = vpop.f32.mrf.mxu0 }
 0x972   :  { %2012 = vmatmul.f32.gmra.mxu1 %v1815_v45  ;;  %1947 = vmatmul.f32.gmra.mxu0 %v1846_v38 }
 0x977   :  { %v6154_v21 = vpop.f32.mrf.mxu0 }
 0x97a   :  { %2015 = vmatmul.f32.gmra.mxu1 %v1817_v41  ;;  %1950 = vmatmul.f32.gmra.mxu0 %v1848_v16 }
 0x97f   :  { %v6158_v47 = vpop.f32.mrf.mxu0 }
 0x982   :  { %2018 = vmatmul.f32.gmra.mxu1 %v1819_v37  ;;  %1953 = vmatmul.f32.gmra.mxu0 %v1850_v23 }
 0x987   :  { %v6162_v10 = vpop.f32.mrf.mxu0 }
 0x98a   :  { %2021 = vmatmul.f32.gmra.mxu1 %v1821_v62  ;;  %1956 = vmatmul.f32.gmra.mxu0 %v1852_v28 }
 0x98f   :  { %v6166_v20 = vpop.f32.mrf.mxu0 }
 0x992   :  { %2024 = vmatmul.f32.gmra.mxu1 %v1823_v54  ;;  %1959 = vmatmul.f32.gmra.mxu0 %v1854_v8 }
 0x997   :  { %v1915_v29 = vpop.f32.mrf.mxu0 }
 0x99a   :  { %2027 = vmatmul.f32.gmra.mxu1 %v1825_v15  ;;  %1962 = vmatmul.f32.gmra.mxu0 %v1856_v43 }
 0x99f   :  { %v1918_v44 = vpop.f32.mrf.mxu0 }
 0x9a2   :  { %2030 = vmatmul.f32.gmra.mxu1 %v1827_v22  ;;  %1965 = vmatmul.f32.gmra.mxu0 %v1858_v35 }
 0x9a7   :  { %v1921_v3 = vpop.f32.mrf.mxu0 }
 0x9aa   :  { %2033 = vmatmul.f32.gmra.mxu1 %v1829_v63  ;;  %1968 = vmatmul.f32.gmra.mxu0 %v1860_v17  ;;  %v1863_v63 = vld [vmem:[#allocation2 + $0xfd8] sm:$0xff] }
 0x9af   :  { %v1924_v45 = vpop.f32.mrf.mxu0 }
 0x9b2   :  { %2036 = vmatmul.f32.gmra.mxu1 %v1831_v30  ;;  %1971 = vmatmul.f32.gmra.mxu0 %v1862_v59 }
 0x9b7   :  { %v1927_v37 = vpop.f32.mrf.mxu0 }
 0x9ba   :  { %2039 = vmatmul.f32.gmra.mxu1 %v1833_v14  ;;  %1974 = vmatmul.f32.gmra.mxu0 %v1864_v60 }
 0x9bf   :  { %v1930_v54 = vpop.f32.mrf.mxu0 }
 0x9c2   :  { %2042 = vmatmul.f32.gmra.mxu1 %v1835_v19  ;;  %1977 = vmatmul.f32.gmra.mxu0 %v1866_v4  ;;  %v1867_v19 = vld [vmem:[#allocation2 + $0xff8] sm:$0xff] }
 0x9c7   :  { %v6144_v51 = vpop.f32.mrf.mxu1  ;;  %v6172_v22 = vpop.f32.mrf.mxu0 }
 0x9ca   :  { %2045 = vmatmul.f32.gmra.mxu1 %v1837_v11 }
 0x9cf   :  { %v6148_v57 = vpop.f32.mrf.mxu1  ;;  %v6174_v31 = vpop.f32.mrf.mxu0 }
 0x9d2   :  { %2048 = vmatmul.f32.gmra.mxu1 %v1839_v46 }
 0x9d7   :  { %v6152_v33 = vpop.f32.mrf.mxu1  ;;  %v6176_v14 = vpop.f32.mrf.mxu0 }
 0x9da   :  { %2051 = vmatmul.f32.gmra.mxu1 %v1841_v12 }
 0x9df   :  { %v6156_v42 = vpop.f32.mrf.mxu1  ;;  %v6178_v46 = vpop.f32.mrf.mxu0 }
 0x9e0   :  { %v2008_v43 = vadd.f32 %v6156_v42, %v6142_v6 }
 0x9e2   :  { %2054 = vmatmul.f32.gmra.mxu1 %v1843_v34 }
 0x9e7   :  { %v6160_v13 = vpop.f32.mrf.mxu1 }
 0x9ea   :  { %2057 = vmatmul.f32.gmra.mxu1 %v1845_v58 }
 0x9ef   :  { %v6164_v39 = vpop.f32.mrf.mxu1 }
 0x9f2   :  { %2060 = vmatmul.f32.gmra.mxu1 %v1847_v32  ;;  %v6186_v32 = vpop.f32.mrf.mxu0 }
 0x9f7   :  { %v6168_v56 = vpop.f32.mrf.mxu1 }
 0x9fa   :  { %2063 = vmatmul.f32.gmra.mxu1 %v1849_v50  ;;  %v2017_v50 = vadd.f32 %v6168_v56, %v6154_v21  ;;  %v2002_v21 = vadd.f32 %v6148_v57, %v6138_v18 }
 0x9ff   :  { %v6170_v52 = vpop.f32.mrf.mxu1 }
 0xa00   :  { %v2020_v8 = vadd.f32 %v6170_v52, %v6158_v47  ;;  %v1948_v47 = vpop.f32.mrf.mxu0  ;;  %v2005_v52 = vadd.f32 %v6152_v33, %v6140_v27 }
 0xa02   :  { %2066 = vmatmul.f32.gmra.mxu1 %v1851_v61 }
 0xa07   :  { %v2022_v36 = vpop.f32.mrf.mxu1 }
 0xa08   :  { %v2023_v58 = vadd.f32 %v2022_v36, %v6162_v10  ;;  %v2011_v10 = vadd.f32 %v6160_v13, %v6146_v40  ;;  %v1951_v13 = vpop.f32.mrf.mxu0 }
 0xa0a   :  { %2069 = vmatmul.f32.gmra.mxu1 %v1853_v1 }
 0xa0f   :  { %v2025_v48 = vpop.f32.mrf.mxu1 }
 0xa10   :  { %v2026_v23 = vadd.f32 %v2025_v48, %v6166_v20  ;;  %v1954_v56 = vpop.f32.mrf.mxu0 }
 0xa12   :  { %2072 = vmatmul.f32.gmra.mxu1 %v1855_v5 }
 0xa17   :  { %v2028_v41 = vpop.f32.mrf.mxu1 }
 0xa18   :  { %v2029_v34 = vadd.f32 %v2028_v41, %v1915_v29  ;;  %v2014_v29 = vadd.f32 %v6164_v39, %v6150_v24  ;;  %v1999_v24 = vadd.f32 %v6144_v51, %v6136_v25  ;;  %v1957_v61 = vpop.f32.mrf.mxu0 }
 0xa1a   :  { %2075 = vmatmul.f32.gmra.mxu1 %v1857_v55  ;;  %v2095_v55 = vld [vmem:[#allocation2 + $0x1000] sm:$0xff] }
 0xa1f   :  { %v2031_v62 = vpop.f32.mrf.mxu1 }
 0xa20   :  { %v2032_v16 = vadd.f32 %v2031_v62, %v1918_v44  ;;  %v1960_v35 = vpop.f32.mrf.mxu0 }
 0xa22   :  { %2078 = vmatmul.f32.gmra.mxu1 %v1859_v0  ;;  %v2097_v0 = vld [vmem:[#allocation2 + $0x1010] sm:$0xff] }
 0xa27   :  { %v2034_v15 = vpop.f32.mrf.mxu1 }
 0xa28   :  { %v2035_v38 = vadd.f32 %v2034_v15, %v1921_v3  ;;  %v1963_v33 = vpop.f32.mrf.mxu0 }
 0xa2a   :  { %2081 = vmatmul.f32.gmra.mxu1 %v1861_v9 }
 0xa2f   :  { %v2037_v2 = vpop.f32.mrf.mxu1 }
 0xa30   :  { %v2038_v26 = vadd.f32 %v2037_v2, %v1924_v45  ;;  %v1966_v1 = vpop.f32.mrf.mxu0  ;;  %v2099_v2 = vld [vmem:[#allocation2 + $0x1020] sm:$0xff] }
 0xa32   :  { %2084 = vmatmul.f32.gmra.mxu1 %v1863_v63 }
 0xa37   :  { %v2040_v30 = vpop.f32.mrf.mxu1 }
 0xa38   :  { %v2041_v11 = vadd.f32 %v2040_v30, %v1927_v37  ;;  %v1969_v3 = vpop.f32.mrf.mxu0 }
 0xa3a   :  { %2087 = vmatmul.f32.gmra.mxu1 %v1865_v49 }
 0xa3f   :  { %v2043_v7 = vpop.f32.mrf.mxu1 }
 0xa40   :  { %v2044_v53 = vadd.f32 %v2043_v7, %v1930_v54  ;;  %v1972_v25 = vpop.f32.mrf.mxu0 }
 0xa42   :  { %2090 = vmatmul.f32.gmra.mxu1 %v1867_v19  ;;  %2159 = vmatpush.msra.mxu2 %v2044_v53  ;;  %v2101_v19 = vld [vmem:[#allocation2 + $0x1030] sm:$0xff] }
 0xa44   :  { %2160 = vmatpush.msra.mxu2 %v2041_v11 }
 0xa46   :  { %2161 = vmatpush.msra.mxu2 %v2038_v26 }
 0xa47   :  { %v6180_v12 = vpop.f32.mrf.mxu1 }
 0xa48   :  { %2162 = vmatpush.msra.mxu2 %v2035_v38  ;;  %v1975_v48 = vpop.f32.mrf.mxu0  ;;  %v2047_v38 = vadd.f32 %v6180_v12, %v6172_v22  ;;  %v2111_v22 = vld [vmem:[#allocation2 + $0x1080] sm:$0xff]  ;;  %v2106_v12 = vld [vmem:[#allocation2 + $0x1058] sm:$0xff] }
 0xa4a   :  { %2163 = vmatpush.msra.mxu2 %v2032_v16  ;;  %v2096_v16 = vld [vmem:[#allocation2 + $0x1008] sm:$0xff] }
 0xa4c   :  { %2164 = vmatpush.msra.mxu2 %v2029_v34  ;;  %v2103_v34 = vld [vmem:[#allocation2 + $0x1040] sm:$0xff] }
 0xa4e   :  { %2165 = vmatpush.msra.mxu2 %v2026_v23  ;;  %v2105_v23 = vld [vmem:[#allocation2 + $0x1050] sm:$0xff] }
 0xa4f   :  { %v6184_v28 = vpop.f32.mrf.mxu1 }
 0xa50   :  { %2166 = vmatpush.msra.mxu2 %v2023_v58  ;;  %v1978_v45 = vpop.f32.mrf.mxu0  ;;  %v2050_v26 = vadd.f32 %v6184_v28, %v6174_v31  ;;  %v2100_v58 = vld [vmem:[#allocation2 + $0x1028] sm:$0xff]  ;;  %v2109_v31 = vld [vmem:[#allocation2 + $0x1070] sm:$0xff] }
 0xa51   :  { %v2104_v28 = vld [vmem:[#allocation2 + $0x1048] sm:$0xff] }
 0xa52   :  { %2167 = vmatpush.msra.mxu2 %v2020_v8  ;;  %v2113_v8 = vld [vmem:[#allocation2 + $0x1090] sm:$0xff] }
 0xa54   :  { %2168 = vmatpush.msra.mxu2 %v2017_v50  ;;  %v2108_v50 = vld [vmem:[#allocation2 + $0x1068] sm:$0xff] }
 0xa56   :  { %2169 = vmatpush.msra.mxu2 %v2014_v29  ;;  %v2115_v29 = vld [vmem:[#allocation2 + $0x10a0] sm:$0xff] }
 0xa57   :  { %v6196_v20 = vpop.f32.mrf.mxu1 }
 0xa58   :  { %2170 = vmatpush.msra.mxu2 %v2011_v10  ;;  %v2053_v11 = vadd.f32 %v6196_v20, %v6176_v14  ;;  %v2107_v14 = vld [vmem:[#allocation2 + $0x1060] sm:$0xff]  ;;  %v2110_v10 = vld [vmem:[#allocation2 + $0x1078] sm:$0xff]  ;;  %v2117_v20 = vld [vmem:[#allocation2 + $0x10b0] sm:$0xff] }
 0xa5a   :  { %2171 = vmatpush.msra.mxu2 %v2008_v43  ;;  %v2112_v43 = vld [vmem:[#allocation2 + $0x1088] sm:$0xff] }
 0xa5c   :  { %2172 = vmatpush.msra.mxu2 %v2005_v52  ;;  %v2114_v52 = vld [vmem:[#allocation2 + $0x1098] sm:$0xff] }
 0xa5e   :  { %2173 = vmatpush.msra.mxu2 %v2002_v21  ;;  %v2121_v21 = vld [vmem:[#allocation2 + $0x10d0] sm:$0xff] }
 0xa5f   :  { %v2055_v40 = vpop.f32.mrf.mxu1 }
 0xa60   :  { %2174 = vmatpush.msra.mxu2 %v1999_v24  ;;  %v2056_v53 = vadd.f32 %v2055_v40, %v6178_v46  ;;  %v2098_v46 = vld [vmem:[#allocation2 + $0x1018] sm:$0xff]  ;;  %v2116_v24 = vld [vmem:[#allocation2 + $0x10a8] sm:$0xff]  ;;  %v2123_v40 = vld [vmem:[#allocation2 + $0x10e0] sm:$0xff] }
 0xa61   :  { %2175 = vmatmul.f32.vlgmr.msra.gmra.mxu2 %v2095_v55 }
 0xa67   :  { %v2058_v39 = vpop.f32.mrf.mxu1 }
 0xa68   :  { %v2059_v7 = vadd.f32 %v2058_v39, %v6186_v32  ;;  %v2102_v32 = vld [vmem:[#allocation2 + $0x1038] sm:$0xff]  ;;  %v2125_v39 = vld [vmem:[#allocation2 + $0x10f0] sm:$0xff] }
 0xa69   :  { %2178 = vmatmul.f32.gmra.mxu2 %v2097_v0 }
 0xa6f   :  { %v2061_v6 = vpop.f32.mrf.mxu1 }
 0xa70   :  { %v2062_v49 = vadd.f32 %v2061_v6, %v1948_v47  ;;  %v2119_v47 = vld [vmem:[#allocation2 + $0x10c0] sm:$0xff] }
 0xa71   :  { %2181 = vmatmul.f32.gmra.mxu2 %v2099_v2  ;;  %v2127_v6 = vld [vmem:[#allocation2 + $0x1100] sm:$0xff] }
 0xa77   :  { %v2064_v42 = vpop.f32.mrf.mxu1 }
 0xa78   :  { %v2065_v30 = vadd.f32 %v2064_v42, %v1951_v13  ;;  %v2118_v13 = vld [vmem:[#allocation2 + $0x10b8] sm:$0xff] }
 0xa79   :  { %2184 = vmatmul.f32.gmra.mxu2 %v2101_v19 }
 0xa7f   :  { %v2067_v44 = vpop.f32.mrf.mxu1 }
 0xa80   :  { %v2068_v63 = vadd.f32 %v2067_v44, %v1954_v56  ;;  %v2120_v56 = vld [vmem:[#allocation2 + $0x10c8] sm:$0xff]  ;;  %v2129_v44 = vld [vmem:[#allocation2 + $0x1110] sm:$0xff] }
 0xa81   :  { %2187 = vmatmul.f32.gmra.mxu2 %v2103_v34 }
 0xa87   :  { %v2070_v27 = vpop.f32.mrf.mxu1 }
 0xa88   :  { %v2071_v9 = vadd.f32 %v2070_v27, %v1957_v61  ;;  %v2122_v61 = vld [vmem:[#allocation2 + $0x10d8] sm:$0xff]  ;;  %v2124_v27 = vld [vmem:[#allocation2 + $0x10e8] sm:$0xff] }
 0xa89   :  { %2190 = vmatmul.f32.gmra.mxu2 %v2105_v23  ;;  %v2147_v23 = vld [vmem:[#allocation2 + $0x11a0] sm:$0xff] }
 0xa8f   :  { %v2073_v36 = vpop.f32.mrf.mxu1 }
 0xa90   :  { %v2074_v15 = vadd.f32 %v2073_v36, %v1960_v35 }
 0xa91   :  { %2193 = vmatmul.f32.gmra.mxu2 %v2107_v14 }
 0xa97   :  { %v2076_v18 = vpop.f32.mrf.mxu1 }
 0xa98   :  { %v2077_v4 = vadd.f32 %v2076_v18, %v1963_v33  ;;  %v2131_v33 = vld [vmem:[#allocation2 + $0x1120] sm:$0xff]  ;;  %v2133_v18 = vld [vmem:[#allocation2 + $0x1130] sm:$0xff] }
 0xa99   :  { %2196 = vmatmul.f32.gmra.mxu2 %v2109_v31  ;;  %v2142_v31 = vld [vmem:[#allocation2 + $0x1178] sm:$0xff] }
 0xa9f   :  { %v2079_v57 = vpop.f32.mrf.mxu1 }
 0xaa0   :  { %v2080_v54 = vadd.f32 %v2079_v57, %v1966_v1  ;;  %v2126_v1 = vld [vmem:[#allocation2 + $0x10f8] sm:$0xff] }
 0xaa1   :  { %2199 = vmatmul.f32.gmra.mxu2 %v2111_v22 }
 0xaa7   :  { %v2082_v17 = vpop.f32.mrf.mxu1 }
 0xaa8   :  { %v2083_v62 = vadd.f32 %v2082_v17, %v1969_v3  ;;  %v2128_v3 = vld [vmem:[#allocation2 + $0x1108] sm:$0xff]  ;;  %v2135_v17 = vld [vmem:[#allocation2 + $0x1140] sm:$0xff] }
 0xaa9   :  { %2202 = vmatmul.f32.gmra.mxu2 %v2113_v8 }
 0xaaf   :  { %v2085_v51 = vpop.f32.mrf.mxu1 }
 0xab0   :  { %v2086_v60 = vadd.f32 %v2085_v51, %v1972_v25 }
 0xab1   :  { %2205 = vmatmul.f32.gmra.mxu2 %v2115_v29  ;;  %v2151_v29 = vld [vmem:[#allocation2 + $0x11c0] sm:$0xff] }
 0xab7   :  { %v2088_v5 = vpop.f32.mrf.mxu1 }
 0xab8   :  { %v2089_v37 = vadd.f32 %v2088_v5, %v1975_v48  ;;  %v2130_v5 = vld [vmem:[#allocation2 + $0x1118] sm:$0xff] }
 0xab9   :  { %2208 = vmatmul.f32.gmra.mxu2 %v2117_v20 }
 0xabf   :  { %v2091_v59 = vpop.f32.mrf.mxu1 }
 0xac0   :  { %v2092_v41 = vadd.f32 %v2091_v59, %v1978_v45  ;;  %v2137_v45 = vld [vmem:[#allocation2 + $0x1150] sm:$0xff] }
 0xac1   :  { %2211 = vmatmul.f32.gmra.mxu2 %v2119_v47  ;;  %v2153_v47 = vld [vmem:[#allocation2 + $0x11d0] sm:$0xff] }
 0xac2   :  { %2272 = vmatpush.msra.mxu3 %v2092_v41 }
 0xac4   :  { %2273 = vmatpush.msra.mxu3 %v2089_v37  ;;  %v2132_v37 = vld [vmem:[#allocation2 + $0x1128] sm:$0xff] }
 0xac6   :  { %2274 = vmatpush.msra.mxu3 %v2086_v60  ;;  %v2139_v60 = vld [vmem:[#allocation2 + $0x1160] sm:$0xff] }
 0xac8   :  { %2275 = vmatpush.msra.mxu3 %v2083_v62 }
 0xac9   :  { %2214 = vmatmul.f32.gmra.mxu2 %v2121_v21 }
 0xaca   :  { %2276 = vmatpush.msra.mxu3 %v2080_v54 }
 0xacc   :  { %2277 = vmatpush.msra.mxu3 %v2077_v4  ;;  %v2134_v4 = vld [vmem:[#allocation2 + $0x1138] sm:$0xff] }
 0xace   :  { %2278 = vmatpush.msra.mxu3 %v2074_v15  ;;  %v2141_v15 = vld [vmem:[#allocation2 + $0x1170] sm:$0xff] }
 0xad0   :  { %2279 = vmatpush.msra.mxu3 %v2071_v9 }
 0xad1   :  { %2217 = vmatmul.f32.gmra.mxu2 %v2123_v40  ;;  %v2155_v40 = vld [vmem:[#allocation2 + $0x11e0] sm:$0xff] }
 0xad2   :  { %2280 = vmatpush.msra.mxu3 %v2068_v63 }
 0xad4   :  { %2281 = vmatpush.msra.mxu3 %v2065_v30  ;;  %v2136_v30 = vld [vmem:[#allocation2 + $0x1148] sm:$0xff] }
 0xad6   :  { %2282 = vmatpush.msra.mxu3 %v2062_v49  ;;  %v2143_v49 = vld [vmem:[#allocation2 + $0x1180] sm:$0xff] }
 0xad8   :  { %2283 = vmatpush.msra.mxu3 %v2059_v7 }
 0xad9   :  { %2220 = vmatmul.f32.gmra.mxu2 %v2125_v39 }
 0xada   :  { %2284 = vmatpush.msra.mxu3 %v2056_v53 }
 0xadc   :  { %2285 = vmatpush.msra.mxu3 %v2053_v11  ;;  %v2138_v11 = vld [vmem:[#allocation2 + $0x1158] sm:$0xff] }
 0xade   :  { %2286 = vmatpush.msra.mxu3 %v2050_v26  ;;  %v2145_v26 = vld [vmem:[#allocation2 + $0x1190] sm:$0xff] }
 0xae0   :  { %2287 = vmatpush.msra.mxu3 %v2047_v38 }
 0xae1   :  { %2288 = vmatmul.f32.vlgmr.msra.gmra.mxu3 %v2096_v16  ;;  %2223 = vmatmul.f32.gmra.mxu2 %v2127_v6  ;;  %v2157_v6 = vld [vmem:[#allocation2 + $0x11f0] sm:$0xff] }
 0xae4   :  { %v2176_v42 = vpop.f32.mrf.mxu2 }
 0xae9   :  { %2291 = vmatmul.f32.gmra.mxu3 %v2098_v46  ;;  %2226 = vmatmul.f32.gmra.mxu2 %v2129_v44  ;;  %v2140_v46 = vld [vmem:[#allocation2 + $0x1168] sm:$0xff] }
 0xaea   :  { %v2152_v44 = vld [vmem:[#allocation2 + $0x11c8] sm:$0xff] }
 0xaec   :  { %v2179_v35 = vpop.f32.mrf.mxu2 }
 0xaf1   :  { %2294 = vmatmul.f32.gmra.mxu3 %v2100_v58  ;;  %2229 = vmatmul.f32.gmra.mxu2 %v2131_v33  ;;  %v2154_v33 = vld [vmem:[#allocation2 + $0x11d8] sm:$0xff] }
 0xaf4   :  { %v2182_v36 = vpop.f32.mrf.mxu2 }
 0xaf9   :  { %2297 = vmatmul.f32.gmra.mxu3 %v2102_v32  ;;  %2232 = vmatmul.f32.gmra.mxu2 %v2133_v18 }
 0xafc   :  { %v2185_v57 = vpop.f32.mrf.mxu2 }
 0xb01   :  { %2300 = vmatmul.f32.gmra.mxu3 %v2104_v28  ;;  %2235 = vmatmul.f32.gmra.mxu2 %v2135_v17  ;;  %v2149_v28 = vld [vmem:[#allocation2 + $0x11b0] sm:$0xff] }
 0xb04   :  { %v2188_v51 = vpop.f32.mrf.mxu2 }
 0xb09   :  { %2303 = vmatmul.f32.gmra.mxu3 %v2106_v12  ;;  %2238 = vmatmul.f32.gmra.mxu2 %v2137_v45 }
 0xb0c   :  { %v2191_v41 = vpop.f32.mrf.mxu2 }
 0xb11   :  { %2306 = vmatmul.f32.gmra.mxu3 %v2108_v50  ;;  %2241 = vmatmul.f32.gmra.mxu2 %v2139_v60  ;;  %v2144_v50 = vld [vmem:[#allocation2 + $0x1188] sm:$0xff] }
 0xb14   :  { %v2194_v0 = vpop.f32.mrf.mxu2 }
 0xb19   :  { %2309 = vmatmul.f32.gmra.mxu3 %v2110_v10  ;;  %2244 = vmatmul.f32.gmra.mxu2 %v2141_v15 }
 0xb1c   :  { %v2197_v2 = vpop.f32.mrf.mxu2 }
 0xb21   :  { %2312 = vmatmul.f32.gmra.mxu3 %v2112_v43  ;;  %2247 = vmatmul.f32.gmra.mxu2 %v2143_v49  ;;  %v2146_v43 = vld [vmem:[#allocation2 + $0x1198] sm:$0xff] }
 0xb24   :  { %v6222_v19 = vpop.f32.mrf.mxu2 }
 0xb29   :  { %2315 = vmatmul.f32.gmra.mxu3 %v2114_v52  ;;  %2250 = vmatmul.f32.gmra.mxu2 %v2145_v26 }
 0xb2c   :  { %v6226_v16 = vpop.f32.mrf.mxu2 }
 0xb31   :  { %2318 = vmatmul.f32.gmra.mxu3 %v2116_v24  ;;  %2253 = vmatmul.f32.gmra.mxu2 %v2147_v23  ;;  %v2148_v24 = vld [vmem:[#allocation2 + $0x11a8] sm:$0xff] }
 0xb34   :  { %v2206_v14 = vpop.f32.mrf.mxu2 }
 0xb39   :  { %2321 = vmatmul.f32.gmra.mxu3 %v2118_v13  ;;  %2256 = vmatmul.f32.gmra.mxu2 %v2149_v28 }
 0xb3c   :  { %v2209_v12 = vpop.f32.mrf.mxu2 }
 0xb41   :  { %2324 = vmatmul.f32.gmra.mxu3 %v2120_v56  ;;  %2259 = vmatmul.f32.gmra.mxu2 %v2151_v29  ;;  %v2150_v56 = vld [vmem:[#allocation2 + $0x11b8] sm:$0xff]  ;;  %v2386_v29 = vld [vmem:[#allocation2 + $0x1200] sm:$0xff] }
 0xb44   :  { %v2212_v20 = vpop.f32.mrf.mxu2 }
 0xb49   :  { %2327 = vmatmul.f32.gmra.mxu3 %v2122_v61  ;;  %2262 = vmatmul.f32.gmra.mxu2 %v2153_v47  ;;  %v2388_v47 = vld [vmem:[#allocation2 + $0x1210] sm:$0xff] }
 0xb4c   :  { %v2215_v21 = vpop.f32.mrf.mxu2 }
 0xb51   :  { %2330 = vmatmul.f32.gmra.mxu3 %v2124_v27  ;;  %2265 = vmatmul.f32.gmra.mxu2 %v2155_v40 }
 0xb54   :  { %v2218_v39 = vpop.f32.mrf.mxu2 }
 0xb59   :  { %2333 = vmatmul.f32.gmra.mxu3 %v2126_v1  ;;  %2268 = vmatmul.f32.gmra.mxu2 %v2157_v6  ;;  %v2156_v1 = vld [vmem:[#allocation2 + $0x11e8] sm:$0xff] }
 0xb5c   :  { %v2221_v61 = vpop.f32.mrf.mxu2 }
 0xb61   :  { %2336 = vmatmul.f32.gmra.mxu3 %v2128_v3  ;;  %v2158_v3 = vld [vmem:[#allocation2 + $0x11f8] sm:$0xff] }
 0xb64   :  { %v2289_v25 = vpop.f32.mrf.mxu3  ;;  %v6232_v27 = vpop.f32.mrf.mxu2 }
 0xb65   :  { %v6214_v48 = vadd.f32 %v2289_v25, %v2176_v42 }
 0xb69   :  { %2339 = vmatmul.f32.gmra.mxu3 %v2130_v5 }
 0xb6c   :  { %v2292_v59 = vpop.f32.mrf.mxu3  ;;  %v6234_v18 = vpop.f32.mrf.mxu2 }
 0xb6d   :  { %v6216_v55 = vadd.f32 %v2292_v59, %v2179_v35 }
 0xb71   :  { %2342 = vmatmul.f32.gmra.mxu3 %v2132_v37 }
 0xb74   :  { %v2295_v62 = vpop.f32.mrf.mxu3  ;;  %v6236_v17 = vpop.f32.mrf.mxu2 }
 0xb75   :  { %v6218_v54 = vadd.f32 %v2295_v62, %v2182_v36 }
 0xb79   :  { %2345 = vmatmul.f32.gmra.mxu3 %v2134_v4 }
 0xb7c   :  { %v2298_v9 = vpop.f32.mrf.mxu3  ;;  %v6238_v59 = vpop.f32.mrf.mxu2 }
 0xb7d   :  { %v6220_v63 = vadd.f32 %v2298_v9, %v2185_v57 }
 0xb81   :  { %2348 = vmatmul.f32.gmra.mxu3 %v2136_v30 }
 0xb84   :  { %v2301_v7 = vpop.f32.mrf.mxu3  ;;  %v2236_v9 = vpop.f32.mrf.mxu2 }
 0xb85   :  { %v6224_v53 = vadd.f32 %v2301_v7, %v2188_v51 }
 0xb89   :  { %2351 = vmatmul.f32.gmra.mxu3 %v2138_v11 }
 0xb8c   :  { %v2304_v38 = vpop.f32.mrf.mxu3  ;;  %v2239_v30 = vpop.f32.mrf.mxu2 }
 0xb8d   :  { %v6228_v34 = vadd.f32 %v2304_v38, %v2191_v41 }
 0xb91   :  { %2354 = vmatmul.f32.gmra.mxu3 %v2140_v46 }
 0xb94   :  { %v2307_v58 = vpop.f32.mrf.mxu3  ;;  %v2242_v7 = vpop.f32.mrf.mxu2 }
 0xb95   :  { %v6230_v32 = vadd.f32 %v2307_v58, %v2194_v0 }
 0xb99   :  { %2357 = vmatmul.f32.gmra.mxu3 %v2142_v31 }
 0xb9c   :  { %v2310_v22 = vpop.f32.mrf.mxu3  ;;  %v2245_v11 = vpop.f32.mrf.mxu2 }
 0xb9d   :  { %v2311_v8 = vadd.f32 %v2310_v22, %v2197_v2 }
 0xba1   :  { %2360 = vmatmul.f32.gmra.mxu3 %v2144_v50 }
 0xba4   :  { %v2313_v10 = vpop.f32.mrf.mxu3 }
 0xba5   :  { %v2314_v4 = vadd.f32 %v2313_v10, %v6222_v19 }
 0xba9   :  { %2363 = vmatmul.f32.gmra.mxu3 %v2146_v43 }
 0xbac   :  { %v2316_v52 = vpop.f32.mrf.mxu3 }
 0xbad   :  { %v2317_v0 = vadd.f32 %v2316_v52, %v6226_v16  ;;  %v2248_v16 = vpop.f32.mrf.mxu2 }
 0xbb1   :  { %2366 = vmatmul.f32.gmra.mxu3 %v2148_v24 }
 0xbb4   :  { %v2319_v13 = vpop.f32.mrf.mxu3 }
 0xbb5   :  { %v2320_v62 = vadd.f32 %v2319_v13, %v2206_v14  ;;  %v2251_v46 = vpop.f32.mrf.mxu2  ;;  %v2390_v13 = vld [vmem:[#allocation2 + $0x1220] sm:$0xff] }
 0xbb9   :  { %2369 = vmatmul.f32.gmra.mxu3 %v2150_v56 }
 0xbbc   :  { %v2322_v42 = vpop.f32.mrf.mxu3 }
 0xbbd   :  { %v2323_v60 = vadd.f32 %v2322_v42, %v2209_v12 }
 0xbc1   :  { %2372 = vmatmul.f32.gmra.mxu3 %v2152_v44 }
 0xbc4   :  { %v2325_v35 = vpop.f32.mrf.mxu3 }
 0xbc5   :  { %v2326_v41 = vadd.f32 %v2325_v35, %v2212_v20 }
 0xbc9   :  { %2375 = vmatmul.f32.gmra.mxu3 %v2154_v33 }
 0xbcc   :  { %v2328_v36 = vpop.f32.mrf.mxu3 }
 0xbcd   :  { %v2329_v45 = vadd.f32 %v2328_v36, %v2215_v21 }
 0xbd1   :  { %2378 = vmatmul.f32.gmra.mxu3 %v2156_v1  ;;  %v2387_v1 = vld [vmem:[#allocation2 + $0x1208] sm:$0xff] }
 0xbd4   :  { %v2331_v57 = vpop.f32.mrf.mxu3 }
 0xbd5   :  { %v2332_v5 = vadd.f32 %v2331_v57, %v2218_v39  ;;  %v2394_v57 = vld [vmem:[#allocation2 + $0x1240] sm:$0xff] }
 0xbd9   :  { %2381 = vmatmul.f32.gmra.mxu3 %v2158_v3  ;;  %v2389_v3 = vld [vmem:[#allocation2 + $0x1218] sm:$0xff] }
 0xbdc   :  { %v2334_v25 = vpop.f32.mrf.mxu3 }
 0xbdd   :  { %v2335_v51 = vadd.f32 %v2334_v25, %v2221_v61  ;;  %v2392_v61 = vld [vmem:[#allocation2 + $0x1230] sm:$0xff] }
 0xbde   :  { %v2396_v25 = vld [vmem:[#allocation2 + $0x1250] sm:$0xff] }
 0xbdf   :  { %2450 = vmatpush.msra.mxu0 %v2335_v51  ;;  %v2391_v51 = vld [vmem:[#allocation2 + $0x1228] sm:$0xff] }
 0xbe1   :  { %2451 = vmatpush.msra.mxu0 %v2332_v5  ;;  %v2393_v5 = vld [vmem:[#allocation2 + $0x1238] sm:$0xff] }
 0xbe3   :  { %2452 = vmatpush.msra.mxu0 %v2329_v45  ;;  %v2395_v45 = vld [vmem:[#allocation2 + $0x1248] sm:$0xff] }
 0xbe4   :  { %v6240_v37 = vpop.f32.mrf.mxu3 }
 0xbe5   :  { %2453 = vmatpush.msra.mxu0 %v2326_v41  ;;  %v2338_v36 = vadd.f32 %v6240_v37, %v6232_v27  ;;  %v2402_v27 = vld [vmem:[#allocation2 + $0x1280] sm:$0xff]  ;;  %v2404_v41 = vld [vmem:[#allocation2 + $0x1290] sm:$0xff]  ;;  %v2399_v37 = vld [vmem:[#allocation2 + $0x1268] sm:$0xff] }
 0xbe7   :  { %2454 = vmatpush.msra.mxu0 %v2323_v60  ;;  %v2406_v60 = vld [vmem:[#allocation2 + $0x12a0] sm:$0xff] }
 0xbe9   :  { %2455 = vmatpush.msra.mxu0 %v2320_v62  ;;  %v2401_v62 = vld [vmem:[#allocation2 + $0x1278] sm:$0xff] }
 0xbeb   :  { %2456 = vmatpush.msra.mxu0 %v2317_v0  ;;  %v2408_v0 = vld [vmem:[#allocation2 + $0x12b0] sm:$0xff] }
 0xbec   :  { %v6244_v15 = vpop.f32.mrf.mxu3 }
 0xbed   :  { %2457 = vmatpush.msra.mxu0 %v2314_v4  ;;  %v2341_v33 = vadd.f32 %v6244_v15, %v6234_v18  ;;  %v2400_v18 = vld [vmem:[#allocation2 + $0x1270] sm:$0xff]  ;;  %v2403_v4 = vld [vmem:[#allocation2 + $0x1288] sm:$0xff]  ;;  %v2410_v15 = vld [vmem:[#allocation2 + $0x12c0] sm:$0xff] }
 0xbef   :  { %2458 = vmatpush.msra.mxu0 %v2311_v8 }
 0xbf1   :  { %2459 = vmatpush.msra.mxu0 %v6230_v32 }
 0xbf3   :  { %2460 = vmatpush.msra.mxu0 %v6228_v34 }
 0xbf4   :  { %v6248_v2 = vpop.f32.mrf.mxu3 }
 0xbf5   :  { %2461 = vmatpush.msra.mxu0 %v6224_v53  ;;  %v2254_v53 = vpop.f32.mrf.mxu2  ;;  %v2344_v35 = vadd.f32 %v6248_v2, %v6236_v17  ;;  %v2398_v17 = vld [vmem:[#allocation2 + $0x1260] sm:$0xff]  ;;  %v2412_v2 = vld [vmem:[#allocation2 + $0x12d0] sm:$0xff] }
 0xbf7   :  { %2462 = vmatpush.msra.mxu0 %v6220_v63 }
 0xbf9   :  { %2463 = vmatpush.msra.mxu0 %v6218_v54 }
 0xbfb   :  { %2464 = vmatpush.msra.mxu0 %v6216_v55 }
 0xbfc   :  { %v2346_v49 = vpop.f32.mrf.mxu3 }
 0xbfd   :  { %2465 = vmatpush.msra.mxu0 %v6214_v48  ;;  %v2257_v14 = vpop.f32.mrf.mxu2  ;;  %v2347_v44 = vadd.f32 %v2346_v49, %v6238_v59  ;;  %v2397_v59 = vld [vmem:[#allocation2 + $0x1258] sm:$0xff]  ;;  %v2414_v49 = vld [vmem:[#allocation2 + $0x12e0] sm:$0xff] }
 0xbfe   :  { %2466 = vmatmul.f32.vlgmr.msra.gmra.mxu0 %v2386_v29  ;;  %v2423_v29 = vld [vmem:[#allocation2 + $0x1328] sm:$0xff] }
 0xc04   :  { %v2349_v19 = vpop.f32.mrf.mxu3 }
 0xc05   :  { %v2260_v54 = vpop.f32.mrf.mxu2  ;;  %v2350_v42 = vadd.f32 %v2349_v19, %v2236_v9  ;;  %v2405_v9 = vld [vmem:[#allocation2 + $0x1298] sm:$0xff]  ;;  %v2416_v19 = vld [vmem:[#allocation2 + $0x12f0] sm:$0xff] }
 0xc06   :  { %2469 = vmatmul.f32.gmra.mxu0 %v2388_v47  ;;  %v2425_v47 = vld [vmem:[#allocation2 + $0x1338] sm:$0xff] }
 0xc0c   :  { %v2352_v26 = vpop.f32.mrf.mxu3 }
 0xc0d   :  { %v2263_v55 = vpop.f32.mrf.mxu2  ;;  %v2353_v6 = vadd.f32 %v2352_v26, %v2239_v30  ;;  %v2407_v30 = vld [vmem:[#allocation2 + $0x12a8] sm:$0xff] }
 0xc0e   :  { %2472 = vmatmul.f32.gmra.mxu0 %v2390_v13 }
 0xc14   :  { %v2355_v38 = vpop.f32.mrf.mxu3 }
 0xc15   :  { %v2266_v22 = vpop.f32.mrf.mxu2  ;;  %v2356_v56 = vadd.f32 %v2355_v38, %v2242_v7  ;;  %v2409_v7 = vld [vmem:[#allocation2 + $0x12b8] sm:$0xff]  ;;  %v2418_v38 = vld [vmem:[#allocation2 + $0x1300] sm:$0xff] }
 0xc16   :  { %2475 = vmatmul.f32.gmra.mxu0 %v2392_v61  ;;  %v2436_v61 = vld [vmem:[#allocation2 + $0x1390] sm:$0xff] }
 0xc1c   :  { %v2358_v34 = vpop.f32.mrf.mxu3 }
 0xc1d   :  { %v2269_v12 = vpop.f32.mrf.mxu2  ;;  %v2359_v39 = vadd.f32 %v2358_v34, %v2245_v11  ;;  %v2411_v11 = vld [vmem:[#allocation2 + $0x12c8] sm:$0xff] }
 0xc1e   :  { %2478 = vmatmul.f32.gmra.mxu0 %v2394_v57  ;;  %v2433_v57 = vld [vmem:[#allocation2 + $0x1378] sm:$0xff] }
 0xc24   :  { %v2361_v23 = vpop.f32.mrf.mxu3 }
 0xc25   :  { %v2362_v40 = vadd.f32 %v2361_v23, %v2248_v16  ;;  %v2413_v16 = vld [vmem:[#allocation2 + $0x12d8] sm:$0xff]  ;;  %v2415_v23 = vld [vmem:[#allocation2 + $0x12e8] sm:$0xff] }
 0xc26   :  { %2481 = vmatmul.f32.gmra.mxu0 %v2396_v25  ;;  %v2440_v25 = vld [vmem:[#allocation2 + $0x13b0] sm:$0xff] }
 0xc2c   :  { %v2364_v58 = vpop.f32.mrf.mxu3 }
 0xc2d   :  { %v2365_v24 = vadd.f32 %v2364_v58, %v2251_v46  ;;  %v2420_v46 = vld [vmem:[#allocation2 + $0x1310] sm:$0xff]  ;;  %v2422_v58 = vld [vmem:[#allocation2 + $0x1320] sm:$0xff] }
 0xc2e   :  { %2484 = vmatmul.f32.gmra.mxu0 %v2398_v17  ;;  %v2435_v17 = vld [vmem:[#allocation2 + $0x1388] sm:$0xff] }
 0xc34   :  { %v2367_v63 = vpop.f32.mrf.mxu3 }
 0xc35   :  { %v2368_v21 = vadd.f32 %v2367_v63, %v2254_v53 }
 0xc36   :  { %2487 = vmatmul.f32.gmra.mxu0 %v2400_v18  ;;  %v2442_v18 = vld [vmem:[#allocation2 + $0x13c0] sm:$0xff] }
 0xc3c   :  { %v2370_v32 = vpop.f32.mrf.mxu3 }
 0xc3d   :  { %v2371_v52 = vadd.f32 %v2370_v32, %v2257_v14  ;;  %v2417_v14 = vld [vmem:[#allocation2 + $0x12f8] sm:$0xff]  ;;  %v2424_v32 = vld [vmem:[#allocation2 + $0x1330] sm:$0xff] }
 0xc3e   :  { %2490 = vmatmul.f32.gmra.mxu0 %v2402_v27  ;;  %v2437_v27 = vld [vmem:[#allocation2 + $0x1398] sm:$0xff] }
 0xc44   :  { %v2373_v31 = vpop.f32.mrf.mxu3 }
 0xc45   :  { %v2374_v43 = vadd.f32 %v2373_v31, %v2260_v54  ;;  %v2419_v31 = vld [vmem:[#allocation2 + $0x1308] sm:$0xff] }
 0xc46   :  { %2493 = vmatmul.f32.gmra.mxu0 %v2404_v41  ;;  %v2444_v41 = vld [vmem:[#allocation2 + $0x13d0] sm:$0xff] }
 0xc4c   :  { %v2376_v28 = vpop.f32.mrf.mxu3 }
 0xc4d   :  { %v2377_v20 = vadd.f32 %v2376_v28, %v2263_v55  ;;  %v2426_v28 = vld [vmem:[#allocation2 + $0x1340] sm:$0xff] }
 0xc4e   :  { %2496 = vmatmul.f32.gmra.mxu0 %v2406_v60  ;;  %v2439_v60 = vld [vmem:[#allocation2 + $0x13a8] sm:$0xff] }
 0xc54   :  { %v2379_v48 = vpop.f32.mrf.mxu3 }
 0xc55   :  { %v2380_v10 = vadd.f32 %v2379_v48, %v2266_v22  ;;  %v2421_v48 = vld [vmem:[#allocation2 + $0x1318] sm:$0xff] }
 0xc56   :  { %2499 = vmatmul.f32.gmra.mxu0 %v2408_v0  ;;  %v2446_v0 = vld [vmem:[#allocation2 + $0x13e0] sm:$0xff] }
 0xc5c   :  { %v2382_v8 = vpop.f32.mrf.mxu3 }
 0xc5d   :  { %v2383_v50 = vadd.f32 %v2382_v8, %v2269_v12  ;;  %v2428_v8 = vld [vmem:[#allocation2 + $0x1350] sm:$0xff] }
 0xc5e   :  { %2502 = vmatmul.f32.gmra.mxu0 %v2410_v15  ;;  %v2441_v15 = vld [vmem:[#allocation2 + $0x13b8] sm:$0xff] }
 0xc5f   :  { %2563 = vmatpush.msra.mxu1 %v2383_v50 }
 0xc61   :  { %2564 = vmatpush.msra.mxu1 %v2380_v10 }
 0xc63   :  { %2565 = vmatpush.msra.mxu1 %v2377_v20  ;;  %v2430_v20 = vld [vmem:[#allocation2 + $0x1360] sm:$0xff] }
 0xc65   :  { %2566 = vmatpush.msra.mxu1 %v2374_v43 }
 0xc66   :  { %2505 = vmatmul.f32.gmra.mxu0 %v2412_v2  ;;  %v2448_v2 = vld [vmem:[#allocation2 + $0x13f0] sm:$0xff] }
 0xc67   :  { %2567 = vmatpush.msra.mxu1 %v2371_v52 }
 0xc69   :  { %2568 = vmatpush.msra.mxu1 %v2368_v21  ;;  %v2432_v21 = vld [vmem:[#allocation2 + $0x1370] sm:$0xff] }
 0xc6b   :  { %2569 = vmatpush.msra.mxu1 %v2365_v24 }
 0xc6d   :  { %2570 = vmatpush.msra.mxu1 %v2362_v40  ;;  %v2427_v40 = vld [vmem:[#allocation2 + $0x1348] sm:$0xff] }
 0xc6e   :  { %2508 = vmatmul.f32.gmra.mxu0 %v2414_v49  ;;  %v2443_v49 = vld [vmem:[#allocation2 + $0x13c8] sm:$0xff] }
 0xc6f   :  { %2571 = vmatpush.msra.mxu1 %v2359_v39  ;;  %v2434_v39 = vld [vmem:[#allocation2 + $0x1380] sm:$0xff] }
 0xc71   :  { %2572 = vmatpush.msra.mxu1 %v2356_v56 }
 0xc73   :  { %2573 = vmatpush.msra.mxu1 %v2353_v6  ;;  %v2429_v6 = vld [vmem:[#allocation2 + $0x1358] sm:$0xff] }
 0xc75   :  { %2574 = vmatpush.msra.mxu1 %v2350_v42 }
 0xc76   :  { %2511 = vmatmul.f32.gmra.mxu0 %v2416_v19 }
 0xc77   :  { %2575 = vmatpush.msra.mxu1 %v2347_v44 }
 0xc79   :  { %2576 = vmatpush.msra.mxu1 %v2344_v35  ;;  %v2431_v35 = vld [vmem:[#allocation2 + $0x1368] sm:$0xff] }
 0xc7b   :  { %2577 = vmatpush.msra.mxu1 %v2341_v33  ;;  %v6262_v26 = vpop.f32.mrf.mxu0 }
 0xc7d   :  { %2578 = vmatpush.msra.mxu1 %v2338_v36  ;;  %v2438_v36 = vld [vmem:[#allocation2 + $0x13a0] sm:$0xff] }
 0xc7e   :  { %2579 = vmatmul.f32.vlgmr.msra.gmra.mxu1 %v2387_v1  ;;  %2514 = vmatmul.f32.gmra.mxu0 %v2418_v38 }
 0xc83   :  { %v6264_v34 = vpop.f32.mrf.mxu0 }
 0xc86   :  { %2582 = vmatmul.f32.gmra.mxu1 %v2389_v3  ;;  %2517 = vmatmul.f32.gmra.mxu0 %v2420_v46  ;;  %v2447_v46 = vld [vmem:[#allocation2 + $0x13e8] sm:$0xff] }
 0xc8b   :  { %v6266_v53 = vpop.f32.mrf.mxu0 }
 0xc8e   :  { %2585 = vmatmul.f32.gmra.mxu1 %v2391_v51  ;;  %2520 = vmatmul.f32.gmra.mxu0 %v2422_v58 }
 0xc93   :  { %v6268_v63 = vpop.f32.mrf.mxu0 }
 0xc96   :  { %2588 = vmatmul.f32.gmra.mxu1 %v2393_v5  ;;  %2523 = vmatmul.f32.gmra.mxu0 %v2424_v32 }
 0xc9b   :  { %v6272_v55 = vpop.f32.mrf.mxu0 }
 0xc9e   :  { %2591 = vmatmul.f32.gmra.mxu1 %v2395_v45  ;;  %2526 = vmatmul.f32.gmra.mxu0 %v2426_v28 }
 0xca3   :  { %v6276_v12 = vpop.f32.mrf.mxu0 }
 0xca6   :  { %2594 = vmatmul.f32.gmra.mxu1 %v2397_v59  ;;  %2529 = vmatmul.f32.gmra.mxu0 %v2428_v8 }
 0xcab   :  { %v6280_v10 = vpop.f32.mrf.mxu0 }
 0xcae   :  { %2597 = vmatmul.f32.gmra.mxu1 %v2399_v37  ;;  %2532 = vmatmul.f32.gmra.mxu0 %v2430_v20 }
 0xcb3   :  { %v6284_v52 = vpop.f32.mrf.mxu0 }
 0xcb6   :  { %2600 = vmatmul.f32.gmra.mxu1 %v2401_v62  ;;  %2535 = vmatmul.f32.gmra.mxu0 %v2432_v21 }
 0xcbb   :  { %v6288_v13 = vpop.f32.mrf.mxu0 }
 0xcbe   :  { %2603 = vmatmul.f32.gmra.mxu1 %v2403_v4  ;;  %2538 = vmatmul.f32.gmra.mxu0 %v2434_v39 }
 0xcc3   :  { %v6292_v42 = vpop.f32.mrf.mxu0 }
 0xcc6   :  { %2606 = vmatmul.f32.gmra.mxu1 %v2405_v9  ;;  %2541 = vmatmul.f32.gmra.mxu0 %v2436_v61 }
 0xccb   :  { %v2497_v33 = vpop.f32.mrf.mxu0 }
 0xcce   :  { %2609 = vmatmul.f32.gmra.mxu1 %v2407_v30  ;;  %2544 = vmatmul.f32.gmra.mxu0 %v2438_v36 }
 0xcd3   :  { %v2500_v3 = vpop.f32.mrf.mxu0 }
 0xcd6   :  { %2612 = vmatmul.f32.gmra.mxu1 %v2409_v7  ;;  %2547 = vmatmul.f32.gmra.mxu0 %v2440_v25 }
 0xcdb   :  { %v2503_v5 = vpop.f32.mrf.mxu0 }
 0xcde   :  { %2615 = vmatmul.f32.gmra.mxu1 %v2411_v11  ;;  %2550 = vmatmul.f32.gmra.mxu0 %v2442_v18  ;;  %v2445_v11 = vld [vmem:[#allocation2 + $0x13d8] sm:$0xff] }
 0xce3   :  { %v2506_v59 = vpop.f32.mrf.mxu0 }
 0xce6   :  { %2618 = vmatmul.f32.gmra.mxu1 %v2413_v16  ;;  %2553 = vmatmul.f32.gmra.mxu0 %v2444_v41 }
 0xceb   :  { %v2509_v62 = vpop.f32.mrf.mxu0 }
 0xcee   :  { %2621 = vmatmul.f32.gmra.mxu1 %v2415_v23  ;;  %2556 = vmatmul.f32.gmra.mxu0 %v2446_v0 }
 0xcf3   :  { %v2512_v9 = vpop.f32.mrf.mxu0 }
 0xcf6   :  { %2624 = vmatmul.f32.gmra.mxu1 %v2417_v14  ;;  %2559 = vmatmul.f32.gmra.mxu0 %v2448_v2  ;;  %v2449_v14 = vld [vmem:[#allocation2 + $0x13f8] sm:$0xff] }
 0xcfb   :  { %v6270_v54 = vpop.f32.mrf.mxu1  ;;  %v6298_v7 = vpop.f32.mrf.mxu0 }
 0xcfe   :  { %2627 = vmatmul.f32.gmra.mxu1 %v2419_v31 }
 0xd03   :  { %v6274_v22 = vpop.f32.mrf.mxu1  ;;  %v6300_v38 = vpop.f32.mrf.mxu0 }
 0xd06   :  { %2630 = vmatmul.f32.gmra.mxu1 %v2421_v48 }
 0xd0b   :  { %v6278_v50 = vpop.f32.mrf.mxu1  ;;  %v6302_v23 = vpop.f32.mrf.mxu0 }
 0xd0e   :  { %2633 = vmatmul.f32.gmra.mxu1 %v2423_v29 }
 0xd13   :  { %v6282_v43 = vpop.f32.mrf.mxu1  ;;  %v6304_v48 = vpop.f32.mrf.mxu0 }
 0xd14   :  { %v2590_v36 = vadd.f32 %v6282_v43, %v6268_v63 }
 0xd16   :  { %2636 = vmatmul.f32.gmra.mxu1 %v2425_v47 }
 0xd1b   :  { %v6286_v24 = vpop.f32.mrf.mxu1 }
 0xd1e   :  { %2639 = vmatmul.f32.gmra.mxu1 %v2427_v40 }
 0xd23   :  { %v6290_v56 = vpop.f32.mrf.mxu1 }
 0xd26   :  { %2642 = vmatmul.f32.gmra.mxu1 %v2429_v6  ;;  %v6312_v6 = vpop.f32.mrf.mxu0 }
 0xd2b   :  { %v6294_v44 = vpop.f32.mrf.mxu1 }
 0xd2e   :  { %2645 = vmatmul.f32.gmra.mxu1 %v2431_v35  ;;  %v2599_v35 = vadd.f32 %v6294_v44, %v6280_v10  ;;  %v2584_v10 = vadd.f32 %v6274_v22, %v6264_v34 }
 0xd33   :  { %v6296_v1 = vpop.f32.mrf.mxu1 }
 0xd34   :  { %v2602_v61 = vadd.f32 %v6296_v1, %v6284_v52  ;;  %v2530_v52 = vpop.f32.mrf.mxu0  ;;  %v2587_v1 = vadd.f32 %v6278_v50, %v6266_v53 }
 0xd36   :  { %2648 = vmatmul.f32.gmra.mxu1 %v2433_v57 }
 0xd3b   :  { %v2604_v51 = vpop.f32.mrf.mxu1 }
 0xd3c   :  { %v2605_v40 = vadd.f32 %v2604_v51, %v6288_v13  ;;  %v2593_v13 = vadd.f32 %v6286_v24, %v6272_v55  ;;  %v2533_v24 = vpop.f32.mrf.mxu0 }
 0xd3e   :  { %2651 = vmatmul.f32.gmra.mxu1 %v2435_v17 }
 0xd43   :  { %v2607_v45 = vpop.f32.mrf.mxu1 }
 0xd44   :  { %v2608_v21 = vadd.f32 %v2607_v45, %v6292_v42  ;;  %v2536_v44 = vpop.f32.mrf.mxu0 }
 0xd46   :  { %2654 = vmatmul.f32.gmra.mxu1 %v2437_v27 }
 0xd4b   :  { %v2610_v37 = vpop.f32.mrf.mxu1 }
 0xd4c   :  { %v2611_v47 = vadd.f32 %v2610_v37, %v2497_v33  ;;  %v2596_v33 = vadd.f32 %v6290_v56, %v6276_v12  ;;  %v2581_v12 = vadd.f32 %v6270_v54, %v6262_v26  ;;  %v2539_v57 = vpop.f32.mrf.mxu0 }
 0xd4e   :  { %2657 = vmatmul.f32.gmra.mxu1 %v2439_v60  ;;  %v2677_v60 = vld [vmem:[#allocation2 + $0x1400] sm:$0xff] }
 0xd53   :  { %v2613_v4 = vpop.f32.mrf.mxu1 }
 0xd54   :  { %v2614_v20 = vadd.f32 %v2613_v4, %v2500_v3  ;;  %v2542_v25 = vpop.f32.mrf.mxu0 }
 0xd56   :  { %2660 = vmatmul.f32.gmra.mxu1 %v2441_v15  ;;  %v2679_v15 = vld [vmem:[#allocation2 + $0x1410] sm:$0xff] }
 0xd5b   :  { %v2616_v30 = vpop.f32.mrf.mxu1 }
 0xd5c   :  { %v2617_v8 = vadd.f32 %v2616_v30, %v2503_v5  ;;  %v2545_v50 = vpop.f32.mrf.mxu0 }
 0xd5e   :  { %2663 = vmatmul.f32.gmra.mxu1 %v2443_v49 }
 0xd63   :  { %v2619_v19 = vpop.f32.mrf.mxu1 }
 0xd64   :  { %v2620_v28 = vadd.f32 %v2619_v19, %v2506_v59  ;;  %v2548_v17 = vpop.f32.mrf.mxu0  ;;  %v2681_v19 = vld [vmem:[#allocation2 + $0x1420] sm:$0xff] }
 0xd66   :  { %2666 = vmatmul.f32.gmra.mxu1 %v2445_v11 }
 0xd6b   :  { %v2622_v16 = vpop.f32.mrf.mxu1 }
 0xd6c   :  { %v2623_v31 = vadd.f32 %v2622_v16, %v2509_v62  ;;  %v2551_v5 = vpop.f32.mrf.mxu0 }
 0xd6e   :  { %2669 = vmatmul.f32.gmra.mxu1 %v2447_v46 }
 0xd73   :  { %v2625_v58 = vpop.f32.mrf.mxu1 }
 0xd74   :  { %v2626_v32 = vadd.f32 %v2625_v58, %v2512_v9  ;;  %v2554_v26 = vpop.f32.mrf.mxu0 }
 0xd76   :  { %2672 = vmatmul.f32.gmra.mxu1 %v2449_v14  ;;  %2741 = vmatpush.msrb.mxu2 %v2626_v32  ;;  %v2683_v14 = vld [vmem:[#allocation2 + $0x1430] sm:$0xff] }
 0xd78   :  { %2742 = vmatpush.msrb.mxu2 %v2623_v31 }
 0xd7a   :  { %2743 = vmatpush.msrb.mxu2 %v2620_v28 }
 0xd7b   :  { %v6306_v29 = vpop.f32.mrf.mxu1 }
 0xd7c   :  { %2744 = vmatpush.msrb.mxu2 %v2617_v8  ;;  %v2557_v45 = vpop.f32.mrf.mxu0  ;;  %v2629_v8 = vadd.f32 %v6306_v29, %v6298_v7  ;;  %v2693_v7 = vld [vmem:[#allocation2 + $0x1480] sm:$0xff]  ;;  %v2688_v29 = vld [vmem:[#allocation2 + $0x1458] sm:$0xff] }
 0xd7e   :  { %2745 = vmatpush.msrb.mxu2 %v2614_v20  ;;  %v2678_v20 = vld [vmem:[#allocation2 + $0x1408] sm:$0xff] }
 0xd80   :  { %2746 = vmatpush.msrb.mxu2 %v2611_v47  ;;  %v2685_v47 = vld [vmem:[#allocation2 + $0x1440] sm:$0xff] }
 0xd82   :  { %2747 = vmatpush.msrb.mxu2 %v2608_v21  ;;  %v2687_v21 = vld [vmem:[#allocation2 + $0x1450] sm:$0xff] }
 0xd83   :  { %v6310_v39 = vpop.f32.mrf.mxu1 }
 0xd84   :  { %2748 = vmatpush.msrb.mxu2 %v2605_v40  ;;  %v2560_v59 = vpop.f32.mrf.mxu0  ;;  %v2632_v28 = vadd.f32 %v6310_v39, %v6300_v38  ;;  %v2682_v40 = vld [vmem:[#allocation2 + $0x1428] sm:$0xff]  ;;  %v2691_v38 = vld [vmem:[#allocation2 + $0x1470] sm:$0xff] }
 0xd85   :  { %v2686_v39 = vld [vmem:[#allocation2 + $0x1448] sm:$0xff] }
 0xd86   :  { %2749 = vmatpush.msrb.mxu2 %v2602_v61  ;;  %v2695_v61 = vld [vmem:[#allocation2 + $0x1490] sm:$0xff] }
 0xd88   :  { %2750 = vmatpush.msrb.mxu2 %v2599_v35  ;;  %v2690_v35 = vld [vmem:[#allocation2 + $0x1468] sm:$0xff] }
 0xd8a   :  { %2751 = vmatpush.msrb.mxu2 %v2596_v33  ;;  %v2697_v33 = vld [vmem:[#allocation2 + $0x14a0] sm:$0xff] }
 0xd8b   :  { %v6322_v42 = vpop.f32.mrf.mxu1 }
 0xd8c   :  { %2752 = vmatpush.msrb.mxu2 %v2593_v13  ;;  %v2635_v31 = vadd.f32 %v6322_v42, %v6302_v23  ;;  %v2689_v23 = vld [vmem:[#allocation2 + $0x1460] sm:$0xff]  ;;  %v2692_v13 = vld [vmem:[#allocation2 + $0x1478] sm:$0xff]  ;;  %v2699_v42 = vld [vmem:[#allocation2 + $0x14b0] sm:$0xff] }
 0xd8e   :  { %2753 = vmatpush.msrb.mxu2 %v2590_v36  ;;  %v2694_v36 = vld [vmem:[#allocation2 + $0x1488] sm:$0xff] }
 0xd90   :  { %2754 = vmatpush.msrb.mxu2 %v2587_v1  ;;  %v2696_v1 = vld [vmem:[#allocation2 + $0x1498] sm:$0xff] }
 0xd92   :  { %2755 = vmatpush.msrb.mxu2 %v2584_v10  ;;  %v2703_v10 = vld [vmem:[#allocation2 + $0x14d0] sm:$0xff] }
 0xd93   :  { %v2637_v55 = vpop.f32.mrf.mxu1 }
 0xd94   :  { %2756 = vmatpush.msrb.mxu2 %v2581_v12  ;;  %v2638_v32 = vadd.f32 %v2637_v55, %v6304_v48  ;;  %v2680_v48 = vld [vmem:[#allocation2 + $0x1418] sm:$0xff]  ;;  %v2698_v12 = vld [vmem:[#allocation2 + $0x14a8] sm:$0xff]  ;;  %v2705_v55 = vld [vmem:[#allocation2 + $0x14e0] sm:$0xff] }
 0xd95   :  { %2757 = vmatmul.f32.vlgmr.msrb.gmra.mxu2 %v2677_v60 }
 0xd9b   :  { %v2640_v56 = vpop.f32.mrf.mxu1 }
 0xd9c   :  { %v2641_v58 = vadd.f32 %v2640_v56, %v6312_v6  ;;  %v2684_v6 = vld [vmem:[#allocation2 + $0x1438] sm:$0xff]  ;;  %v2707_v56 = vld [vmem:[#allocation2 + $0x14f0] sm:$0xff] }
 0xd9d   :  { %2760 = vmatmul.f32.gmra.mxu2 %v2679_v15 }
 0xda3   :  { %v2643_v63 = vpop.f32.mrf.mxu1 }
 0xda4   :  { %v2644_v46 = vadd.f32 %v2643_v63, %v2530_v52  ;;  %v2701_v52 = vld [vmem:[#allocation2 + $0x14c0] sm:$0xff] }
 0xda5   :  { %2763 = vmatmul.f32.gmra.mxu2 %v2681_v19  ;;  %v2709_v63 = vld [vmem:[#allocation2 + $0x1500] sm:$0xff] }
 0xdab   :  { %v2646_v43 = vpop.f32.mrf.mxu1 }
 0xdac   :  { %v2647_v16 = vadd.f32 %v2646_v43, %v2533_v24  ;;  %v2700_v24 = vld [vmem:[#allocation2 + $0x14b8] sm:$0xff] }
 0xdad   :  { %2766 = vmatmul.f32.gmra.mxu2 %v2683_v14 }
 0xdb3   :  { %v2649_v3 = vpop.f32.mrf.mxu1 }
 0xdb4   :  { %v2650_v11 = vadd.f32 %v2649_v3, %v2536_v44  ;;  %v2702_v44 = vld [vmem:[#allocation2 + $0x14c8] sm:$0xff]  ;;  %v2711_v3 = vld [vmem:[#allocation2 + $0x1510] sm:$0xff] }
 0xdb5   :  { %2769 = vmatmul.f32.gmra.mxu2 %v2685_v47 }
 0xdbb   :  { %v2652_v53 = vpop.f32.mrf.mxu1 }
 0xdbc   :  { %v2653_v49 = vadd.f32 %v2652_v53, %v2539_v57  ;;  %v2704_v57 = vld [vmem:[#allocation2 + $0x14d8] sm:$0xff]  ;;  %v2706_v53 = vld [vmem:[#allocation2 + $0x14e8] sm:$0xff] }
 0xdbd   :  { %2772 = vmatmul.f32.gmra.mxu2 %v2687_v21  ;;  %v2729_v21 = vld [vmem:[#allocation2 + $0x15a0] sm:$0xff] }
 0xdc3   :  { %v2655_v51 = vpop.f32.mrf.mxu1 }
 0xdc4   :  { %v2656_v30 = vadd.f32 %v2655_v51, %v2542_v25 }
 0xdc5   :  { %2775 = vmatmul.f32.gmra.mxu2 %v2689_v23 }
 0xdcb   :  { %v2658_v34 = vpop.f32.mrf.mxu1 }
 0xdcc   :  { %v2659_v2 = vadd.f32 %v2658_v34, %v2545_v50  ;;  %v2713_v50 = vld [vmem:[#allocation2 + $0x1520] sm:$0xff]  ;;  %v2715_v34 = vld [vmem:[#allocation2 + $0x1530] sm:$0xff] }
 0xdcd   :  { %2778 = vmatmul.f32.gmra.mxu2 %v2691_v38  ;;  %v2724_v38 = vld [vmem:[#allocation2 + $0x1578] sm:$0xff] }
 0xdd3   :  { %v2661_v22 = vpop.f32.mrf.mxu1 }
 0xdd4   :  { %v2662_v9 = vadd.f32 %v2661_v22, %v2548_v17  ;;  %v2708_v17 = vld [vmem:[#allocation2 + $0x14f8] sm:$0xff] }
 0xdd5   :  { %2781 = vmatmul.f32.gmra.mxu2 %v2693_v7 }
 0xddb   :  { %v2664_v18 = vpop.f32.mrf.mxu1 }
 0xddc   :  { %v2665_v4 = vadd.f32 %v2664_v18, %v2551_v5  ;;  %v2710_v5 = vld [vmem:[#allocation2 + $0x1508] sm:$0xff]  ;;  %v2717_v18 = vld [vmem:[#allocation2 + $0x1540] sm:$0xff] }
 0xddd   :  { %2784 = vmatmul.f32.gmra.mxu2 %v2695_v61 }
 0xde3   :  { %v2667_v54 = vpop.f32.mrf.mxu1 }
 0xde4   :  { %v2668_v0 = vadd.f32 %v2667_v54, %v2554_v26 }
 0xde5   :  { %2787 = vmatmul.f32.gmra.mxu2 %v2697_v33  ;;  %v2733_v33 = vld [vmem:[#allocation2 + $0x15c0] sm:$0xff] }
 0xdeb   :  { %v2670_v27 = vpop.f32.mrf.mxu1 }
 0xdec   :  { %v2671_v62 = vadd.f32 %v2670_v27, %v2557_v45  ;;  %v2712_v27 = vld [vmem:[#allocation2 + $0x1518] sm:$0xff] }
 0xded   :  { %2790 = vmatmul.f32.gmra.mxu2 %v2699_v42 }
 0xdf3   :  { %v2673_v41 = vpop.f32.mrf.mxu1 }
 0xdf4   :  { %v2674_v37 = vadd.f32 %v2673_v41, %v2560_v59  ;;  %v2719_v59 = vld [vmem:[#allocation2 + $0x1550] sm:$0xff] }
 0xdf5   :  { %2793 = vmatmul.f32.gmra.mxu2 %v2701_v52  ;;  %v2735_v52 = vld [vmem:[#allocation2 + $0x15d0] sm:$0xff] }
 0xdf6   :  { %2854 = vmatpush.msrb.mxu3 %v2674_v37 }
 0xdf8   :  { %2855 = vmatpush.msrb.mxu3 %v2671_v62  ;;  %v2714_v62 = vld [vmem:[#allocation2 + $0x1528] sm:$0xff] }
 0xdfa   :  { %2856 = vmatpush.msrb.mxu3 %v2668_v0  ;;  %v2721_v0 = vld [vmem:[#allocation2 + $0x1560] sm:$0xff] }
 0xdfc   :  { %2857 = vmatpush.msrb.mxu3 %v2665_v4 }
 0xdfd   :  { %2796 = vmatmul.f32.gmra.mxu2 %v2703_v10 }
 0xdfe   :  { %2858 = vmatpush.msrb.mxu3 %v2662_v9 }
 0xe00   :  { %2859 = vmatpush.msrb.mxu3 %v2659_v2  ;;  %v2716_v2 = vld [vmem:[#allocation2 + $0x1538] sm:$0xff] }
 0xe02   :  { %2860 = vmatpush.msrb.mxu3 %v2656_v30  ;;  %v2723_v30 = vld [vmem:[#allocation2 + $0x1570] sm:$0xff] }
 0xe04   :  { %2861 = vmatpush.msrb.mxu3 %v2653_v49 }
 0xe05   :  { %2799 = vmatmul.f32.gmra.mxu2 %v2705_v55  ;;  %v2737_v55 = vld [vmem:[#allocation2 + $0x15e0] sm:$0xff] }
 0xe06   :  { %2862 = vmatpush.msrb.mxu3 %v2650_v11 }
 0xe08   :  { %2863 = vmatpush.msrb.mxu3 %v2647_v16  ;;  %v2718_v16 = vld [vmem:[#allocation2 + $0x1548] sm:$0xff] }
 0xe0a   :  { %2864 = vmatpush.msrb.mxu3 %v2644_v46  ;;  %v2725_v46 = vld [vmem:[#allocation2 + $0x1580] sm:$0xff] }
 0xe0c   :  { %2865 = vmatpush.msrb.mxu3 %v2641_v58 }
 0xe0d   :  { %2802 = vmatmul.f32.gmra.mxu2 %v2707_v56 }
 0xe0e   :  { %2866 = vmatpush.msrb.mxu3 %v2638_v32 }
 0xe10   :  { %2867 = vmatpush.msrb.mxu3 %v2635_v31  ;;  %v2720_v31 = vld [vmem:[#allocation2 + $0x1558] sm:$0xff] }
 0xe12   :  { %2868 = vmatpush.msrb.mxu3 %v2632_v28  ;;  %v2727_v28 = vld [vmem:[#allocation2 + $0x1590] sm:$0xff] }
 0xe14   :  { %2869 = vmatpush.msrb.mxu3 %v2629_v8 }
 0xe15   :  { %2870 = vmatmul.f32.vlgmr.msrb.gmra.mxu3 %v2678_v20  ;;  %2805 = vmatmul.f32.gmra.mxu2 %v2709_v63  ;;  %v2739_v63 = vld [vmem:[#allocation2 + $0x15f0] sm:$0xff] }
 0xe18   :  { %v2758_v43 = vpop.f32.mrf.mxu2 }
 0xe1d   :  { %2873 = vmatmul.f32.gmra.mxu3 %v2680_v48  ;;  %2808 = vmatmul.f32.gmra.mxu2 %v2711_v3  ;;  %v2722_v48 = vld [vmem:[#allocation2 + $0x1568] sm:$0xff] }
 0xe1e   :  { %v2734_v3 = vld [vmem:[#allocation2 + $0x15c8] sm:$0xff] }
 0xe20   :  { %v2761_v25 = vpop.f32.mrf.mxu2 }
 0xe25   :  { %2876 = vmatmul.f32.gmra.mxu3 %v2682_v40  ;;  %2811 = vmatmul.f32.gmra.mxu2 %v2713_v50  ;;  %v2736_v50 = vld [vmem:[#allocation2 + $0x15d8] sm:$0xff] }
 0xe28   :  { %v2764_v51 = vpop.f32.mrf.mxu2 }
 0xe2d   :  { %2879 = vmatmul.f32.gmra.mxu3 %v2684_v6  ;;  %2814 = vmatmul.f32.gmra.mxu2 %v2715_v34 }
 0xe30   :  { %v2767_v22 = vpop.f32.mrf.mxu2 }
 0xe35   :  { %2882 = vmatmul.f32.gmra.mxu3 %v2686_v39  ;;  %2817 = vmatmul.f32.gmra.mxu2 %v2717_v18  ;;  %v2731_v39 = vld [vmem:[#allocation2 + $0x15b0] sm:$0xff] }
 0xe38   :  { %v2770_v54 = vpop.f32.mrf.mxu2 }
 0xe3d   :  { %2885 = vmatmul.f32.gmra.mxu3 %v2688_v29  ;;  %2820 = vmatmul.f32.gmra.mxu2 %v2719_v59 }
 0xe40   :  { %v2773_v37 = vpop.f32.mrf.mxu2 }
 0xe45   :  { %2888 = vmatmul.f32.gmra.mxu3 %v2690_v35  ;;  %2823 = vmatmul.f32.gmra.mxu2 %v2721_v0  ;;  %v2726_v35 = vld [vmem:[#allocation2 + $0x1588] sm:$0xff] }
 0xe48   :  { %v2776_v15 = vpop.f32.mrf.mxu2 }
 0xe4d   :  { %2891 = vmatmul.f32.gmra.mxu3 %v2692_v13  ;;  %2826 = vmatmul.f32.gmra.mxu2 %v2723_v30 }
 0xe50   :  { %v2779_v19 = vpop.f32.mrf.mxu2 }
 0xe55   :  { %2894 = vmatmul.f32.gmra.mxu3 %v2694_v36  ;;  %2829 = vmatmul.f32.gmra.mxu2 %v2725_v46  ;;  %v2728_v36 = vld [vmem:[#allocation2 + $0x1598] sm:$0xff] }
 0xe58   :  { %v6348_v14 = vpop.f32.mrf.mxu2 }
 0xe5d   :  { %2897 = vmatmul.f32.gmra.mxu3 %v2696_v1  ;;  %2832 = vmatmul.f32.gmra.mxu2 %v2727_v28 }
 0xe60   :  { %v6352_v20 = vpop.f32.mrf.mxu2 }
 0xe65   :  { %2900 = vmatmul.f32.gmra.mxu3 %v2698_v12  ;;  %2835 = vmatmul.f32.gmra.mxu2 %v2729_v21  ;;  %v2730_v12 = vld [vmem:[#allocation2 + $0x15a8] sm:$0xff] }
 0xe68   :  { %v2788_v23 = vpop.f32.mrf.mxu2 }
 0xe6d   :  { %2903 = vmatmul.f32.gmra.mxu3 %v2700_v24  ;;  %2838 = vmatmul.f32.gmra.mxu2 %v2731_v39 }
 0xe70   :  { %v2791_v29 = vpop.f32.mrf.mxu2 }
 0xe75   :  { %2906 = vmatmul.f32.gmra.mxu3 %v2702_v44  ;;  %2841 = vmatmul.f32.gmra.mxu2 %v2733_v33  ;;  %v2732_v44 = vld [vmem:[#allocation2 + $0x15b8] sm:$0xff]  ;;  %v2968_v33 = vld [vmem:[#allocation2 + $0x1600] sm:$0xff] }
 0xe78   :  { %v2794_v42 = vpop.f32.mrf.mxu2 }
 0xe7d   :  { %2909 = vmatmul.f32.gmra.mxu3 %v2704_v57  ;;  %2844 = vmatmul.f32.gmra.mxu2 %v2735_v52  ;;  %v2970_v52 = vld [vmem:[#allocation2 + $0x1610] sm:$0xff] }
 0xe80   :  { %v2797_v10 = vpop.f32.mrf.mxu2 }
 0xe85   :  { %2912 = vmatmul.f32.gmra.mxu3 %v2706_v53  ;;  %2847 = vmatmul.f32.gmra.mxu2 %v2737_v55 }
 0xe88   :  { %v2800_v56 = vpop.f32.mrf.mxu2 }
 0xe8d   :  { %2915 = vmatmul.f32.gmra.mxu3 %v2708_v17  ;;  %2850 = vmatmul.f32.gmra.mxu2 %v2739_v63  ;;  %v2738_v17 = vld [vmem:[#allocation2 + $0x15e8] sm:$0xff] }
 0xe90   :  { %v2803_v57 = vpop.f32.mrf.mxu2 }
 0xe95   :  { %2918 = vmatmul.f32.gmra.mxu3 %v2710_v5  ;;  %v2740_v5 = vld [vmem:[#allocation2 + $0x15f8] sm:$0xff] }
 0xe98   :  { %v2871_v26 = vpop.f32.mrf.mxu3  ;;  %v6358_v53 = vpop.f32.mrf.mxu2 }
 0xe99   :  { %v6340_v45 = vadd.f32 %v2871_v26, %v2758_v43 }
 0xe9d   :  { %2921 = vmatmul.f32.gmra.mxu3 %v2712_v27 }
 0xea0   :  { %v2874_v41 = vpop.f32.mrf.mxu3  ;;  %v6360_v34 = vpop.f32.mrf.mxu2 }
 0xea1   :  { %v6342_v60 = vadd.f32 %v2874_v41, %v2761_v25 }
 0xea5   :  { %2924 = vmatmul.f32.gmra.mxu3 %v2714_v62 }
 0xea8   :  { %v2877_v4 = vpop.f32.mrf.mxu3  ;;  %v6362_v18 = vpop.f32.mrf.mxu2 }
 0xea9   :  { %v6344_v9 = vadd.f32 %v2877_v4, %v2764_v51 }
 0xead   :  { %2927 = vmatmul.f32.gmra.mxu3 %v2716_v2 }
 0xeb0   :  { %v2880_v49 = vpop.f32.mrf.mxu3  ;;  %v6364_v41 = vpop.f32.mrf.mxu2 }
 0xeb1   :  { %v6346_v11 = vadd.f32 %v2880_v49, %v2767_v22 }
 0xeb5   :  { %2930 = vmatmul.f32.gmra.mxu3 %v2718_v16 }
 0xeb8   :  { %v2883_v58 = vpop.f32.mrf.mxu3  ;;  %v2818_v49 = vpop.f32.mrf.mxu2 }
 0xeb9   :  { %v6350_v32 = vadd.f32 %v2883_v58, %v2770_v54 }
 0xebd   :  { %2933 = vmatmul.f32.gmra.mxu3 %v2720_v31 }
 0xec0   :  { %v2886_v8 = vpop.f32.mrf.mxu3  ;;  %v2821_v16 = vpop.f32.mrf.mxu2 }
 0xec1   :  { %v6354_v47 = vadd.f32 %v2886_v8, %v2773_v37 }
 0xec5   :  { %2936 = vmatmul.f32.gmra.mxu3 %v2722_v48 }
 0xec8   :  { %v2889_v40 = vpop.f32.mrf.mxu3  ;;  %v2824_v58 = vpop.f32.mrf.mxu2 }
 0xec9   :  { %v6356_v6 = vadd.f32 %v2889_v40, %v2776_v15 }
 0xecd   :  { %2939 = vmatmul.f32.gmra.mxu3 %v2724_v38 }
 0xed0   :  { %v2892_v7 = vpop.f32.mrf.mxu3  ;;  %v2827_v31 = vpop.f32.mrf.mxu2 }
 0xed1   :  { %v2893_v61 = vadd.f32 %v2892_v7, %v2779_v19 }
 0xed5   :  { %2942 = vmatmul.f32.gmra.mxu3 %v2726_v35 }
 0xed8   :  { %v2895_v13 = vpop.f32.mrf.mxu3 }
 0xed9   :  { %v2896_v2 = vadd.f32 %v2895_v13, %v6348_v14 }
 0xedd   :  { %2945 = vmatmul.f32.gmra.mxu3 %v2728_v36 }
 0xee0   :  { %v2898_v1 = vpop.f32.mrf.mxu3 }
 0xee1   :  { %v2899_v15 = vadd.f32 %v2898_v1, %v6352_v20  ;;  %v2830_v20 = vpop.f32.mrf.mxu2 }
 0xee5   :  { %2948 = vmatmul.f32.gmra.mxu3 %v2730_v12 }
 0xee8   :  { %v2901_v24 = vpop.f32.mrf.mxu3 }
 0xee9   :  { %v2902_v4 = vadd.f32 %v2901_v24, %v2788_v23  ;;  %v2833_v48 = vpop.f32.mrf.mxu2  ;;  %v2972_v24 = vld [vmem:[#allocation2 + $0x1620] sm:$0xff] }
 0xeed   :  { %2951 = vmatmul.f32.gmra.mxu3 %v2732_v44 }
 0xef0   :  { %v2904_v43 = vpop.f32.mrf.mxu3 }
 0xef1   :  { %v2905_v0 = vadd.f32 %v2904_v43, %v2791_v29 }
 0xef5   :  { %2954 = vmatmul.f32.gmra.mxu3 %v2734_v3 }
 0xef8   :  { %v2907_v25 = vpop.f32.mrf.mxu3 }
 0xef9   :  { %v2908_v37 = vadd.f32 %v2907_v25, %v2794_v42 }
 0xefd   :  { %2957 = vmatmul.f32.gmra.mxu3 %v2736_v50 }
 0xf00   :  { %v2910_v51 = vpop.f32.mrf.mxu3 }
 0xf01   :  { %v2911_v59 = vadd.f32 %v2910_v51, %v2797_v10 }
 0xf05   :  { %2960 = vmatmul.f32.gmra.mxu3 %v2738_v17  ;;  %v2969_v17 = vld [vmem:[#allocation2 + $0x1608] sm:$0xff] }
 0xf08   :  { %v2913_v22 = vpop.f32.mrf.mxu3 }
 0xf09   :  { %v2914_v27 = vadd.f32 %v2913_v22, %v2800_v56  ;;  %v2976_v22 = vld [vmem:[#allocation2 + $0x1640] sm:$0xff] }
 0xf0d   :  { %2963 = vmatmul.f32.gmra.mxu3 %v2740_v5  ;;  %v2971_v5 = vld [vmem:[#allocation2 + $0x1618] sm:$0xff] }
 0xf10   :  { %v2916_v26 = vpop.f32.mrf.mxu3 }
 0xf11   :  { %v2917_v54 = vadd.f32 %v2916_v26, %v2803_v57  ;;  %v2974_v57 = vld [vmem:[#allocation2 + $0x1630] sm:$0xff] }
 0xf12   :  { %v2978_v26 = vld [vmem:[#allocation2 + $0x1650] sm:$0xff] }
 0xf13   :  { %3032 = vmatpush.msrb.mxu0 %v2917_v54  ;;  %v2973_v54 = vld [vmem:[#allocation2 + $0x1628] sm:$0xff] }
 0xf15   :  { %3033 = vmatpush.msrb.mxu0 %v2914_v27  ;;  %v2975_v27 = vld [vmem:[#allocation2 + $0x1638] sm:$0xff] }
 0xf17   :  { %3034 = vmatpush.msrb.mxu0 %v2911_v59  ;;  %v2977_v59 = vld [vmem:[#allocation2 + $0x1648] sm:$0xff] }
 0xf18   :  { %v6366_v62 = vpop.f32.mrf.mxu3 }
 0xf19   :  { %3035 = vmatpush.msrb.mxu0 %v2908_v37  ;;  %v2920_v51 = vadd.f32 %v6366_v62, %v6358_v53  ;;  %v2984_v53 = vld [vmem:[#allocation2 + $0x1680] sm:$0xff]  ;;  %v2986_v37 = vld [vmem:[#allocation2 + $0x1690] sm:$0xff]  ;;  %v2981_v62 = vld [vmem:[#allocation2 + $0x1668] sm:$0xff] }
 0xf1b   :  { %3036 = vmatpush.msrb.mxu0 %v2905_v0  ;;  %v2988_v0 = vld [vmem:[#allocation2 + $0x16a0] sm:$0xff] }
 0xf1d   :  { %3037 = vmatpush.msrb.mxu0 %v2902_v4  ;;  %v2983_v4 = vld [vmem:[#allocation2 + $0x1678] sm:$0xff] }
 0xf1f   :  { %3038 = vmatpush.msrb.mxu0 %v2899_v15  ;;  %v2990_v15 = vld [vmem:[#allocation2 + $0x16b0] sm:$0xff] }
 0xf20   :  { %v6370_v30 = vpop.f32.mrf.mxu3 }
 0xf21   :  { %3039 = vmatpush.msrb.mxu0 %v2896_v2  ;;  %v2923_v50 = vadd.f32 %v6370_v30, %v6360_v34  ;;  %v2982_v34 = vld [vmem:[#allocation2 + $0x1670] sm:$0xff]  ;;  %v2985_v2 = vld [vmem:[#allocation2 + $0x1688] sm:$0xff]  ;;  %v2992_v30 = vld [vmem:[#allocation2 + $0x16c0] sm:$0xff] }
 0xf23   :  { %3040 = vmatpush.msrb.mxu0 %v2893_v61 }
 0xf25   :  { %3041 = vmatpush.msrb.mxu0 %v6356_v6 }
 0xf27   :  { %3042 = vmatpush.msrb.mxu0 %v6354_v47 }
 0xf28   :  { %v6374_v19 = vpop.f32.mrf.mxu3 }
 0xf29   :  { %3043 = vmatpush.msrb.mxu0 %v6350_v32  ;;  %v2836_v32 = vpop.f32.mrf.mxu2  ;;  %v2926_v25 = vadd.f32 %v6374_v19, %v6362_v18  ;;  %v2980_v18 = vld [vmem:[#allocation2 + $0x1660] sm:$0xff]  ;;  %v2994_v19 = vld [vmem:[#allocation2 + $0x16d0] sm:$0xff] }
 0xf2b   :  { %3044 = vmatpush.msrb.mxu0 %v6346_v11 }
 0xf2d   :  { %3045 = vmatpush.msrb.mxu0 %v6344_v9 }
 0xf2f   :  { %3046 = vmatpush.msrb.mxu0 %v6342_v60 }
 0xf30   :  { %v2928_v46 = vpop.f32.mrf.mxu3 }
 0xf31   :  { %3047 = vmatpush.msrb.mxu0 %v6340_v45  ;;  %v2839_v23 = vpop.f32.mrf.mxu2  ;;  %v2929_v3 = vadd.f32 %v2928_v46, %v6364_v41  ;;  %v2979_v41 = vld [vmem:[#allocation2 + $0x1658] sm:$0xff]  ;;  %v2996_v46 = vld [vmem:[#allocation2 + $0x16e0] sm:$0xff] }
 0xf32   :  { %3048 = vmatmul.f32.vlgmr.msrb.gmra.mxu0 %v2968_v33  ;;  %v3005_v33 = vld [vmem:[#allocation2 + $0x1728] sm:$0xff] }
 0xf38   :  { %v2931_v14 = vpop.f32.mrf.mxu3 }
 0xf39   :  { %v2842_v9 = vpop.f32.mrf.mxu2  ;;  %v2932_v43 = vadd.f32 %v2931_v14, %v2818_v49  ;;  %v2987_v49 = vld [vmem:[#allocation2 + $0x1698] sm:$0xff]  ;;  %v2998_v14 = vld [vmem:[#allocation2 + $0x16f0] sm:$0xff] }
 0xf3a   :  { %3051 = vmatmul.f32.gmra.mxu0 %v2970_v52  ;;  %v3007_v52 = vld [vmem:[#allocation2 + $0x1738] sm:$0xff] }
 0xf40   :  { %v2934_v28 = vpop.f32.mrf.mxu3 }
 0xf41   :  { %v2845_v60 = vpop.f32.mrf.mxu2  ;;  %v2935_v63 = vadd.f32 %v2934_v28, %v2821_v16  ;;  %v2989_v16 = vld [vmem:[#allocation2 + $0x16a8] sm:$0xff] }
 0xf42   :  { %3054 = vmatmul.f32.gmra.mxu0 %v2972_v24 }
 0xf48   :  { %v2937_v8 = vpop.f32.mrf.mxu3 }
 0xf49   :  { %v2848_v7 = vpop.f32.mrf.mxu2  ;;  %v2938_v44 = vadd.f32 %v2937_v8, %v2824_v58  ;;  %v2991_v58 = vld [vmem:[#allocation2 + $0x16b8] sm:$0xff]  ;;  %v3000_v8 = vld [vmem:[#allocation2 + $0x1700] sm:$0xff] }
 0xf4a   :  { %3057 = vmatmul.f32.gmra.mxu0 %v2974_v57  ;;  %v3018_v57 = vld [vmem:[#allocation2 + $0x1790] sm:$0xff] }
 0xf50   :  { %v2940_v47 = vpop.f32.mrf.mxu3 }
 0xf51   :  { %v2851_v29 = vpop.f32.mrf.mxu2  ;;  %v2941_v56 = vadd.f32 %v2940_v47, %v2827_v31  ;;  %v2993_v31 = vld [vmem:[#allocation2 + $0x16c8] sm:$0xff] }
 0xf52   :  { %3060 = vmatmul.f32.gmra.mxu0 %v2976_v22  ;;  %v3015_v22 = vld [vmem:[#allocation2 + $0x1778] sm:$0xff] }
 0xf58   :  { %v2943_v21 = vpop.f32.mrf.mxu3 }
 0xf59   :  { %v2944_v55 = vadd.f32 %v2943_v21, %v2830_v20  ;;  %v2995_v20 = vld [vmem:[#allocation2 + $0x16d8] sm:$0xff]  ;;  %v2997_v21 = vld [vmem:[#allocation2 + $0x16e8] sm:$0xff] }
 0xf5a   :  { %3063 = vmatmul.f32.gmra.mxu0 %v2978_v26  ;;  %v3022_v26 = vld [vmem:[#allocation2 + $0x17b0] sm:$0xff] }
 0xf60   :  { %v2946_v40 = vpop.f32.mrf.mxu3 }
 0xf61   :  { %v2947_v12 = vadd.f32 %v2946_v40, %v2833_v48  ;;  %v3002_v48 = vld [vmem:[#allocation2 + $0x1710] sm:$0xff]  ;;  %v3004_v40 = vld [vmem:[#allocation2 + $0x1720] sm:$0xff] }
 0xf62   :  { %3066 = vmatmul.f32.gmra.mxu0 %v2980_v18  ;;  %v3017_v18 = vld [vmem:[#allocation2 + $0x1788] sm:$0xff] }
 0xf68   :  { %v2949_v11 = vpop.f32.mrf.mxu3 }
 0xf69   :  { %v2950_v10 = vadd.f32 %v2949_v11, %v2836_v32 }
 0xf6a   :  { %3069 = vmatmul.f32.gmra.mxu0 %v2982_v34  ;;  %v3024_v34 = vld [vmem:[#allocation2 + $0x17c0] sm:$0xff] }
 0xf70   :  { %v2952_v6 = vpop.f32.mrf.mxu3 }
 0xf71   :  { %v2953_v1 = vadd.f32 %v2952_v6, %v2839_v23  ;;  %v2999_v23 = vld [vmem:[#allocation2 + $0x16f8] sm:$0xff]  ;;  %v3006_v6 = vld [vmem:[#allocation2 + $0x1730] sm:$0xff] }
 0xf72   :  { %3072 = vmatmul.f32.gmra.mxu0 %v2984_v53  ;;  %v3019_v53 = vld [vmem:[#allocation2 + $0x1798] sm:$0xff] }
 0xf78   :  { %v2955_v38 = vpop.f32.mrf.mxu3 }
 0xf79   :  { %v2956_v36 = vadd.f32 %v2955_v38, %v2842_v9  ;;  %v3001_v38 = vld [vmem:[#allocation2 + $0x1708] sm:$0xff] }
 0xf7a   :  { %3075 = vmatmul.f32.gmra.mxu0 %v2986_v37  ;;  %v3026_v37 = vld [vmem:[#allocation2 + $0x17d0] sm:$0xff] }
 0xf80   :  { %v2958_v39 = vpop.f32.mrf.mxu3 }
 0xf81   :  { %v2959_v42 = vadd.f32 %v2958_v39, %v2845_v60  ;;  %v3008_v39 = vld [vmem:[#allocation2 + $0x1740] sm:$0xff] }
 0xf82   :  { %3078 = vmatmul.f32.gmra.mxu0 %v2988_v0  ;;  %v3021_v0 = vld [vmem:[#allocation2 + $0x17a8] sm:$0xff] }
 0xf88   :  { %v2961_v45 = vpop.f32.mrf.mxu3 }
 0xf89   :  { %v2962_v13 = vadd.f32 %v2961_v45, %v2848_v7  ;;  %v3003_v45 = vld [vmem:[#allocation2 + $0x1718] sm:$0xff] }
 0xf8a   :  { %3081 = vmatmul.f32.gmra.mxu0 %v2990_v15  ;;  %v3028_v15 = vld [vmem:[#allocation2 + $0x17e0] sm:$0xff] }
 0xf90   :  { %v2964_v61 = vpop.f32.mrf.mxu3 }
 0xf91   :  { %v2965_v35 = vadd.f32 %v2964_v61, %v2851_v29  ;;  %v3010_v61 = vld [vmem:[#allocation2 + $0x1750] sm:$0xff] }
 0xf92   :  { %3084 = vmatmul.f32.gmra.mxu0 %v2992_v30  ;;  %v3023_v30 = vld [vmem:[#allocation2 + $0x17b8] sm:$0xff] }
 0xf93   :  { %3145 = vmatpush.msrb.mxu1 %v2965_v35 }
 0xf95   :  { %3146 = vmatpush.msrb.mxu1 %v2962_v13 }
 0xf97   :  { %3147 = vmatpush.msrb.mxu1 %v2959_v42  ;;  %v3012_v42 = vld [vmem:[#allocation2 + $0x1760] sm:$0xff] }
 0xf99   :  { %3148 = vmatpush.msrb.mxu1 %v2956_v36 }
 0xf9a   :  { %3087 = vmatmul.f32.gmra.mxu0 %v2994_v19  ;;  %v3030_v19 = vld [vmem:[#allocation2 + $0x17f0] sm:$0xff] }
 0xf9b   :  { %3149 = vmatpush.msrb.mxu1 %v2953_v1 }
 0xf9d   :  { %3150 = vmatpush.msrb.mxu1 %v2950_v10  ;;  %v3014_v10 = vld [vmem:[#allocation2 + $0x1770] sm:$0xff] }
 0xf9f   :  { %3151 = vmatpush.msrb.mxu1 %v2947_v12 }
 0xfa1   :  { %3152 = vmatpush.msrb.mxu1 %v2944_v55  ;;  %v3009_v55 = vld [vmem:[#allocation2 + $0x1748] sm:$0xff] }
 0xfa2   :  { %3090 = vmatmul.f32.gmra.mxu0 %v2996_v46  ;;  %v3025_v46 = vld [vmem:[#allocation2 + $0x17c8] sm:$0xff] }
 0xfa3   :  { %3153 = vmatpush.msrb.mxu1 %v2941_v56  ;;  %v3016_v56 = vld [vmem:[#allocation2 + $0x1780] sm:$0xff] }
 0xfa5   :  { %3154 = vmatpush.msrb.mxu1 %v2938_v44 }
 0xfa7   :  { %3155 = vmatpush.msrb.mxu1 %v2935_v63  ;;  %v3011_v63 = vld [vmem:[#allocation2 + $0x1758] sm:$0xff] }
 0xfa9   :  { %3156 = vmatpush.msrb.mxu1 %v2932_v43 }
 0xfaa   :  { %3093 = vmatmul.f32.gmra.mxu0 %v2998_v14 }
 0xfab   :  { %3157 = vmatpush.msrb.mxu1 %v2929_v3 }
 0xfad   :  { %3158 = vmatpush.msrb.mxu1 %v2926_v25  ;;  %v3013_v25 = vld [vmem:[#allocation2 + $0x1768] sm:$0xff] }
 0xfaf   :  { %3159 = vmatpush.msrb.mxu1 %v2923_v50  ;;  %v6388_v28 = vpop.f32.mrf.mxu0 }
 0xfb1   :  { %3160 = vmatpush.msrb.mxu1 %v2920_v51  ;;  %v3020_v51 = vld [vmem:[#allocation2 + $0x17a0] sm:$0xff] }
 0xfb2   :  { %3161 = vmatmul.f32.vlgmr.msrb.gmra.mxu1 %v2969_v17  ;;  %3096 = vmatmul.f32.gmra.mxu0 %v3000_v8 }
 0xfb7   :  { %v6390_v47 = vpop.f32.mrf.mxu0 }
 0xfba   :  { %3164 = vmatmul.f32.gmra.mxu1 %v2971_v5  ;;  %3099 = vmatmul.f32.gmra.mxu0 %v3002_v48  ;;  %v3029_v48 = vld [vmem:[#allocation2 + $0x17e8] sm:$0xff] }
 0xfbf   :  { %v6392_v32 = vpop.f32.mrf.mxu0 }
 0xfc2   :  { %3167 = vmatmul.f32.gmra.mxu1 %v2973_v54  ;;  %3102 = vmatmul.f32.gmra.mxu0 %v3004_v40 }
 0xfc7   :  { %v6394_v11 = vpop.f32.mrf.mxu0 }
 0xfca   :  { %3170 = vmatmul.f32.gmra.mxu1 %v2975_v27  ;;  %3105 = vmatmul.f32.gmra.mxu0 %v3006_v6 }
 0xfcf   :  { %v6398_v60 = vpop.f32.mrf.mxu0 }
 0xfd2   :  { %3173 = vmatmul.f32.gmra.mxu1 %v2977_v59  ;;  %3108 = vmatmul.f32.gmra.mxu0 %v3008_v39 }
 0xfd7   :  { %v6402_v29 = vpop.f32.mrf.mxu0 }
 0xfda   :  { %3176 = vmatmul.f32.gmra.mxu1 %v2979_v41  ;;  %3111 = vmatmul.f32.gmra.mxu0 %v3010_v61 }
 0xfdf   :  { %v6406_v13 = vpop.f32.mrf.mxu0 }
 0xfe2   :  { %3179 = vmatmul.f32.gmra.mxu1 %v2981_v62  ;;  %3114 = vmatmul.f32.gmra.mxu0 %v3012_v42 }
 0xfe7   :  { %v6410_v1 = vpop.f32.mrf.mxu0 }
 0xfea   :  { %3182 = vmatmul.f32.gmra.mxu1 %v2983_v4  ;;  %3117 = vmatmul.f32.gmra.mxu0 %v3014_v10 }
 0xfef   :  { %v6414_v24 = vpop.f32.mrf.mxu0 }
 0xff2   :  { %3185 = vmatmul.f32.gmra.mxu1 %v2985_v2  ;;  %3120 = vmatmul.f32.gmra.mxu0 %v3016_v56 }
 0xff7   :  { %v6418_v43 = vpop.f32.mrf.mxu0 }
 0xffa   :  { %3188 = vmatmul.f32.gmra.mxu1 %v2987_v49  ;;  %3123 = vmatmul.f32.gmra.mxu0 %v3018_v57 }
 0xfff   :  { %v3079_v50 = vpop.f32.mrf.mxu0 }
0x1002   :  { %3191 = vmatmul.f32.gmra.mxu1 %v2989_v16  ;;  %3126 = vmatmul.f32.gmra.mxu0 %v3020_v51 }
0x1007   :  { %v3082_v5 = vpop.f32.mrf.mxu0 }
0x100a   :  { %3194 = vmatmul.f32.gmra.mxu1 %v2991_v58  ;;  %3129 = vmatmul.f32.gmra.mxu0 %v3022_v26 }
0x100f   :  { %v3085_v27 = vpop.f32.mrf.mxu0 }
0x1012   :  { %3197 = vmatmul.f32.gmra.mxu1 %v2993_v31  ;;  %3132 = vmatmul.f32.gmra.mxu0 %v3024_v34  ;;  %v3027_v31 = vld [vmem:[#allocation2 + $0x17d8] sm:$0xff] }
0x1017   :  { %v3088_v41 = vpop.f32.mrf.mxu0 }
0x101a   :  { %3200 = vmatmul.f32.gmra.mxu1 %v2995_v20  ;;  %3135 = vmatmul.f32.gmra.mxu0 %v3026_v37 }
0x101f   :  { %v3091_v4 = vpop.f32.mrf.mxu0 }
0x1022   :  { %3203 = vmatmul.f32.gmra.mxu1 %v2997_v21  ;;  %3138 = vmatmul.f32.gmra.mxu0 %v3028_v15 }
0x1027   :  { %v3094_v49 = vpop.f32.mrf.mxu0 }
0x102a   :  { %3206 = vmatmul.f32.gmra.mxu1 %v2999_v23  ;;  %3141 = vmatmul.f32.gmra.mxu0 %v3030_v19  ;;  %v3031_v23 = vld [vmem:[#allocation2 + $0x17f8] sm:$0xff] }
0x102f   :  { %v6396_v9 = vpop.f32.mrf.mxu1  ;;  %v6424_v58 = vpop.f32.mrf.mxu0 }
0x1032   :  { %3209 = vmatmul.f32.gmra.mxu1 %v3001_v38 }
0x1037   :  { %v6400_v7 = vpop.f32.mrf.mxu1  ;;  %v6426_v8 = vpop.f32.mrf.mxu0 }
0x103a   :  { %3212 = vmatmul.f32.gmra.mxu1 %v3003_v45 }
0x103f   :  { %v6404_v35 = vpop.f32.mrf.mxu1  ;;  %v6428_v21 = vpop.f32.mrf.mxu0 }
0x1042   :  { %3215 = vmatmul.f32.gmra.mxu1 %v3005_v33 }
0x1047   :  { %v6408_v36 = vpop.f32.mrf.mxu1  ;;  %v6430_v45 = vpop.f32.mrf.mxu0 }
0x1048   :  { %v3172_v51 = vadd.f32 %v6408_v36, %v6394_v11 }
0x104a   :  { %3218 = vmatmul.f32.gmra.mxu1 %v3007_v52 }
0x104f   :  { %v6412_v12 = vpop.f32.mrf.mxu1 }
0x1052   :  { %3221 = vmatmul.f32.gmra.mxu1 %v3009_v55 }
0x1057   :  { %v6416_v44 = vpop.f32.mrf.mxu1 }
0x105a   :  { %3224 = vmatmul.f32.gmra.mxu1 %v3011_v63  ;;  %v6438_v63 = vpop.f32.mrf.mxu0 }
0x105f   :  { %v6420_v3 = vpop.f32.mrf.mxu1 }
0x1062   :  { %3227 = vmatmul.f32.gmra.mxu1 %v3013_v25  ;;  %v3181_v25 = vadd.f32 %v6420_v3, %v6406_v13  ;;  %v3166_v13 = vadd.f32 %v6400_v7, %v6390_v47 }
0x1067   :  { %v6422_v17 = vpop.f32.mrf.mxu1 }
0x1068   :  { %v3184_v57 = vadd.f32 %v6422_v17, %v6410_v1  ;;  %v3112_v1 = vpop.f32.mrf.mxu0  ;;  %v3169_v17 = vadd.f32 %v6404_v35, %v6392_v32 }
0x106a   :  { %3230 = vmatmul.f32.gmra.mxu1 %v3015_v22 }
0x106f   :  { %v3186_v54 = vpop.f32.mrf.mxu1 }
0x1070   :  { %v3187_v55 = vadd.f32 %v3186_v54, %v6414_v24  ;;  %v3175_v24 = vadd.f32 %v6412_v12, %v6398_v60  ;;  %v3115_v12 = vpop.f32.mrf.mxu0 }
0x1072   :  { %3233 = vmatmul.f32.gmra.mxu1 %v3017_v18 }
0x1077   :  { %v3189_v59 = vpop.f32.mrf.mxu1 }
0x1078   :  { %v3190_v10 = vadd.f32 %v3189_v59, %v6418_v43  ;;  %v3118_v3 = vpop.f32.mrf.mxu0 }
0x107a   :  { %3236 = vmatmul.f32.gmra.mxu1 %v3019_v53 }
0x107f   :  { %v3192_v62 = vpop.f32.mrf.mxu1 }
0x1080   :  { %v3193_v52 = vadd.f32 %v3192_v62, %v3079_v50  ;;  %v3178_v50 = vadd.f32 %v6416_v44, %v6402_v29  ;;  %v3163_v29 = vadd.f32 %v6396_v9, %v6388_v28  ;;  %v3121_v22 = vpop.f32.mrf.mxu0 }
0x1082   :  { %3239 = vmatmul.f32.gmra.mxu1 %v3021_v0  ;;  %v3259_v0 = vld [vmem:[#allocation2 + $0x1800] sm:$0xff] }
0x1087   :  { %v3195_v2 = vpop.f32.mrf.mxu1 }
0x1088   :  { %v3196_v42 = vadd.f32 %v3195_v2, %v3082_v5  ;;  %v3124_v26 = vpop.f32.mrf.mxu0 }
0x108a   :  { %3242 = vmatmul.f32.gmra.mxu1 %v3023_v30  ;;  %v3261_v30 = vld [vmem:[#allocation2 + $0x1810] sm:$0xff] }
0x108f   :  { %v3198_v16 = vpop.f32.mrf.mxu1 }
0x1090   :  { %v3199_v61 = vadd.f32 %v3198_v16, %v3085_v27  ;;  %v3127_v35 = vpop.f32.mrf.mxu0 }
0x1092   :  { %3245 = vmatmul.f32.gmra.mxu1 %v3025_v46 }
0x1097   :  { %v3201_v14 = vpop.f32.mrf.mxu1 }
0x1098   :  { %v3202_v39 = vadd.f32 %v3201_v14, %v3088_v41  ;;  %v3130_v18 = vpop.f32.mrf.mxu0  ;;  %v3263_v14 = vld [vmem:[#allocation2 + $0x1820] sm:$0xff] }
0x109a   :  { %3248 = vmatmul.f32.gmra.mxu1 %v3027_v31 }
0x109f   :  { %v3204_v20 = vpop.f32.mrf.mxu1 }
0x10a0   :  { %v3205_v38 = vadd.f32 %v3204_v20, %v3091_v4  ;;  %v3133_v27 = vpop.f32.mrf.mxu0 }
0x10a2   :  { %3251 = vmatmul.f32.gmra.mxu1 %v3029_v48 }
0x10a7   :  { %v3207_v40 = vpop.f32.mrf.mxu1 }
0x10a8   :  { %v3208_v6 = vadd.f32 %v3207_v40, %v3094_v49  ;;  %v3136_v28 = vpop.f32.mrf.mxu0 }
0x10aa   :  { %3254 = vmatmul.f32.gmra.mxu1 %v3031_v23  ;;  %3323 = vmatpush.msra.mxu2 %v3208_v6  ;;  %v3265_v23 = vld [vmem:[#allocation2 + $0x1830] sm:$0xff] }
0x10ac   :  { %3324 = vmatpush.msra.mxu2 %v3205_v38 }
0x10ae   :  { %3325 = vmatpush.msra.mxu2 %v3202_v39 }
0x10af   :  { %v6432_v33 = vpop.f32.mrf.mxu1 }
0x10b0   :  { %3326 = vmatpush.msra.mxu2 %v3199_v61  ;;  %v3139_v59 = vpop.f32.mrf.mxu0  ;;  %v3211_v61 = vadd.f32 %v6432_v33, %v6424_v58  ;;  %v3275_v58 = vld [vmem:[#allocation2 + $0x1880] sm:$0xff]  ;;  %v3270_v33 = vld [vmem:[#allocation2 + $0x1858] sm:$0xff] }
0x10b2   :  { %3327 = vmatpush.msra.mxu2 %v3196_v42  ;;  %v3260_v42 = vld [vmem:[#allocation2 + $0x1808] sm:$0xff] }
0x10b4   :  { %3328 = vmatpush.msra.mxu2 %v3193_v52  ;;  %v3267_v52 = vld [vmem:[#allocation2 + $0x1840] sm:$0xff] }
0x10b6   :  { %3329 = vmatpush.msra.mxu2 %v3190_v10  ;;  %v3269_v10 = vld [vmem:[#allocation2 + $0x1850] sm:$0xff] }
0x10b7   :  { %v6436_v56 = vpop.f32.mrf.mxu1 }
0x10b8   :  { %3330 = vmatpush.msra.mxu2 %v3187_v55  ;;  %v3142_v41 = vpop.f32.mrf.mxu0  ;;  %v3214_v39 = vadd.f32 %v6436_v56, %v6426_v8  ;;  %v3264_v55 = vld [vmem:[#allocation2 + $0x1828] sm:$0xff]  ;;  %v3273_v8 = vld [vmem:[#allocation2 + $0x1870] sm:$0xff] }
0x10b9   :  { %v3268_v56 = vld [vmem:[#allocation2 + $0x1848] sm:$0xff] }
0x10ba   :  { %3331 = vmatpush.msra.mxu2 %v3184_v57  ;;  %v3277_v57 = vld [vmem:[#allocation2 + $0x1890] sm:$0xff] }
0x10bc   :  { %3332 = vmatpush.msra.mxu2 %v3181_v25  ;;  %v3272_v25 = vld [vmem:[#allocation2 + $0x1868] sm:$0xff] }
0x10be   :  { %3333 = vmatpush.msra.mxu2 %v3178_v50  ;;  %v3279_v50 = vld [vmem:[#allocation2 + $0x18a0] sm:$0xff] }
0x10bf   :  { %v6448_v43 = vpop.f32.mrf.mxu1 }
0x10c0   :  { %3334 = vmatpush.msra.mxu2 %v3175_v24  ;;  %v3217_v38 = vadd.f32 %v6448_v43, %v6428_v21  ;;  %v3271_v21 = vld [vmem:[#allocation2 + $0x1860] sm:$0xff]  ;;  %v3274_v24 = vld [vmem:[#allocation2 + $0x1878] sm:$0xff]  ;;  %v3281_v43 = vld [vmem:[#allocation2 + $0x18b0] sm:$0xff] }
0x10c2   :  { %3335 = vmatpush.msra.mxu2 %v3172_v51  ;;  %v3276_v51 = vld [vmem:[#allocation2 + $0x1888] sm:$0xff] }
0x10c4   :  { %3336 = vmatpush.msra.mxu2 %v3169_v17  ;;  %v3278_v17 = vld [vmem:[#allocation2 + $0x1898] sm:$0xff] }
0x10c6   :  { %3337 = vmatpush.msra.mxu2 %v3166_v13  ;;  %v3285_v13 = vld [vmem:[#allocation2 + $0x18d0] sm:$0xff] }
0x10c7   :  { %v3219_v60 = vpop.f32.mrf.mxu1 }
0x10c8   :  { %3338 = vmatpush.msra.mxu2 %v3163_v29  ;;  %v3220_v6 = vadd.f32 %v3219_v60, %v6430_v45  ;;  %v3262_v45 = vld [vmem:[#allocation2 + $0x1818] sm:$0xff]  ;;  %v3280_v29 = vld [vmem:[#allocation2 + $0x18a8] sm:$0xff]  ;;  %v3287_v60 = vld [vmem:[#allocation2 + $0x18e0] sm:$0xff] }
0x10c9   :  { %3339 = vmatmul.f32.vlgmr.msra.gmra.mxu2 %v3259_v0 }
0x10cf   :  { %v3222_v44 = vpop.f32.mrf.mxu1 }
0x10d0   :  { %v3223_v40 = vadd.f32 %v3222_v44, %v6438_v63  ;;  %v3266_v63 = vld [vmem:[#allocation2 + $0x1838] sm:$0xff]  ;;  %v3289_v44 = vld [vmem:[#allocation2 + $0x18f0] sm:$0xff] }
0x10d1   :  { %3342 = vmatmul.f32.gmra.mxu2 %v3261_v30 }
0x10d7   :  { %v3225_v11 = vpop.f32.mrf.mxu1 }
0x10d8   :  { %v3226_v48 = vadd.f32 %v3225_v11, %v3112_v1  ;;  %v3283_v1 = vld [vmem:[#allocation2 + $0x18c0] sm:$0xff] }
0x10d9   :  { %3345 = vmatmul.f32.gmra.mxu2 %v3263_v14  ;;  %v3291_v11 = vld [vmem:[#allocation2 + $0x1900] sm:$0xff] }
0x10df   :  { %v3228_v36 = vpop.f32.mrf.mxu1 }
0x10e0   :  { %v3229_v20 = vadd.f32 %v3228_v36, %v3115_v12  ;;  %v3282_v12 = vld [vmem:[#allocation2 + $0x18b8] sm:$0xff] }
0x10e1   :  { %3348 = vmatmul.f32.gmra.mxu2 %v3265_v23 }
0x10e7   :  { %v3231_v5 = vpop.f32.mrf.mxu1 }
0x10e8   :  { %v3232_v31 = vadd.f32 %v3231_v5, %v3118_v3  ;;  %v3284_v3 = vld [vmem:[#allocation2 + $0x18c8] sm:$0xff]  ;;  %v3293_v5 = vld [vmem:[#allocation2 + $0x1910] sm:$0xff] }
0x10e9   :  { %3351 = vmatmul.f32.gmra.mxu2 %v3267_v52 }
0x10ef   :  { %v3234_v32 = vpop.f32.mrf.mxu1 }
0x10f0   :  { %v3235_v46 = vadd.f32 %v3234_v32, %v3121_v22  ;;  %v3286_v22 = vld [vmem:[#allocation2 + $0x18d8] sm:$0xff]  ;;  %v3288_v32 = vld [vmem:[#allocation2 + $0x18e8] sm:$0xff] }
0x10f1   :  { %3354 = vmatmul.f32.gmra.mxu2 %v3269_v10  ;;  %v3311_v10 = vld [vmem:[#allocation2 + $0x19a0] sm:$0xff] }
0x10f7   :  { %v3237_v54 = vpop.f32.mrf.mxu1 }
0x10f8   :  { %v3238_v16 = vadd.f32 %v3237_v54, %v3124_v26 }
0x10f9   :  { %3357 = vmatmul.f32.gmra.mxu2 %v3271_v21 }
0x10ff   :  { %v3240_v47 = vpop.f32.mrf.mxu1 }
0x1100   :  { %v3241_v19 = vadd.f32 %v3240_v47, %v3127_v35  ;;  %v3295_v35 = vld [vmem:[#allocation2 + $0x1920] sm:$0xff]  ;;  %v3297_v47 = vld [vmem:[#allocation2 + $0x1930] sm:$0xff] }
0x1101   :  { %3360 = vmatmul.f32.gmra.mxu2 %v3273_v8  ;;  %v3306_v8 = vld [vmem:[#allocation2 + $0x1978] sm:$0xff] }
0x1107   :  { %v3243_v7 = vpop.f32.mrf.mxu1 }
0x1108   :  { %v3244_v49 = vadd.f32 %v3243_v7, %v3130_v18  ;;  %v3290_v18 = vld [vmem:[#allocation2 + $0x18f8] sm:$0xff] }
0x1109   :  { %3363 = vmatmul.f32.gmra.mxu2 %v3275_v58 }
0x110f   :  { %v3246_v34 = vpop.f32.mrf.mxu1 }
0x1110   :  { %v3247_v2 = vadd.f32 %v3246_v34, %v3133_v27  ;;  %v3292_v27 = vld [vmem:[#allocation2 + $0x1908] sm:$0xff]  ;;  %v3299_v34 = vld [vmem:[#allocation2 + $0x1940] sm:$0xff] }
0x1111   :  { %3366 = vmatmul.f32.gmra.mxu2 %v3277_v57 }
0x1117   :  { %v3249_v9 = vpop.f32.mrf.mxu1 }
0x1118   :  { %v3250_v15 = vadd.f32 %v3249_v9, %v3136_v28 }
0x1119   :  { %3369 = vmatmul.f32.gmra.mxu2 %v3279_v50  ;;  %v3315_v50 = vld [vmem:[#allocation2 + $0x19c0] sm:$0xff] }
0x111f   :  { %v3252_v53 = vpop.f32.mrf.mxu1 }
0x1120   :  { %v3253_v4 = vadd.f32 %v3252_v53, %v3139_v59  ;;  %v3294_v53 = vld [vmem:[#allocation2 + $0x1918] sm:$0xff] }
0x1121   :  { %3372 = vmatmul.f32.gmra.mxu2 %v3281_v43 }
0x1127   :  { %v3255_v37 = vpop.f32.mrf.mxu1 }
0x1128   :  { %v3256_v62 = vadd.f32 %v3255_v37, %v3142_v41  ;;  %v3301_v41 = vld [vmem:[#allocation2 + $0x1950] sm:$0xff] }
0x1129   :  { %3375 = vmatmul.f32.gmra.mxu2 %v3283_v1  ;;  %v3317_v1 = vld [vmem:[#allocation2 + $0x19d0] sm:$0xff] }
0x112a   :  { %3436 = vmatpush.msra.mxu3 %v3256_v62 }
0x112c   :  { %3437 = vmatpush.msra.mxu3 %v3253_v4  ;;  %v3296_v4 = vld [vmem:[#allocation2 + $0x1928] sm:$0xff] }
0x112e   :  { %3438 = vmatpush.msra.mxu3 %v3250_v15  ;;  %v3303_v15 = vld [vmem:[#allocation2 + $0x1960] sm:$0xff] }
0x1130   :  { %3439 = vmatpush.msra.mxu3 %v3247_v2 }
0x1131   :  { %3378 = vmatmul.f32.gmra.mxu2 %v3285_v13 }
0x1132   :  { %3440 = vmatpush.msra.mxu3 %v3244_v49 }
0x1134   :  { %3441 = vmatpush.msra.mxu3 %v3241_v19  ;;  %v3298_v19 = vld [vmem:[#allocation2 + $0x1938] sm:$0xff] }
0x1136   :  { %3442 = vmatpush.msra.mxu3 %v3238_v16  ;;  %v3305_v16 = vld [vmem:[#allocation2 + $0x1970] sm:$0xff] }
0x1138   :  { %3443 = vmatpush.msra.mxu3 %v3235_v46 }
0x1139   :  { %3381 = vmatmul.f32.gmra.mxu2 %v3287_v60  ;;  %v3319_v60 = vld [vmem:[#allocation2 + $0x19e0] sm:$0xff] }
0x113a   :  { %3444 = vmatpush.msra.mxu3 %v3232_v31 }
0x113c   :  { %3445 = vmatpush.msra.mxu3 %v3229_v20  ;;  %v3300_v20 = vld [vmem:[#allocation2 + $0x1948] sm:$0xff] }
0x113e   :  { %3446 = vmatpush.msra.mxu3 %v3226_v48  ;;  %v3307_v48 = vld [vmem:[#allocation2 + $0x1980] sm:$0xff] }
0x1140   :  { %3447 = vmatpush.msra.mxu3 %v3223_v40 }
0x1141   :  { %3384 = vmatmul.f32.gmra.mxu2 %v3289_v44 }
0x1142   :  { %3448 = vmatpush.msra.mxu3 %v3220_v6 }
0x1144   :  { %3449 = vmatpush.msra.mxu3 %v3217_v38  ;;  %v3302_v38 = vld [vmem:[#allocation2 + $0x1958] sm:$0xff] }
0x1146   :  { %3450 = vmatpush.msra.mxu3 %v3214_v39  ;;  %v3309_v39 = vld [vmem:[#allocation2 + $0x1990] sm:$0xff] }
0x1148   :  { %3451 = vmatpush.msra.mxu3 %v3211_v61 }
0x1149   :  { %3452 = vmatmul.f32.vlgmr.msra.gmra.mxu3 %v3260_v42  ;;  %3387 = vmatmul.f32.gmra.mxu2 %v3291_v11  ;;  %v3321_v11 = vld [vmem:[#allocation2 + $0x19f0] sm:$0xff] }
0x114c   :  { %v3340_v36 = vpop.f32.mrf.mxu2 }
0x1151   :  { %3455 = vmatmul.f32.gmra.mxu3 %v3262_v45  ;;  %3390 = vmatmul.f32.gmra.mxu2 %v3293_v5  ;;  %v3304_v45 = vld [vmem:[#allocation2 + $0x1968] sm:$0xff] }
0x1152   :  { %v3316_v5 = vld [vmem:[#allocation2 + $0x19c8] sm:$0xff] }
0x1154   :  { %v3343_v26 = vpop.f32.mrf.mxu2 }
0x1159   :  { %3458 = vmatmul.f32.gmra.mxu3 %v3264_v55  ;;  %3393 = vmatmul.f32.gmra.mxu2 %v3295_v35  ;;  %v3318_v35 = vld [vmem:[#allocation2 + $0x19d8] sm:$0xff] }
0x115c   :  { %v3346_v54 = vpop.f32.mrf.mxu2 }
0x1161   :  { %3461 = vmatmul.f32.gmra.mxu3 %v3266_v63  ;;  %3396 = vmatmul.f32.gmra.mxu2 %v3297_v47 }
0x1164   :  { %v3349_v7 = vpop.f32.mrf.mxu2 }
0x1169   :  { %3464 = vmatmul.f32.gmra.mxu3 %v3268_v56  ;;  %3399 = vmatmul.f32.gmra.mxu2 %v3299_v34  ;;  %v3313_v56 = vld [vmem:[#allocation2 + $0x19b0] sm:$0xff] }
0x116c   :  { %v3352_v9 = vpop.f32.mrf.mxu2 }
0x1171   :  { %3467 = vmatmul.f32.gmra.mxu3 %v3270_v33  ;;  %3402 = vmatmul.f32.gmra.mxu2 %v3301_v41 }
0x1174   :  { %v3355_v62 = vpop.f32.mrf.mxu2 }
0x1179   :  { %3470 = vmatmul.f32.gmra.mxu3 %v3272_v25  ;;  %3405 = vmatmul.f32.gmra.mxu2 %v3303_v15  ;;  %v3308_v25 = vld [vmem:[#allocation2 + $0x1988] sm:$0xff] }
0x117c   :  { %v3358_v30 = vpop.f32.mrf.mxu2 }
0x1181   :  { %3473 = vmatmul.f32.gmra.mxu3 %v3274_v24  ;;  %3408 = vmatmul.f32.gmra.mxu2 %v3305_v16 }
0x1184   :  { %v3361_v14 = vpop.f32.mrf.mxu2 }
0x1189   :  { %3476 = vmatmul.f32.gmra.mxu3 %v3276_v51  ;;  %3411 = vmatmul.f32.gmra.mxu2 %v3307_v48  ;;  %v3310_v51 = vld [vmem:[#allocation2 + $0x1998] sm:$0xff] }
0x118c   :  { %v6474_v23 = vpop.f32.mrf.mxu2 }
0x1191   :  { %3479 = vmatmul.f32.gmra.mxu3 %v3278_v17  ;;  %3414 = vmatmul.f32.gmra.mxu2 %v3309_v39 }
0x1194   :  { %v6478_v42 = vpop.f32.mrf.mxu2 }
0x1199   :  { %3482 = vmatmul.f32.gmra.mxu3 %v3280_v29  ;;  %3417 = vmatmul.f32.gmra.mxu2 %v3311_v10  ;;  %v3312_v29 = vld [vmem:[#allocation2 + $0x19a8] sm:$0xff] }
0x119c   :  { %v3370_v21 = vpop.f32.mrf.mxu2 }
0x11a1   :  { %3485 = vmatmul.f32.gmra.mxu3 %v3282_v12  ;;  %3420 = vmatmul.f32.gmra.mxu2 %v3313_v56 }
0x11a4   :  { %v3373_v33 = vpop.f32.mrf.mxu2 }
0x11a9   :  { %3488 = vmatmul.f32.gmra.mxu3 %v3284_v3  ;;  %3423 = vmatmul.f32.gmra.mxu2 %v3315_v50  ;;  %v3314_v3 = vld [vmem:[#allocation2 + $0x19b8] sm:$0xff]  ;;  %v3550_v50 = vld [vmem:[#allocation2 + $0x1a00] sm:$0xff] }
0x11ac   :  { %v3376_v43 = vpop.f32.mrf.mxu2 }
0x11b1   :  { %3491 = vmatmul.f32.gmra.mxu3 %v3286_v22  ;;  %3426 = vmatmul.f32.gmra.mxu2 %v3317_v1  ;;  %v3552_v1 = vld [vmem:[#allocation2 + $0x1a10] sm:$0xff] }
0x11b4   :  { %v3379_v13 = vpop.f32.mrf.mxu2 }
0x11b9   :  { %3494 = vmatmul.f32.gmra.mxu3 %v3288_v32  ;;  %3429 = vmatmul.f32.gmra.mxu2 %v3319_v60 }
0x11bc   :  { %v3382_v44 = vpop.f32.mrf.mxu2 }
0x11c1   :  { %3497 = vmatmul.f32.gmra.mxu3 %v3290_v18  ;;  %3432 = vmatmul.f32.gmra.mxu2 %v3321_v11  ;;  %v3320_v18 = vld [vmem:[#allocation2 + $0x19e8] sm:$0xff] }
0x11c4   :  { %v3385_v22 = vpop.f32.mrf.mxu2 }
0x11c9   :  { %3500 = vmatmul.f32.gmra.mxu3 %v3292_v27  ;;  %v3322_v27 = vld [vmem:[#allocation2 + $0x19f8] sm:$0xff] }
0x11cc   :  { %v3453_v28 = vpop.f32.mrf.mxu3  ;;  %v6484_v32 = vpop.f32.mrf.mxu2 }
0x11cd   :  { %v6466_v59 = vadd.f32 %v3453_v28, %v3340_v36 }
0x11d1   :  { %3503 = vmatmul.f32.gmra.mxu3 %v3294_v53 }
0x11d4   :  { %v3456_v37 = vpop.f32.mrf.mxu3  ;;  %v6486_v47 = vpop.f32.mrf.mxu2 }
0x11d5   :  { %v6468_v0 = vadd.f32 %v3456_v37, %v3343_v26 }
0x11d9   :  { %3506 = vmatmul.f32.gmra.mxu3 %v3296_v4 }
0x11dc   :  { %v3459_v2 = vpop.f32.mrf.mxu3  ;;  %v6488_v34 = vpop.f32.mrf.mxu2 }
0x11dd   :  { %v6470_v49 = vadd.f32 %v3459_v2, %v3346_v54 }
0x11e1   :  { %3509 = vmatmul.f32.gmra.mxu3 %v3298_v19 }
0x11e4   :  { %v3462_v46 = vpop.f32.mrf.mxu3  ;;  %v6490_v37 = vpop.f32.mrf.mxu2 }
0x11e5   :  { %v6472_v31 = vadd.f32 %v3462_v46, %v3349_v7 }
0x11e9   :  { %3512 = vmatmul.f32.gmra.mxu3 %v3300_v20 }
0x11ec   :  { %v3465_v40 = vpop.f32.mrf.mxu3  ;;  %v3400_v46 = vpop.f32.mrf.mxu2 }
0x11ed   :  { %v6476_v6 = vadd.f32 %v3465_v40, %v3352_v9 }
0x11f1   :  { %3515 = vmatmul.f32.gmra.mxu3 %v3302_v38 }
0x11f4   :  { %v3468_v61 = vpop.f32.mrf.mxu3  ;;  %v3403_v20 = vpop.f32.mrf.mxu2 }
0x11f5   :  { %v6480_v52 = vadd.f32 %v3468_v61, %v3355_v62 }
0x11f9   :  { %3518 = vmatmul.f32.gmra.mxu3 %v3304_v45 }
0x11fc   :  { %v3471_v55 = vpop.f32.mrf.mxu3  ;;  %v3406_v40 = vpop.f32.mrf.mxu2 }
0x11fd   :  { %v6482_v63 = vadd.f32 %v3471_v55, %v3358_v30 }
0x1201   :  { %3521 = vmatmul.f32.gmra.mxu3 %v3306_v8 }
0x1204   :  { %v3474_v58 = vpop.f32.mrf.mxu3  ;;  %v3409_v38 = vpop.f32.mrf.mxu2 }
0x1205   :  { %v3475_v57 = vadd.f32 %v3474_v58, %v3361_v14 }
0x1209   :  { %3524 = vmatmul.f32.gmra.mxu3 %v3308_v25 }
0x120c   :  { %v3477_v24 = vpop.f32.mrf.mxu3 }
0x120d   :  { %v3478_v19 = vadd.f32 %v3477_v24, %v6474_v23 }
0x1211   :  { %3527 = vmatmul.f32.gmra.mxu3 %v3310_v51 }
0x1214   :  { %v3480_v17 = vpop.f32.mrf.mxu3 }
0x1215   :  { %v3481_v30 = vadd.f32 %v3480_v17, %v6478_v42  ;;  %v3412_v42 = vpop.f32.mrf.mxu2 }
0x1219   :  { %3530 = vmatmul.f32.gmra.mxu3 %v3312_v29 }
0x121c   :  { %v3483_v12 = vpop.f32.mrf.mxu3 }
0x121d   :  { %v3484_v2 = vadd.f32 %v3483_v12, %v3370_v21  ;;  %v3415_v45 = vpop.f32.mrf.mxu2  ;;  %v3554_v12 = vld [vmem:[#allocation2 + $0x1a20] sm:$0xff] }
0x1221   :  { %3533 = vmatmul.f32.gmra.mxu3 %v3314_v3 }
0x1224   :  { %v3486_v36 = vpop.f32.mrf.mxu3 }
0x1225   :  { %v3487_v15 = vadd.f32 %v3486_v36, %v3373_v33 }
0x1229   :  { %3536 = vmatmul.f32.gmra.mxu3 %v3316_v5 }
0x122c   :  { %v3489_v26 = vpop.f32.mrf.mxu3 }
0x122d   :  { %v3490_v62 = vadd.f32 %v3489_v26, %v3376_v43 }
0x1231   :  { %3539 = vmatmul.f32.gmra.mxu3 %v3318_v35 }
0x1234   :  { %v3492_v54 = vpop.f32.mrf.mxu3 }
0x1235   :  { %v3493_v41 = vadd.f32 %v3492_v54, %v3379_v13 }
0x1239   :  { %3542 = vmatmul.f32.gmra.mxu3 %v3320_v18  ;;  %v3551_v18 = vld [vmem:[#allocation2 + $0x1a08] sm:$0xff] }
0x123c   :  { %v3495_v7 = vpop.f32.mrf.mxu3 }
0x123d   :  { %v3496_v53 = vadd.f32 %v3495_v7, %v3382_v44  ;;  %v3558_v7 = vld [vmem:[#allocation2 + $0x1a40] sm:$0xff] }
0x1241   :  { %3545 = vmatmul.f32.gmra.mxu3 %v3322_v27  ;;  %v3553_v27 = vld [vmem:[#allocation2 + $0x1a18] sm:$0xff] }
0x1244   :  { %v3498_v28 = vpop.f32.mrf.mxu3 }
0x1245   :  { %v3499_v9 = vadd.f32 %v3498_v28, %v3385_v22  ;;  %v3556_v22 = vld [vmem:[#allocation2 + $0x1a30] sm:$0xff] }
0x1246   :  { %v3560_v28 = vld [vmem:[#allocation2 + $0x1a50] sm:$0xff] }
0x1247   :  { %3614 = vmatpush.msra.mxu0 %v3499_v9  ;;  %v3555_v9 = vld [vmem:[#allocation2 + $0x1a28] sm:$0xff] }
0x1249   :  { %3615 = vmatpush.msra.mxu0 %v3496_v53  ;;  %v3557_v53 = vld [vmem:[#allocation2 + $0x1a38] sm:$0xff] }
0x124b   :  { %3616 = vmatpush.msra.mxu0 %v3493_v41  ;;  %v3559_v41 = vld [vmem:[#allocation2 + $0x1a48] sm:$0xff] }
0x124c   :  { %v6492_v4 = vpop.f32.mrf.mxu3 }
0x124d   :  { %3617 = vmatpush.msra.mxu0 %v3490_v62  ;;  %v3502_v54 = vadd.f32 %v6492_v4, %v6484_v32  ;;  %v3566_v32 = vld [vmem:[#allocation2 + $0x1a80] sm:$0xff]  ;;  %v3568_v62 = vld [vmem:[#allocation2 + $0x1a90] sm:$0xff]  ;;  %v3563_v4 = vld [vmem:[#allocation2 + $0x1a68] sm:$0xff] }
0x124f   :  { %3618 = vmatpush.msra.mxu0 %v3487_v15  ;;  %v3570_v15 = vld [vmem:[#allocation2 + $0x1aa0] sm:$0xff] }
0x1251   :  { %3619 = vmatpush.msra.mxu0 %v3484_v2  ;;  %v3565_v2 = vld [vmem:[#allocation2 + $0x1a78] sm:$0xff] }
0x1253   :  { %3620 = vmatpush.msra.mxu0 %v3481_v30  ;;  %v3572_v30 = vld [vmem:[#allocation2 + $0x1ab0] sm:$0xff] }
0x1254   :  { %v6496_v16 = vpop.f32.mrf.mxu3 }
0x1255   :  { %3621 = vmatpush.msra.mxu0 %v3478_v19  ;;  %v3505_v35 = vadd.f32 %v6496_v16, %v6486_v47  ;;  %v3564_v47 = vld [vmem:[#allocation2 + $0x1a70] sm:$0xff]  ;;  %v3567_v19 = vld [vmem:[#allocation2 + $0x1a88] sm:$0xff]  ;;  %v3574_v16 = vld [vmem:[#allocation2 + $0x1ac0] sm:$0xff] }
0x1257   :  { %3622 = vmatpush.msra.mxu0 %v3475_v57 }
0x1259   :  { %3623 = vmatpush.msra.mxu0 %v6482_v63 }
0x125b   :  { %3624 = vmatpush.msra.mxu0 %v6480_v52 }
0x125c   :  { %v6500_v14 = vpop.f32.mrf.mxu3 }
0x125d   :  { %3625 = vmatpush.msra.mxu0 %v6476_v6  ;;  %v3418_v6 = vpop.f32.mrf.mxu2  ;;  %v3508_v26 = vadd.f32 %v6500_v14, %v6488_v34  ;;  %v3562_v34 = vld [vmem:[#allocation2 + $0x1a60] sm:$0xff]  ;;  %v3576_v14 = vld [vmem:[#allocation2 + $0x1ad0] sm:$0xff] }
0x125f   :  { %3626 = vmatpush.msra.mxu0 %v6472_v31 }
0x1261   :  { %3627 = vmatpush.msra.mxu0 %v6470_v49 }
0x1263   :  { %3628 = vmatpush.msra.mxu0 %v6468_v0 }
0x1264   :  { %v3510_v48 = vpop.f32.mrf.mxu3 }
0x1265   :  { %3629 = vmatpush.msra.mxu0 %v6466_v59  ;;  %v3421_v21 = vpop.f32.mrf.mxu2  ;;  %v3511_v5 = vadd.f32 %v3510_v48, %v6490_v37  ;;  %v3561_v37 = vld [vmem:[#allocation2 + $0x1a58] sm:$0xff]  ;;  %v3578_v48 = vld [vmem:[#allocation2 + $0x1ae0] sm:$0xff] }
0x1266   :  { %3630 = vmatmul.f32.vlgmr.msra.gmra.mxu0 %v3550_v50  ;;  %v3587_v50 = vld [vmem:[#allocation2 + $0x1b28] sm:$0xff] }
0x126c   :  { %v3513_v23 = vpop.f32.mrf.mxu3 }
0x126d   :  { %v3424_v49 = vpop.f32.mrf.mxu2  ;;  %v3514_v36 = vadd.f32 %v3513_v23, %v3400_v46  ;;  %v3569_v46 = vld [vmem:[#allocation2 + $0x1a98] sm:$0xff]  ;;  %v3580_v23 = vld [vmem:[#allocation2 + $0x1af0] sm:$0xff] }
0x126e   :  { %3633 = vmatmul.f32.gmra.mxu0 %v3552_v1  ;;  %v3589_v1 = vld [vmem:[#allocation2 + $0x1b38] sm:$0xff] }
0x1274   :  { %v3516_v39 = vpop.f32.mrf.mxu3 }
0x1275   :  { %v3427_v0 = vpop.f32.mrf.mxu2  ;;  %v3517_v11 = vadd.f32 %v3516_v39, %v3403_v20  ;;  %v3571_v20 = vld [vmem:[#allocation2 + $0x1aa8] sm:$0xff] }
0x1276   :  { %3636 = vmatmul.f32.gmra.mxu0 %v3554_v12 }
0x127c   :  { %v3519_v61 = vpop.f32.mrf.mxu3 }
0x127d   :  { %v3430_v58 = vpop.f32.mrf.mxu2  ;;  %v3520_v3 = vadd.f32 %v3519_v61, %v3406_v40  ;;  %v3573_v40 = vld [vmem:[#allocation2 + $0x1ab8] sm:$0xff]  ;;  %v3582_v61 = vld [vmem:[#allocation2 + $0x1b00] sm:$0xff] }
0x127e   :  { %3639 = vmatmul.f32.gmra.mxu0 %v3556_v22  ;;  %v3600_v22 = vld [vmem:[#allocation2 + $0x1b90] sm:$0xff] }
0x1284   :  { %v3522_v52 = vpop.f32.mrf.mxu3 }
0x1285   :  { %v3433_v33 = vpop.f32.mrf.mxu2  ;;  %v3523_v44 = vadd.f32 %v3522_v52, %v3409_v38  ;;  %v3575_v38 = vld [vmem:[#allocation2 + $0x1ac8] sm:$0xff] }
0x1286   :  { %3642 = vmatmul.f32.gmra.mxu0 %v3558_v7  ;;  %v3597_v7 = vld [vmem:[#allocation2 + $0x1b78] sm:$0xff] }
0x128c   :  { %v3525_v10 = vpop.f32.mrf.mxu3 }
0x128d   :  { %v3526_v60 = vadd.f32 %v3525_v10, %v3412_v42  ;;  %v3577_v42 = vld [vmem:[#allocation2 + $0x1ad8] sm:$0xff]  ;;  %v3579_v10 = vld [vmem:[#allocation2 + $0x1ae8] sm:$0xff] }
0x128e   :  { %3645 = vmatmul.f32.gmra.mxu0 %v3560_v28  ;;  %v3604_v28 = vld [vmem:[#allocation2 + $0x1bb0] sm:$0xff] }
0x1294   :  { %v3528_v55 = vpop.f32.mrf.mxu3 }
0x1295   :  { %v3529_v29 = vadd.f32 %v3528_v55, %v3415_v45  ;;  %v3584_v45 = vld [vmem:[#allocation2 + $0x1b10] sm:$0xff]  ;;  %v3586_v55 = vld [vmem:[#allocation2 + $0x1b20] sm:$0xff] }
0x1296   :  { %3648 = vmatmul.f32.gmra.mxu0 %v3562_v34  ;;  %v3599_v34 = vld [vmem:[#allocation2 + $0x1b88] sm:$0xff] }
0x129c   :  { %v3531_v31 = vpop.f32.mrf.mxu3 }
0x129d   :  { %v3532_v13 = vadd.f32 %v3531_v31, %v3418_v6 }
0x129e   :  { %3651 = vmatmul.f32.gmra.mxu0 %v3564_v47  ;;  %v3606_v47 = vld [vmem:[#allocation2 + $0x1bc0] sm:$0xff] }
0x12a4   :  { %v3534_v63 = vpop.f32.mrf.mxu3 }
0x12a5   :  { %v3535_v17 = vadd.f32 %v3534_v63, %v3421_v21  ;;  %v3581_v21 = vld [vmem:[#allocation2 + $0x1af8] sm:$0xff]  ;;  %v3588_v63 = vld [vmem:[#allocation2 + $0x1b30] sm:$0xff] }
0x12a6   :  { %3654 = vmatmul.f32.gmra.mxu0 %v3566_v32  ;;  %v3601_v32 = vld [vmem:[#allocation2 + $0x1b98] sm:$0xff] }
0x12ac   :  { %v3537_v8 = vpop.f32.mrf.mxu3 }
0x12ad   :  { %v3538_v51 = vadd.f32 %v3537_v8, %v3424_v49  ;;  %v3583_v8 = vld [vmem:[#allocation2 + $0x1b08] sm:$0xff] }
0x12ae   :  { %3657 = vmatmul.f32.gmra.mxu0 %v3568_v62  ;;  %v3608_v62 = vld [vmem:[#allocation2 + $0x1bd0] sm:$0xff] }
0x12b4   :  { %v3540_v56 = vpop.f32.mrf.mxu3 }
0x12b5   :  { %v3541_v43 = vadd.f32 %v3540_v56, %v3427_v0  ;;  %v3590_v56 = vld [vmem:[#allocation2 + $0x1b40] sm:$0xff] }
0x12b6   :  { %3660 = vmatmul.f32.gmra.mxu0 %v3570_v15  ;;  %v3603_v15 = vld [vmem:[#allocation2 + $0x1ba8] sm:$0xff] }
0x12bc   :  { %v3543_v59 = vpop.f32.mrf.mxu3 }
0x12bd   :  { %v3544_v24 = vadd.f32 %v3543_v59, %v3430_v58  ;;  %v3585_v59 = vld [vmem:[#allocation2 + $0x1b18] sm:$0xff] }
0x12be   :  { %3663 = vmatmul.f32.gmra.mxu0 %v3572_v30  ;;  %v3610_v30 = vld [vmem:[#allocation2 + $0x1be0] sm:$0xff] }
0x12c4   :  { %v3546_v57 = vpop.f32.mrf.mxu3 }
0x12c5   :  { %v3547_v25 = vadd.f32 %v3546_v57, %v3433_v33  ;;  %v3592_v57 = vld [vmem:[#allocation2 + $0x1b50] sm:$0xff] }
0x12c6   :  { %3666 = vmatmul.f32.gmra.mxu0 %v3574_v16  ;;  %v3605_v16 = vld [vmem:[#allocation2 + $0x1bb8] sm:$0xff] }
0x12c7   :  { %3727 = vmatpush.msra.mxu1 %v3547_v25 }
0x12c9   :  { %3728 = vmatpush.msra.mxu1 %v3544_v24 }
0x12cb   :  { %3729 = vmatpush.msra.mxu1 %v3541_v43  ;;  %v3594_v43 = vld [vmem:[#allocation2 + $0x1b60] sm:$0xff] }
0x12cd   :  { %3730 = vmatpush.msra.mxu1 %v3538_v51 }
0x12ce   :  { %3669 = vmatmul.f32.gmra.mxu0 %v3576_v14  ;;  %v3612_v14 = vld [vmem:[#allocation2 + $0x1bf0] sm:$0xff] }
0x12cf   :  { %3731 = vmatpush.msra.mxu1 %v3535_v17 }
0x12d1   :  { %3732 = vmatpush.msra.mxu1 %v3532_v13  ;;  %v3596_v13 = vld [vmem:[#allocation2 + $0x1b70] sm:$0xff] }
0x12d3   :  { %3733 = vmatpush.msra.mxu1 %v3529_v29 }
0x12d5   :  { %3734 = vmatpush.msra.mxu1 %v3526_v60  ;;  %v3591_v60 = vld [vmem:[#allocation2 + $0x1b48] sm:$0xff] }
0x12d6   :  { %3672 = vmatmul.f32.gmra.mxu0 %v3578_v48  ;;  %v3607_v48 = vld [vmem:[#allocation2 + $0x1bc8] sm:$0xff] }
0x12d7   :  { %3735 = vmatpush.msra.mxu1 %v3523_v44  ;;  %v3598_v44 = vld [vmem:[#allocation2 + $0x1b80] sm:$0xff] }
0x12d9   :  { %3736 = vmatpush.msra.mxu1 %v3520_v3 }
0x12db   :  { %3737 = vmatpush.msra.mxu1 %v3517_v11  ;;  %v3593_v11 = vld [vmem:[#allocation2 + $0x1b58] sm:$0xff] }
0x12dd   :  { %3738 = vmatpush.msra.mxu1 %v3514_v36 }
0x12de   :  { %3675 = vmatmul.f32.gmra.mxu0 %v3580_v23 }
0x12df   :  { %3739 = vmatpush.msra.mxu1 %v3511_v5 }
0x12e1   :  { %3740 = vmatpush.msra.mxu1 %v3508_v26  ;;  %v3595_v26 = vld [vmem:[#allocation2 + $0x1b68] sm:$0xff] }
0x12e3   :  { %3741 = vmatpush.msra.mxu1 %v3505_v35  ;;  %v6514_v39 = vpop.f32.mrf.mxu0 }
0x12e5   :  { %3742 = vmatpush.msra.mxu1 %v3502_v54  ;;  %v3602_v54 = vld [vmem:[#allocation2 + $0x1ba0] sm:$0xff] }
0x12e6   :  { %3743 = vmatmul.f32.vlgmr.msra.gmra.mxu1 %v3551_v18  ;;  %3678 = vmatmul.f32.gmra.mxu0 %v3582_v61 }
0x12eb   :  { %v6516_v52 = vpop.f32.mrf.mxu0 }
0x12ee   :  { %3746 = vmatmul.f32.gmra.mxu1 %v3553_v27  ;;  %3681 = vmatmul.f32.gmra.mxu0 %v3584_v45  ;;  %v3611_v45 = vld [vmem:[#allocation2 + $0x1be8] sm:$0xff] }
0x12f3   :  { %v6518_v6 = vpop.f32.mrf.mxu0 }
0x12f6   :  { %3749 = vmatmul.f32.gmra.mxu1 %v3555_v9  ;;  %3684 = vmatmul.f32.gmra.mxu0 %v3586_v55 }
0x12fb   :  { %v6520_v31 = vpop.f32.mrf.mxu0 }
0x12fe   :  { %3752 = vmatmul.f32.gmra.mxu1 %v3557_v53  ;;  %3687 = vmatmul.f32.gmra.mxu0 %v3588_v63 }
0x1303   :  { %v6524_v0 = vpop.f32.mrf.mxu0 }
0x1306   :  { %3755 = vmatmul.f32.gmra.mxu1 %v3559_v41  ;;  %3690 = vmatmul.f32.gmra.mxu0 %v3590_v56 }
0x130b   :  { %v6528_v33 = vpop.f32.mrf.mxu0 }
0x130e   :  { %3758 = vmatmul.f32.gmra.mxu1 %v3561_v37  ;;  %3693 = vmatmul.f32.gmra.mxu0 %v3592_v57 }
0x1313   :  { %v6532_v24 = vpop.f32.mrf.mxu0 }
0x1316   :  { %3761 = vmatmul.f32.gmra.mxu1 %v3563_v4  ;;  %3696 = vmatmul.f32.gmra.mxu0 %v3594_v43 }
0x131b   :  { %v6536_v17 = vpop.f32.mrf.mxu0 }
0x131e   :  { %3764 = vmatmul.f32.gmra.mxu1 %v3565_v2  ;;  %3699 = vmatmul.f32.gmra.mxu0 %v3596_v13 }
0x1323   :  { %v6540_v12 = vpop.f32.mrf.mxu0 }
0x1326   :  { %3767 = vmatmul.f32.gmra.mxu1 %v3567_v19  ;;  %3702 = vmatmul.f32.gmra.mxu0 %v3598_v44 }
0x132b   :  { %v6544_v36 = vpop.f32.mrf.mxu0 }
0x132e   :  { %3770 = vmatmul.f32.gmra.mxu1 %v3569_v46  ;;  %3705 = vmatmul.f32.gmra.mxu0 %v3600_v22 }
0x1333   :  { %v3661_v35 = vpop.f32.mrf.mxu0 }
0x1336   :  { %3773 = vmatmul.f32.gmra.mxu1 %v3571_v20  ;;  %3708 = vmatmul.f32.gmra.mxu0 %v3602_v54 }
0x133b   :  { %v3664_v27 = vpop.f32.mrf.mxu0 }
0x133e   :  { %3776 = vmatmul.f32.gmra.mxu1 %v3573_v40  ;;  %3711 = vmatmul.f32.gmra.mxu0 %v3604_v28 }
0x1343   :  { %v3667_v53 = vpop.f32.mrf.mxu0 }
0x1346   :  { %3779 = vmatmul.f32.gmra.mxu1 %v3575_v38  ;;  %3714 = vmatmul.f32.gmra.mxu0 %v3606_v47  ;;  %v3609_v38 = vld [vmem:[#allocation2 + $0x1bd8] sm:$0xff] }
0x134b   :  { %v3670_v37 = vpop.f32.mrf.mxu0 }
0x134e   :  { %3782 = vmatmul.f32.gmra.mxu1 %v3577_v42  ;;  %3717 = vmatmul.f32.gmra.mxu0 %v3608_v62 }
0x1353   :  { %v3673_v2 = vpop.f32.mrf.mxu0 }
0x1356   :  { %3785 = vmatmul.f32.gmra.mxu1 %v3579_v10  ;;  %3720 = vmatmul.f32.gmra.mxu0 %v3610_v30 }
0x135b   :  { %v3676_v46 = vpop.f32.mrf.mxu0 }
0x135e   :  { %3788 = vmatmul.f32.gmra.mxu1 %v3581_v21  ;;  %3723 = vmatmul.f32.gmra.mxu0 %v3612_v14  ;;  %v3613_v21 = vld [vmem:[#allocation2 + $0x1bf8] sm:$0xff] }
0x1363   :  { %v6522_v49 = vpop.f32.mrf.mxu1  ;;  %v6550_v40 = vpop.f32.mrf.mxu0 }
0x1366   :  { %3791 = vmatmul.f32.gmra.mxu1 %v3583_v8 }
0x136b   :  { %v6526_v58 = vpop.f32.mrf.mxu1  ;;  %v6552_v61 = vpop.f32.mrf.mxu0 }
0x136e   :  { %3794 = vmatmul.f32.gmra.mxu1 %v3585_v59 }
0x1373   :  { %v6530_v25 = vpop.f32.mrf.mxu1  ;;  %v6554_v10 = vpop.f32.mrf.mxu0 }
0x1376   :  { %3797 = vmatmul.f32.gmra.mxu1 %v3587_v50 }
0x137b   :  { %v6534_v51 = vpop.f32.mrf.mxu1  ;;  %v6556_v59 = vpop.f32.mrf.mxu0 }
0x137c   :  { %v3754_v54 = vadd.f32 %v6534_v51, %v6520_v31 }
0x137e   :  { %3800 = vmatmul.f32.gmra.mxu1 %v3589_v1 }
0x1383   :  { %v6538_v29 = vpop.f32.mrf.mxu1 }
0x1386   :  { %3803 = vmatmul.f32.gmra.mxu1 %v3591_v60 }
0x138b   :  { %v6542_v3 = vpop.f32.mrf.mxu1 }
0x138e   :  { %3806 = vmatmul.f32.gmra.mxu1 %v3593_v11  ;;  %v6564_v11 = vpop.f32.mrf.mxu0 }
0x1393   :  { %v6546_v5 = vpop.f32.mrf.mxu1 }
0x1396   :  { %3809 = vmatmul.f32.gmra.mxu1 %v3595_v26  ;;  %v3763_v26 = vadd.f32 %v6546_v5, %v6532_v24  ;;  %v3748_v24 = vadd.f32 %v6526_v58, %v6516_v52 }
0x139b   :  { %v6548_v18 = vpop.f32.mrf.mxu1 }
0x139c   :  { %v3766_v22 = vadd.f32 %v6548_v18, %v6536_v17  ;;  %v3694_v17 = vpop.f32.mrf.mxu0  ;;  %v3751_v18 = vadd.f32 %v6530_v25, %v6518_v6 }
0x139e   :  { %3812 = vmatmul.f32.gmra.mxu1 %v3597_v7 }
0x13a3   :  { %v3768_v9 = vpop.f32.mrf.mxu1 }
0x13a4   :  { %v3769_v60 = vadd.f32 %v3768_v9, %v6540_v12  ;;  %v3757_v12 = vadd.f32 %v6538_v29, %v6524_v0  ;;  %v3697_v29 = vpop.f32.mrf.mxu0 }
0x13a6   :  { %3815 = vmatmul.f32.gmra.mxu1 %v3599_v34 }
0x13ab   :  { %v3771_v41 = vpop.f32.mrf.mxu1 }
0x13ac   :  { %v3772_v13 = vadd.f32 %v3771_v41, %v6544_v36  ;;  %v3700_v5 = vpop.f32.mrf.mxu0 }
0x13ae   :  { %3818 = vmatmul.f32.gmra.mxu1 %v3601_v32 }
0x13b3   :  { %v3774_v4 = vpop.f32.mrf.mxu1 }
0x13b4   :  { %v3775_v1 = vadd.f32 %v3774_v4, %v3661_v35  ;;  %v3760_v35 = vadd.f32 %v6542_v3, %v6528_v33  ;;  %v3745_v33 = vadd.f32 %v6522_v49, %v6514_v39  ;;  %v3703_v7 = vpop.f32.mrf.mxu0 }
0x13b6   :  { %3821 = vmatmul.f32.gmra.mxu1 %v3603_v15  ;;  %v3841_v15 = vld [vmem:[#allocation2 + $0x1c00] sm:$0xff] }
0x13bb   :  { %v3777_v19 = vpop.f32.mrf.mxu1 }
0x13bc   :  { %v3778_v43 = vadd.f32 %v3777_v19, %v3664_v27  ;;  %v3706_v28 = vpop.f32.mrf.mxu0 }
0x13be   :  { %3824 = vmatmul.f32.gmra.mxu1 %v3605_v16  ;;  %v3843_v16 = vld [vmem:[#allocation2 + $0x1c10] sm:$0xff] }
0x13c3   :  { %v3780_v20 = vpop.f32.mrf.mxu1 }
0x13c4   :  { %v3781_v57 = vadd.f32 %v3780_v20, %v3667_v53  ;;  %v3709_v25 = vpop.f32.mrf.mxu0 }
0x13c6   :  { %3827 = vmatmul.f32.gmra.mxu1 %v3607_v48 }
0x13cb   :  { %v3783_v23 = vpop.f32.mrf.mxu1 }
0x13cc   :  { %v3784_v56 = vadd.f32 %v3783_v23, %v3670_v37  ;;  %v3712_v34 = vpop.f32.mrf.mxu0  ;;  %v3845_v23 = vld [vmem:[#allocation2 + $0x1c20] sm:$0xff] }
0x13ce   :  { %3830 = vmatmul.f32.gmra.mxu1 %v3609_v38 }
0x13d3   :  { %v3786_v42 = vpop.f32.mrf.mxu1 }
0x13d4   :  { %v3787_v8 = vadd.f32 %v3786_v42, %v3673_v2  ;;  %v3715_v53 = vpop.f32.mrf.mxu0 }
0x13d6   :  { %3833 = vmatmul.f32.gmra.mxu1 %v3611_v45 }
0x13db   :  { %v3789_v55 = vpop.f32.mrf.mxu1 }
0x13dc   :  { %v3790_v63 = vadd.f32 %v3789_v55, %v3676_v46  ;;  %v3718_v39 = vpop.f32.mrf.mxu0 }
0x13de   :  { %3836 = vmatmul.f32.gmra.mxu1 %v3613_v21  ;;  %3905 = vmatpush.msrb.mxu2 %v3790_v63  ;;  %v3847_v21 = vld [vmem:[#allocation2 + $0x1c30] sm:$0xff] }
0x13e0   :  { %3906 = vmatpush.msrb.mxu2 %v3787_v8 }
0x13e2   :  { %3907 = vmatpush.msrb.mxu2 %v3784_v56 }
0x13e3   :  { %v6558_v50 = vpop.f32.mrf.mxu1 }
0x13e4   :  { %3908 = vmatpush.msrb.mxu2 %v3781_v57  ;;  %v3721_v41 = vpop.f32.mrf.mxu0  ;;  %v3793_v57 = vadd.f32 %v6558_v50, %v6550_v40  ;;  %v3857_v40 = vld [vmem:[#allocation2 + $0x1c80] sm:$0xff]  ;;  %v3852_v50 = vld [vmem:[#allocation2 + $0x1c58] sm:$0xff] }
0x13e6   :  { %3909 = vmatpush.msrb.mxu2 %v3778_v43  ;;  %v3842_v43 = vld [vmem:[#allocation2 + $0x1c08] sm:$0xff] }
0x13e8   :  { %3910 = vmatpush.msrb.mxu2 %v3775_v1  ;;  %v3849_v1 = vld [vmem:[#allocation2 + $0x1c40] sm:$0xff] }
0x13ea   :  { %3911 = vmatpush.msrb.mxu2 %v3772_v13  ;;  %v3851_v13 = vld [vmem:[#allocation2 + $0x1c50] sm:$0xff] }
0x13eb   :  { %v6562_v44 = vpop.f32.mrf.mxu1 }
0x13ec   :  { %3912 = vmatpush.msrb.mxu2 %v3769_v60  ;;  %v3724_v37 = vpop.f32.mrf.mxu0  ;;  %v3796_v56 = vadd.f32 %v6562_v44, %v6552_v61  ;;  %v3846_v60 = vld [vmem:[#allocation2 + $0x1c28] sm:$0xff]  ;;  %v3855_v61 = vld [vmem:[#allocation2 + $0x1c70] sm:$0xff] }
0x13ed   :  { %v3850_v44 = vld [vmem:[#allocation2 + $0x1c48] sm:$0xff] }
0x13ee   :  { %3913 = vmatpush.msrb.mxu2 %v3766_v22  ;;  %v3859_v22 = vld [vmem:[#allocation2 + $0x1c90] sm:$0xff] }
0x13f0   :  { %3914 = vmatpush.msrb.mxu2 %v3763_v26  ;;  %v3854_v26 = vld [vmem:[#allocation2 + $0x1c68] sm:$0xff] }
0x13f2   :  { %3915 = vmatpush.msrb.mxu2 %v3760_v35  ;;  %v3861_v35 = vld [vmem:[#allocation2 + $0x1ca0] sm:$0xff] }
0x13f3   :  { %v6574_v36 = vpop.f32.mrf.mxu1 }
0x13f4   :  { %3916 = vmatpush.msrb.mxu2 %v3757_v12  ;;  %v3799_v8 = vadd.f32 %v6574_v36, %v6554_v10  ;;  %v3853_v10 = vld [vmem:[#allocation2 + $0x1c60] sm:$0xff]  ;;  %v3856_v12 = vld [vmem:[#allocation2 + $0x1c78] sm:$0xff]  ;;  %v3863_v36 = vld [vmem:[#allocation2 + $0x1cb0] sm:$0xff] }
0x13f6   :  { %3917 = vmatpush.msrb.mxu2 %v3754_v54  ;;  %v3858_v54 = vld [vmem:[#allocation2 + $0x1c88] sm:$0xff] }
0x13f8   :  { %3918 = vmatpush.msrb.mxu2 %v3751_v18  ;;  %v3860_v18 = vld [vmem:[#allocation2 + $0x1c98] sm:$0xff] }
0x13fa   :  { %3919 = vmatpush.msrb.mxu2 %v3748_v24  ;;  %v3867_v24 = vld [vmem:[#allocation2 + $0x1cd0] sm:$0xff] }
0x13fb   :  { %v3801_v0 = vpop.f32.mrf.mxu1 }
0x13fc   :  { %3920 = vmatpush.msrb.mxu2 %v3745_v33  ;;  %v3802_v63 = vadd.f32 %v3801_v0, %v6556_v59  ;;  %v3844_v59 = vld [vmem:[#allocation2 + $0x1c18] sm:$0xff]  ;;  %v3862_v33 = vld [vmem:[#allocation2 + $0x1ca8] sm:$0xff]  ;;  %v3869_v0 = vld [vmem:[#allocation2 + $0x1ce0] sm:$0xff] }
0x13fd   :  { %3921 = vmatmul.f32.vlgmr.msrb.gmra.mxu2 %v3841_v15 }
0x1403   :  { %v3804_v3 = vpop.f32.mrf.mxu1 }
0x1404   :  { %v3805_v55 = vadd.f32 %v3804_v3, %v6564_v11  ;;  %v3848_v11 = vld [vmem:[#allocation2 + $0x1c38] sm:$0xff]  ;;  %v3871_v3 = vld [vmem:[#allocation2 + $0x1cf0] sm:$0xff] }
0x1405   :  { %3924 = vmatmul.f32.gmra.mxu2 %v3843_v16 }
0x140b   :  { %v3807_v31 = vpop.f32.mrf.mxu1 }
0x140c   :  { %v3808_v45 = vadd.f32 %v3807_v31, %v3694_v17  ;;  %v3865_v17 = vld [vmem:[#allocation2 + $0x1cc0] sm:$0xff] }
0x140d   :  { %3927 = vmatmul.f32.gmra.mxu2 %v3845_v23  ;;  %v3873_v31 = vld [vmem:[#allocation2 + $0x1d00] sm:$0xff] }
0x1413   :  { %v3810_v51 = vpop.f32.mrf.mxu1 }
0x1414   :  { %v3811_v42 = vadd.f32 %v3810_v51, %v3697_v29  ;;  %v3864_v29 = vld [vmem:[#allocation2 + $0x1cb8] sm:$0xff] }
0x1415   :  { %3930 = vmatmul.f32.gmra.mxu2 %v3847_v21 }
0x141b   :  { %v3813_v27 = vpop.f32.mrf.mxu1 }
0x141c   :  { %v3814_v38 = vadd.f32 %v3813_v27, %v3700_v5  ;;  %v3866_v5 = vld [vmem:[#allocation2 + $0x1cc8] sm:$0xff]  ;;  %v3875_v27 = vld [vmem:[#allocation2 + $0x1d10] sm:$0xff] }
0x141d   :  { %3933 = vmatmul.f32.gmra.mxu2 %v3849_v1 }
0x1423   :  { %v3816_v6 = vpop.f32.mrf.mxu1 }
0x1424   :  { %v3817_v48 = vadd.f32 %v3816_v6, %v3703_v7  ;;  %v3868_v7 = vld [vmem:[#allocation2 + $0x1cd8] sm:$0xff]  ;;  %v3870_v6 = vld [vmem:[#allocation2 + $0x1ce8] sm:$0xff] }
0x1425   :  { %3936 = vmatmul.f32.gmra.mxu2 %v3851_v13  ;;  %v3893_v13 = vld [vmem:[#allocation2 + $0x1da0] sm:$0xff] }
0x142b   :  { %v3819_v9 = vpop.f32.mrf.mxu1 }
0x142c   :  { %v3820_v20 = vadd.f32 %v3819_v9, %v3706_v28 }
0x142d   :  { %3939 = vmatmul.f32.gmra.mxu2 %v3853_v10 }
0x1433   :  { %v3822_v52 = vpop.f32.mrf.mxu1 }
0x1434   :  { %v3823_v14 = vadd.f32 %v3822_v52, %v3709_v25  ;;  %v3877_v25 = vld [vmem:[#allocation2 + $0x1d20] sm:$0xff]  ;;  %v3879_v52 = vld [vmem:[#allocation2 + $0x1d30] sm:$0xff] }
0x1435   :  { %3942 = vmatmul.f32.gmra.mxu2 %v3855_v61  ;;  %v3888_v61 = vld [vmem:[#allocation2 + $0x1d78] sm:$0xff] }
0x143b   :  { %v3825_v58 = vpop.f32.mrf.mxu1 }
0x143c   :  { %v3826_v46 = vadd.f32 %v3825_v58, %v3712_v34  ;;  %v3872_v34 = vld [vmem:[#allocation2 + $0x1cf8] sm:$0xff] }
0x143d   :  { %3945 = vmatmul.f32.gmra.mxu2 %v3857_v40 }
0x1443   :  { %v3828_v47 = vpop.f32.mrf.mxu1 }
0x1444   :  { %v3829_v19 = vadd.f32 %v3828_v47, %v3715_v53  ;;  %v3874_v53 = vld [vmem:[#allocation2 + $0x1d08] sm:$0xff]  ;;  %v3881_v47 = vld [vmem:[#allocation2 + $0x1d40] sm:$0xff] }
0x1445   :  { %3948 = vmatmul.f32.gmra.mxu2 %v3859_v22 }
0x144b   :  { %v3831_v49 = vpop.f32.mrf.mxu1 }
0x144c   :  { %v3832_v30 = vadd.f32 %v3831_v49, %v3718_v39 }
0x144d   :  { %3951 = vmatmul.f32.gmra.mxu2 %v3861_v35  ;;  %v3897_v35 = vld [vmem:[#allocation2 + $0x1dc0] sm:$0xff] }
0x1453   :  { %v3834_v32 = vpop.f32.mrf.mxu1 }
0x1454   :  { %v3835_v2 = vadd.f32 %v3834_v32, %v3721_v41  ;;  %v3876_v32 = vld [vmem:[#allocation2 + $0x1d18] sm:$0xff] }
0x1455   :  { %3954 = vmatmul.f32.gmra.mxu2 %v3863_v36 }
0x145b   :  { %v3837_v62 = vpop.f32.mrf.mxu1 }
0x145c   :  { %v3838_v4 = vadd.f32 %v3837_v62, %v3724_v37  ;;  %v3883_v37 = vld [vmem:[#allocation2 + $0x1d50] sm:$0xff] }
0x145d   :  { %3957 = vmatmul.f32.gmra.mxu2 %v3865_v17  ;;  %v3899_v17 = vld [vmem:[#allocation2 + $0x1dd0] sm:$0xff] }
0x145e   :  { %4018 = vmatpush.msrb.mxu3 %v3838_v4 }
0x1460   :  { %4019 = vmatpush.msrb.mxu3 %v3835_v2  ;;  %v3878_v2 = vld [vmem:[#allocation2 + $0x1d28] sm:$0xff] }
0x1462   :  { %4020 = vmatpush.msrb.mxu3 %v3832_v30  ;;  %v3885_v30 = vld [vmem:[#allocation2 + $0x1d60] sm:$0xff] }
0x1464   :  { %4021 = vmatpush.msrb.mxu3 %v3829_v19 }
0x1465   :  { %3960 = vmatmul.f32.gmra.mxu2 %v3867_v24 }
0x1466   :  { %4022 = vmatpush.msrb.mxu3 %v3826_v46 }
0x1468   :  { %4023 = vmatpush.msrb.mxu3 %v3823_v14  ;;  %v3880_v14 = vld [vmem:[#allocation2 + $0x1d38] sm:$0xff] }
0x146a   :  { %4024 = vmatpush.msrb.mxu3 %v3820_v20  ;;  %v3887_v20 = vld [vmem:[#allocation2 + $0x1d70] sm:$0xff] }
0x146c   :  { %4025 = vmatpush.msrb.mxu3 %v3817_v48 }
0x146d   :  { %3963 = vmatmul.f32.gmra.mxu2 %v3869_v0  ;;  %v3901_v0 = vld [vmem:[#allocation2 + $0x1de0] sm:$0xff] }
0x146e   :  { %4026 = vmatpush.msrb.mxu3 %v3814_v38 }
0x1470   :  { %4027 = vmatpush.msrb.mxu3 %v3811_v42  ;;  %v3882_v42 = vld [vmem:[#allocation2 + $0x1d48] sm:$0xff] }
0x1472   :  { %4028 = vmatpush.msrb.mxu3 %v3808_v45  ;;  %v3889_v45 = vld [vmem:[#allocation2 + $0x1d80] sm:$0xff] }
0x1474   :  { %4029 = vmatpush.msrb.mxu3 %v3805_v55 }
0x1475   :  { %3966 = vmatmul.f32.gmra.mxu2 %v3871_v3 }
0x1476   :  { %4030 = vmatpush.msrb.mxu3 %v3802_v63 }
0x1478   :  { %4031 = vmatpush.msrb.mxu3 %v3799_v8  ;;  %v3884_v8 = vld [vmem:[#allocation2 + $0x1d58] sm:$0xff] }
0x147a   :  { %4032 = vmatpush.msrb.mxu3 %v3796_v56  ;;  %v3891_v56 = vld [vmem:[#allocation2 + $0x1d90] sm:$0xff] }
0x147c   :  { %4033 = vmatpush.msrb.mxu3 %v3793_v57 }
0x147d   :  { %4034 = vmatmul.f32.vlgmr.msrb.gmra.mxu3 %v3842_v43  ;;  %3969 = vmatmul.f32.gmra.mxu2 %v3873_v31  ;;  %v3903_v31 = vld [vmem:[#allocation2 + $0x1df0] sm:$0xff] }
0x1480   :  { %v3922_v51 = vpop.f32.mrf.mxu2 }
0x1485   :  { %4037 = vmatmul.f32.gmra.mxu3 %v3844_v59  ;;  %3972 = vmatmul.f32.gmra.mxu2 %v3875_v27  ;;  %v3886_v59 = vld [vmem:[#allocation2 + $0x1d68] sm:$0xff] }
0x1486   :  { %v3898_v27 = vld [vmem:[#allocation2 + $0x1dc8] sm:$0xff] }
0x1488   :  { %v3925_v28 = vpop.f32.mrf.mxu2 }
0x148d   :  { %4040 = vmatmul.f32.gmra.mxu3 %v3846_v60  ;;  %3975 = vmatmul.f32.gmra.mxu2 %v3877_v25  ;;  %v3900_v25 = vld [vmem:[#allocation2 + $0x1dd8] sm:$0xff] }
0x1490   :  { %v3928_v9 = vpop.f32.mrf.mxu2 }
0x1495   :  { %4043 = vmatmul.f32.gmra.mxu3 %v3848_v11  ;;  %3978 = vmatmul.f32.gmra.mxu2 %v3879_v52 }
0x1498   :  { %v3931_v58 = vpop.f32.mrf.mxu2 }
0x149d   :  { %4046 = vmatmul.f32.gmra.mxu3 %v3850_v44  ;;  %3981 = vmatmul.f32.gmra.mxu2 %v3881_v47  ;;  %v3895_v44 = vld [vmem:[#allocation2 + $0x1db0] sm:$0xff] }
0x14a0   :  { %v3934_v49 = vpop.f32.mrf.mxu2 }
0x14a5   :  { %4049 = vmatmul.f32.gmra.mxu3 %v3852_v50  ;;  %3984 = vmatmul.f32.gmra.mxu2 %v3883_v37 }
0x14a8   :  { %v3937_v4 = vpop.f32.mrf.mxu2 }
0x14ad   :  { %4052 = vmatmul.f32.gmra.mxu3 %v3854_v26  ;;  %3987 = vmatmul.f32.gmra.mxu2 %v3885_v30  ;;  %v3890_v26 = vld [vmem:[#allocation2 + $0x1d88] sm:$0xff] }
0x14b0   :  { %v3940_v16 = vpop.f32.mrf.mxu2 }
0x14b5   :  { %4055 = vmatmul.f32.gmra.mxu3 %v3856_v12  ;;  %3990 = vmatmul.f32.gmra.mxu2 %v3887_v20 }
0x14b8   :  { %v3943_v23 = vpop.f32.mrf.mxu2 }
0x14bd   :  { %4058 = vmatmul.f32.gmra.mxu3 %v3858_v54  ;;  %3993 = vmatmul.f32.gmra.mxu2 %v3889_v45  ;;  %v3892_v54 = vld [vmem:[#allocation2 + $0x1d98] sm:$0xff] }
0x14c0   :  { %v6600_v21 = vpop.f32.mrf.mxu2 }
0x14c5   :  { %4061 = vmatmul.f32.gmra.mxu3 %v3860_v18  ;;  %3996 = vmatmul.f32.gmra.mxu2 %v3891_v56 }
0x14c8   :  { %v6604_v43 = vpop.f32.mrf.mxu2 }
0x14cd   :  { %4064 = vmatmul.f32.gmra.mxu3 %v3862_v33  ;;  %3999 = vmatmul.f32.gmra.mxu2 %v3893_v13  ;;  %v3894_v33 = vld [vmem:[#allocation2 + $0x1da8] sm:$0xff] }
0x14d0   :  { %v3952_v10 = vpop.f32.mrf.mxu2 }
0x14d5   :  { %4067 = vmatmul.f32.gmra.mxu3 %v3864_v29  ;;  %4002 = vmatmul.f32.gmra.mxu2 %v3895_v44 }
0x14d8   :  { %v3955_v50 = vpop.f32.mrf.mxu2 }
0x14dd   :  { %4070 = vmatmul.f32.gmra.mxu3 %v3866_v5  ;;  %4005 = vmatmul.f32.gmra.mxu2 %v3897_v35  ;;  %v3896_v5 = vld [vmem:[#allocation2 + $0x1db8] sm:$0xff]  ;;  %v4132_v35 = vld [vmem:[#allocation2 + $0x1e00] sm:$0xff] }
0x14e0   :  { %v3958_v36 = vpop.f32.mrf.mxu2 }
0x14e5   :  { %4073 = vmatmul.f32.gmra.mxu3 %v3868_v7  ;;  %4008 = vmatmul.f32.gmra.mxu2 %v3899_v17  ;;  %v4134_v17 = vld [vmem:[#allocation2 + $0x1e10] sm:$0xff] }
0x14e8   :  { %v3961_v24 = vpop.f32.mrf.mxu2 }
0x14ed   :  { %4076 = vmatmul.f32.gmra.mxu3 %v3870_v6  ;;  %4011 = vmatmul.f32.gmra.mxu2 %v3901_v0 }
0x14f0   :  { %v3964_v3 = vpop.f32.mrf.mxu2 }
0x14f5   :  { %4079 = vmatmul.f32.gmra.mxu3 %v3872_v34  ;;  %4014 = vmatmul.f32.gmra.mxu2 %v3903_v31  ;;  %v3902_v34 = vld [vmem:[#allocation2 + $0x1de8] sm:$0xff] }
0x14f8   :  { %v3967_v7 = vpop.f32.mrf.mxu2 }
0x14fd   :  { %4082 = vmatmul.f32.gmra.mxu3 %v3874_v53  ;;  %v3904_v53 = vld [vmem:[#allocation2 + $0x1df8] sm:$0xff] }
0x1500   :  { %v4035_v39 = vpop.f32.mrf.mxu3  ;;  %v6610_v6 = vpop.f32.mrf.mxu2 }
0x1501   :  { %v6592_v41 = vadd.f32 %v4035_v39, %v3922_v51 }
0x1505   :  { %4085 = vmatmul.f32.gmra.mxu3 %v3876_v32 }
0x1508   :  { %v4038_v62 = vpop.f32.mrf.mxu3  ;;  %v6612_v52 = vpop.f32.mrf.mxu2 }
0x1509   :  { %v6594_v15 = vadd.f32 %v4038_v62, %v3925_v28 }
0x150d   :  { %4088 = vmatmul.f32.gmra.mxu3 %v3878_v2 }
0x1510   :  { %v4041_v19 = vpop.f32.mrf.mxu3  ;;  %v6614_v47 = vpop.f32.mrf.mxu2 }
0x1511   :  { %v6596_v46 = vadd.f32 %v4041_v19, %v3928_v9 }
0x1515   :  { %4091 = vmatmul.f32.gmra.mxu3 %v3880_v14 }
0x1518   :  { %v4044_v48 = vpop.f32.mrf.mxu3  ;;  %v6616_v62 = vpop.f32.mrf.mxu2 }
0x1519   :  { %v6598_v38 = vadd.f32 %v4044_v48, %v3931_v58 }
0x151d   :  { %4094 = vmatmul.f32.gmra.mxu3 %v3882_v42 }
0x1520   :  { %v4047_v55 = vpop.f32.mrf.mxu3  ;;  %v3982_v48 = vpop.f32.mrf.mxu2 }
0x1521   :  { %v6602_v63 = vadd.f32 %v4047_v55, %v3934_v49 }
0x1525   :  { %4097 = vmatmul.f32.gmra.mxu3 %v3884_v8 }
0x1528   :  { %v4050_v57 = vpop.f32.mrf.mxu3  ;;  %v3985_v42 = vpop.f32.mrf.mxu2 }
0x1529   :  { %v6606_v1 = vadd.f32 %v4050_v57, %v3937_v4 }
0x152d   :  { %4100 = vmatmul.f32.gmra.mxu3 %v3886_v59 }
0x1530   :  { %v4053_v60 = vpop.f32.mrf.mxu3  ;;  %v3988_v55 = vpop.f32.mrf.mxu2 }
0x1531   :  { %v6608_v11 = vadd.f32 %v4053_v60, %v3940_v16 }
0x1535   :  { %4103 = vmatmul.f32.gmra.mxu3 %v3888_v61 }
0x1538   :  { %v4056_v40 = vpop.f32.mrf.mxu3  ;;  %v3991_v8 = vpop.f32.mrf.mxu2 }
0x1539   :  { %v4057_v22 = vadd.f32 %v4056_v40, %v3943_v23 }
0x153d   :  { %4106 = vmatmul.f32.gmra.mxu3 %v3890_v26 }
0x1540   :  { %v4059_v12 = vpop.f32.mrf.mxu3 }
0x1541   :  { %v4060_v14 = vadd.f32 %v4059_v12, %v6600_v21 }
0x1545   :  { %4109 = vmatmul.f32.gmra.mxu3 %v3892_v54 }
0x1548   :  { %v4062_v18 = vpop.f32.mrf.mxu3 }
0x1549   :  { %v4063_v16 = vadd.f32 %v4062_v18, %v6604_v43  ;;  %v3994_v43 = vpop.f32.mrf.mxu2 }
0x154d   :  { %4112 = vmatmul.f32.gmra.mxu3 %v3894_v33 }
0x1550   :  { %v4065_v29 = vpop.f32.mrf.mxu3 }
0x1551   :  { %v4066_v19 = vadd.f32 %v4065_v29, %v3952_v10  ;;  %v3997_v59 = vpop.f32.mrf.mxu2  ;;  %v4136_v29 = vld [vmem:[#allocation2 + $0x1e20] sm:$0xff] }
0x1555   :  { %4115 = vmatmul.f32.gmra.mxu3 %v3896_v5 }
0x1558   :  { %v4068_v51 = vpop.f32.mrf.mxu3 }
0x1559   :  { %v4069_v30 = vadd.f32 %v4068_v51, %v3955_v50 }
0x155d   :  { %4118 = vmatmul.f32.gmra.mxu3 %v3898_v27 }
0x1560   :  { %v4071_v28 = vpop.f32.mrf.mxu3 }
0x1561   :  { %v4072_v4 = vadd.f32 %v4071_v28, %v3958_v36 }
0x1565   :  { %4121 = vmatmul.f32.gmra.mxu3 %v3900_v25 }
0x1568   :  { %v4074_v9 = vpop.f32.mrf.mxu3 }
0x1569   :  { %v4075_v37 = vadd.f32 %v4074_v9, %v3961_v24 }
0x156d   :  { %4124 = vmatmul.f32.gmra.mxu3 %v3902_v34  ;;  %v4133_v34 = vld [vmem:[#allocation2 + $0x1e08] sm:$0xff] }
0x1570   :  { %v4077_v58 = vpop.f32.mrf.mxu3 }
0x1571   :  { %v4078_v32 = vadd.f32 %v4077_v58, %v3964_v3  ;;  %v4140_v58 = vld [vmem:[#allocation2 + $0x1e40] sm:$0xff] }
0x1575   :  { %4127 = vmatmul.f32.gmra.mxu3 %v3904_v53  ;;  %v4135_v53 = vld [vmem:[#allocation2 + $0x1e18] sm:$0xff] }
0x1578   :  { %v4080_v39 = vpop.f32.mrf.mxu3 }
0x1579   :  { %v4081_v49 = vadd.f32 %v4080_v39, %v3967_v7  ;;  %v4138_v7 = vld [vmem:[#allocation2 + $0x1e30] sm:$0xff] }
0x157a   :  { %v4142_v39 = vld [vmem:[#allocation2 + $0x1e50] sm:$0xff] }
0x157b   :  { %4196 = vmatpush.msrb.mxu0 %v4081_v49  ;;  %v4137_v49 = vld [vmem:[#allocation2 + $0x1e28] sm:$0xff] }
0x157d   :  { %4197 = vmatpush.msrb.mxu0 %v4078_v32  ;;  %v4139_v32 = vld [vmem:[#allocation2 + $0x1e38] sm:$0xff] }
0x157f   :  { %4198 = vmatpush.msrb.mxu0 %v4075_v37  ;;  %v4141_v37 = vld [vmem:[#allocation2 + $0x1e48] sm:$0xff] }
0x1580   :  { %v6618_v2 = vpop.f32.mrf.mxu3 }
0x1581   :  { %4199 = vmatpush.msrb.mxu0 %v4072_v4  ;;  %v4084_v9 = vadd.f32 %v6618_v2, %v6610_v6  ;;  %v4148_v6 = vld [vmem:[#allocation2 + $0x1e80] sm:$0xff]  ;;  %v4150_v4 = vld [vmem:[#allocation2 + $0x1e90] sm:$0xff]  ;;  %v4145_v2 = vld [vmem:[#allocation2 + $0x1e68] sm:$0xff] }
0x1583   :  { %4200 = vmatpush.msrb.mxu0 %v4069_v30  ;;  %v4152_v30 = vld [vmem:[#allocation2 + $0x1ea0] sm:$0xff] }
0x1585   :  { %4201 = vmatpush.msrb.mxu0 %v4066_v19  ;;  %v4147_v19 = vld [vmem:[#allocation2 + $0x1e78] sm:$0xff] }
0x1587   :  { %4202 = vmatpush.msrb.mxu0 %v4063_v16  ;;  %v4154_v16 = vld [vmem:[#allocation2 + $0x1eb0] sm:$0xff] }
0x1588   :  { %v6622_v20 = vpop.f32.mrf.mxu3 }
0x1589   :  { %4203 = vmatpush.msrb.mxu0 %v4060_v14  ;;  %v4087_v25 = vadd.f32 %v6622_v20, %v6612_v52  ;;  %v4146_v52 = vld [vmem:[#allocation2 + $0x1e70] sm:$0xff]  ;;  %v4149_v14 = vld [vmem:[#allocation2 + $0x1e88] sm:$0xff]  ;;  %v4156_v20 = vld [vmem:[#allocation2 + $0x1ec0] sm:$0xff] }
0x158b   :  { %4204 = vmatpush.msrb.mxu0 %v4057_v22 }
0x158d   :  { %4205 = vmatpush.msrb.mxu0 %v6608_v11 }
0x158f   :  { %4206 = vmatpush.msrb.mxu0 %v6606_v1 }
0x1590   :  { %v6626_v23 = vpop.f32.mrf.mxu3 }
0x1591   :  { %4207 = vmatpush.msrb.mxu0 %v6602_v63  ;;  %v4000_v63 = vpop.f32.mrf.mxu2  ;;  %v4090_v28 = vadd.f32 %v6626_v23, %v6614_v47  ;;  %v4144_v47 = vld [vmem:[#allocation2 + $0x1e60] sm:$0xff]  ;;  %v4158_v23 = vld [vmem:[#allocation2 + $0x1ed0] sm:$0xff] }
0x1593   :  { %4208 = vmatpush.msrb.mxu0 %v6598_v38 }
0x1595   :  { %4209 = vmatpush.msrb.mxu0 %v6596_v46 }
0x1597   :  { %4210 = vmatpush.msrb.mxu0 %v6594_v15 }
0x1598   :  { %v4092_v45 = vpop.f32.mrf.mxu3 }
0x1599   :  { %4211 = vmatpush.msrb.mxu0 %v6592_v41  ;;  %v4003_v10 = vpop.f32.mrf.mxu2  ;;  %v4093_v27 = vadd.f32 %v4092_v45, %v6616_v62  ;;  %v4143_v62 = vld [vmem:[#allocation2 + $0x1e58] sm:$0xff]  ;;  %v4160_v45 = vld [vmem:[#allocation2 + $0x1ee0] sm:$0xff] }
0x159a   :  { %4212 = vmatmul.f32.vlgmr.msrb.gmra.mxu0 %v4132_v35  ;;  %v4169_v35 = vld [vmem:[#allocation2 + $0x1f28] sm:$0xff] }
0x15a0   :  { %v4095_v21 = vpop.f32.mrf.mxu3 }
0x15a1   :  { %v4006_v46 = vpop.f32.mrf.mxu2  ;;  %v4096_v51 = vadd.f32 %v4095_v21, %v3982_v48  ;;  %v4151_v48 = vld [vmem:[#allocation2 + $0x1e98] sm:$0xff]  ;;  %v4162_v21 = vld [vmem:[#allocation2 + $0x1ef0] sm:$0xff] }
0x15a2   :  { %4215 = vmatmul.f32.gmra.mxu0 %v4134_v17  ;;  %v4171_v17 = vld [vmem:[#allocation2 + $0x1f38] sm:$0xff] }
0x15a8   :  { %v4098_v56 = vpop.f32.mrf.mxu3 }
0x15a9   :  { %v4009_v15 = vpop.f32.mrf.mxu2  ;;  %v4099_v31 = vadd.f32 %v4098_v56, %v3985_v42  ;;  %v4153_v42 = vld [vmem:[#allocation2 + $0x1ea8] sm:$0xff] }
0x15aa   :  { %4218 = vmatmul.f32.gmra.mxu0 %v4136_v29 }
0x15b0   :  { %v4101_v57 = vpop.f32.mrf.mxu3 }
0x15b1   :  { %v4012_v40 = vpop.f32.mrf.mxu2  ;;  %v4102_v5 = vadd.f32 %v4101_v57, %v3988_v55  ;;  %v4155_v55 = vld [vmem:[#allocation2 + $0x1eb8] sm:$0xff]  ;;  %v4164_v57 = vld [vmem:[#allocation2 + $0x1f00] sm:$0xff] }
0x15b2   :  { %4221 = vmatmul.f32.gmra.mxu0 %v4138_v7  ;;  %v4182_v7 = vld [vmem:[#allocation2 + $0x1f90] sm:$0xff] }
0x15b8   :  { %v4104_v1 = vpop.f32.mrf.mxu3 }
0x15b9   :  { %v4015_v50 = vpop.f32.mrf.mxu2  ;;  %v4105_v3 = vadd.f32 %v4104_v1, %v3991_v8  ;;  %v4157_v8 = vld [vmem:[#allocation2 + $0x1ec8] sm:$0xff] }
0x15ba   :  { %4224 = vmatmul.f32.gmra.mxu0 %v4140_v58  ;;  %v4179_v58 = vld [vmem:[#allocation2 + $0x1f78] sm:$0xff] }
0x15c0   :  { %v4107_v13 = vpop.f32.mrf.mxu3 }
0x15c1   :  { %v4108_v0 = vadd.f32 %v4107_v13, %v3994_v43  ;;  %v4159_v43 = vld [vmem:[#allocation2 + $0x1ed8] sm:$0xff]  ;;  %v4161_v13 = vld [vmem:[#allocation2 + $0x1ee8] sm:$0xff] }
0x15c2   :  { %4227 = vmatmul.f32.gmra.mxu0 %v4142_v39  ;;  %v4186_v39 = vld [vmem:[#allocation2 + $0x1fb0] sm:$0xff] }
0x15c8   :  { %v4110_v60 = vpop.f32.mrf.mxu3 }
0x15c9   :  { %v4111_v33 = vadd.f32 %v4110_v60, %v3997_v59  ;;  %v4166_v59 = vld [vmem:[#allocation2 + $0x1f10] sm:$0xff]  ;;  %v4168_v60 = vld [vmem:[#allocation2 + $0x1f20] sm:$0xff] }
0x15ca   :  { %4230 = vmatmul.f32.gmra.mxu0 %v4144_v47  ;;  %v4181_v47 = vld [vmem:[#allocation2 + $0x1f88] sm:$0xff] }
0x15d0   :  { %v4113_v38 = vpop.f32.mrf.mxu3 }
0x15d1   :  { %v4114_v24 = vadd.f32 %v4113_v38, %v4000_v63 }
0x15d2   :  { %4233 = vmatmul.f32.gmra.mxu0 %v4146_v52  ;;  %v4188_v52 = vld [vmem:[#allocation2 + $0x1fc0] sm:$0xff] }
0x15d8   :  { %v4116_v11 = vpop.f32.mrf.mxu3 }
0x15d9   :  { %v4117_v18 = vadd.f32 %v4116_v11, %v4003_v10  ;;  %v4163_v10 = vld [vmem:[#allocation2 + $0x1ef8] sm:$0xff]  ;;  %v4170_v11 = vld [vmem:[#allocation2 + $0x1f30] sm:$0xff] }
0x15da   :  { %4236 = vmatmul.f32.gmra.mxu0 %v4148_v6  ;;  %v4183_v6 = vld [vmem:[#allocation2 + $0x1f98] sm:$0xff] }
0x15e0   :  { %v4119_v61 = vpop.f32.mrf.mxu3 }
0x15e1   :  { %v4120_v54 = vadd.f32 %v4119_v61, %v4006_v46  ;;  %v4165_v61 = vld [vmem:[#allocation2 + $0x1f08] sm:$0xff] }
0x15e2   :  { %4239 = vmatmul.f32.gmra.mxu0 %v4150_v4  ;;  %v4190_v4 = vld [vmem:[#allocation2 + $0x1fd0] sm:$0xff] }
0x15e8   :  { %v4122_v44 = vpop.f32.mrf.mxu3 }
0x15e9   :  { %v4123_v36 = vadd.f32 %v4122_v44, %v4009_v15  ;;  %v4172_v44 = vld [vmem:[#allocation2 + $0x1f40] sm:$0xff] }
0x15ea   :  { %4242 = vmatmul.f32.gmra.mxu0 %v4152_v30  ;;  %v4185_v30 = vld [vmem:[#allocation2 + $0x1fa8] sm:$0xff] }
0x15f0   :  { %v4125_v41 = vpop.f32.mrf.mxu3 }
0x15f1   :  { %v4126_v12 = vadd.f32 %v4125_v41, %v4012_v40  ;;  %v4167_v41 = vld [vmem:[#allocation2 + $0x1f18] sm:$0xff] }
0x15f2   :  { %4245 = vmatmul.f32.gmra.mxu0 %v4154_v16  ;;  %v4192_v16 = vld [vmem:[#allocation2 + $0x1fe0] sm:$0xff] }
0x15f8   :  { %v4128_v22 = vpop.f32.mrf.mxu3 }
0x15f9   :  { %v4129_v26 = vadd.f32 %v4128_v22, %v4015_v50  ;;  %v4174_v22 = vld [vmem:[#allocation2 + $0x1f50] sm:$0xff] }
0x15fa   :  { %4248 = vmatmul.f32.gmra.mxu0 %v4156_v20  ;;  %v4187_v20 = vld [vmem:[#allocation2 + $0x1fb8] sm:$0xff] }
0x15fb   :  { %4309 = vmatpush.msrb.mxu1 %v4129_v26 }
0x15fd   :  { %4310 = vmatpush.msrb.mxu1 %v4126_v12 }
0x15ff   :  { %4311 = vmatpush.msrb.mxu1 %v4123_v36  ;;  %v4176_v36 = vld [vmem:[#allocation2 + $0x1f60] sm:$0xff] }
0x1601   :  { %4312 = vmatpush.msrb.mxu1 %v4120_v54 }
0x1602   :  { %4251 = vmatmul.f32.gmra.mxu0 %v4158_v23  ;;  %v4194_v23 = vld [vmem:[#allocation2 + $0x1ff0] sm:$0xff] }
0x1603   :  { %4313 = vmatpush.msrb.mxu1 %v4117_v18 }
0x1605   :  { %4314 = vmatpush.msrb.mxu1 %v4114_v24  ;;  %v4178_v24 = vld [vmem:[#allocation2 + $0x1f70] sm:$0xff] }
0x1607   :  { %4315 = vmatpush.msrb.mxu1 %v4111_v33 }
0x1609   :  { %4316 = vmatpush.msrb.mxu1 %v4108_v0  ;;  %v4173_v0 = vld [vmem:[#allocation2 + $0x1f48] sm:$0xff] }
0x160a   :  { %4254 = vmatmul.f32.gmra.mxu0 %v4160_v45  ;;  %v4189_v45 = vld [vmem:[#allocation2 + $0x1fc8] sm:$0xff] }
0x160b   :  { %4317 = vmatpush.msrb.mxu1 %v4105_v3  ;;  %v4180_v3 = vld [vmem:[#allocation2 + $0x1f80] sm:$0xff] }
0x160d   :  { %4318 = vmatpush.msrb.mxu1 %v4102_v5 }
0x160f   :  { %4319 = vmatpush.msrb.mxu1 %v4099_v31  ;;  %v4175_v31 = vld [vmem:[#allocation2 + $0x1f58] sm:$0xff] }
0x1611   :  { %4320 = vmatpush.msrb.mxu1 %v4096_v51 }
0x1612   :  { %4257 = vmatmul.f32.gmra.mxu0 %v4162_v21 }
0x1613   :  { %4321 = vmatpush.msrb.mxu1 %v4093_v27 }
0x1615   :  { %4322 = vmatpush.msrb.mxu1 %v4090_v28  ;;  %v4177_v28 = vld [vmem:[#allocation2 + $0x1f68] sm:$0xff] }
0x1617   :  { %4323 = vmatpush.msrb.mxu1 %v4087_v25  ;;  %v6640_v56 = vpop.f32.mrf.mxu0 }
0x1619   :  { %4324 = vmatpush.msrb.mxu1 %v4084_v9  ;;  %v4184_v9 = vld [vmem:[#allocation2 + $0x1fa0] sm:$0xff] }
0x161a   :  { %4325 = vmatmul.f32.vlgmr.msrb.gmra.mxu1 %v4133_v34  ;;  %4260 = vmatmul.f32.gmra.mxu0 %v4164_v57 }
0x161f   :  { %v6642_v1 = vpop.f32.mrf.mxu0 }
0x1622   :  { %4328 = vmatmul.f32.gmra.mxu1 %v4135_v53  ;;  %4263 = vmatmul.f32.gmra.mxu0 %v4166_v59  ;;  %v4193_v59 = vld [vmem:[#allocation2 + $0x1fe8] sm:$0xff] }
0x1627   :  { %v6644_v63 = vpop.f32.mrf.mxu0 }
0x162a   :  { %4331 = vmatmul.f32.gmra.mxu1 %v4137_v49  ;;  %4266 = vmatmul.f32.gmra.mxu0 %v4168_v60 }
0x162f   :  { %v6646_v38 = vpop.f32.mrf.mxu0 }
0x1632   :  { %4334 = vmatmul.f32.gmra.mxu1 %v4139_v32  ;;  %4269 = vmatmul.f32.gmra.mxu0 %v4170_v11 }
0x1637   :  { %v6650_v15 = vpop.f32.mrf.mxu0 }
0x163a   :  { %4337 = vmatmul.f32.gmra.mxu1 %v4141_v37  ;;  %4272 = vmatmul.f32.gmra.mxu0 %v4172_v44 }
0x163f   :  { %v6654_v50 = vpop.f32.mrf.mxu0 }
0x1642   :  { %4340 = vmatmul.f32.gmra.mxu1 %v4143_v62  ;;  %4275 = vmatmul.f32.gmra.mxu0 %v4174_v22 }
0x1647   :  { %v6658_v12 = vpop.f32.mrf.mxu0 }
0x164a   :  { %4343 = vmatmul.f32.gmra.mxu1 %v4145_v2  ;;  %4278 = vmatmul.f32.gmra.mxu0 %v4176_v36 }
0x164f   :  { %v6662_v18 = vpop.f32.mrf.mxu0 }
0x1652   :  { %4346 = vmatmul.f32.gmra.mxu1 %v4147_v19  ;;  %4281 = vmatmul.f32.gmra.mxu0 %v4178_v24 }
0x1657   :  { %v6666_v29 = vpop.f32.mrf.mxu0 }
0x165a   :  { %4349 = vmatmul.f32.gmra.mxu1 %v4149_v14  ;;  %4284 = vmatmul.f32.gmra.mxu0 %v4180_v3 }
0x165f   :  { %v6670_v51 = vpop.f32.mrf.mxu0 }
0x1662   :  { %4352 = vmatmul.f32.gmra.mxu1 %v4151_v48  ;;  %4287 = vmatmul.f32.gmra.mxu0 %v4182_v7 }
0x1667   :  { %v4243_v25 = vpop.f32.mrf.mxu0 }
0x166a   :  { %4355 = vmatmul.f32.gmra.mxu1 %v4153_v42  ;;  %4290 = vmatmul.f32.gmra.mxu0 %v4184_v9 }
0x166f   :  { %v4246_v53 = vpop.f32.mrf.mxu0 }
0x1672   :  { %4358 = vmatmul.f32.gmra.mxu1 %v4155_v55  ;;  %4293 = vmatmul.f32.gmra.mxu0 %v4186_v39 }
0x1677   :  { %v4249_v32 = vpop.f32.mrf.mxu0 }
0x167a   :  { %4361 = vmatmul.f32.gmra.mxu1 %v4157_v8  ;;  %4296 = vmatmul.f32.gmra.mxu0 %v4188_v52  ;;  %v4191_v8 = vld [vmem:[#allocation2 + $0x1fd8] sm:$0xff] }
0x167f   :  { %v4252_v62 = vpop.f32.mrf.mxu0 }
0x1682   :  { %4364 = vmatmul.f32.gmra.mxu1 %v4159_v43  ;;  %4299 = vmatmul.f32.gmra.mxu0 %v4190_v4 }
0x1687   :  { %v4255_v19 = vpop.f32.mrf.mxu0 }
0x168a   :  { %4367 = vmatmul.f32.gmra.mxu1 %v4161_v13  ;;  %4302 = vmatmul.f32.gmra.mxu0 %v4192_v16 }
0x168f   :  { %v4258_v48 = vpop.f32.mrf.mxu0 }
0x1692   :  { %4370 = vmatmul.f32.gmra.mxu1 %v4163_v10  ;;  %4305 = vmatmul.f32.gmra.mxu0 %v4194_v23  ;;  %v4195_v10 = vld [vmem:[#allocation2 + $0x1ff8] sm:$0xff] }
0x1697   :  { %v6648_v46 = vpop.f32.mrf.mxu1  ;;  %v6676_v55 = vpop.f32.mrf.mxu0 }
0x169a   :  { %4373 = vmatmul.f32.gmra.mxu1 %v4165_v61 }
0x169f   :  { %v6652_v40 = vpop.f32.mrf.mxu1  ;;  %v6678_v57 = vpop.f32.mrf.mxu0 }
0x16a2   :  { %4376 = vmatmul.f32.gmra.mxu1 %v4167_v41 }
0x16a7   :  { %v6656_v26 = vpop.f32.mrf.mxu1  ;;  %v6680_v13 = vpop.f32.mrf.mxu0 }
0x16aa   :  { %4379 = vmatmul.f32.gmra.mxu1 %v4169_v35 }
0x16af   :  { %v6660_v54 = vpop.f32.mrf.mxu1  ;;  %v6682_v41 = vpop.f32.mrf.mxu0 }
0x16b0   :  { %v4336_v9 = vadd.f32 %v6660_v54, %v6646_v38 }
0x16b2   :  { %4382 = vmatmul.f32.gmra.mxu1 %v4171_v17 }
0x16b7   :  { %v6664_v33 = vpop.f32.mrf.mxu1 }
0x16ba   :  { %4385 = vmatmul.f32.gmra.mxu1 %v4173_v0 }
0x16bf   :  { %v6668_v5 = vpop.f32.mrf.mxu1 }
0x16c2   :  { %4388 = vmatmul.f32.gmra.mxu1 %v4175_v31  ;;  %v6690_v31 = vpop.f32.mrf.mxu0 }
0x16c7   :  { %v6672_v27 = vpop.f32.mrf.mxu1 }
0x16ca   :  { %4391 = vmatmul.f32.gmra.mxu1 %v4177_v28  ;;  %v4345_v28 = vadd.f32 %v6672_v27, %v6658_v12  ;;  %v4330_v12 = vadd.f32 %v6652_v40, %v6642_v1 }
0x16cf   :  { %v6674_v34 = vpop.f32.mrf.mxu1 }
0x16d0   :  { %v4348_v7 = vadd.f32 %v6674_v34, %v6662_v18  ;;  %v4276_v18 = vpop.f32.mrf.mxu0  ;;  %v4333_v34 = vadd.f32 %v6656_v26, %v6644_v63 }
0x16d2   :  { %4394 = vmatmul.f32.gmra.mxu1 %v4179_v58 }
0x16d7   :  { %v4350_v49 = vpop.f32.mrf.mxu1 }
0x16d8   :  { %v4351_v0 = vadd.f32 %v4350_v49, %v6666_v29  ;;  %v4339_v29 = vadd.f32 %v6664_v33, %v6650_v15  ;;  %v4279_v33 = vpop.f32.mrf.mxu0 }
0x16da   :  { %4397 = vmatmul.f32.gmra.mxu1 %v4181_v47 }
0x16df   :  { %v4353_v37 = vpop.f32.mrf.mxu1 }
0x16e0   :  { %v4354_v24 = vadd.f32 %v4353_v37, %v6670_v51  ;;  %v4282_v27 = vpop.f32.mrf.mxu0 }
0x16e2   :  { %4400 = vmatmul.f32.gmra.mxu1 %v4183_v6 }
0x16e7   :  { %v4356_v2 = vpop.f32.mrf.mxu1 }
0x16e8   :  { %v4357_v17 = vadd.f32 %v4356_v2, %v4243_v25  ;;  %v4342_v25 = vadd.f32 %v6668_v5, %v6654_v50  ;;  %v4327_v50 = vadd.f32 %v6648_v46, %v6640_v56  ;;  %v4285_v58 = vpop.f32.mrf.mxu0 }
0x16ea   :  { %4403 = vmatmul.f32.gmra.mxu1 %v4185_v30  ;;  %v4423_v30 = vld [vmem:[#allocation2 + $0x2000] sm:$0xff] }
0x16ef   :  { %v4359_v14 = vpop.f32.mrf.mxu1 }
0x16f0   :  { %v4360_v36 = vadd.f32 %v4359_v14, %v4246_v53  ;;  %v4288_v39 = vpop.f32.mrf.mxu0 }
0x16f2   :  { %4406 = vmatmul.f32.gmra.mxu1 %v4187_v20  ;;  %v4425_v20 = vld [vmem:[#allocation2 + $0x2010] sm:$0xff] }
0x16f7   :  { %v4362_v42 = vpop.f32.mrf.mxu1 }
0x16f8   :  { %v4363_v22 = vadd.f32 %v4362_v42, %v4249_v32  ;;  %v4291_v26 = vpop.f32.mrf.mxu0 }
0x16fa   :  { %4409 = vmatmul.f32.gmra.mxu1 %v4189_v45 }
0x16ff   :  { %v4365_v21 = vpop.f32.mrf.mxu1 }
0x1700   :  { %v4366_v44 = vadd.f32 %v4365_v21, %v4252_v62  ;;  %v4294_v47 = vpop.f32.mrf.mxu0  ;;  %v4427_v21 = vld [vmem:[#allocation2 + $0x2020] sm:$0xff] }
0x1702   :  { %4412 = vmatmul.f32.gmra.mxu1 %v4191_v8 }
0x1707   :  { %v4368_v43 = vpop.f32.mrf.mxu1 }
0x1708   :  { %v4369_v61 = vadd.f32 %v4368_v43, %v4255_v19  ;;  %v4297_v32 = vpop.f32.mrf.mxu0 }
0x170a   :  { %4415 = vmatmul.f32.gmra.mxu1 %v4193_v59 }
0x170f   :  { %v4371_v60 = vpop.f32.mrf.mxu1 }
0x1710   :  { %v4372_v11 = vadd.f32 %v4371_v60, %v4258_v48  ;;  %v4300_v56 = vpop.f32.mrf.mxu0 }
0x1712   :  { %4418 = vmatmul.f32.gmra.mxu1 %v4195_v10  ;;  %4487 = vmatpush.msra.mxu2 %v4372_v11  ;;  %v4429_v10 = vld [vmem:[#allocation2 + $0x2030] sm:$0xff] }
0x1714   :  { %4488 = vmatpush.msra.mxu2 %v4369_v61 }
0x1716   :  { %4489 = vmatpush.msra.mxu2 %v4366_v44 }
0x1717   :  { %v6684_v35 = vpop.f32.mrf.mxu1 }
0x1718   :  { %4490 = vmatpush.msra.mxu2 %v4363_v22  ;;  %v4303_v37 = vpop.f32.mrf.mxu0  ;;  %v4375_v22 = vadd.f32 %v6684_v35, %v6676_v55  ;;  %v4439_v55 = vld [vmem:[#allocation2 + $0x2080] sm:$0xff]  ;;  %v4434_v35 = vld [vmem:[#allocation2 + $0x2058] sm:$0xff] }
0x171a   :  { %4491 = vmatpush.msra.mxu2 %v4360_v36  ;;  %v4424_v36 = vld [vmem:[#allocation2 + $0x2008] sm:$0xff] }
0x171c   :  { %4492 = vmatpush.msra.mxu2 %v4357_v17  ;;  %v4431_v17 = vld [vmem:[#allocation2 + $0x2040] sm:$0xff] }
0x171e   :  { %4493 = vmatpush.msra.mxu2 %v4354_v24  ;;  %v4433_v24 = vld [vmem:[#allocation2 + $0x2050] sm:$0xff] }
0x171f   :  { %v6688_v3 = vpop.f32.mrf.mxu1 }
0x1720   :  { %4494 = vmatpush.msra.mxu2 %v4351_v0  ;;  %v4306_v62 = vpop.f32.mrf.mxu0  ;;  %v4378_v44 = vadd.f32 %v6688_v3, %v6678_v57  ;;  %v4428_v0 = vld [vmem:[#allocation2 + $0x2028] sm:$0xff]  ;;  %v4437_v57 = vld [vmem:[#allocation2 + $0x2070] sm:$0xff] }
0x1721   :  { %v4432_v3 = vld [vmem:[#allocation2 + $0x2048] sm:$0xff] }
0x1722   :  { %4495 = vmatpush.msra.mxu2 %v4348_v7  ;;  %v4441_v7 = vld [vmem:[#allocation2 + $0x2090] sm:$0xff] }
0x1724   :  { %4496 = vmatpush.msra.mxu2 %v4345_v28  ;;  %v4436_v28 = vld [vmem:[#allocation2 + $0x2068] sm:$0xff] }
0x1726   :  { %4497 = vmatpush.msra.mxu2 %v4342_v25  ;;  %v4443_v25 = vld [vmem:[#allocation2 + $0x20a0] sm:$0xff] }
0x1727   :  { %v6700_v51 = vpop.f32.mrf.mxu1 }
0x1728   :  { %4498 = vmatpush.msra.mxu2 %v4339_v29  ;;  %v4381_v61 = vadd.f32 %v6700_v51, %v6680_v13  ;;  %v4435_v13 = vld [vmem:[#allocation2 + $0x2060] sm:$0xff]  ;;  %v4438_v29 = vld [vmem:[#allocation2 + $0x2078] sm:$0xff]  ;;  %v4445_v51 = vld [vmem:[#allocation2 + $0x20b0] sm:$0xff] }
0x172a   :  { %4499 = vmatpush.msra.mxu2 %v4336_v9  ;;  %v4440_v9 = vld [vmem:[#allocation2 + $0x2088] sm:$0xff] }
0x172c   :  { %4500 = vmatpush.msra.mxu2 %v4333_v34  ;;  %v4442_v34 = vld [vmem:[#allocation2 + $0x2098] sm:$0xff] }
0x172e   :  { %4501 = vmatpush.msra.mxu2 %v4330_v12  ;;  %v4449_v12 = vld [vmem:[#allocation2 + $0x20d0] sm:$0xff] }
0x172f   :  { %v4383_v15 = vpop.f32.mrf.mxu1 }
0x1730   :  { %4502 = vmatpush.msra.mxu2 %v4327_v50  ;;  %v4384_v11 = vadd.f32 %v4383_v15, %v6682_v41  ;;  %v4426_v41 = vld [vmem:[#allocation2 + $0x2018] sm:$0xff]  ;;  %v4444_v50 = vld [vmem:[#allocation2 + $0x20a8] sm:$0xff]  ;;  %v4451_v15 = vld [vmem:[#allocation2 + $0x20e0] sm:$0xff] }
0x1731   :  { %4503 = vmatmul.f32.vlgmr.msra.gmra.mxu2 %v4423_v30 }
0x1737   :  { %v4386_v5 = vpop.f32.mrf.mxu1 }
0x1738   :  { %v4387_v60 = vadd.f32 %v4386_v5, %v6690_v31  ;;  %v4430_v31 = vld [vmem:[#allocation2 + $0x2038] sm:$0xff]  ;;  %v4453_v5 = vld [vmem:[#allocation2 + $0x20f0] sm:$0xff] }
0x1739   :  { %4506 = vmatmul.f32.gmra.mxu2 %v4425_v20 }
0x173f   :  { %v4389_v38 = vpop.f32.mrf.mxu1 }
0x1740   :  { %v4390_v59 = vadd.f32 %v4389_v38, %v4276_v18  ;;  %v4447_v18 = vld [vmem:[#allocation2 + $0x20c0] sm:$0xff] }
0x1741   :  { %4509 = vmatmul.f32.gmra.mxu2 %v4427_v21  ;;  %v4455_v38 = vld [vmem:[#allocation2 + $0x2100] sm:$0xff] }
0x1747   :  { %v4392_v54 = vpop.f32.mrf.mxu1 }
0x1748   :  { %v4393_v43 = vadd.f32 %v4392_v54, %v4279_v33  ;;  %v4446_v33 = vld [vmem:[#allocation2 + $0x20b8] sm:$0xff] }
0x1749   :  { %4512 = vmatmul.f32.gmra.mxu2 %v4429_v10 }
0x174f   :  { %v4395_v53 = vpop.f32.mrf.mxu1 }
0x1750   :  { %v4396_v8 = vadd.f32 %v4395_v53, %v4282_v27  ;;  %v4448_v27 = vld [vmem:[#allocation2 + $0x20c8] sm:$0xff]  ;;  %v4457_v53 = vld [vmem:[#allocation2 + $0x2110] sm:$0xff] }
0x1751   :  { %4515 = vmatmul.f32.gmra.mxu2 %v4431_v17 }
0x1757   :  { %v4398_v63 = vpop.f32.mrf.mxu1 }
0x1758   :  { %v4399_v45 = vadd.f32 %v4398_v63, %v4285_v58  ;;  %v4450_v58 = vld [vmem:[#allocation2 + $0x20d8] sm:$0xff]  ;;  %v4452_v63 = vld [vmem:[#allocation2 + $0x20e8] sm:$0xff] }
0x1759   :  { %4518 = vmatmul.f32.gmra.mxu2 %v4433_v24  ;;  %v4475_v24 = vld [vmem:[#allocation2 + $0x21a0] sm:$0xff] }
0x175f   :  { %v4401_v49 = vpop.f32.mrf.mxu1 }
0x1760   :  { %v4402_v42 = vadd.f32 %v4401_v49, %v4288_v39 }
0x1761   :  { %4521 = vmatmul.f32.gmra.mxu2 %v4435_v13 }
0x1767   :  { %v4404_v1 = vpop.f32.mrf.mxu1 }
0x1768   :  { %v4405_v23 = vadd.f32 %v4404_v1, %v4291_v26  ;;  %v4459_v26 = vld [vmem:[#allocation2 + $0x2120] sm:$0xff]  ;;  %v4461_v1 = vld [vmem:[#allocation2 + $0x2130] sm:$0xff] }
0x1769   :  { %4524 = vmatmul.f32.gmra.mxu2 %v4437_v57  ;;  %v4470_v57 = vld [vmem:[#allocation2 + $0x2178] sm:$0xff] }
0x176f   :  { %v4407_v40 = vpop.f32.mrf.mxu1 }
0x1770   :  { %v4408_v48 = vadd.f32 %v4407_v40, %v4294_v47  ;;  %v4454_v47 = vld [vmem:[#allocation2 + $0x20f8] sm:$0xff] }
0x1771   :  { %4527 = vmatmul.f32.gmra.mxu2 %v4439_v55 }
0x1777   :  { %v4410_v52 = vpop.f32.mrf.mxu1 }
0x1778   :  { %v4411_v14 = vadd.f32 %v4410_v52, %v4297_v32  ;;  %v4456_v32 = vld [vmem:[#allocation2 + $0x2108] sm:$0xff]  ;;  %v4463_v52 = vld [vmem:[#allocation2 + $0x2140] sm:$0xff] }
0x1779   :  { %4530 = vmatmul.f32.gmra.mxu2 %v4441_v7 }
0x177f   :  { %v4413_v46 = vpop.f32.mrf.mxu1 }
0x1780   :  { %v4414_v16 = vadd.f32 %v4413_v46, %v4300_v56 }
0x1781   :  { %4533 = vmatmul.f32.gmra.mxu2 %v4443_v25  ;;  %v4479_v25 = vld [vmem:[#allocation2 + $0x21c0] sm:$0xff] }
0x1787   :  { %v4416_v6 = vpop.f32.mrf.mxu1 }
0x1788   :  { %v4417_v19 = vadd.f32 %v4416_v6, %v4303_v37  ;;  %v4458_v6 = vld [vmem:[#allocation2 + $0x2118] sm:$0xff] }
0x1789   :  { %4536 = vmatmul.f32.gmra.mxu2 %v4445_v51 }
0x178f   :  { %v4419_v4 = vpop.f32.mrf.mxu1 }
0x1790   :  { %v4420_v2 = vadd.f32 %v4419_v4, %v4306_v62  ;;  %v4465_v62 = vld [vmem:[#allocation2 + $0x2150] sm:$0xff] }
0x1791   :  { %4539 = vmatmul.f32.gmra.mxu2 %v4447_v18  ;;  %v4481_v18 = vld [vmem:[#allocation2 + $0x21d0] sm:$0xff] }
0x1792   :  { %4600 = vmatpush.msra.mxu3 %v4420_v2 }
0x1794   :  { %4601 = vmatpush.msra.mxu3 %v4417_v19  ;;  %v4460_v19 = vld [vmem:[#allocation2 + $0x2128] sm:$0xff] }
0x1796   :  { %4602 = vmatpush.msra.mxu3 %v4414_v16  ;;  %v4467_v16 = vld [vmem:[#allocation2 + $0x2160] sm:$0xff] }
0x1798   :  { %4603 = vmatpush.msra.mxu3 %v4411_v14 }
0x1799   :  { %4542 = vmatmul.f32.gmra.mxu2 %v4449_v12 }
0x179a   :  { %4604 = vmatpush.msra.mxu3 %v4408_v48 }
0x179c   :  { %4605 = vmatpush.msra.mxu3 %v4405_v23  ;;  %v4462_v23 = vld [vmem:[#allocation2 + $0x2138] sm:$0xff] }
0x179e   :  { %4606 = vmatpush.msra.mxu3 %v4402_v42  ;;  %v4469_v42 = vld [vmem:[#allocation2 + $0x2170] sm:$0xff] }
0x17a0   :  { %4607 = vmatpush.msra.mxu3 %v4399_v45 }
0x17a1   :  { %4545 = vmatmul.f32.gmra.mxu2 %v4451_v15  ;;  %v4483_v15 = vld [vmem:[#allocation2 + $0x21e0] sm:$0xff] }
0x17a2   :  { %4608 = vmatpush.msra.mxu3 %v4396_v8 }
0x17a4   :  { %4609 = vmatpush.msra.mxu3 %v4393_v43  ;;  %v4464_v43 = vld [vmem:[#allocation2 + $0x2148] sm:$0xff] }
0x17a6   :  { %4610 = vmatpush.msra.mxu3 %v4390_v59  ;;  %v4471_v59 = vld [vmem:[#allocation2 + $0x2180] sm:$0xff] }
0x17a8   :  { %4611 = vmatpush.msra.mxu3 %v4387_v60 }
0x17a9   :  { %4548 = vmatmul.f32.gmra.mxu2 %v4453_v5 }
0x17aa   :  { %4612 = vmatpush.msra.mxu3 %v4384_v11 }
0x17ac   :  { %4613 = vmatpush.msra.mxu3 %v4381_v61  ;;  %v4466_v61 = vld [vmem:[#allocation2 + $0x2158] sm:$0xff] }
0x17ae   :  { %4614 = vmatpush.msra.mxu3 %v4378_v44  ;;  %v4473_v44 = vld [vmem:[#allocation2 + $0x2190] sm:$0xff] }
0x17b0   :  { %4615 = vmatpush.msra.mxu3 %v4375_v22 }
0x17b1   :  { %4616 = vmatmul.f32.vlgmr.msra.gmra.mxu3 %v4424_v36  ;;  %4551 = vmatmul.f32.gmra.mxu2 %v4455_v38  ;;  %v4485_v38 = vld [vmem:[#allocation2 + $0x21f0] sm:$0xff] }
0x17b4   :  { %v4504_v54 = vpop.f32.mrf.mxu2 }
0x17b9   :  { %4619 = vmatmul.f32.gmra.mxu3 %v4426_v41  ;;  %4554 = vmatmul.f32.gmra.mxu2 %v4457_v53  ;;  %v4468_v41 = vld [vmem:[#allocation2 + $0x2168] sm:$0xff] }
0x17ba   :  { %v4480_v53 = vld [vmem:[#allocation2 + $0x21c8] sm:$0xff] }
0x17bc   :  { %v4507_v39 = vpop.f32.mrf.mxu2 }
0x17c1   :  { %4622 = vmatmul.f32.gmra.mxu3 %v4428_v0  ;;  %4557 = vmatmul.f32.gmra.mxu2 %v4459_v26  ;;  %v4482_v26 = vld [vmem:[#allocation2 + $0x21d8] sm:$0xff] }
0x17c4   :  { %v4510_v49 = vpop.f32.mrf.mxu2 }
0x17c9   :  { %4625 = vmatmul.f32.gmra.mxu3 %v4430_v31  ;;  %4560 = vmatmul.f32.gmra.mxu2 %v4461_v1 }
0x17cc   :  { %v4513_v40 = vpop.f32.mrf.mxu2 }
0x17d1   :  { %4628 = vmatmul.f32.gmra.mxu3 %v4432_v3  ;;  %4563 = vmatmul.f32.gmra.mxu2 %v4463_v52  ;;  %v4477_v3 = vld [vmem:[#allocation2 + $0x21b0] sm:$0xff] }
0x17d4   :  { %v4516_v46 = vpop.f32.mrf.mxu2 }
0x17d9   :  { %4631 = vmatmul.f32.gmra.mxu3 %v4434_v35  ;;  %4566 = vmatmul.f32.gmra.mxu2 %v4465_v62 }
0x17dc   :  { %v4519_v2 = vpop.f32.mrf.mxu2 }
0x17e1   :  { %4634 = vmatmul.f32.gmra.mxu3 %v4436_v28  ;;  %4569 = vmatmul.f32.gmra.mxu2 %v4467_v16  ;;  %v4472_v28 = vld [vmem:[#allocation2 + $0x2188] sm:$0xff] }
0x17e4   :  { %v4522_v20 = vpop.f32.mrf.mxu2 }
0x17e9   :  { %4637 = vmatmul.f32.gmra.mxu3 %v4438_v29  ;;  %4572 = vmatmul.f32.gmra.mxu2 %v4469_v42 }
0x17ec   :  { %v4525_v21 = vpop.f32.mrf.mxu2 }
0x17f1   :  { %4640 = vmatmul.f32.gmra.mxu3 %v4440_v9  ;;  %4575 = vmatmul.f32.gmra.mxu2 %v4471_v59  ;;  %v4474_v9 = vld [vmem:[#allocation2 + $0x2198] sm:$0xff] }
0x17f4   :  { %v6726_v10 = vpop.f32.mrf.mxu2 }
0x17f9   :  { %4643 = vmatmul.f32.gmra.mxu3 %v4442_v34  ;;  %4578 = vmatmul.f32.gmra.mxu2 %v4473_v44 }
0x17fc   :  { %v6730_v36 = vpop.f32.mrf.mxu2 }
0x1801   :  { %4646 = vmatmul.f32.gmra.mxu3 %v4444_v50  ;;  %4581 = vmatmul.f32.gmra.mxu2 %v4475_v24  ;;  %v4476_v50 = vld [vmem:[#allocation2 + $0x21a8] sm:$0xff] }
0x1804   :  { %v4534_v13 = vpop.f32.mrf.mxu2 }
0x1809   :  { %4649 = vmatmul.f32.gmra.mxu3 %v4446_v33  ;;  %4584 = vmatmul.f32.gmra.mxu2 %v4477_v3 }
0x180c   :  { %v4537_v35 = vpop.f32.mrf.mxu2 }
0x1811   :  { %4652 = vmatmul.f32.gmra.mxu3 %v4448_v27  ;;  %4587 = vmatmul.f32.gmra.mxu2 %v4479_v25  ;;  %v4478_v27 = vld [vmem:[#allocation2 + $0x21b8] sm:$0xff]  ;;  %v4714_v25 = vld [vmem:[#allocation2 + $0x2200] sm:$0xff] }
0x1814   :  { %v4540_v51 = vpop.f32.mrf.mxu2 }
0x1819   :  { %4655 = vmatmul.f32.gmra.mxu3 %v4450_v58  ;;  %4590 = vmatmul.f32.gmra.mxu2 %v4481_v18  ;;  %v4716_v18 = vld [vmem:[#allocation2 + $0x2210] sm:$0xff] }
0x181c   :  { %v4543_v12 = vpop.f32.mrf.mxu2 }
0x1821   :  { %4658 = vmatmul.f32.gmra.mxu3 %v4452_v63  ;;  %4593 = vmatmul.f32.gmra.mxu2 %v4483_v15 }
0x1824   :  { %v4546_v5 = vpop.f32.mrf.mxu2 }
0x1829   :  { %4661 = vmatmul.f32.gmra.mxu3 %v4454_v47  ;;  %4596 = vmatmul.f32.gmra.mxu2 %v4485_v38  ;;  %v4484_v47 = vld [vmem:[#allocation2 + $0x21e8] sm:$0xff] }
0x182c   :  { %v4549_v58 = vpop.f32.mrf.mxu2 }
0x1831   :  { %4664 = vmatmul.f32.gmra.mxu3 %v4456_v32  ;;  %v4486_v32 = vld [vmem:[#allocation2 + $0x21f8] sm:$0xff] }
0x1834   :  { %v4617_v56 = vpop.f32.mrf.mxu3  ;;  %v6736_v63 = vpop.f32.mrf.mxu2 }
0x1835   :  { %v6718_v37 = vadd.f32 %v4617_v56, %v4504_v54 }
0x1839   :  { %4667 = vmatmul.f32.gmra.mxu3 %v4458_v6 }
0x183c   :  { %v4620_v4 = vpop.f32.mrf.mxu3  ;;  %v6738_v1 = vpop.f32.mrf.mxu2 }
0x183d   :  { %v6720_v30 = vadd.f32 %v4620_v4, %v4507_v39 }
0x1841   :  { %4670 = vmatmul.f32.gmra.mxu3 %v4460_v19 }
0x1844   :  { %v4623_v14 = vpop.f32.mrf.mxu3  ;;  %v6740_v52 = vpop.f32.mrf.mxu2 }
0x1845   :  { %v6722_v48 = vadd.f32 %v4623_v14, %v4510_v49 }
0x1849   :  { %4673 = vmatmul.f32.gmra.mxu3 %v4462_v23 }
0x184c   :  { %v4626_v45 = vpop.f32.mrf.mxu3  ;;  %v6742_v4 = vpop.f32.mrf.mxu2 }
0x184d   :  { %v6724_v8 = vadd.f32 %v4626_v45, %v4513_v40 }
0x1851   :  { %4676 = vmatmul.f32.gmra.mxu3 %v4464_v43 }
0x1854   :  { %v4629_v60 = vpop.f32.mrf.mxu3  ;;  %v4564_v45 = vpop.f32.mrf.mxu2 }
0x1855   :  { %v6728_v11 = vadd.f32 %v4629_v60, %v4516_v46 }
0x1859   :  { %4679 = vmatmul.f32.gmra.mxu3 %v4466_v61 }
0x185c   :  { %v4632_v22 = vpop.f32.mrf.mxu3  ;;  %v4567_v43 = vpop.f32.mrf.mxu2 }
0x185d   :  { %v6732_v17 = vadd.f32 %v4632_v22, %v4519_v2 }
0x1861   :  { %4682 = vmatmul.f32.gmra.mxu3 %v4468_v41 }
0x1864   :  { %v4635_v0 = vpop.f32.mrf.mxu3  ;;  %v4570_v60 = vpop.f32.mrf.mxu2 }
0x1865   :  { %v6734_v31 = vadd.f32 %v4635_v0, %v4522_v20 }
0x1869   :  { %4685 = vmatmul.f32.gmra.mxu3 %v4470_v57 }
0x186c   :  { %v4638_v55 = vpop.f32.mrf.mxu3  ;;  %v4573_v61 = vpop.f32.mrf.mxu2 }
0x186d   :  { %v4639_v7 = vadd.f32 %v4638_v55, %v4525_v21 }
0x1871   :  { %4688 = vmatmul.f32.gmra.mxu3 %v4472_v28 }
0x1874   :  { %v4641_v29 = vpop.f32.mrf.mxu3 }
0x1875   :  { %v4642_v23 = vadd.f32 %v4641_v29, %v6726_v10 }
0x1879   :  { %4691 = vmatmul.f32.gmra.mxu3 %v4474_v9 }
0x187c   :  { %v4644_v34 = vpop.f32.mrf.mxu3 }
0x187d   :  { %v4645_v20 = vadd.f32 %v4644_v34, %v6730_v36  ;;  %v4576_v36 = vpop.f32.mrf.mxu2 }
0x1881   :  { %4694 = vmatmul.f32.gmra.mxu3 %v4476_v50 }
0x1884   :  { %v4647_v33 = vpop.f32.mrf.mxu3 }
0x1885   :  { %v4648_v14 = vadd.f32 %v4647_v33, %v4534_v13  ;;  %v4579_v41 = vpop.f32.mrf.mxu2  ;;  %v4718_v33 = vld [vmem:[#allocation2 + $0x2220] sm:$0xff] }
0x1889   :  { %4697 = vmatmul.f32.gmra.mxu3 %v4478_v27 }
0x188c   :  { %v4650_v54 = vpop.f32.mrf.mxu3 }
0x188d   :  { %v4651_v16 = vadd.f32 %v4650_v54, %v4537_v35 }
0x1891   :  { %4700 = vmatmul.f32.gmra.mxu3 %v4480_v53 }
0x1894   :  { %v4653_v39 = vpop.f32.mrf.mxu3 }
0x1895   :  { %v4654_v2 = vadd.f32 %v4653_v39, %v4540_v51 }
0x1899   :  { %4703 = vmatmul.f32.gmra.mxu3 %v4482_v26 }
0x189c   :  { %v4656_v49 = vpop.f32.mrf.mxu3 }
0x189d   :  { %v4657_v62 = vadd.f32 %v4656_v49, %v4543_v12 }
0x18a1   :  { %4706 = vmatmul.f32.gmra.mxu3 %v4484_v47  ;;  %v4715_v47 = vld [vmem:[#allocation2 + $0x2208] sm:$0xff] }
0x18a4   :  { %v4659_v40 = vpop.f32.mrf.mxu3 }
0x18a5   :  { %v4660_v6 = vadd.f32 %v4659_v40, %v4546_v5  ;;  %v4722_v40 = vld [vmem:[#allocation2 + $0x2240] sm:$0xff] }
0x18a9   :  { %4709 = vmatmul.f32.gmra.mxu3 %v4486_v32  ;;  %v4717_v32 = vld [vmem:[#allocation2 + $0x2218] sm:$0xff] }
0x18ac   :  { %v4662_v56 = vpop.f32.mrf.mxu3 }
0x18ad   :  { %v4663_v46 = vadd.f32 %v4662_v56, %v4549_v58  ;;  %v4720_v58 = vld [vmem:[#allocation2 + $0x2230] sm:$0xff] }
0x18ae   :  { %v4724_v56 = vld [vmem:[#allocation2 + $0x2250] sm:$0xff] }
0x18af   :  { %4778 = vmatpush.msra.mxu0 %v4663_v46  ;;  %v4719_v46 = vld [vmem:[#allocation2 + $0x2228] sm:$0xff] }
0x18b1   :  { %4779 = vmatpush.msra.mxu0 %v4660_v6  ;;  %v4721_v6 = vld [vmem:[#allocation2 + $0x2238] sm:$0xff] }
0x18b3   :  { %4780 = vmatpush.msra.mxu0 %v4657_v62  ;;  %v4723_v62 = vld [vmem:[#allocation2 + $0x2248] sm:$0xff] }
0x18b4   :  { %v6744_v19 = vpop.f32.mrf.mxu3 }
0x18b5   :  { %4781 = vmatpush.msra.mxu0 %v4654_v2  ;;  %v4666_v49 = vadd.f32 %v6744_v19, %v6736_v63  ;;  %v4730_v63 = vld [vmem:[#allocation2 + $0x2280] sm:$0xff]  ;;  %v4732_v2 = vld [vmem:[#allocation2 + $0x2290] sm:$0xff]  ;;  %v4727_v19 = vld [vmem:[#allocation2 + $0x2268] sm:$0xff] }
0x18b7   :  { %4782 = vmatpush.msra.mxu0 %v4651_v16  ;;  %v4734_v16 = vld [vmem:[#allocation2 + $0x22a0] sm:$0xff] }
0x18b9   :  { %4783 = vmatpush.msra.mxu0 %v4648_v14  ;;  %v4729_v14 = vld [vmem:[#allocation2 + $0x2278] sm:$0xff] }
0x18bb   :  { %4784 = vmatpush.msra.mxu0 %v4645_v20  ;;  %v4736_v20 = vld [vmem:[#allocation2 + $0x22b0] sm:$0xff] }
0x18bc   :  { %v6748_v42 = vpop.f32.mrf.mxu3 }
0x18bd   :  { %4785 = vmatpush.msra.mxu0 %v4642_v23  ;;  %v4669_v26 = vadd.f32 %v6748_v42, %v6738_v1  ;;  %v4728_v1 = vld [vmem:[#allocation2 + $0x2270] sm:$0xff]  ;;  %v4731_v23 = vld [vmem:[#allocation2 + $0x2288] sm:$0xff]  ;;  %v4738_v42 = vld [vmem:[#allocation2 + $0x22c0] sm:$0xff] }
0x18bf   :  { %4786 = vmatpush.msra.mxu0 %v4639_v7 }
0x18c1   :  { %4787 = vmatpush.msra.mxu0 %v6734_v31 }
0x18c3   :  { %4788 = vmatpush.msra.mxu0 %v6732_v17 }
0x18c4   :  { %v6752_v21 = vpop.f32.mrf.mxu3 }
0x18c5   :  { %4789 = vmatpush.msra.mxu0 %v6728_v11  ;;  %v4582_v11 = vpop.f32.mrf.mxu2  ;;  %v4672_v39 = vadd.f32 %v6752_v21, %v6740_v52  ;;  %v4726_v52 = vld [vmem:[#allocation2 + $0x2260] sm:$0xff]  ;;  %v4740_v21 = vld [vmem:[#allocation2 + $0x22d0] sm:$0xff] }
0x18c7   :  { %4790 = vmatpush.msra.mxu0 %v6724_v8 }
0x18c9   :  { %4791 = vmatpush.msra.mxu0 %v6722_v48 }
0x18cb   :  { %4792 = vmatpush.msra.mxu0 %v6720_v30 }
0x18cc   :  { %v4674_v59 = vpop.f32.mrf.mxu3 }
0x18cd   :  { %4793 = vmatpush.msra.mxu0 %v6718_v37  ;;  %v4585_v13 = vpop.f32.mrf.mxu2  ;;  %v4675_v53 = vadd.f32 %v4674_v59, %v6742_v4  ;;  %v4725_v4 = vld [vmem:[#allocation2 + $0x2258] sm:$0xff]  ;;  %v4742_v59 = vld [vmem:[#allocation2 + $0x22e0] sm:$0xff] }
0x18ce   :  { %4794 = vmatmul.f32.vlgmr.msra.gmra.mxu0 %v4714_v25  ;;  %v4751_v25 = vld [vmem:[#allocation2 + $0x2328] sm:$0xff] }
0x18d4   :  { %v4677_v10 = vpop.f32.mrf.mxu3 }
0x18d5   :  { %v4588_v48 = vpop.f32.mrf.mxu2  ;;  %v4678_v54 = vadd.f32 %v4677_v10, %v4564_v45  ;;  %v4733_v45 = vld [vmem:[#allocation2 + $0x2298] sm:$0xff]  ;;  %v4744_v10 = vld [vmem:[#allocation2 + $0x22f0] sm:$0xff] }
0x18d6   :  { %4797 = vmatmul.f32.gmra.mxu0 %v4716_v18  ;;  %v4753_v18 = vld [vmem:[#allocation2 + $0x2338] sm:$0xff] }
0x18dc   :  { %v4680_v44 = vpop.f32.mrf.mxu3 }
0x18dd   :  { %v4591_v30 = vpop.f32.mrf.mxu2  ;;  %v4681_v38 = vadd.f32 %v4680_v44, %v4567_v43  ;;  %v4735_v43 = vld [vmem:[#allocation2 + $0x22a8] sm:$0xff] }
0x18de   :  { %4800 = vmatmul.f32.gmra.mxu0 %v4718_v33 }
0x18e4   :  { %v4683_v22 = vpop.f32.mrf.mxu3 }
0x18e5   :  { %v4594_v55 = vpop.f32.mrf.mxu2  ;;  %v4684_v27 = vadd.f32 %v4683_v22, %v4570_v60  ;;  %v4737_v60 = vld [vmem:[#allocation2 + $0x22b8] sm:$0xff]  ;;  %v4746_v22 = vld [vmem:[#allocation2 + $0x2300] sm:$0xff] }
0x18e6   :  { %4803 = vmatmul.f32.gmra.mxu0 %v4720_v58  ;;  %v4764_v58 = vld [vmem:[#allocation2 + $0x2390] sm:$0xff] }
0x18ec   :  { %v4686_v17 = vpop.f32.mrf.mxu3 }
0x18ed   :  { %v4597_v35 = vpop.f32.mrf.mxu2  ;;  %v4687_v5 = vadd.f32 %v4686_v17, %v4573_v61  ;;  %v4739_v61 = vld [vmem:[#allocation2 + $0x22c8] sm:$0xff] }
0x18ee   :  { %4806 = vmatmul.f32.gmra.mxu0 %v4722_v40  ;;  %v4761_v40 = vld [vmem:[#allocation2 + $0x2378] sm:$0xff] }
0x18f4   :  { %v4689_v24 = vpop.f32.mrf.mxu3 }
0x18f5   :  { %v4690_v15 = vadd.f32 %v4689_v24, %v4576_v36  ;;  %v4741_v36 = vld [vmem:[#allocation2 + $0x22d8] sm:$0xff]  ;;  %v4743_v24 = vld [vmem:[#allocation2 + $0x22e8] sm:$0xff] }
0x18f6   :  { %4809 = vmatmul.f32.gmra.mxu0 %v4724_v56  ;;  %v4768_v56 = vld [vmem:[#allocation2 + $0x23b0] sm:$0xff] }
0x18fc   :  { %v4692_v0 = vpop.f32.mrf.mxu3 }
0x18fd   :  { %v4693_v50 = vadd.f32 %v4692_v0, %v4579_v41  ;;  %v4748_v41 = vld [vmem:[#allocation2 + $0x2310] sm:$0xff]  ;;  %v4750_v0 = vld [vmem:[#allocation2 + $0x2320] sm:$0xff] }
0x18fe   :  { %4812 = vmatmul.f32.gmra.mxu0 %v4726_v52  ;;  %v4763_v52 = vld [vmem:[#allocation2 + $0x2388] sm:$0xff] }
0x1904   :  { %v4695_v8 = vpop.f32.mrf.mxu3 }
0x1905   :  { %v4696_v12 = vadd.f32 %v4695_v8, %v4582_v11 }
0x1906   :  { %4815 = vmatmul.f32.gmra.mxu0 %v4728_v1  ;;  %v4770_v1 = vld [vmem:[#allocation2 + $0x23c0] sm:$0xff] }
0x190c   :  { %v4698_v31 = vpop.f32.mrf.mxu3 }
0x190d   :  { %v4699_v34 = vadd.f32 %v4698_v31, %v4585_v13  ;;  %v4745_v13 = vld [vmem:[#allocation2 + $0x22f8] sm:$0xff]  ;;  %v4752_v31 = vld [vmem:[#allocation2 + $0x2330] sm:$0xff] }
0x190e   :  { %4818 = vmatmul.f32.gmra.mxu0 %v4730_v63  ;;  %v4765_v63 = vld [vmem:[#allocation2 + $0x2398] sm:$0xff] }
0x1914   :  { %v4701_v57 = vpop.f32.mrf.mxu3 }
0x1915   :  { %v4702_v9 = vadd.f32 %v4701_v57, %v4588_v48  ;;  %v4747_v57 = vld [vmem:[#allocation2 + $0x2308] sm:$0xff] }
0x1916   :  { %4821 = vmatmul.f32.gmra.mxu0 %v4732_v2  ;;  %v4772_v2 = vld [vmem:[#allocation2 + $0x23d0] sm:$0xff] }
0x191c   :  { %v4704_v3 = vpop.f32.mrf.mxu3 }
0x191d   :  { %v4705_v51 = vadd.f32 %v4704_v3, %v4591_v30  ;;  %v4754_v3 = vld [vmem:[#allocation2 + $0x2340] sm:$0xff] }
0x191e   :  { %4824 = vmatmul.f32.gmra.mxu0 %v4734_v16  ;;  %v4767_v16 = vld [vmem:[#allocation2 + $0x23a8] sm:$0xff] }
0x1924   :  { %v4707_v37 = vpop.f32.mrf.mxu3 }
0x1925   :  { %v4708_v29 = vadd.f32 %v4707_v37, %v4594_v55  ;;  %v4749_v37 = vld [vmem:[#allocation2 + $0x2318] sm:$0xff] }
0x1926   :  { %4827 = vmatmul.f32.gmra.mxu0 %v4736_v20  ;;  %v4774_v20 = vld [vmem:[#allocation2 + $0x23e0] sm:$0xff] }
0x192c   :  { %v4710_v7 = vpop.f32.mrf.mxu3 }
0x192d   :  { %v4711_v28 = vadd.f32 %v4710_v7, %v4597_v35  ;;  %v4756_v7 = vld [vmem:[#allocation2 + $0x2350] sm:$0xff] }
0x192e   :  { %4830 = vmatmul.f32.gmra.mxu0 %v4738_v42  ;;  %v4769_v42 = vld [vmem:[#allocation2 + $0x23b8] sm:$0xff] }
0x192f   :  { %4891 = vmatpush.msra.mxu1 %v4711_v28 }
0x1931   :  { %4892 = vmatpush.msra.mxu1 %v4708_v29 }
0x1933   :  { %4893 = vmatpush.msra.mxu1 %v4705_v51  ;;  %v4758_v51 = vld [vmem:[#allocation2 + $0x2360] sm:$0xff] }
0x1935   :  { %4894 = vmatpush.msra.mxu1 %v4702_v9 }
0x1936   :  { %4833 = vmatmul.f32.gmra.mxu0 %v4740_v21  ;;  %v4776_v21 = vld [vmem:[#allocation2 + $0x23f0] sm:$0xff] }
0x1937   :  { %4895 = vmatpush.msra.mxu1 %v4699_v34 }
0x1939   :  { %4896 = vmatpush.msra.mxu1 %v4696_v12  ;;  %v4760_v12 = vld [vmem:[#allocation2 + $0x2370] sm:$0xff] }
0x193b   :  { %4897 = vmatpush.msra.mxu1 %v4693_v50 }
0x193d   :  { %4898 = vmatpush.msra.mxu1 %v4690_v15  ;;  %v4755_v15 = vld [vmem:[#allocation2 + $0x2348] sm:$0xff] }
0x193e   :  { %4836 = vmatmul.f32.gmra.mxu0 %v4742_v59  ;;  %v4771_v59 = vld [vmem:[#allocation2 + $0x23c8] sm:$0xff] }
0x193f   :  { %4899 = vmatpush.msra.mxu1 %v4687_v5  ;;  %v4762_v5 = vld [vmem:[#allocation2 + $0x2380] sm:$0xff] }
0x1941   :  { %4900 = vmatpush.msra.mxu1 %v4684_v27 }
0x1943   :  { %4901 = vmatpush.msra.mxu1 %v4681_v38  ;;  %v4757_v38 = vld [vmem:[#allocation2 + $0x2358] sm:$0xff] }
0x1945   :  { %4902 = vmatpush.msra.mxu1 %v4678_v54 }
0x1946   :  { %4839 = vmatmul.f32.gmra.mxu0 %v4744_v10 }
0x1947   :  { %4903 = vmatpush.msra.mxu1 %v4675_v53 }
0x1949   :  { %4904 = vmatpush.msra.mxu1 %v4672_v39  ;;  %v4759_v39 = vld [vmem:[#allocation2 + $0x2368] sm:$0xff] }
0x194b   :  { %4905 = vmatpush.msra.mxu1 %v4669_v26  ;;  %v6766_v44 = vpop.f32.mrf.mxu0 }
0x194d   :  { %4906 = vmatpush.msra.mxu1 %v4666_v49  ;;  %v4766_v49 = vld [vmem:[#allocation2 + $0x23a0] sm:$0xff] }
0x194e   :  { %4907 = vmatmul.f32.vlgmr.msra.gmra.mxu1 %v4715_v47  ;;  %4842 = vmatmul.f32.gmra.mxu0 %v4746_v22 }
0x1953   :  { %v6768_v17 = vpop.f32.mrf.mxu0 }
0x1956   :  { %4910 = vmatmul.f32.gmra.mxu1 %v4717_v32  ;;  %4845 = vmatmul.f32.gmra.mxu0 %v4748_v41  ;;  %v4775_v41 = vld [vmem:[#allocation2 + $0x23e8] sm:$0xff] }
0x195b   :  { %v6770_v11 = vpop.f32.mrf.mxu0 }
0x195e   :  { %4913 = vmatmul.f32.gmra.mxu1 %v4719_v46  ;;  %4848 = vmatmul.f32.gmra.mxu0 %v4750_v0 }
0x1963   :  { %v6772_v8 = vpop.f32.mrf.mxu0 }
0x1966   :  { %4916 = vmatmul.f32.gmra.mxu1 %v4721_v6  ;;  %4851 = vmatmul.f32.gmra.mxu0 %v4752_v31 }
0x196b   :  { %v6776_v30 = vpop.f32.mrf.mxu0 }
0x196e   :  { %4919 = vmatmul.f32.gmra.mxu1 %v4723_v62  ;;  %4854 = vmatmul.f32.gmra.mxu0 %v4754_v3 }
0x1973   :  { %v6780_v35 = vpop.f32.mrf.mxu0 }
0x1976   :  { %4922 = vmatmul.f32.gmra.mxu1 %v4725_v4  ;;  %4857 = vmatmul.f32.gmra.mxu0 %v4756_v7 }
0x197b   :  { %v6784_v29 = vpop.f32.mrf.mxu0 }
0x197e   :  { %4925 = vmatmul.f32.gmra.mxu1 %v4727_v19  ;;  %4860 = vmatmul.f32.gmra.mxu0 %v4758_v51 }
0x1983   :  { %v6788_v34 = vpop.f32.mrf.mxu0 }
0x1986   :  { %4928 = vmatmul.f32.gmra.mxu1 %v4729_v14  ;;  %4863 = vmatmul.f32.gmra.mxu0 %v4760_v12 }
0x198b   :  { %v6792_v33 = vpop.f32.mrf.mxu0 }
0x198e   :  { %4931 = vmatmul.f32.gmra.mxu1 %v4731_v23  ;;  %4866 = vmatmul.f32.gmra.mxu0 %v4762_v5 }
0x1993   :  { %v6796_v54 = vpop.f32.mrf.mxu0 }
0x1996   :  { %4934 = vmatmul.f32.gmra.mxu1 %v4733_v45  ;;  %4869 = vmatmul.f32.gmra.mxu0 %v4764_v58 }
0x199b   :  { %v4825_v26 = vpop.f32.mrf.mxu0 }
0x199e   :  { %4937 = vmatmul.f32.gmra.mxu1 %v4735_v43  ;;  %4872 = vmatmul.f32.gmra.mxu0 %v4766_v49 }
0x19a3   :  { %v4828_v32 = vpop.f32.mrf.mxu0 }
0x19a6   :  { %4940 = vmatmul.f32.gmra.mxu1 %v4737_v60  ;;  %4875 = vmatmul.f32.gmra.mxu0 %v4768_v56 }
0x19ab   :  { %v4831_v6 = vpop.f32.mrf.mxu0 }
0x19ae   :  { %4943 = vmatmul.f32.gmra.mxu1 %v4739_v61  ;;  %4878 = vmatmul.f32.gmra.mxu0 %v4770_v1  ;;  %v4773_v61 = vld [vmem:[#allocation2 + $0x23d8] sm:$0xff] }
0x19b3   :  { %v4834_v4 = vpop.f32.mrf.mxu0 }
0x19b6   :  { %4946 = vmatmul.f32.gmra.mxu1 %v4741_v36  ;;  %4881 = vmatmul.f32.gmra.mxu0 %v4772_v2 }
0x19bb   :  { %v4837_v14 = vpop.f32.mrf.mxu0 }
0x19be   :  { %4949 = vmatmul.f32.gmra.mxu1 %v4743_v24  ;;  %4884 = vmatmul.f32.gmra.mxu0 %v4774_v20 }
0x19c3   :  { %v4840_v45 = vpop.f32.mrf.mxu0 }
0x19c6   :  { %4952 = vmatmul.f32.gmra.mxu1 %v4745_v13  ;;  %4887 = vmatmul.f32.gmra.mxu0 %v4776_v21  ;;  %v4777_v13 = vld [vmem:[#allocation2 + $0x23f8] sm:$0xff] }
0x19cb   :  { %v6774_v48 = vpop.f32.mrf.mxu1  ;;  %v6802_v60 = vpop.f32.mrf.mxu0 }
0x19ce   :  { %4955 = vmatmul.f32.gmra.mxu1 %v4747_v57 }
0x19d3   :  { %v6778_v55 = vpop.f32.mrf.mxu1  ;;  %v6804_v22 = vpop.f32.mrf.mxu0 }
0x19d6   :  { %4958 = vmatmul.f32.gmra.mxu1 %v4749_v37 }
0x19db   :  { %v6782_v28 = vpop.f32.mrf.mxu1  ;;  %v6806_v24 = vpop.f32.mrf.mxu0 }
0x19de   :  { %4961 = vmatmul.f32.gmra.mxu1 %v4751_v25 }
0x19e3   :  { %v6786_v9 = vpop.f32.mrf.mxu1  ;;  %v6808_v37 = vpop.f32.mrf.mxu0 }
0x19e4   :  { %v4918_v49 = vadd.f32 %v6786_v9, %v6772_v8 }
0x19e6   :  { %4964 = vmatmul.f32.gmra.mxu1 %v4753_v18 }
0x19eb   :  { %v6790_v50 = vpop.f32.mrf.mxu1 }
0x19ee   :  { %4967 = vmatmul.f32.gmra.mxu1 %v4755_v15 }
0x19f3   :  { %v6794_v27 = vpop.f32.mrf.mxu1 }
0x19f6   :  { %4970 = vmatmul.f32.gmra.mxu1 %v4757_v38  ;;  %v6816_v38 = vpop.f32.mrf.mxu0 }
0x19fb   :  { %v6798_v53 = vpop.f32.mrf.mxu1 }
0x19fe   :  { %4973 = vmatmul.f32.gmra.mxu1 %v4759_v39  ;;  %v4927_v39 = vadd.f32 %v6798_v53, %v6784_v29  ;;  %v4912_v29 = vadd.f32 %v6778_v55, %v6768_v17 }
0x1a03   :  { %v6800_v47 = vpop.f32.mrf.mxu1 }
0x1a04   :  { %v4930_v58 = vadd.f32 %v6800_v47, %v6788_v34  ;;  %v4858_v34 = vpop.f32.mrf.mxu0  ;;  %v4915_v47 = vadd.f32 %v6782_v28, %v6770_v11 }
0x1a06   :  { %4976 = vmatmul.f32.gmra.mxu1 %v4761_v40 }
0x1a0b   :  { %v4932_v46 = vpop.f32.mrf.mxu1 }
0x1a0c   :  { %v4933_v15 = vadd.f32 %v4932_v46, %v6792_v33  ;;  %v4921_v33 = vadd.f32 %v6790_v50, %v6776_v30  ;;  %v4861_v50 = vpop.f32.mrf.mxu0 }
0x1a0e   :  { %4979 = vmatmul.f32.gmra.mxu1 %v4763_v52 }
0x1a13   :  { %v4935_v62 = vpop.f32.mrf.mxu1 }
0x1a14   :  { %v4936_v12 = vadd.f32 %v4935_v62, %v6796_v54  ;;  %v4864_v53 = vpop.f32.mrf.mxu0 }
0x1a16   :  { %4982 = vmatmul.f32.gmra.mxu1 %v4765_v63 }
0x1a1b   :  { %v4938_v19 = vpop.f32.mrf.mxu1 }
0x1a1c   :  { %v4939_v18 = vadd.f32 %v4938_v19, %v4825_v26  ;;  %v4924_v26 = vadd.f32 %v6794_v27, %v6780_v35  ;;  %v4909_v35 = vadd.f32 %v6774_v48, %v6766_v44  ;;  %v4867_v40 = vpop.f32.mrf.mxu0 }
0x1a1e   :  { %4985 = vmatmul.f32.gmra.mxu1 %v4767_v16  ;;  %v5005_v16 = vld [vmem:[#allocation2 + $0x2400] sm:$0xff] }
0x1a23   :  { %v4941_v23 = vpop.f32.mrf.mxu1 }
0x1a24   :  { %v4942_v51 = vadd.f32 %v4941_v23, %v4828_v32  ;;  %v4870_v56 = vpop.f32.mrf.mxu0 }
0x1a26   :  { %4988 = vmatmul.f32.gmra.mxu1 %v4769_v42  ;;  %v5007_v42 = vld [vmem:[#allocation2 + $0x2410] sm:$0xff] }
0x1a2b   :  { %v4944_v43 = vpop.f32.mrf.mxu1 }
0x1a2c   :  { %v4945_v7 = vadd.f32 %v4944_v43, %v4831_v6  ;;  %v4873_v28 = vpop.f32.mrf.mxu0 }
0x1a2e   :  { %4991 = vmatmul.f32.gmra.mxu1 %v4771_v59 }
0x1a33   :  { %v4947_v10 = vpop.f32.mrf.mxu1 }
0x1a34   :  { %v4948_v3 = vadd.f32 %v4947_v10, %v4834_v4  ;;  %v4876_v52 = vpop.f32.mrf.mxu0  ;;  %v5009_v10 = vld [vmem:[#allocation2 + $0x2420] sm:$0xff] }
0x1a36   :  { %4994 = vmatmul.f32.gmra.mxu1 %v4773_v61 }
0x1a3b   :  { %v4950_v36 = vpop.f32.mrf.mxu1 }
0x1a3c   :  { %v4951_v57 = vadd.f32 %v4950_v36, %v4837_v14  ;;  %v4879_v6 = vpop.f32.mrf.mxu0 }
0x1a3e   :  { %4997 = vmatmul.f32.gmra.mxu1 %v4775_v41 }
0x1a43   :  { %v4953_v0 = vpop.f32.mrf.mxu1 }
0x1a44   :  { %v4954_v31 = vadd.f32 %v4953_v0, %v4840_v45  ;;  %v4882_v44 = vpop.f32.mrf.mxu0 }
0x1a46   :  { %5000 = vmatmul.f32.gmra.mxu1 %v4777_v13  ;;  %5069 = vmatpush.msrb.mxu2 %v4954_v31  ;;  %v5011_v13 = vld [vmem:[#allocation2 + $0x2430] sm:$0xff] }
0x1a48   :  { %5070 = vmatpush.msrb.mxu2 %v4951_v57 }
0x1a4a   :  { %5071 = vmatpush.msrb.mxu2 %v4948_v3 }
0x1a4b   :  { %v6810_v25 = vpop.f32.mrf.mxu1 }
0x1a4c   :  { %5072 = vmatpush.msrb.mxu2 %v4945_v7  ;;  %v4885_v62 = vpop.f32.mrf.mxu0  ;;  %v4957_v7 = vadd.f32 %v6810_v25, %v6802_v60  ;;  %v5021_v60 = vld [vmem:[#allocation2 + $0x2480] sm:$0xff]  ;;  %v5016_v25 = vld [vmem:[#allocation2 + $0x2458] sm:$0xff] }
0x1a4e   :  { %5073 = vmatpush.msrb.mxu2 %v4942_v51  ;;  %v5006_v51 = vld [vmem:[#allocation2 + $0x2408] sm:$0xff] }
0x1a50   :  { %5074 = vmatpush.msrb.mxu2 %v4939_v18  ;;  %v5013_v18 = vld [vmem:[#allocation2 + $0x2440] sm:$0xff] }
0x1a52   :  { %5075 = vmatpush.msrb.mxu2 %v4936_v12  ;;  %v5015_v12 = vld [vmem:[#allocation2 + $0x2450] sm:$0xff] }
0x1a53   :  { %v6814_v5 = vpop.f32.mrf.mxu1 }
0x1a54   :  { %5076 = vmatpush.msrb.mxu2 %v4933_v15  ;;  %v4888_v4 = vpop.f32.mrf.mxu0  ;;  %v4960_v3 = vadd.f32 %v6814_v5, %v6804_v22  ;;  %v5010_v15 = vld [vmem:[#allocation2 + $0x2428] sm:$0xff]  ;;  %v5019_v22 = vld [vmem:[#allocation2 + $0x2470] sm:$0xff] }
0x1a55   :  { %v5014_v5 = vld [vmem:[#allocation2 + $0x2448] sm:$0xff] }
0x1a56   :  { %5077 = vmatpush.msrb.mxu2 %v4930_v58  ;;  %v5023_v58 = vld [vmem:[#allocation2 + $0x2490] sm:$0xff] }
0x1a58   :  { %5078 = vmatpush.msrb.mxu2 %v4927_v39  ;;  %v5018_v39 = vld [vmem:[#allocation2 + $0x2468] sm:$0xff] }
0x1a5a   :  { %5079 = vmatpush.msrb.mxu2 %v4924_v26  ;;  %v5025_v26 = vld [vmem:[#allocation2 + $0x24a0] sm:$0xff] }
0x1a5b   :  { %v6826_v54 = vpop.f32.mrf.mxu1 }
0x1a5c   :  { %5080 = vmatpush.msrb.mxu2 %v4921_v33  ;;  %v4963_v57 = vadd.f32 %v6826_v54, %v6806_v24  ;;  %v5017_v24 = vld [vmem:[#allocation2 + $0x2460] sm:$0xff]  ;;  %v5020_v33 = vld [vmem:[#allocation2 + $0x2478] sm:$0xff]  ;;  %v5027_v54 = vld [vmem:[#allocation2 + $0x24b0] sm:$0xff] }
0x1a5e   :  { %5081 = vmatpush.msrb.mxu2 %v4918_v49  ;;  %v5022_v49 = vld [vmem:[#allocation2 + $0x2488] sm:$0xff] }
0x1a60   :  { %5082 = vmatpush.msrb.mxu2 %v4915_v47  ;;  %v5024_v47 = vld [vmem:[#allocation2 + $0x2498] sm:$0xff] }
0x1a62   :  { %5083 = vmatpush.msrb.mxu2 %v4912_v29  ;;  %v5031_v29 = vld [vmem:[#allocation2 + $0x24d0] sm:$0xff] }
0x1a63   :  { %v4965_v30 = vpop.f32.mrf.mxu1 }
0x1a64   :  { %5084 = vmatpush.msrb.mxu2 %v4909_v35  ;;  %v4966_v31 = vadd.f32 %v4965_v30, %v6808_v37  ;;  %v5008_v37 = vld [vmem:[#allocation2 + $0x2418] sm:$0xff]  ;;  %v5026_v35 = vld [vmem:[#allocation2 + $0x24a8] sm:$0xff]  ;;  %v5033_v30 = vld [vmem:[#allocation2 + $0x24e0] sm:$0xff] }
0x1a65   :  { %5085 = vmatmul.f32.vlgmr.msrb.gmra.mxu2 %v5005_v16 }
0x1a6b   :  { %v4968_v27 = vpop.f32.mrf.mxu1 }
0x1a6c   :  { %v4969_v0 = vadd.f32 %v4968_v27, %v6816_v38  ;;  %v5012_v38 = vld [vmem:[#allocation2 + $0x2438] sm:$0xff]  ;;  %v5035_v27 = vld [vmem:[#allocation2 + $0x24f0] sm:$0xff] }
0x1a6d   :  { %5088 = vmatmul.f32.gmra.mxu2 %v5007_v42 }
0x1a73   :  { %v4971_v8 = vpop.f32.mrf.mxu1 }
0x1a74   :  { %v4972_v41 = vadd.f32 %v4971_v8, %v4858_v34  ;;  %v5029_v34 = vld [vmem:[#allocation2 + $0x24c0] sm:$0xff] }
0x1a75   :  { %5091 = vmatmul.f32.gmra.mxu2 %v5009_v10  ;;  %v5037_v8 = vld [vmem:[#allocation2 + $0x2500] sm:$0xff] }
0x1a7b   :  { %v4974_v9 = vpop.f32.mrf.mxu1 }
0x1a7c   :  { %v4975_v36 = vadd.f32 %v4974_v9, %v4861_v50  ;;  %v5028_v50 = vld [vmem:[#allocation2 + $0x24b8] sm:$0xff] }
0x1a7d   :  { %5094 = vmatmul.f32.gmra.mxu2 %v5011_v13 }
0x1a83   :  { %v4977_v32 = vpop.f32.mrf.mxu1 }
0x1a84   :  { %v4978_v61 = vadd.f32 %v4977_v32, %v4864_v53  ;;  %v5030_v53 = vld [vmem:[#allocation2 + $0x24c8] sm:$0xff]  ;;  %v5039_v32 = vld [vmem:[#allocation2 + $0x2510] sm:$0xff] }
0x1a85   :  { %5097 = vmatmul.f32.gmra.mxu2 %v5013_v18 }
0x1a8b   :  { %v4980_v11 = vpop.f32.mrf.mxu1 }
0x1a8c   :  { %v4981_v59 = vadd.f32 %v4980_v11, %v4867_v40  ;;  %v5032_v40 = vld [vmem:[#allocation2 + $0x24d8] sm:$0xff]  ;;  %v5034_v11 = vld [vmem:[#allocation2 + $0x24e8] sm:$0xff] }
0x1a8d   :  { %5100 = vmatmul.f32.gmra.mxu2 %v5015_v12  ;;  %v5057_v12 = vld [vmem:[#allocation2 + $0x25a0] sm:$0xff] }
0x1a93   :  { %v4983_v46 = vpop.f32.mrf.mxu1 }
0x1a94   :  { %v4984_v43 = vadd.f32 %v4983_v46, %v4870_v56 }
0x1a95   :  { %5103 = vmatmul.f32.gmra.mxu2 %v5017_v24 }
0x1a9b   :  { %v4986_v17 = vpop.f32.mrf.mxu1 }
0x1a9c   :  { %v4987_v21 = vadd.f32 %v4986_v17, %v4873_v28  ;;  %v5041_v28 = vld [vmem:[#allocation2 + $0x2520] sm:$0xff]  ;;  %v5043_v17 = vld [vmem:[#allocation2 + $0x2530] sm:$0xff] }
0x1a9d   :  { %5106 = vmatmul.f32.gmra.mxu2 %v5019_v22  ;;  %v5052_v22 = vld [vmem:[#allocation2 + $0x2578] sm:$0xff] }
0x1aa3   :  { %v4989_v55 = vpop.f32.mrf.mxu1 }
0x1aa4   :  { %v4990_v45 = vadd.f32 %v4989_v55, %v4876_v52  ;;  %v5036_v52 = vld [vmem:[#allocation2 + $0x24f8] sm:$0xff] }
0x1aa5   :  { %5109 = vmatmul.f32.gmra.mxu2 %v5021_v60 }
0x1aab   :  { %v4992_v1 = vpop.f32.mrf.mxu1 }
0x1aac   :  { %v4993_v23 = vadd.f32 %v4992_v1, %v4879_v6  ;;  %v5038_v6 = vld [vmem:[#allocation2 + $0x2508] sm:$0xff]  ;;  %v5045_v1 = vld [vmem:[#allocation2 + $0x2540] sm:$0xff] }
0x1aad   :  { %5112 = vmatmul.f32.gmra.mxu2 %v5023_v58 }
0x1ab3   :  { %v4995_v48 = vpop.f32.mrf.mxu1 }
0x1ab4   :  { %v4996_v20 = vadd.f32 %v4995_v48, %v4882_v44 }
0x1ab5   :  { %5115 = vmatmul.f32.gmra.mxu2 %v5025_v26  ;;  %v5061_v26 = vld [vmem:[#allocation2 + $0x25c0] sm:$0xff] }
0x1abb   :  { %v4998_v63 = vpop.f32.mrf.mxu1 }
0x1abc   :  { %v4999_v14 = vadd.f32 %v4998_v63, %v4885_v62  ;;  %v5040_v63 = vld [vmem:[#allocation2 + $0x2518] sm:$0xff] }
0x1abd   :  { %5118 = vmatmul.f32.gmra.mxu2 %v5027_v54 }
0x1ac3   :  { %v5001_v2 = vpop.f32.mrf.mxu1 }
0x1ac4   :  { %v5002_v19 = vadd.f32 %v5001_v2, %v4888_v4  ;;  %v5047_v4 = vld [vmem:[#allocation2 + $0x2550] sm:$0xff] }
0x1ac5   :  { %5121 = vmatmul.f32.gmra.mxu2 %v5029_v34  ;;  %v5056_v34 = vld [vmem:[#allocation2 + $0x2598] sm:$0xff] }
0x1ac6   :  { %5182 = vmatpush.msrb.mxu3 %v5002_v19 }
0x1ac8   :  { %5183 = vmatpush.msrb.mxu3 %v4999_v14  ;;  %v5042_v14 = vld [vmem:[#allocation2 + $0x2528] sm:$0xff] }
0x1aca   :  { %5184 = vmatpush.msrb.mxu3 %v4996_v20  ;;  %v5049_v20 = vld [vmem:[#allocation2 + $0x2560] sm:$0xff] }
0x1acc   :  { %5185 = vmatpush.msrb.mxu3 %v4993_v23 }
0x1acd   :  { %5124 = vmatmul.f32.gmra.mxu2 %v5031_v29 }
0x1ace   :  { %5186 = vmatpush.msrb.mxu3 %v4990_v45 }
0x1ad0   :  { %5187 = vmatpush.msrb.mxu3 %v4987_v21  ;;  %v5044_v21 = vld [vmem:[#allocation2 + $0x2538] sm:$0xff] }
0x1ad2   :  { %5188 = vmatpush.msrb.mxu3 %v4984_v43  ;;  %v5051_v43 = vld [vmem:[#allocation2 + $0x2570] sm:$0xff] }
0x1ad4   :  { %5189 = vmatpush.msrb.mxu3 %v4981_v59 }
0x1ad5   :  { %5127 = vmatmul.f32.gmra.mxu2 %v5033_v30  ;;  %v5058_v30 = vld [vmem:[#allocation2 + $0x25a8] sm:$0xff] }
0x1ad6   :  { %5190 = vmatpush.msrb.mxu3 %v4978_v61 }
0x1ad8   :  { %5191 = vmatpush.msrb.mxu3 %v4975_v36  ;;  %v5046_v36 = vld [vmem:[#allocation2 + $0x2548] sm:$0xff] }
0x1ada   :  { %5192 = vmatpush.msrb.mxu3 %v4972_v41  ;;  %v5053_v41 = vld [vmem:[#allocation2 + $0x2580] sm:$0xff] }
0x1adc   :  { %5193 = vmatpush.msrb.mxu3 %v4969_v0 }
0x1add   :  { %5130 = vmatmul.f32.gmra.mxu2 %v5035_v27 }
0x1ade   :  { %5194 = vmatpush.msrb.mxu3 %v4966_v31 }
0x1ae0   :  { %5195 = vmatpush.msrb.mxu3 %v4963_v57  ;;  %v5048_v57 = vld [vmem:[#allocation2 + $0x2558] sm:$0xff] }
0x1ae2   :  { %5196 = vmatpush.msrb.mxu3 %v4960_v3  ;;  %v5055_v3 = vld [vmem:[#allocation2 + $0x2590] sm:$0xff] }
0x1ae4   :  { %5197 = vmatpush.msrb.mxu3 %v4957_v7 }
0x1ae5   :  { %5198 = vmatmul.f32.vlgmr.msrb.gmra.mxu3 %v5006_v51  ;;  %5133 = vmatmul.f32.gmra.mxu2 %v5037_v8  ;;  %v5060_v8 = vld [vmem:[#allocation2 + $0x25b8] sm:$0xff] }
0x1ae8   :  { %v5086_v9 = vpop.f32.mrf.mxu2 }
0x1aed   :  { %5201 = vmatmul.f32.gmra.mxu3 %v5008_v37  ;;  %5136 = vmatmul.f32.gmra.mxu2 %v5039_v32  ;;  %v5050_v37 = vld [vmem:[#allocation2 + $0x2568] sm:$0xff] }
0x1af0   :  { %v5089_v56 = vpop.f32.mrf.mxu2 }
0x1af5   :  { %5204 = vmatmul.f32.gmra.mxu3 %v5010_v15  ;;  %5139 = vmatmul.f32.gmra.mxu2 %v5041_v28 }
0x1af8   :  { %v5092_v46 = vpop.f32.mrf.mxu2 }
0x1afd   :  { %5207 = vmatmul.f32.gmra.mxu3 %v5012_v38  ;;  %5142 = vmatmul.f32.gmra.mxu2 %v5043_v17  ;;  %v5066_v17 = vld [vmem:[#allocation2 + $0x25e8] sm:$0xff] }
0x1b00   :  { %v5095_v55 = vpop.f32.mrf.mxu2 }
0x1b05   :  { %5210 = vmatmul.f32.gmra.mxu3 %v5014_v5  ;;  %5145 = vmatmul.f32.gmra.mxu2 %v5045_v1  ;;  %v5059_v5 = vld [vmem:[#allocation2 + $0x25b0] sm:$0xff]  ;;  %v5068_v1 = vld [vmem:[#allocation2 + $0x25f8] sm:$0xff] }
0x1b08   :  { %v5098_v48 = vpop.f32.mrf.mxu2 }
0x1b0d   :  { %5213 = vmatmul.f32.gmra.mxu3 %v5016_v25  ;;  %5148 = vmatmul.f32.gmra.mxu2 %v5047_v4 }
0x1b10   :  { %v5101_v19 = vpop.f32.mrf.mxu2 }
0x1b15   :  { %5216 = vmatmul.f32.gmra.mxu3 %v5018_v39  ;;  %5151 = vmatmul.f32.gmra.mxu2 %v5049_v20  ;;  %v5054_v39 = vld [vmem:[#allocation2 + $0x2588] sm:$0xff] }
0x1b18   :  { %v5104_v42 = vpop.f32.mrf.mxu2 }
0x1b1d   :  { %5219 = vmatmul.f32.gmra.mxu3 %v5020_v33  ;;  %5154 = vmatmul.f32.gmra.mxu2 %v5051_v43 }
0x1b20   :  { %v5107_v10 = vpop.f32.mrf.mxu2 }
0x1b25   :  { %5222 = vmatmul.f32.gmra.mxu3 %v5022_v49  ;;  %5157 = vmatmul.f32.gmra.mxu2 %v5053_v41 }
0x1b28   :  { %v5110_v13 = vpop.f32.mrf.mxu2 }
0x1b2d   :  { %5225 = vmatmul.f32.gmra.mxu3 %v5024_v47  ;;  %5160 = vmatmul.f32.gmra.mxu2 %v5055_v3  ;;  %v5063_v47 = vld [vmem:[#allocation2 + $0x25d0] sm:$0xff] }
0x1b30   :  { %v6854_v51 = vpop.f32.mrf.mxu2 }
0x1b35   :  { %5228 = vmatmul.f32.gmra.mxu3 %v5026_v35  ;;  %5163 = vmatmul.f32.gmra.mxu2 %v5057_v12 }
0x1b38   :  { %v5116_v24 = vpop.f32.mrf.mxu2 }
0x1b3d   :  { %5231 = vmatmul.f32.gmra.mxu3 %v5028_v50  ;;  %5166 = vmatmul.f32.gmra.mxu2 %v5059_v5  ;;  %v5065_v50 = vld [vmem:[#allocation2 + $0x25e0] sm:$0xff] }
0x1b40   :  { %v5119_v25 = vpop.f32.mrf.mxu2 }
0x1b45   :  { %5234 = vmatmul.f32.gmra.mxu3 %v5030_v53  ;;  %5169 = vmatmul.f32.gmra.mxu2 %v5061_v26 }
0x1b48   :  { %v5122_v54 = vpop.f32.mrf.mxu2 }
0x1b4d   :  { %5237 = vmatmul.f32.gmra.mxu3 %v5032_v40  ;;  %5172 = vmatmul.f32.gmra.mxu2 %v5063_v47 }
0x1b50   :  { %v5125_v35 = vpop.f32.mrf.mxu2 }
0x1b55   :  { %5240 = vmatmul.f32.gmra.mxu3 %v5034_v11  ;;  %5175 = vmatmul.f32.gmra.mxu2 %v5065_v50  ;;  %v5296_v50 = vld [vmem:[#allocation2 + $0x2600] sm:$0xff] }
0x1b58   :  { %v5128_v53 = vpop.f32.mrf.mxu2 }
0x1b5d   :  { %5243 = vmatmul.f32.gmra.mxu3 %v5036_v52 }
0x1b60   :  { %v5131_v32 = vpop.f32.mrf.mxu2 }
0x1b65   :  { %5246 = vmatmul.f32.gmra.mxu3 %v5038_v6 }
0x1b68   :  { %v5199_v44 = vpop.f32.mrf.mxu3  ;;  %v5134_v28 = vpop.f32.mrf.mxu2 }
0x1b69   :  { %v6844_v62 = vadd.f32 %v5199_v44, %v5086_v9  ;;  %v5067_v9 = vld [vmem:[#allocation2 + $0x25f0] sm:$0xff] }
0x1b6a   :  { %5178 = vmatmul.f32.gmra.mxu2 %v5067_v9  ;;  %v5298_v9 = vld [vmem:[#allocation2 + $0x2610] sm:$0xff] }
0x1b6d   :  { %5249 = vmatmul.f32.gmra.mxu3 %v5040_v63 }
0x1b70   :  { %v5202_v2 = vpop.f32.mrf.mxu3 }
0x1b71   :  { %v6846_v16 = vadd.f32 %v5202_v2, %v5089_v56  ;;  %v5062_v56 = vld [vmem:[#allocation2 + $0x25c8] sm:$0xff] }
0x1b75   :  { %5252 = vmatmul.f32.gmra.mxu3 %v5042_v14 }
0x1b78   :  { %v5205_v23 = vpop.f32.mrf.mxu3 }
0x1b79   :  { %v6848_v45 = vadd.f32 %v5205_v23, %v5092_v46  ;;  %v5064_v46 = vld [vmem:[#allocation2 + $0x25d8] sm:$0xff] }
0x1b7d   :  { %5255 = vmatmul.f32.gmra.mxu3 %v5044_v21 }
0x1b80   :  { %v5208_v59 = vpop.f32.mrf.mxu3 }
0x1b81   :  { %v6850_v61 = vadd.f32 %v5208_v59, %v5095_v55  ;;  %v5137_v55 = vpop.f32.mrf.mxu2 }
0x1b85   :  { %5258 = vmatmul.f32.gmra.mxu3 %v5046_v36 }
0x1b88   :  { %v5211_v0 = vpop.f32.mrf.mxu3 }
0x1b89   :  { %v6852_v31 = vadd.f32 %v5211_v0, %v5098_v48  ;;  %v5140_v44 = vpop.f32.mrf.mxu2 }
0x1b8d   :  { %5261 = vmatmul.f32.gmra.mxu3 %v5048_v57 }
0x1b90   :  { %v5214_v7 = vpop.f32.mrf.mxu3 }
0x1b91   :  { %v6856_v18 = vadd.f32 %v5214_v7, %v5101_v19  ;;  %v5143_v19 = vpop.f32.mrf.mxu2 }
0x1b95   :  { %5264 = vmatmul.f32.gmra.mxu3 %v5050_v37 }
0x1b98   :  { %v5217_v15 = vpop.f32.mrf.mxu3 }
0x1b99   :  { %v6858_v38 = vadd.f32 %v5217_v15, %v5104_v42 }
0x1b9d   :  { %5267 = vmatmul.f32.gmra.mxu3 %v5052_v22 }
0x1ba0   :  { %v5220_v60 = vpop.f32.mrf.mxu3 }
0x1ba1   :  { %v5221_v58 = vadd.f32 %v5220_v60, %v5107_v10  ;;  %v5146_v10 = vpop.f32.mrf.mxu2 }
0x1ba5   :  { %5270 = vmatmul.f32.gmra.mxu3 %v5054_v39 }
0x1ba8   :  { %v5223_v33 = vpop.f32.mrf.mxu3 }
0x1ba9   :  { %v5224_v49 = vadd.f32 %v5223_v33, %v5110_v13  ;;  %v5149_v13 = vpop.f32.mrf.mxu2 }
0x1bad   :  { %5273 = vmatmul.f32.gmra.mxu3 %v5056_v34 }
0x1bb0   :  { %v5226_v29 = vpop.f32.mrf.mxu3 }
0x1bb1   :  { %v5227_v43 = vadd.f32 %v5226_v29, %v6854_v51  ;;  %v5152_v7 = vpop.f32.mrf.mxu2 }
0x1bb5   :  { %5276 = vmatmul.f32.gmra.mxu3 %v5058_v30 }
0x1bb8   :  { %v5229_v27 = vpop.f32.mrf.mxu3 }
0x1bb9   :  { %v5230_v21 = vadd.f32 %v5229_v27, %v5116_v24 }
0x1bbd   :  { %5279 = vmatmul.f32.gmra.mxu3 %v5060_v8 }
0x1bc0   :  { %v5232_v40 = vpop.f32.mrf.mxu3 }
0x1bc1   :  { %v5233_v23 = vadd.f32 %v5232_v40, %v5119_v25 }
0x1bc5   :  { %5282 = vmatmul.f32.gmra.mxu3 %v5062_v56 }
0x1bc8   :  { %v5235_v11 = vpop.f32.mrf.mxu3 }
0x1bc9   :  { %v5236_v14 = vadd.f32 %v5235_v11, %v5122_v54  ;;  %v5300_v11 = vld [vmem:[#allocation2 + $0x2620] sm:$0xff] }
0x1bcd   :  { %5285 = vmatmul.f32.gmra.mxu3 %v5064_v46  ;;  %v5297_v46 = vld [vmem:[#allocation2 + $0x2608] sm:$0xff] }
0x1bd0   :  { %v5238_v52 = vpop.f32.mrf.mxu3 }
0x1bd1   :  { %v5239_v2 = vadd.f32 %v5238_v52, %v5125_v35  ;;  %v5304_v52 = vld [vmem:[#allocation2 + $0x2640] sm:$0xff] }
0x1bd5   :  { %5288 = vmatmul.f32.gmra.mxu3 %v5066_v17  ;;  %v5299_v17 = vld [vmem:[#allocation2 + $0x2618] sm:$0xff] }
0x1bd8   :  { %v5241_v6 = vpop.f32.mrf.mxu3 }
0x1bd9   :  { %v5242_v4 = vadd.f32 %v5241_v6, %v5128_v53  ;;  %v5301_v6 = vld [vmem:[#allocation2 + $0x2628] sm:$0xff] }
0x1bdd   :  { %5291 = vmatmul.f32.gmra.mxu3 %v5068_v1  ;;  %v5308_v1 = vld [vmem:[#allocation2 + $0x2660] sm:$0xff] }
0x1be0   :  { %v5244_v48 = vpop.f32.mrf.mxu3 }
0x1be1   :  { %v5245_v63 = vadd.f32 %v5244_v48, %v5131_v32  ;;  %v5310_v48 = vld [vmem:[#allocation2 + $0x2670] sm:$0xff] }
0x1be3   :  { %5360 = vmatpush.msrb.mxu0 %v5245_v63  ;;  %v5305_v63 = vld [vmem:[#allocation2 + $0x2648] sm:$0xff] }
0x1be5   :  { %5361 = vmatpush.msrb.mxu0 %v5242_v4  ;;  %v5312_v4 = vld [vmem:[#allocation2 + $0x2680] sm:$0xff] }
0x1be7   :  { %5362 = vmatpush.msrb.mxu0 %v5239_v2  ;;  %v5307_v2 = vld [vmem:[#allocation2 + $0x2658] sm:$0xff] }
0x1be8   :  { %v5247_v20 = vpop.f32.mrf.mxu3 }
0x1be9   :  { %v6860_v42 = vadd.f32 %v5247_v20, %v5134_v28  ;;  %5363 = vmatpush.msrb.mxu0 %v5236_v14  ;;  %v5302_v28 = vld [vmem:[#allocation2 + $0x2630] sm:$0xff]  ;;  %v5309_v14 = vld [vmem:[#allocation2 + $0x2668] sm:$0xff]  ;;  %v5316_v20 = vld [vmem:[#allocation2 + $0x26a0] sm:$0xff] }
0x1beb   :  { %5364 = vmatpush.msrb.mxu0 %v5233_v23  ;;  %v5311_v23 = vld [vmem:[#allocation2 + $0x2678] sm:$0xff] }
0x1bed   :  { %5365 = vmatpush.msrb.mxu0 %v5230_v21  ;;  %v5313_v21 = vld [vmem:[#allocation2 + $0x2688] sm:$0xff] }
0x1bef   :  { %5366 = vmatpush.msrb.mxu0 %v5227_v43  ;;  %v5320_v43 = vld [vmem:[#allocation2 + $0x26c0] sm:$0xff] }
0x1bf0   :  { %v5250_v59 = vpop.f32.mrf.mxu3 }
0x1bf1   :  { %v6863_v36 = vadd.f32 %v5250_v59, %v5137_v55  ;;  %5367 = vmatpush.msrb.mxu0 %v5224_v49  ;;  %v5306_v55 = vld [vmem:[#allocation2 + $0x2650] sm:$0xff]  ;;  %v5315_v59 = vld [vmem:[#allocation2 + $0x2698] sm:$0xff] }
0x1bf3   :  { %5368 = vmatpush.msrb.mxu0 %v5221_v58 }
0x1bf5   :  { %5369 = vmatpush.msrb.mxu0 %v6858_v38 }
0x1bf7   :  { %5370 = vmatpush.msrb.mxu0 %v6856_v18  ;;  %v5155_v18 = vpop.f32.mrf.mxu2 }
0x1bf8   :  { %v5253_v41 = vpop.f32.mrf.mxu3 }
0x1bf9   :  { %v6867_v0 = vadd.f32 %v5253_v41, %v5140_v44  ;;  %5371 = vmatpush.msrb.mxu0 %v6852_v31  ;;  %v5303_v44 = vld [vmem:[#allocation2 + $0x2638] sm:$0xff]  ;;  %v5324_v41 = vld [vmem:[#allocation2 + $0x26e0] sm:$0xff] }
0x1bfb   :  { %5372 = vmatpush.msrb.mxu0 %v6850_v61 }
0x1bfd   :  { %5373 = vmatpush.msrb.mxu0 %v6848_v45 }
0x1bff   :  { %5374 = vmatpush.msrb.mxu0 %v6846_v16  ;;  %v5158_v38 = vpop.f32.mrf.mxu2 }
0x1c00   :  { %v5256_v57 = vpop.f32.mrf.mxu3 }
0x1c01   :  { %v5257_v3 = vadd.f32 %v5256_v57, %v5143_v19  ;;  %5375 = vmatpush.msrb.mxu0 %v6844_v62  ;;  %v5314_v19 = vld [vmem:[#allocation2 + $0x2690] sm:$0xff]  ;;  %v5321_v57 = vld [vmem:[#allocation2 + $0x26c8] sm:$0xff] }
0x1c02   :  { %5376 = vmatmul.f32.vlgmr.msrb.gmra.mxu0 %v5296_v50 }
0x1c07   :  { %v5161_v61 = vpop.f32.mrf.mxu2 }
0x1c08   :  { %v5259_v51 = vpop.f32.mrf.mxu3 }
0x1c09   :  { %v5260_v37 = vadd.f32 %v5259_v51, %v5146_v10  ;;  %v5322_v10 = vld [vmem:[#allocation2 + $0x26d0] sm:$0xff]  ;;  %v5323_v51 = vld [vmem:[#allocation2 + $0x26d8] sm:$0xff] }
0x1c0a   :  { %5379 = vmatmul.f32.gmra.mxu0 %v5298_v9 }
0x1c0f   :  { %v5164_v25 = vpop.f32.mrf.mxu2 }
0x1c10   :  { %v5262_v12 = vpop.f32.mrf.mxu3 }
0x1c11   :  { %v5263_v15 = vadd.f32 %v5262_v12, %v5149_v13  ;;  %v5326_v13 = vld [vmem:[#allocation2 + $0x26f0] sm:$0xff]  ;;  %v5325_v12 = vld [vmem:[#allocation2 + $0x26e8] sm:$0xff] }
0x1c12   :  { %5382 = vmatmul.f32.gmra.mxu0 %v5300_v11  ;;  %v5339_v11 = vld [vmem:[#allocation2 + $0x2758] sm:$0xff] }
0x1c17   :  { %v5167_v58 = vpop.f32.mrf.mxu2 }
0x1c18   :  { %v5265_v24 = vpop.f32.mrf.mxu3 }
0x1c19   :  { %v5266_v31 = vadd.f32 %v5265_v24, %v5152_v7  ;;  %v5328_v7 = vld [vmem:[#allocation2 + $0x2700] sm:$0xff] }
0x1c1a   :  { %5385 = vmatmul.f32.gmra.mxu0 %v5302_v28  ;;  %v5332_v24 = vld [vmem:[#allocation2 + $0x2720] sm:$0xff] }
0x1c1f   :  { %v5170_v62 = vpop.f32.mrf.mxu2 }
0x1c20   :  { %v5268_v22 = vpop.f32.mrf.mxu3 }
0x1c21   :  { %v5269_v5 = vadd.f32 %v5268_v22, %v5155_v18  ;;  %v5330_v18 = vld [vmem:[#allocation2 + $0x2710] sm:$0xff] }
0x1c22   :  { %5388 = vmatmul.f32.gmra.mxu0 %v5304_v52  ;;  %v5334_v22 = vld [vmem:[#allocation2 + $0x2730] sm:$0xff] }
0x1c23   :  { %v5346_v52 = vld [vmem:[#allocation2 + $0x2790] sm:$0xff] }
0x1c27   :  { %v5173_v54 = vpop.f32.mrf.mxu2 }
0x1c28   :  { %v5271_v60 = vpop.f32.mrf.mxu3 }
0x1c29   :  { %v5272_v45 = vadd.f32 %v5271_v60, %v5158_v38  ;;  %v5327_v38 = vld [vmem:[#allocation2 + $0x26f8] sm:$0xff] }
0x1c2a   :  { %5391 = vmatmul.f32.gmra.mxu0 %v5306_v55  ;;  %v5341_v55 = vld [vmem:[#allocation2 + $0x2768] sm:$0xff] }
0x1c2f   :  { %v5176_v34 = vpop.f32.mrf.mxu2 }
0x1c30   :  { %v5274_v16 = vpop.f32.mrf.mxu3 }
0x1c31   :  { %v5275_v56 = vadd.f32 %v5274_v16, %v5161_v61  ;;  %v5329_v61 = vld [vmem:[#allocation2 + $0x2708] sm:$0xff] }
0x1c32   :  { %5394 = vmatmul.f32.gmra.mxu0 %v5308_v1 }
0x1c37   :  { %v5179_v29 = vpop.f32.mrf.mxu2 }
0x1c38   :  { %v5277_v39 = vpop.f32.mrf.mxu3 }
0x1c39   :  { %v5278_v32 = vadd.f32 %v5277_v39, %v5164_v25  ;;  %v5336_v25 = vld [vmem:[#allocation2 + $0x2740] sm:$0xff] }
0x1c3a   :  { %5397 = vmatmul.f32.gmra.mxu0 %v5310_v48 }
0x1c40   :  { %v5280_v26 = vpop.f32.mrf.mxu3 }
0x1c41   :  { %v5281_v40 = vadd.f32 %v5280_v26, %v5167_v58  ;;  %v5331_v58 = vld [vmem:[#allocation2 + $0x2718] sm:$0xff] }
0x1c42   :  { %5400 = vmatmul.f32.gmra.mxu0 %v5312_v4 }
0x1c48   :  { %v5283_v33 = vpop.f32.mrf.mxu3 }
0x1c49   :  { %v5284_v8 = vadd.f32 %v5283_v33, %v5170_v62  ;;  %v5338_v62 = vld [vmem:[#allocation2 + $0x2750] sm:$0xff] }
0x1c4a   :  { %5403 = vmatmul.f32.gmra.mxu0 %v5314_v19  ;;  %v5350_v19 = vld [vmem:[#allocation2 + $0x27b0] sm:$0xff] }
0x1c50   :  { %v5286_v49 = vpop.f32.mrf.mxu3 }
0x1c51   :  { %v5287_v53 = vadd.f32 %v5286_v49, %v5173_v54  ;;  %v5333_v54 = vld [vmem:[#allocation2 + $0x2728] sm:$0xff] }
0x1c52   :  { %5406 = vmatmul.f32.gmra.mxu0 %v5316_v20  ;;  %v5345_v20 = vld [vmem:[#allocation2 + $0x2788] sm:$0xff] }
0x1c58   :  { %v5289_v47 = vpop.f32.mrf.mxu3 }
0x1c59   :  { %v5290_v27 = vadd.f32 %v5289_v47, %v5176_v34  ;;  %v5340_v47 = vld [vmem:[#allocation2 + $0x2760] sm:$0xff] }
0x1c60   :  { %v5292_v35 = vpop.f32.mrf.mxu3 }
0x1c61   :  { %v5293_v30 = vadd.f32 %v5292_v35, %v5179_v29  ;;  %v5335_v35 = vld [vmem:[#allocation2 + $0x2738] sm:$0xff] }
0x1c63   :  { %5473 = vmatpush.msrb.mxu1 %v5293_v30 }
0x1c65   :  { %5474 = vmatpush.msrb.mxu1 %v5290_v27  ;;  %v5342_v27 = vld [vmem:[#allocation2 + $0x2770] sm:$0xff] }
0x1c67   :  { %5475 = vmatpush.msrb.mxu1 %v5287_v53 }
0x1c69   :  { %5476 = vmatpush.msrb.mxu1 %v5284_v8  ;;  %v5337_v8 = vld [vmem:[#allocation2 + $0x2748] sm:$0xff] }
0x1c6b   :  { %5477 = vmatpush.msrb.mxu1 %v5281_v40 }
0x1c6d   :  { %5478 = vmatpush.msrb.mxu1 %v5278_v32  ;;  %v5344_v32 = vld [vmem:[#allocation2 + $0x2780] sm:$0xff] }
0x1c6f   :  { %5479 = vmatpush.msrb.mxu1 %v5275_v56 }
0x1c71   :  { %5480 = vmatpush.msrb.mxu1 %v5272_v45 }
0x1c73   :  { %5481 = vmatpush.msrb.mxu1 %v5269_v5 }
0x1c75   :  { %5482 = vmatpush.msrb.mxu1 %v5266_v31 }
0x1c77   :  { %5483 = vmatpush.msrb.mxu1 %v5263_v15 }
0x1c79   :  { %5484 = vmatpush.msrb.mxu1 %v5260_v37 }
0x1c7b   :  { %5485 = vmatpush.msrb.mxu1 %v5257_v3 }
0x1c7d   :  { %5486 = vmatpush.msrb.mxu1 %v6867_v0  ;;  %v5319_v0 = vld [vmem:[#allocation2 + $0x26b8] sm:$0xff] }
0x1c7f   :  { %5487 = vmatpush.msrb.mxu1 %v6863_v36  ;;  %v5317_v36 = vld [vmem:[#allocation2 + $0x26a8] sm:$0xff]  ;;  %v5377_v3 = vpop.f32.mrf.mxu0 }
0x1c81   :  { %5488 = vmatpush.msrb.mxu1 %v6860_v42  ;;  %v5318_v42 = vld [vmem:[#allocation2 + $0x26b0] sm:$0xff] }
0x1c82   :  { %5489 = vmatmul.f32.vlgmr.msrb.gmra.mxu1 %v5297_v46  ;;  %5409 = vmatmul.f32.gmra.mxu0 %v5318_v42 }
0x1c87   :  { %v5380_v37 = vpop.f32.mrf.mxu0 }
0x1c8a   :  { %5492 = vmatmul.f32.gmra.mxu1 %v5299_v17  ;;  %5412 = vmatmul.f32.gmra.mxu0 %v5320_v43 }
0x1c8f   :  { %v5383_v15 = vpop.f32.mrf.mxu0 }
0x1c92   :  { %5495 = vmatmul.f32.gmra.mxu1 %v5301_v6  ;;  %5415 = vmatmul.f32.gmra.mxu0 %v5322_v10 }
0x1c97   :  { %v5386_v31 = vpop.f32.mrf.mxu0 }
0x1c9a   :  { %5498 = vmatmul.f32.gmra.mxu1 %v5303_v44  ;;  %5418 = vmatmul.f32.gmra.mxu0 %v5324_v41  ;;  %v5348_v44 = vld [vmem:[#allocation2 + $0x27a0] sm:$0xff]  ;;  %v5354_v41 = vld [vmem:[#allocation2 + $0x27d0] sm:$0xff] }
0x1c9f   :  { %v5389_v60 = vpop.f32.mrf.mxu0 }
0x1ca2   :  { %5501 = vmatmul.f32.gmra.mxu1 %v5305_v63  ;;  %5421 = vmatmul.f32.gmra.mxu0 %v5326_v13  ;;  %v5343_v63 = vld [vmem:[#allocation2 + $0x2778] sm:$0xff]  ;;  %v5349_v13 = vld [vmem:[#allocation2 + $0x27a8] sm:$0xff] }
0x1ca7   :  { %v5392_v39 = vpop.f32.mrf.mxu0 }
0x1caa   :  { %5504 = vmatmul.f32.gmra.mxu1 %v5307_v2  ;;  %5424 = vmatmul.f32.gmra.mxu0 %v5328_v7  ;;  %v5356_v7 = vld [vmem:[#allocation2 + $0x27e0] sm:$0xff] }
0x1caf   :  { %v5395_v49 = vpop.f32.mrf.mxu0 }
0x1cb2   :  { %5507 = vmatmul.f32.gmra.mxu1 %v5309_v14  ;;  %5427 = vmatmul.f32.gmra.mxu0 %v5330_v18 }
0x1cb7   :  { %v5398_v30 = vpop.f32.mrf.mxu0 }
0x1cba   :  { %5510 = vmatmul.f32.gmra.mxu1 %v5311_v23  ;;  %5430 = vmatmul.f32.gmra.mxu0 %v5332_v24 }
0x1cbf   :  { %v5401_v9 = vpop.f32.mrf.mxu0 }
0x1cc2   :  { %5513 = vmatmul.f32.gmra.mxu1 %v5313_v21  ;;  %5433 = vmatmul.f32.gmra.mxu0 %v5334_v22  ;;  %v5352_v21 = vld [vmem:[#allocation2 + $0x27c0] sm:$0xff] }
0x1cc7   :  { %v5404_v28 = vpop.f32.mrf.mxu0 }
0x1cca   :  { %5516 = vmatmul.f32.gmra.mxu1 %v5315_v59  ;;  %5436 = vmatmul.f32.gmra.mxu0 %v5336_v25  ;;  %v5347_v59 = vld [vmem:[#allocation2 + $0x2798] sm:$0xff] }
0x1ccf   :  { %v5407_v6 = vpop.f32.mrf.mxu0 }
0x1cd2   :  { %5519 = vmatmul.f32.gmra.mxu1 %v5317_v36  ;;  %5439 = vmatmul.f32.gmra.mxu0 %v5338_v62  ;;  %v5359_v62 = vld [vmem:[#allocation2 + $0x27f8] sm:$0xff] }
0x1cda   :  { %5522 = vmatmul.f32.gmra.mxu1 %v5319_v0  ;;  %5442 = vmatmul.f32.gmra.mxu0 %v5340_v47 }
0x1ce2   :  { %5525 = vmatmul.f32.gmra.mxu1 %v5321_v57  ;;  %5445 = vmatmul.f32.gmra.mxu0 %v5342_v27 }
0x1cea   :  { %5528 = vmatmul.f32.gmra.mxu1 %v5323_v51  ;;  %5448 = vmatmul.f32.gmra.mxu0 %v5344_v32 }
0x1cf2   :  { %5531 = vmatmul.f32.gmra.mxu1 %v5325_v12  ;;  %5451 = vmatmul.f32.gmra.mxu0 %v5346_v52 }
0x1cfa   :  { %5534 = vmatmul.f32.gmra.mxu1 %v5327_v38  ;;  %5454 = vmatmul.f32.gmra.mxu0 %v5348_v44  ;;  %v5353_v38 = vld [vmem:[#allocation2 + $0x27c8] sm:$0xff] }
0x1cff   :  { %v5490_v5 = vpop.f32.mrf.mxu1  ;;  %v5410_v4 = vpop.f32.mrf.mxu0 }
0x1d00   :  { %v5491_v45 = vadd.f32 %v5490_v5, %v5377_v3 }
0x1d02   :  { %5586 = vst [vmem:[#allocation5] sm:$0xff] %v5491_v45  ;;  %5537 = vmatmul.f32.gmra.mxu1 %v5329_v61  ;;  %5457 = vmatmul.f32.gmra.mxu0 %v5350_v19  ;;  %v5355_v61 = vld [vmem:[#allocation2 + $0x27d8] sm:$0xff] }
0x1d07   :  { %v5493_v16 = vpop.f32.mrf.mxu1  ;;  %v5413_v23 = vpop.f32.mrf.mxu0 }
0x1d08   :  { %v5494_v26 = vadd.f32 %v5493_v16, %v5380_v37  ;;  %v5351_v37 = vld [vmem:[#allocation2 + $0x27b8] sm:$0xff]  ;;  %v5357_v16 = vld [vmem:[#allocation2 + $0x27e8] sm:$0xff] }
0x1d0a   :  { %5587 = vst [vmem:[#allocation5 + $0x8] sm:$0xff] %v5494_v26  ;;  %5540 = vmatmul.f32.gmra.mxu1 %v5331_v58  ;;  %5460 = vmatmul.f32.gmra.mxu0 %v5352_v21 }
0x1d0f   :  { %v5496_v33 = vpop.f32.mrf.mxu1  ;;  %v5416_v10 = vpop.f32.mrf.mxu0 }
0x1d10   :  { %v5497_v34 = vadd.f32 %v5496_v33, %v5383_v15  ;;  %v5358_v15 = vld [vmem:[#allocation2 + $0x27f0] sm:$0xff] }
0x1d12   :  { %5588 = vst [vmem:[#allocation5 + $0x10] sm:$0xff] %v5497_v34  ;;  %5543 = vmatmul.f32.gmra.mxu1 %v5333_v54  ;;  %5463 = vmatmul.f32.gmra.mxu0 %v5354_v41 }
0x1d17   :  { %v5499_v29 = vpop.f32.mrf.mxu1  ;;  %v5419_v57 = vpop.f32.mrf.mxu0 }
0x1d18   :  { %v5500_v50 = vadd.f32 %v5499_v29, %v5386_v31 }
0x1d1a   :  { %5589 = vst [vmem:[#allocation5 + $0x18] sm:$0xff] %v5500_v50  ;;  %5546 = vmatmul.f32.gmra.mxu1 %v5335_v35  ;;  %5466 = vmatmul.f32.gmra.mxu0 %v5356_v7 }
0x1d1f   :  { %v5502_v53 = vpop.f32.mrf.mxu1  ;;  %v5422_v18 = vpop.f32.mrf.mxu0 }
0x1d20   :  { %v5503_v40 = vadd.f32 %v5502_v53, %v5389_v60 }
0x1d22   :  { %5590 = vst [vmem:[#allocation5 + $0x20] sm:$0xff] %v5503_v40  ;;  %5549 = vmatmul.f32.gmra.mxu1 %v5337_v8  ;;  %5469 = vmatmul.f32.gmra.mxu0 %v5358_v15 }
0x1d27   :  { %v5505_v56 = vpop.f32.mrf.mxu1  ;;  %v5425_v31 = vpop.f32.mrf.mxu0 }
0x1d28   :  { %v5506_v46 = vadd.f32 %v5505_v56, %v5392_v39 }
0x1d2a   :  { %5591 = vst [vmem:[#allocation5 + $0x28] sm:$0xff] %v5506_v46  ;;  %5552 = vmatmul.f32.gmra.mxu1 %v5339_v11 }
0x1d2f   :  { %v5508_v17 = vpop.f32.mrf.mxu1  ;;  %v5428_v45 = vpop.f32.mrf.mxu0 }
0x1d30   :  { %v5509_v1 = vadd.f32 %v5508_v17, %v5395_v49 }
0x1d32   :  { %5592 = vst [vmem:[#allocation5 + $0x30] sm:$0xff] %v5509_v1  ;;  %5555 = vmatmul.f32.gmra.mxu1 %v5341_v55 }
0x1d37   :  { %v5511_v48 = vpop.f32.mrf.mxu1  ;;  %v5431_v39 = vpop.f32.mrf.mxu0 }
0x1d38   :  { %v5512_v2 = vadd.f32 %v5511_v48, %v5398_v30 }
0x1d3a   :  { %5593 = vst [vmem:[#allocation5 + $0x38] sm:$0xff] %v5512_v2  ;;  %5558 = vmatmul.f32.gmra.mxu1 %v5343_v63 }
0x1d3f   :  { %v5514_v14 = vpop.f32.mrf.mxu1  ;;  %v5434_v54 = vpop.f32.mrf.mxu0 }
0x1d40   :  { %v5515_v42 = vadd.f32 %v5514_v14, %v5401_v9 }
0x1d42   :  { %5594 = vst [vmem:[#allocation5 + $0x40] sm:$0xff] %v5515_v42  ;;  %5561 = vmatmul.f32.gmra.mxu1 %v5345_v20 }
0x1d47   :  { %v5517_v43 = vpop.f32.mrf.mxu1  ;;  %v5437_v29 = vpop.f32.mrf.mxu0 }
0x1d48   :  { %v5518_v36 = vadd.f32 %v5517_v43, %v5404_v28 }
0x1d4a   :  { %5595 = vst [vmem:[#allocation5 + $0x48] sm:$0xff] %v5518_v36  ;;  %5564 = vmatmul.f32.gmra.mxu1 %v5347_v59 }
0x1d4f   :  { %v5520_v0 = vpop.f32.mrf.mxu1  ;;  %v5440_v27 = vpop.f32.mrf.mxu0 }
0x1d50   :  { %v5521_v3 = vadd.f32 %v5520_v0, %v5407_v6 }
0x1d52   :  { %5596 = vst [vmem:[#allocation5 + $0x50] sm:$0xff] %v5521_v3  ;;  %5567 = vmatmul.f32.gmra.mxu1 %v5349_v13 }
0x1d57   :  { %v5523_v51 = vpop.f32.mrf.mxu1  ;;  %v5443_v9 = vpop.f32.mrf.mxu0 }
0x1d58   :  { %v5524_v12 = vadd.f32 %v5523_v51, %v5410_v4 }
0x1d5a   :  { %5597 = vst [vmem:[#allocation5 + $0x58] sm:$0xff] %v5524_v12  ;;  %5570 = vmatmul.f32.gmra.mxu1 %v5351_v37 }
0x1d5f   :  { %v5526_v24 = vpop.f32.mrf.mxu1  ;;  %v5446_v56 = vpop.f32.mrf.mxu0 }
0x1d60   :  { %v5527_v22 = vadd.f32 %v5526_v24, %v5413_v23 }
0x1d62   :  { %5598 = vst [vmem:[#allocation5 + $0x60] sm:$0xff] %v5527_v22  ;;  %5573 = vmatmul.f32.gmra.mxu1 %v5353_v38 }
0x1d67   :  { %v5529_v5 = vpop.f32.mrf.mxu1  ;;  %v5449_v52 = vpop.f32.mrf.mxu0 }
0x1d68   :  { %v5530_v60 = vadd.f32 %v5529_v5, %v5416_v10 }
0x1d6a   :  { %5599 = vst [vmem:[#allocation5 + $0x68] sm:$0xff] %v5530_v60  ;;  %5576 = vmatmul.f32.gmra.mxu1 %v5355_v61 }
0x1d6f   :  { %v5532_v25 = vpop.f32.mrf.mxu1  ;;  %v5452_v1 = vpop.f32.mrf.mxu0 }
0x1d70   :  { %v5533_v58 = vadd.f32 %v5532_v25, %v5419_v57 }
0x1d72   :  { %5600 = vst [vmem:[#allocation5 + $0x70] sm:$0xff] %v5533_v58  ;;  %5579 = vmatmul.f32.gmra.mxu1 %v5357_v16 }
0x1d77   :  { %v5535_v26 = vpop.f32.mrf.mxu1  ;;  %v5455_v63 = vpop.f32.mrf.mxu0 }
0x1d78   :  { %v5536_v33 = vadd.f32 %v5535_v26, %v5422_v18 }
0x1d7a   :  { %5601 = vst [vmem:[#allocation5 + $0x78] sm:$0xff] %v5536_v33  ;;  %5582 = vmatmul.f32.gmra.mxu1 %v5359_v62 }
0x1d7f   :  { %v5538_v49 = vpop.f32.mrf.mxu1  ;;  %v5458_v19 = vpop.f32.mrf.mxu0 }
0x1d80   :  { %v5539_v34 = vadd.f32 %v5538_v49, %v5425_v31 }
0x1d82   :  { %5602 = vst [vmem:[#allocation5 + $0x80] sm:$0xff] %v5539_v34 }
0x1d87   :  { %v5541_v47 = vpop.f32.mrf.mxu1  ;;  %v5461_v42 = vpop.f32.mrf.mxu0 }
0x1d88   :  { %v5542_v35 = vadd.f32 %v5541_v47, %v5428_v45 }
0x1d8a   :  { %5603 = vst [vmem:[#allocation5 + $0x88] sm:$0xff] %v5542_v35 }
0x1d8f   :  { %v5544_v30 = vpop.f32.mrf.mxu1  ;;  %v5464_v10 = vpop.f32.mrf.mxu0 }
0x1d90   :  { %v5545_v50 = vadd.f32 %v5544_v30, %v5431_v39 }
0x1d92   :  { %5604 = vst [vmem:[#allocation5 + $0x90] sm:$0xff] %v5545_v50 }
0x1d97   :  { %v5547_v53 = vpop.f32.mrf.mxu1  ;;  %v5467_v0 = vpop.f32.mrf.mxu0 }
0x1d98   :  { %v5548_v8 = vadd.f32 %v5547_v53, %v5434_v54 }
0x1d9a   :  { %5605 = vst [vmem:[#allocation5 + $0x98] sm:$0xff] %v5548_v8 }
0x1d9f   :  { %v5550_v40 = vpop.f32.mrf.mxu1  ;;  %v5470_v3 = vpop.f32.mrf.mxu0 }
0x1da0   :  { %v5551_v32 = vadd.f32 %v5550_v40, %v5437_v29 }
0x1da2   :  { %5606 = vst [vmem:[#allocation5 + $0xa0] sm:$0xff] %v5551_v32 }
0x1da7   :  { %v5553_v11 = vpop.f32.mrf.mxu1 }
0x1da8   :  { %v5554_v28 = vadd.f32 %v5553_v11, %v5440_v27 }
0x1daa   :  { %5607 = vst [vmem:[#allocation5 + $0xa8] sm:$0xff] %v5554_v28 }
0x1daf   :  { %v5556_v46 = vpop.f32.mrf.mxu1 }
0x1db0   :  { %v5557_v17 = vadd.f32 %v5556_v46, %v5443_v9 }
0x1db2   :  { %5608 = vst [vmem:[#allocation5 + $0xb0] sm:$0xff] %v5557_v17 }
0x1db7   :  { %v5559_v55 = vpop.f32.mrf.mxu1 }
0x1db8   :  { %v5560_v6 = vadd.f32 %v5559_v55, %v5446_v56 }
0x1dba   :  { %5609 = vst [vmem:[#allocation5 + $0xb8] sm:$0xff] %v5560_v6 }
0x1dbf   :  { %v5562_v44 = vpop.f32.mrf.mxu1 }
0x1dc0   :  { %v5563_v48 = vadd.f32 %v5562_v44, %v5449_v52 }
0x1dc2   :  { %5610 = vst [vmem:[#allocation5 + $0xc0] sm:$0xff] %v5563_v48 }
0x1dc7   :  { %v5565_v4 = vpop.f32.mrf.mxu1 }
0x1dc8   :  { %v5566_v2 = vadd.f32 %v5565_v4, %v5452_v1 }
0x1dca   :  { %5611 = vst [vmem:[#allocation5 + $0xc8] sm:$0xff] %v5566_v2 }
0x1dcf   :  { %v5568_v14 = vpop.f32.mrf.mxu1 }
0x1dd0   :  { %v5569_v20 = vadd.f32 %v5568_v14, %v5455_v63 }
0x1dd2   :  { %5612 = vst [vmem:[#allocation5 + $0xd0] sm:$0xff] %v5569_v20 }
0x1dd7   :  { %v5571_v23 = vpop.f32.mrf.mxu1 }
0x1dd8   :  { %v5572_v21 = vadd.f32 %v5571_v23, %v5458_v19 }
0x1dda   :  { %5613 = vst [vmem:[#allocation5 + $0xd8] sm:$0xff] %v5572_v21 }
0x1ddf   :  { %v5574_v43 = vpop.f32.mrf.mxu1 }
0x1de0   :  { %v5575_v59 = vadd.f32 %v5574_v43, %v5461_v42 }
0x1de2   :  { %5614 = vst [vmem:[#allocation5 + $0xe0] sm:$0xff] %v5575_v59 }
0x1de7   :  { %v5577_v36 = vpop.f32.mrf.mxu1 }
0x1de8   :  { %v5578_v41 = vadd.f32 %v5577_v36, %v5464_v10 }
0x1dea   :  { %5615 = vst [vmem:[#allocation5 + $0xe8] sm:$0xff] %v5578_v41 }
0x1def   :  { %v5580_v13 = vpop.f32.mrf.mxu1 }
0x1df0   :  { %v5581_v57 = vadd.f32 %v5580_v13, %v5467_v0 }
0x1df2   :  { %5616 = vst [vmem:[#allocation5 + $0xf0] sm:$0xff] %v5581_v57 }
0x1df7   :  { %v5583_v7 = vpop.f32.mrf.mxu1 }
0x1df8   :  { %v5584_v51 = vadd.f32 %v5583_v7, %v5470_v3 }
0x1dfa   :  { %5617 = vst [vmem:[#allocation5 + $0xf8] sm:$0xff] %v5584_v51 }
0x1dfb   :  { %5630 = dma.vmem_to_hbm [thread:$0]  %s5623_s13, 4096, %s5625_s16, [#allocation4], %s5731_s17, %s5731_s17, %s5732_s18  }
0x1dfc   :  { %5725 = dma.done.wait [#allocation4], 4096  }
0x1dfd   :  { %5726 = vsyncadd [#allocation4], 4294963200 }
0x1dfe   :  { %5635 = vsyncpa [#allocation3], 1 }
0x1dff   :  { %5636 = vsyncpa [#allocation4], 1 }

</bundles_post_ra>
